<compile_context>
chip_gen: v6e
topology: v6e:2x2x1
jax: 0.10.0
libtpu: 0.0.40
codegen_flags: <defaults>
</compile_context>

<pallas_src>
import functools

import jax
import jax.numpy as jnp
from jax.experimental import pallas as pl
from jax.experimental.pallas import tpu as pltpu  # noqa: F401  (TPU tuning hooks)


# ------------------------------ small helpers --------------------------------
def _round_up(x, m):
    return ((x + m - 1) // m) * m


def _pad_gate_cols(w, H, H_p):
    """(..., 4H) -> (..., 4H_p): each i/f/g/o block zero-padded to H_p lanes."""
    if H == H_p:
        return w
    pads = [(0, 0)] * (w.ndim - 1) + [(0, H_p - H)]
    return jnp.concatenate(
        [jnp.pad(w[..., k * H:(k + 1) * H], pads) for k in range(4)], axis=-1)


def _pad_rows(w, R, R_p):
    if R == R_p:
        return w
    return jnp.pad(w, ((0, R_p - R), (0, 0)))


def _pad_cols(w, C, C_p):
    if C == C_p:
        return w
    pads = [(0, 0)] * (w.ndim - 1) + [(0, C_p - C)]
    return jnp.pad(w, pads)


# --------------------- one-time weight padding (hoisted) ----------------------
def prepare_weights(params, hidden_dim, num_layers, lane=128):
    """Called ONCE at init time; NOT on the per-forward path."""
    H = hidden_dim
    H_p = _round_up(H, lane)
    O = params["fc_w_t"].shape[1]
    O_p = _round_up(O, lane)

    p0 = params["l0"]
    wih0 = _pad_gate_cols(p0["wih_t"], H, H_p)                          # (D, 4H_p)
    whh0 = _pad_gate_cols(_pad_rows(p0["whh_t"], H, H_p), H, H_p)       # (H_p, 4H_p)
    b0 = _pad_gate_cols(p0["b"], H, H_p)                                # (1, 4H_p)

    upper = []
    for l in range(1, num_layers):
        p = params[f"l{l}"]
        upper.append(_pad_gate_cols(_pad_rows(p["wih_t"], H, H_p), H, H_p))  # (H_p, 4H_p)
        upper.append(_pad_gate_cols(_pad_rows(p["whh_t"], H, H_p), H, H_p))  # (H_p, 4H_p)
        upper.append(_pad_gate_cols(p["b"], H, H_p))                         # (1, 4H_p)

    fcw = _pad_cols(_pad_rows(params["fc_w_t"], H, H_p), O, O_p)        # (H_p, O_p)
    fcb = _pad_cols(params["fc_b"], O, O_p)                             # (1, O_p)

    return tuple([wih0, whh0, b0] + upper + [fcw, fcb])


# ------------------------------ fused kernel ---------------------------------
def make_fused_kernel(T, B_p, H_p, num_layers):
    """Whole-model kernel: LSTM stack (recurrence in-register) + FC head."""

    def kernel(*refs):
        x_ref = refs[0]                                      # (T*B_p, D)
        wih0_ref, whh0_ref, b0_ref = refs[1], refs[2], refs[3]
        upper_refs = refs[4:4 + 3 * (num_layers - 1)]        # (wih, whh, b) per layer
        fcw_ref = refs[4 + 3 * (num_layers - 1)]
        fcb_ref = refs[5 + 3 * (num_layers - 1)]
        out_ref = refs[-1]                                   # (B_p, O_p)

        # Hoisted layer-0 input projection + bias: one MXU matmul for all T steps.
        gx0 = jnp.dot(x_ref[...], wih0_ref[...],
                      preferred_element_type=jnp.float32) + b0_ref[...]  # (T*B_p, 4H_p)

        whh0 = whh0_ref[...]
        wih_up = [upper_refs[3 * l][...] for l in range(num_layers - 1)]
        whh_up = [upper_refs[3 * l + 1][...] for l in range(num_layers - 1)]
        # Bias broadcast hoisted out of the time loop (one per upper layer).
        b_up = [jnp.broadcast_to(upper_refs[3 * l + 2][...], (B_p, 4 * H_p))
                for l in range(num_layers - 1)]

        def _sig(v):
            # sigmoid as a single EUP tanh push (no exp + divide).
            return 0.5 * jnp.tanh(0.5 * v) + 0.5

        def gate_step(pre, c):
            # All slices are 128-lane aligned (H_p = 128): pure VPU/EUP work.
            i = _sig(pre[:, 0 * H_p:1 * H_p])
            f = _sig(pre[:, 1 * H_p:2 * H_p])
            g = jnp.tanh(pre[:, 2 * H_p:3 * H_p])
            o = _sig(pre[:, 3 * H_p:4 * H_p])
            c_new = f * c + i * g
            h_new = o * jnp.tanh(c_new)
            return h_new, c_new

        zeros = jnp.zeros((B_p, H_p), jnp.float32)
        h = [zeros] * num_layers
        c = [zeros] * num_layers

        # T is small & static: fully unrolled so adjacent steps can interleave.
        for t in range(T):
            # Layer 0: only the recurrent matmul remains on the serial path.
            pre0 = gx0[t * B_p:(t + 1) * B_p, :] + jnp.dot(
                h[0], whh0, preferred_element_type=jnp.float32)
            h[0], c[0] = gate_step(pre0, c[0])

            # Upper layers: two independent dots (no concat, no false dep) —
            # h[l] @ W_hh depends only on step t-1 state, so it can issue while
            # layer l-1's gate nonlinearities are still in flight.
            for l in range(1, num_layers):
                pre = (jnp.dot(h[l], whh_up[l - 1], preferred_element_type=jnp.float32)
                       + jnp.dot(h[l - 1], wih_up[l - 1], preferred_element_type=jnp.float32)
                       + b_up[l - 1])
                h[l], c[l] = gate_step(pre, c[l])

        # FC head on the final hidden state of the top layer (lane-dense O_p=128).
        out_ref[...] = (jnp.dot(h[num_layers - 1], fcw_ref[...],
                                preferred_element_type=jnp.float32) + fcb_ref[...])

    return kernel


# ------------------------------ model wrapper --------------------------------
@functools.partial(jax.jit,
                   static_argnames=("hidden_dim", "num_layers", "output_dim"))
def lstm_model_forward(x_btd, weights, hidden_dim, num_layers, output_dim):
    """x_btd: (B, T, input_dim) batch-first, like the PyTorch module.
    `weights` is the pre-padded tuple from prepare_weights (hoisted)."""
    B, T, D = x_btd.shape
    H_p = _round_up(hidden_dim, 128)          # 64 -> 128: lane-aligned gate blocks
    B_p = _round_up(B, 8)                     # 2  -> 8:   full f32 sublane rows
    O_p = _round_up(output_dim, 128)          # lane-dense output store

    # Only x prep remains on the per-call path (input-dependent): time-major,
    # batch padded, flattened for the hoisted input projection.
    x_tbd = jnp.transpose(x_btd, (1, 0, 2))                  # (T, B, D)
    x_pad = jnp.pad(x_tbd, ((0, 0), (0, B_p - B), (0, 0)))   # (T, B_p, D)
    x_flat = x_pad.reshape(T * B_p, D)                       # (T*B_p, D)

    # Whole model in one pallas_call; all operands fit in VMEM (< 1 MiB, fine
    # even under the v7x 64 MiB budget): full-array blocks, no grid.
    out_padded = pl.pallas_call(
        make_fused_kernel(T, B_p, H_p, num_layers),
        out_shape=jax.ShapeDtypeStruct((B_p, O_p), jnp.float32),
    )(x_flat, *weights)
    return out_padded[:B, :output_dim]


def init_params(key, input_dim, hidden_dim, output_dim, num_layers):
    params = {}
    scale = 1.0 / float(hidden_dim) ** 0.5
    in_d = input_dim
    k = key
    for layer in range(num_layers):
        k, k1, k2, k3, k4 = jax.random.split(k, 5)
        wih = jax.random.uniform(k1, (4 * hidden_dim, in_d), jnp.float32, -scale, scale)
        whh = jax.random.uniform(k2, (4 * hidden_dim, hidden_dim), jnp.float32, -scale, scale)
        bih = jax.random.uniform(k3, (4 * hidden_dim,), jnp.float32, -scale, scale)
        bhh = jax.random.uniform(k4, (4 * hidden_dim,), jnp.float32, -scale, scale)
        params[f"l{layer}"] = {
            "wih_t": wih.T,                          # (in_d, 4H)
            "whh_t": whh.T,                          # (H, 4H)
            "b": (bih + bhh)[None, :],               # (1, 4H)
        }
        in_d = hidden_dim
    k, k1, k2 = jax.random.split(k, 3)
    fc_w = jax.random.uniform(k1, (output_dim, hidden_dim), jnp.float32, -scale, scale)
    fc_b = jax.random.uniform(k2, (output_dim,), jnp.float32, -scale, scale)
    params["fc_w_t"] = fc_w.T                        # (H, O)
    params["fc_b"] = fc_b[None, :]                   # (1, O)
    return params


# ------------------------------ pure-JAX reference ---------------------------
def reference_forward(x_btd, params, hidden_dim, num_layers):
    B, T, _ = x_btd.shape
    h_seq = x_btd
    for layer in range(num_layers):
        p = params[f"l{layer}"]
        h = jnp.zeros((B, hidden_dim), jnp.float32)
        c = jnp.zeros((B, hidden_dim), jnp.float32)
        outs = []
        for t in range(T):
            gates = h_seq[:, t, :] @ p["wih_t"] + h @ p["whh_t"] + p["b"]
            i = jax.nn.sigmoid(gates[:, :hidden_dim])
            f = jax.nn.sigmoid(gates[:, hidden_dim:2 * hidden_dim])
            g = jnp.tanh(gates[:, 2 * hidden_dim:3 * hidden_dim])
            o = jax.nn.sigmoid(gates[:, 3 * hidden_dim:])
            c = f * c + i * g
            h = o * jnp.tanh(c)
            outs.append(h)
        h_seq = jnp.stack(outs, axis=1)
    return h_seq[:, -1, :] @ params["fc_w_t"] + params["fc_b"]


if __name__ == "__main__":
    B, T = 2, 8
    INPUT_DIM, HIDDEN_DIM, OUTPUT_DIM, NUM_LAYERS = 16, 64, 8, 2  # hidden=64 (hardcoded in torch forward)

    key = jax.random.PRNGKey(0)
    kx, kp = jax.random.split(key)
    x = jax.random.normal(kx, (B, T, INPUT_DIM), jnp.float32)
    params = init_params(kp, INPUT_DIM, HIDDEN_DIM, OUTPUT_DIM, NUM_LAYERS)

    # Hoisted once (init time) — NOT on the per-forward path.
    weights = prepare_weights(params, HIDDEN_DIM, NUM_LAYERS)

    out = lstm_model_forward(x, weights, hidden_dim=HIDDEN_DIM,
                             num_layers=NUM_LAYERS, output_dim=OUTPUT_DIM)
    out = jax.block_until_ready(out)

    ref = reference_forward(x, params, HIDDEN_DIM, NUM_LAYERS)
    assert out.shape == (B, OUTPUT_DIM)
    assert jnp.allclose(out, ref, atol=1e-5, rtol=1e-5), "mismatch vs reference"

    print("KERNEL_OK")
</pallas_src>

<mosaic_0001>
module attributes {stable_mosaic.version = 11 : i64} {
  func.func @kernel(%arg0: memref<64x16xf32, #tpu.memory_space<vmem>>, %arg1: memref<16x512xf32, #tpu.memory_space<vmem>>, %arg2: memref<128x512xf32, #tpu.memory_space<vmem>>, %arg3: memref<1x512xf32, #tpu.memory_space<vmem>>, %arg4: memref<128x512xf32, #tpu.memory_space<vmem>>, %arg5: memref<128x512xf32, #tpu.memory_space<vmem>>, %arg6: memref<1x512xf32, #tpu.memory_space<vmem>>, %arg7: memref<128x128xf32, #tpu.memory_space<vmem>>, %arg8: memref<1x128xf32, #tpu.memory_space<vmem>>, %arg9: memref<8x128xf32, #tpu.memory_space<vmem>>) attributes {dimension_semantics = [], scalar_prefetch = 0 : i64, scratch_operands = 0 : i64, tpu.core_type = #tpu.core_type<tc>} {
    %c0 = arith.constant 0 : index
    %c0_0 = arith.constant 0 : index
    %0 = vector.load %arg0[%c0, %c0_0] : memref<64x16xf32, #tpu.memory_space<vmem>>, vector<64x16xf32>
    %c0_1 = arith.constant 0 : index
    %c0_2 = arith.constant 0 : index
    %1 = vector.load %arg1[%c0_1, %c0_2] : memref<16x512xf32, #tpu.memory_space<vmem>>, vector<16x512xf32>
    %cst = arith.constant dense<0.000000e+00> : vector<64x512xf32>
    %2 = tpu.matmul %0, %1, %cst {dimension_numbers = #tpu.dot_dimension_numbers<[1], [0], [0], [1], [0, 0, 1, 1], [], []>} : vector<64x16xf32>, vector<16x512xf32>, vector<64x512xf32> -> vector<64x512xf32>
    %c0_3 = arith.constant 0 : index
    %c0_4 = arith.constant 0 : index
    %3 = vector.load %arg3[%c0_3, %c0_4] : memref<1x512xf32, #tpu.memory_space<vmem>>, vector<1x512xf32>
    %4 = vector.broadcast %3 : vector<1x512xf32> to vector<64x512xf32>
    %5 = arith.addf %2, %4 : vector<64x512xf32>
    %c0_5 = arith.constant 0 : index
    %c0_6 = arith.constant 0 : index
    %6 = vector.load %arg2[%c0_5, %c0_6] : memref<128x512xf32, #tpu.memory_space<vmem>>, vector<128x512xf32>
    %c0_7 = arith.constant 0 : index
    %c0_8 = arith.constant 0 : index
    %7 = vector.load %arg4[%c0_7, %c0_8] : memref<128x512xf32, #tpu.memory_space<vmem>>, vector<128x512xf32>
    %c0_9 = arith.constant 0 : index
    %c0_10 = arith.constant 0 : index
    %8 = vector.load %arg5[%c0_9, %c0_10] : memref<128x512xf32, #tpu.memory_space<vmem>>, vector<128x512xf32>
    %c0_11 = arith.constant 0 : index
    %c0_12 = arith.constant 0 : index
    %9 = vector.load %arg6[%c0_11, %c0_12] : memref<1x512xf32, #tpu.memory_space<vmem>>, vector<1x512xf32>
    %10 = vector.shape_cast %9 : vector<1x512xf32> to vector<1x512xf32>
    %11 = vector.broadcast %10 : vector<1x512xf32> to vector<8x512xf32>
    %cst_13 = arith.constant 0.000000e+00 : f32
    %12 = vector.broadcast %cst_13 : f32 to vector<8x128xf32>
    %13 = vector.extract_strided_slice %5 {offsets = [0, 0], sizes = [8, 512], strides = [1, 1]} : vector<64x512xf32> to vector<8x512xf32>
    %cst_14 = arith.constant dense<0.000000e+00> : vector<8x512xf32>
    %14 = tpu.matmul %12, %6, %cst_14 {dimension_numbers = #tpu.dot_dimension_numbers<[1], [0], [0], [1], [0, 0, 1, 1], [], []>} : vector<8x128xf32>, vector<128x512xf32>, vector<8x512xf32> -> vector<8x512xf32>
    %15 = arith.addf %13, %14 : vector<8x512xf32>
    %16 = vector.extract_strided_slice %15 {offsets = [0, 0], sizes = [8, 128], strides = [1, 1]} : vector<8x512xf32> to vector<8x128xf32>
    %cst_15 = arith.constant 5.000000e-01 : f32
    %17 = vector.broadcast %cst_15 : f32 to vector<8x128xf32>
    %18 = arith.mulf %17, %16 : vector<8x128xf32>
    %19 = math.tanh %18 : vector<8x128xf32>
    %cst_16 = arith.constant 5.000000e-01 : f32
    %20 = vector.broadcast %cst_16 : f32 to vector<8x128xf32>
    %21 = arith.mulf %20, %19 : vector<8x128xf32>
    %cst_17 = arith.constant 5.000000e-01 : f32
    %22 = vector.broadcast %cst_17 : f32 to vector<8x128xf32>
    %23 = arith.addf %21, %22 : vector<8x128xf32>
    %24 = vector.extract_strided_slice %15 {offsets = [0, 128], sizes = [8, 128], strides = [1, 1]} : vector<8x512xf32> to vector<8x128xf32>
    %cst_18 = arith.constant 5.000000e-01 : f32
    %25 = vector.broadcast %cst_18 : f32 to vector<8x128xf32>
    %26 = arith.mulf %25, %24 : vector<8x128xf32>
    %27 = math.tanh %26 : vector<8x128xf32>
    %cst_19 = arith.constant 5.000000e-01 : f32
    %28 = vector.broadcast %cst_19 : f32 to vector<8x128xf32>
    %29 = arith.mulf %28, %27 : vector<8x128xf32>
    %cst_20 = arith.constant 5.000000e-01 : f32
    %30 = vector.broadcast %cst_20 : f32 to vector<8x128xf32>
    %31 = arith.addf %29, %30 : vector<8x128xf32>
    %32 = vector.extract_strided_slice %15 {offsets = [0, 256], sizes = [8, 128], strides = [1, 1]} : vector<8x512xf32> to vector<8x128xf32>
    %33 = math.tanh %32 : vector<8x128xf32>
    %34 = vector.extract_strided_slice %15 {offsets = [0, 384], sizes = [8, 128], strides = [1, 1]} : vector<8x512xf32> to vector<8x128xf32>
    %cst_21 = arith.constant 5.000000e-01 : f32
    %35 = vector.broadcast %cst_21 : f32 to vector<8x128xf32>
    %36 = arith.mulf %35, %34 : vector<8x128xf32>
    %37 = math.tanh %36 : vector<8x128xf32>
    %cst_22 = arith.constant 5.000000e-01 : f32
    %38 = vector.broadcast %cst_22 : f32 to vector<8x128xf32>
    %39 = arith.mulf %38, %37 : vector<8x128xf32>
    %cst_23 = arith.constant 5.000000e-01 : f32
    %40 = vector.broadcast %cst_23 : f32 to vector<8x128xf32>
    %41 = arith.addf %39, %40 : vector<8x128xf32>
    %42 = arith.mulf %31, %12 : vector<8x128xf32>
    %43 = arith.mulf %23, %33 : vector<8x128xf32>
    %44 = arith.addf %42, %43 : vector<8x128xf32>
    %45 = math.tanh %44 : vector<8x128xf32>
    %46 = arith.mulf %41, %45 : vector<8x128xf32>
    %cst_24 = arith.constant dense<0.000000e+00> : vector<8x512xf32>
    %47 = tpu.matmul %12, %8, %cst_24 {dimension_numbers = #tpu.dot_dimension_numbers<[1], [0], [0], [1], [0, 0, 1, 1], [], []>} : vector<8x128xf32>, vector<128x512xf32>, vector<8x512xf32> -> vector<8x512xf32>
    %cst_25 = arith.constant dense<0.000000e+00> : vector<8x512xf32>
    %48 = tpu.matmul %46, %7, %cst_25 {dimension_numbers = #tpu.dot_dimension_numbers<[1], [0], [0], [1], [0, 0, 1, 1], [], []>} : vector<8x128xf32>, vector<128x512xf32>, vector<8x512xf32> -> vector<8x512xf32>
    %49 = arith.addf %47, %48 : vector<8x512xf32>
    %50 = arith.addf %49, %11 : vector<8x512xf32>
    %51 = vector.extract_strided_slice %50 {offsets = [0, 0], sizes = [8, 128], strides = [1, 1]} : vector<8x512xf32> to vector<8x128xf32>
    %cst_26 = arith.constant 5.000000e-01 : f32
    %52 = vector.broadcast %cst_26 : f32 to vector<8x128xf32>
    %53 = arith.mulf %52, %51 : vector<8x128xf32>
    %54 = math.tanh %53 : vector<8x128xf32>
    %cst_27 = arith.constant 5.000000e-01 : f32
    %55 = vector.broadcast %cst_27 : f32 to vector<8x128xf32>
    %56 = arith.mulf %55, %54 : vector<8x128xf32>
    %cst_28 = arith.constant 5.000000e-01 : f32
    %57 = vector.broadcast %cst_28 : f32 to vector<8x128xf32>
    %58 = arith.addf %56, %57 : vector<8x128xf32>
    %59 = vector.extract_strided_slice %50 {offsets = [0, 128], sizes = [8, 128], strides = [1, 1]} : vector<8x512xf32> to vector<8x128xf32>
    %cst_29 = arith.constant 5.000000e-01 : f32
    %60 = vector.broadcast %cst_29 : f32 to vector<8x128xf32>
    %61 = arith.mulf %60, %59 : vector<8x128xf32>
    %62 = math.tanh %61 : vector<8x128xf32>
    %cst_30 = arith.constant 5.000000e-01 : f32
    %63 = vector.broadcast %cst_30 : f32 to vector<8x128xf32>
    %64 = arith.mulf %63, %62 : vector<8x128xf32>
    %cst_31 = arith.constant 5.000000e-01 : f32
    %65 = vector.broadcast %cst_31 : f32 to vector<8x128xf32>
    %66 = arith.addf %64, %65 : vector<8x128xf32>
    %67 = vector.extract_strided_slice %50 {offsets = [0, 256], sizes = [8, 128], strides = [1, 1]} : vector<8x512xf32> to vector<8x128xf32>
    %68 = math.tanh %67 : vector<8x128xf32>
    %69 = vector.extract_strided_slice %50 {offsets = [0, 384], sizes = [8, 128], strides = [1, 1]} : vector<8x512xf32> to vector<8x128xf32>
    %cst_32 = arith.constant 5.000000e-01 : f32
    %70 = vector.broadcast %cst_32 : f32 to vector<8x128xf32>
    %71 = arith.mulf %70, %69 : vector<8x128xf32>
    %72 = math.tanh %71 : vector<8x128xf32>
    %cst_33 = arith.constant 5.000000e-01 : f32
    %73 = vector.broadcast %cst_33 : f32 to vector<8x128xf32>
    %74 = arith.mulf %73, %72 : vector<8x128xf32>
    %cst_34 = arith.constant 5.000000e-01 : f32
    %75 = vector.broadcast %cst_34 : f32 to vector<8x128xf32>
    %76 = arith.addf %74, %75 : vector<8x128xf32>
    %77 = arith.mulf %66, %12 : vector<8x128xf32>
    %78 = arith.mulf %58, %68 : vector<8x128xf32>
    %79 = arith.addf %77, %78 : vector<8x128xf32>
    %80 = math.tanh %79 : vector<8x128xf32>
    %81 = arith.mulf %76, %80 : vector<8x128xf32>
    %82 = vector.extract_strided_slice %5 {offsets = [8, 0], sizes = [8, 512], strides = [1, 1]} : vector<64x512xf32> to vector<8x512xf32>
    %cst_35 = arith.constant dense<0.000000e+00> : vector<8x512xf32>
    %83 = tpu.matmul %46, %6, %cst_35 {dimension_numbers = #tpu.dot_dimension_numbers<[1], [0], [0], [1], [0, 0, 1, 1], [], []>} : vector<8x128xf32>, vector<128x512xf32>, vector<8x512xf32> -> vector<8x512xf32>
    %84 = arith.addf %82, %83 : vector<8x512xf32>
    %85 = vector.extract_strided_slice %84 {offsets = [0, 0], sizes = [8, 128], strides = [1, 1]} : vector<8x512xf32> to vector<8x128xf32>
    %cst_36 = arith.constant 5.000000e-01 : f32
    %86 = vector.broadcast %cst_36 : f32 to vector<8x128xf32>
    %87 = arith.mulf %86, %85 : vector<8x128xf32>
    %88 = math.tanh %87 : vector<8x128xf32>
    %cst_37 = arith.constant 5.000000e-01 : f32
    %89 = vector.broadcast %cst_37 : f32 to vector<8x128xf32>
    %90 = arith.mulf %89, %88 : vector<8x128xf32>
    %cst_38 = arith.constant 5.000000e-01 : f32
    %91 = vector.broadcast %cst_38 : f32 to vector<8x128xf32>
    %92 = arith.addf %90, %91 : vector<8x128xf32>
    %93 = vector.extract_strided_slice %84 {offsets = [0, 128], sizes = [8, 128], strides = [1, 1]} : vector<8x512xf32> to vector<8x128xf32>
    %cst_39 = arith.constant 5.000000e-01 : f32
    %94 = vector.broadcast %cst_39 : f32 to vector<8x128xf32>
    %95 = arith.mulf %94, %93 : vector<8x128xf32>
    %96 = math.tanh %95 : vector<8x128xf32>
    %cst_40 = arith.constant 5.000000e-01 : f32
    %97 = vector.broadcast %cst_40 : f32 to vector<8x128xf32>
    %98 = arith.mulf %97, %96 : vector<8x128xf32>
    %cst_41 = arith.constant 5.000000e-01 : f32
    %99 = vector.broadcast %cst_41 : f32 to vector<8x128xf32>
    %100 = arith.addf %98, %99 : vector<8x128xf32>
    %101 = vector.extract_strided_slice %84 {offsets = [0, 256], sizes = [8, 128], strides = [1, 1]} : vector<8x512xf32> to vector<8x128xf32>
    %102 = math.tanh %101 : vector<8x128xf32>
    %103 = vector.extract_strided_slice %84 {offsets = [0, 384], sizes = [8, 128], strides = [1, 1]} : vector<8x512xf32> to vector<8x128xf32>
    %cst_42 = arith.constant 5.000000e-01 : f32
    %104 = vector.broadcast %cst_42 : f32 to vector<8x128xf32>
    %105 = arith.mulf %104, %103 : vector<8x128xf32>
    %106 = math.tanh %105 : vector<8x128xf32>
    %cst_43 = arith.constant 5.000000e-01 : f32
    %107 = vector.broadcast %cst_43 : f32 to vector<8x128xf32>
    %108 = arith.mulf %107, %106 : vector<8x128xf32>
    %cst_44 = arith.constant 5.000000e-01 : f32
    %109 = vector.broadcast %cst_44 : f32 to vector<8x128xf32>
    %110 = arith.addf %108, %109 : vector<8x128xf32>
    %111 = arith.mulf %100, %44 : vector<8x128xf32>
    %112 = arith.mulf %92, %102 : vector<8x128xf32>
    %113 = arith.addf %111, %112 : vector<8x128xf32>
    %114 = math.tanh %113 : vector<8x128xf32>
    %115 = arith.mulf %110, %114 : vector<8x128xf32>
    %cst_45 = arith.constant dense<0.000000e+00> : vector<8x512xf32>
    %116 = tpu.matmul %81, %8, %cst_45 {dimension_numbers = #tpu.dot_dimension_numbers<[1], [0], [0], [1], [0, 0, 1, 1], [], []>} : vector<8x128xf32>, vector<128x512xf32>, vector<8x512xf32> -> vector<8x512xf32>
    %cst_46 = arith.constant dense<0.000000e+00> : vector<8x512xf32>
    %117 = tpu.matmul %115, %7, %cst_46 {dimension_numbers = #tpu.dot_dimension_numbers<[1], [0], [0], [1], [0, 0, 1, 1], [], []>} : vector<8x128xf32>, vector<128x512xf32>, vector<8x512xf32> -> vector<8x512xf32>
    %118 = arith.addf %116, %117 : vector<8x512xf32>
    %119 = arith.addf %118, %11 : vector<8x512xf32>
    %120 = vector.extract_strided_slice %119 {offsets = [0, 0], sizes = [8, 128], strides = [1, 1]} : vector<8x512xf32> to vector<8x128xf32>
    %cst_47 = arith.constant 5.000000e-01 : f32
    %121 = vector.broadcast %cst_47 : f32 to vector<8x128xf32>
    %122 = arith.mulf %121, %120 : vector<8x128xf32>
    %123 = math.tanh %122 : vector<8x128xf32>
    %cst_48 = arith.constant 5.000000e-01 : f32
    %124 = vector.broadcast %cst_48 : f32 to vector<8x128xf32>
    %125 = arith.mulf %124, %123 : vector<8x128xf32>
    %cst_49 = arith.constant 5.000000e-01 : f32
    %126 = vector.broadcast %cst_49 : f32 to vector<8x128xf32>
    %127 = arith.addf %125, %126 : vector<8x128xf32>
    %128 = vector.extract_strided_slice %119 {offsets = [0, 128], sizes = [8, 128], strides = [1, 1]} : vector<8x512xf32> to vector<8x128xf32>
    %cst_50 = arith.constant 5.000000e-01 : f32
    %129 = vector.broadcast %cst_50 : f32 to vector<8x128xf32>
    %130 = arith.mulf %129, %128 : vector<8x128xf32>
    %131 = math.tanh %130 : vector<8x128xf32>
    %cst_51 = arith.constant 5.000000e-01 : f32
    %132 = vector.broadcast %cst_51 : f32 to vector<8x128xf32>
    %133 = arith.mulf %132, %131 : vector<8x128xf32>
    %cst_52 = arith.constant 5.000000e-01 : f32
    %134 = vector.broadcast %cst_52 : f32 to vector<8x128xf32>
    %135 = arith.addf %133, %134 : vector<8x128xf32>
    %136 = vector.extract_strided_slice %119 {offsets = [0, 256], sizes = [8, 128], strides = [1, 1]} : vector<8x512xf32> to vector<8x128xf32>
    %137 = math.tanh %136 : vector<8x128xf32>
    %138 = vector.extract_strided_slice %119 {offsets = [0, 384], sizes = [8, 128], strides = [1, 1]} : vector<8x512xf32> to vector<8x128xf32>
    %cst_53 = arith.constant 5.000000e-01 : f32
    %139 = vector.broadcast %cst_53 : f32 to vector<8x128xf32>
    %140 = arith.mulf %139, %138 : vector<8x128xf32>
    %141 = math.tanh %140 : vector<8x128xf32>
    %cst_54 = arith.constant 5.000000e-01 : f32
    %142 = vector.broadcast %cst_54 : f32 to vector<8x128xf32>
    %143 = arith.mulf %142, %141 : vector<8x128xf32>
    %cst_55 = arith.constant 5.000000e-01 : f32
    %144 = vector.broadcast %cst_55 : f32 to vector<8x128xf32>
    %145 = arith.addf %143, %144 : vector<8x128xf32>
    %146 = arith.mulf %135, %79 : vector<8x128xf32>
    %147 = arith.mulf %127, %137 : vector<8x128xf32>
    %148 = arith.addf %146, %147 : vector<8x128xf32>
    %149 = math.tanh %148 : vector<8x128xf32>
    %150 = arith.mulf %145, %149 : vector<8x128xf32>
    %151 = vector.extract_strided_slice %5 {offsets = [16, 0], sizes = [8, 512], strides = [1, 1]} : vector<64x512xf32> to vector<8x512xf32>
    %cst_56 = arith.constant dense<0.000000e+00> : vector<8x512xf32>
    %152 = tpu.matmul %115, %6, %cst_56 {dimension_numbers = #tpu.dot_dimension_numbers<[1], [0], [0], [1], [0, 0, 1, 1], [], []>} : vector<8x128xf32>, vector<128x512xf32>, vector<8x512xf32> -> vector<8x512xf32>
    %153 = arith.addf %151, %152 : vector<8x512xf32>
    %154 = vector.extract_strided_slice %153 {offsets = [0, 0], sizes = [8, 128], strides = [1, 1]} : vector<8x512xf32> to vector<8x128xf32>
    %cst_57 = arith.constant 5.000000e-01 : f32
    %155 = vector.broadcast %cst_57 : f32 to vector<8x128xf32>
    %156 = arith.mulf %155, %154 : vector<8x128xf32>
    %157 = math.tanh %156 : vector<8x128xf32>
    %cst_58 = arith.constant 5.000000e-01 : f32
    %158 = vector.broadcast %cst_58 : f32 to vector<8x128xf32>
    %159 = arith.mulf %158, %157 : vector<8x128xf32>
    %cst_59 = arith.constant 5.000000e-01 : f32
    %160 = vector.broadcast %cst_59 : f32 to vector<8x128xf32>
    %161 = arith.addf %159, %160 : vector<8x128xf32>
    %162 = vector.extract_strided_slice %153 {offsets = [0, 128], sizes = [8, 128], strides = [1, 1]} : vector<8x512xf32> to vector<8x128xf32>
    %cst_60 = arith.constant 5.000000e-01 : f32
    %163 = vector.broadcast %cst_60 : f32 to vector<8x128xf32>
    %164 = arith.mulf %163, %162 : vector<8x128xf32>
    %165 = math.tanh %164 : vector<8x128xf32>
    %cst_61 = arith.constant 5.000000e-01 : f32
    %166 = vector.broadcast %cst_61 : f32 to vector<8x128xf32>
    %167 = arith.mulf %166, %165 : vector<8x128xf32>
    %cst_62 = arith.constant 5.000000e-01 : f32
    %168 = vector.broadcast %cst_62 : f32 to vector<8x128xf32>
    %169 = arith.addf %167, %168 : vector<8x128xf32>
    %170 = vector.extract_strided_slice %153 {offsets = [0, 256], sizes = [8, 128], strides = [1, 1]} : vector<8x512xf32> to vector<8x128xf32>
    %171 = math.tanh %170 : vector<8x128xf32>
    %172 = vector.extract_strided_slice %153 {offsets = [0, 384], sizes = [8, 128], strides = [1, 1]} : vector<8x512xf32> to vector<8x128xf32>
    %cst_63 = arith.constant 5.000000e-01 : f32
    %173 = vector.broadcast %cst_63 : f32 to vector<8x128xf32>
    %174 = arith.mulf %173, %172 : vector<8x128xf32>
    %175 = math.tanh %174 : vector<8x128xf32>
    %cst_64 = arith.constant 5.000000e-01 : f32
    %176 = vector.broadcast %cst_64 : f32 to vector<8x128xf32>
    %177 = arith.mulf %176, %175 : vector<8x128xf32>
    %cst_65 = arith.constant 5.000000e-01 : f32
    %178 = vector.broadcast %cst_65 : f32 to vector<8x128xf32>
    %179 = arith.addf %177, %178 : vector<8x128xf32>
    %180 = arith.mulf %169, %113 : vector<8x128xf32>
    %181 = arith.mulf %161, %171 : vector<8x128xf32>
    %182 = arith.addf %180, %181 : vector<8x128xf32>
    %183 = math.tanh %182 : vector<8x128xf32>
    %184 = arith.mulf %179, %183 : vector<8x128xf32>
    %cst_66 = arith.constant dense<0.000000e+00> : vector<8x512xf32>
    %185 = tpu.matmul %150, %8, %cst_66 {dimension_numbers = #tpu.dot_dimension_numbers<[1], [0], [0], [1], [0, 0, 1, 1], [], []>} : vector<8x128xf32>, vector<128x512xf32>, vector<8x512xf32> -> vector<8x512xf32>
    %cst_67 = arith.constant dense<0.000000e+00> : vector<8x512xf32>
    %186 = tpu.matmul %184, %7, %cst_67 {dimension_numbers = #tpu.dot_dimension_numbers<[1], [0], [0], [1], [0, 0, 1, 1], [], []>} : vector<8x128xf32>, vector<128x512xf32>, vector<8x512xf32> -> vector<8x512xf32>
    %187 = arith.addf %185, %186 : vector<8x512xf32>
    %188 = arith.addf %187, %11 : vector<8x512xf32>
    %189 = vector.extract_strided_slice %188 {offsets = [0, 0], sizes = [8, 128], strides = [1, 1]} : vector<8x512xf32> to vector<8x128xf32>
    %cst_68 = arith.constant 5.000000e-01 : f32
    %190 = vector.broadcast %cst_68 : f32 to vector<8x128xf32>
    %191 = arith.mulf %190, %189 : vector<8x128xf32>
    %192 = math.tanh %191 : vector<8x128xf32>
    %cst_69 = arith.constant 5.000000e-01 : f32
    %193 = vector.broadcast %cst_69 : f32 to vector<8x128xf32>
    %194 = arith.mulf %193, %192 : vector<8x128xf32>
    %cst_70 = arith.constant 5.000000e-01 : f32
    %195 = vector.broadcast %cst_70 : f32 to vector<8x128xf32>
    %196 = arith.addf %194, %195 : vector<8x128xf32>
    %197 = vector.extract_strided_slice %188 {offsets = [0, 128], sizes = [8, 128], strides = [1, 1]} : vector<8x512xf32> to vector<8x128xf32>
    %cst_71 = arith.constant 5.000000e-01 : f32
    %198 = vector.broadcast %cst_71 : f32 to vector<8x128xf32>
    %199 = arith.mulf %198, %197 : vector<8x128xf32>
    %200 = math.tanh %199 : vector<8x128xf32>
    %cst_72 = arith.constant 5.000000e-01 : f32
    %201 = vector.broadcast %cst_72 : f32 to vector<8x128xf32>
    %202 = arith.mulf %201, %200 : vector<8x128xf32>
    %cst_73 = arith.constant 5.000000e-01 : f32
    %203 = vector.broadcast %cst_73 : f32 to vector<8x128xf32>
    %204 = arith.addf %202, %203 : vector<8x128xf32>
    %205 = vector.extract_strided_slice %188 {offsets = [0, 256], sizes = [8, 128], strides = [1, 1]} : vector<8x512xf32> to vector<8x128xf32>
    %206 = math.tanh %205 : vector<8x128xf32>
    %207 = vector.extract_strided_slice %188 {offsets = [0, 384], sizes = [8, 128], strides = [1, 1]} : vector<8x512xf32> to vector<8x128xf32>
    %cst_74 = arith.constant 5.000000e-01 : f32
    %208 = vector.broadcast %cst_74 : f32 to vector<8x128xf32>
    %209 = arith.mulf %208, %207 : vector<8x128xf32>
    %210 = math.tanh %209 : vector<8x128xf32>
    %cst_75 = arith.constant 5.000000e-01 : f32
    %211 = vector.broadcast %cst_75 : f32 to vector<8x128xf32>
    %212 = arith.mulf %211, %210 : vector<8x128xf32>
    %cst_76 = arith.constant 5.000000e-01 : f32
    %213 = vector.broadcast %cst_76 : f32 to vector<8x128xf32>
    %214 = arith.addf %212, %213 : vector<8x128xf32>
    %215 = arith.mulf %204, %148 : vector<8x128xf32>
    %216 = arith.mulf %196, %206 : vector<8x128xf32>
    %217 = arith.addf %215, %216 : vector<8x128xf32>
    %218 = math.tanh %217 : vector<8x128xf32>
    %219 = arith.mulf %214, %218 : vector<8x128xf32>
    %220 = vector.extract_strided_slice %5 {offsets = [24, 0], sizes = [8, 512], strides = [1, 1]} : vector<64x512xf32> to vector<8x512xf32>
    %cst_77 = arith.constant dense<0.000000e+00> : vector<8x512xf32>
    %221 = tpu.matmul %184, %6, %cst_77 {dimension_numbers = #tpu.dot_dimension_numbers<[1], [0], [0], [1], [0, 0, 1, 1], [], []>} : vector<8x128xf32>, vector<128x512xf32>, vector<8x512xf32> -> vector<8x512xf32>
    %222 = arith.addf %220, %221 : vector<8x512xf32>
    %223 = vector.extract_strided_slice %222 {offsets = [0, 0], sizes = [8, 128], strides = [1, 1]} : vector<8x512xf32> to vector<8x128xf32>
    %cst_78 = arith.constant 5.000000e-01 : f32
    %224 = vector.broadcast %cst_78 : f32 to vector<8x128xf32>
    %225 = arith.mulf %224, %223 : vector<8x128xf32>
    %226 = math.tanh %225 : vector<8x128xf32>
    %cst_79 = arith.constant 5.000000e-01 : f32
    %227 = vector.broadcast %cst_79 : f32 to vector<8x128xf32>
    %228 = arith.mulf %227, %226 : vector<8x128xf32>
    %cst_80 = arith.constant 5.000000e-01 : f32
    %229 = vector.broadcast %cst_80 : f32 to vector<8x128xf32>
    %230 = arith.addf %228, %229 : vector<8x128xf32>
    %231 = vector.extract_strided_slice %222 {offsets = [0, 128], sizes = [8, 128], strides = [1, 1]} : vector<8x512xf32> to vector<8x128xf32>
    %cst_81 = arith.constant 5.000000e-01 : f32
    %232 = vector.broadcast %cst_81 : f32 to vector<8x128xf32>
    %233 = arith.mulf %232, %231 : vector<8x128xf32>
    %234 = math.tanh %233 : vector<8x128xf32>
    %cst_82 = arith.constant 5.000000e-01 : f32
    %235 = vector.broadcast %cst_82 : f32 to vector<8x128xf32>
    %236 = arith.mulf %235, %234 : vector<8x128xf32>
    %cst_83 = arith.constant 5.000000e-01 : f32
    %237 = vector.broadcast %cst_83 : f32 to vector<8x128xf32>
    %238 = arith.addf %236, %237 : vector<8x128xf32>
    %239 = vector.extract_strided_slice %222 {offsets = [0, 256], sizes = [8, 128], strides = [1, 1]} : vector<8x512xf32> to vector<8x128xf32>
    %240 = math.tanh %239 : vector<8x128xf32>
    %241 = vector.extract_strided_slice %222 {offsets = [0, 384], sizes = [8, 128], strides = [1, 1]} : vector<8x512xf32> to vector<8x128xf32>
    %cst_84 = arith.constant 5.000000e-01 : f32
    %242 = vector.broadcast %cst_84 : f32 to vector<8x128xf32>
    %243 = arith.mulf %242, %241 : vector<8x128xf32>
    %244 = math.tanh %243 : vector<8x128xf32>
    %cst_85 = arith.constant 5.000000e-01 : f32
    %245 = vector.broadcast %cst_85 : f32 to vector<8x128xf32>
    %246 = arith.mulf %245, %244 : vector<8x128xf32>
    %cst_86 = arith.constant 5.000000e-01 : f32
    %247 = vector.broadcast %cst_86 : f32 to vector<8x128xf32>
    %248 = arith.addf %246, %247 : vector<8x128xf32>
    %249 = arith.mulf %238, %182 : vector<8x128xf32>
    %250 = arith.mulf %230, %240 : vector<8x128xf32>
    %251 = arith.addf %249, %250 : vector<8x128xf32>
    %252 = math.tanh %251 : vector<8x128xf32>
    %253 = arith.mulf %248, %252 : vector<8x128xf32>
    %cst_87 = arith.constant dense<0.000000e+00> : vector<8x512xf32>
    %254 = tpu.matmul %219, %8, %cst_87 {dimension_numbers = #tpu.dot_dimension_numbers<[1], [0], [0], [1], [0, 0, 1, 1], [], []>} : vector<8x128xf32>, vector<128x512xf32>, vector<8x512xf32> -> vector<8x512xf32>
    %cst_88 = arith.constant dense<0.000000e+00> : vector<8x512xf32>
    %255 = tpu.matmul %253, %7, %cst_88 {dimension_numbers = #tpu.dot_dimension_numbers<[1], [0], [0], [1], [0, 0, 1, 1], [], []>} : vector<8x128xf32>, vector<128x512xf32>, vector<8x512xf32> -> vector<8x512xf32>
    %256 = arith.addf %254, %255 : vector<8x512xf32>
    %257 = arith.addf %256, %11 : vector<8x512xf32>
    %258 = vector.extract_strided_slice %257 {offsets = [0, 0], sizes = [8, 128], strides = [1, 1]} : vector<8x512xf32> to vector<8x128xf32>
    %cst_89 = arith.constant 5.000000e-01 : f32
    %259 = vector.broadcast %cst_89 : f32 to vector<8x128xf32>
    %260 = arith.mulf %259, %258 : vector<8x128xf32>
    %261 = math.tanh %260 : vector<8x128xf32>
    %cst_90 = arith.constant 5.000000e-01 : f32
    %262 = vector.broadcast %cst_90 : f32 to vector<8x128xf32>
    %263 = arith.mulf %262, %261 : vector<8x128xf32>
    %cst_91 = arith.constant 5.000000e-01 : f32
    %264 = vector.broadcast %cst_91 : f32 to vector<8x128xf32>
    %265 = arith.addf %263, %264 : vector<8x128xf32>
    %266 = vector.extract_strided_slice %257 {offsets = [0, 128], sizes = [8, 128], strides = [1, 1]} : vector<8x512xf32> to vector<8x128xf32>
    %cst_92 = arith.constant 5.000000e-01 : f32
    %267 = vector.broadcast %cst_92 : f32 to vector<8x128xf32>
    %268 = arith.mulf %267, %266 : vector<8x128xf32>
    %269 = math.tanh %268 : vector<8x128xf32>
    %cst_93 = arith.constant 5.000000e-01 : f32
    %270 = vector.broadcast %cst_93 : f32 to vector<8x128xf32>
    %271 = arith.mulf %270, %269 : vector<8x128xf32>
    %cst_94 = arith.constant 5.000000e-01 : f32
    %272 = vector.broadcast %cst_94 : f32 to vector<8x128xf32>
    %273 = arith.addf %271, %272 : vector<8x128xf32>
    %274 = vector.extract_strided_slice %257 {offsets = [0, 256], sizes = [8, 128], strides = [1, 1]} : vector<8x512xf32> to vector<8x128xf32>
    %275 = math.tanh %274 : vector<8x128xf32>
    %276 = vector.extract_strided_slice %257 {offsets = [0, 384], sizes = [8, 128], strides = [1, 1]} : vector<8x512xf32> to vector<8x128xf32>
    %cst_95 = arith.constant 5.000000e-01 : f32
    %277 = vector.broadcast %cst_95 : f32 to vector<8x128xf32>
    %278 = arith.mulf %277, %276 : vector<8x128xf32>
    %279 = math.tanh %278 : vector<8x128xf32>
    %cst_96 = arith.constant 5.000000e-01 : f32
    %280 = vector.broadcast %cst_96 : f32 to vector<8x128xf32>
    %281 = arith.mulf %280, %279 : vector<8x128xf32>
    %cst_97 = arith.constant 5.000000e-01 : f32
    %282 = vector.broadcast %cst_97 : f32 to vector<8x128xf32>
    %283 = arith.addf %281, %282 : vector<8x128xf32>
    %284 = arith.mulf %273, %217 : vector<8x128xf32>
    %285 = arith.mulf %265, %275 : vector<8x128xf32>
    %286 = arith.addf %284, %285 : vector<8x128xf32>
    %287 = math.tanh %286 : vector<8x128xf32>
    %288 = arith.mulf %283, %287 : vector<8x128xf32>
    %289 = vector.extract_strided_slice %5 {offsets = [32, 0], sizes = [8, 512], strides = [1, 1]} : vector<64x512xf32> to vector<8x512xf32>
    %cst_98 = arith.constant dense<0.000000e+00> : vector<8x512xf32>
    %290 = tpu.matmul %253, %6, %cst_98 {dimension_numbers = #tpu.dot_dimension_numbers<[1], [0], [0], [1], [0, 0, 1, 1], [], []>} : vector<8x128xf32>, vector<128x512xf32>, vector<8x512xf32> -> vector<8x512xf32>
    %291 = arith.addf %289, %290 : vector<8x512xf32>
    %292 = vector.extract_strided_slice %291 {offsets = [0, 0], sizes = [8, 128], strides = [1, 1]} : vector<8x512xf32> to vector<8x128xf32>
    %cst_99 = arith.constant 5.000000e-01 : f32
    %293 = vector.broadcast %cst_99 : f32 to vector<8x128xf32>
    %294 = arith.mulf %293, %292 : vector<8x128xf32>
    %295 = math.tanh %294 : vector<8x128xf32>
    %cst_100 = arith.constant 5.000000e-01 : f32
    %296 = vector.broadcast %cst_100 : f32 to vector<8x128xf32>
    %297 = arith.mulf %296, %295 : vector<8x128xf32>
    %cst_101 = arith.constant 5.000000e-01 : f32
    %298 = vector.broadcast %cst_101 : f32 to vector<8x128xf32>
    %299 = arith.addf %297, %298 : vector<8x128xf32>
    %300 = vector.extract_strided_slice %291 {offsets = [0, 128], sizes = [8, 128], strides = [1, 1]} : vector<8x512xf32> to vector<8x128xf32>
    %cst_102 = arith.constant 5.000000e-01 : f32
    %301 = vector.broadcast %cst_102 : f32 to vector<8x128xf32>
    %302 = arith.mulf %301, %300 : vector<8x128xf32>
    %303 = math.tanh %302 : vector<8x128xf32>
    %cst_103 = arith.constant 5.000000e-01 : f32
    %304 = vector.broadcast %cst_103 : f32 to vector<8x128xf32>
    %305 = arith.mulf %304, %303 : vector<8x128xf32>
    %cst_104 = arith.constant 5.000000e-01 : f32
    %306 = vector.broadcast %cst_104 : f32 to vector<8x128xf32>
    %307 = arith.addf %305, %306 : vector<8x128xf32>
    %308 = vector.extract_strided_slice %291 {offsets = [0, 256], sizes = [8, 128], strides = [1, 1]} : vector<8x512xf32> to vector<8x128xf32>
    %309 = math.tanh %308 : vector<8x128xf32>
    %310 = vector.extract_strided_slice %291 {offsets = [0, 384], sizes = [8, 128], strides = [1, 1]} : vector<8x512xf32> to vector<8x128xf32>
    %cst_105 = arith.constant 5.000000e-01 : f32
    %311 = vector.broadcast %cst_105 : f32 to vector<8x128xf32>
    %312 = arith.mulf %311, %310 : vector<8x128xf32>
    %313 = math.tanh %312 : vector<8x128xf32>
    %cst_106 = arith.constant 5.000000e-01 : f32
    %314 = vector.broadcast %cst_106 : f32 to vector<8x128xf32>
    %315 = arith.mulf %314, %313 : vector<8x128xf32>
    %cst_107 = arith.constant 5.000000e-01 : f32
    %316 = vector.broadcast %cst_107 : f32 to vector<8x128xf32>
    %317 = arith.addf %315, %316 : vector<8x128xf32>
    %318 = arith.mulf %307, %251 : vector<8x128xf32>
    %319 = arith.mulf %299, %309 : vector<8x128xf32>
    %320 = arith.addf %318, %319 : vector<8x128xf32>
    %321 = math.tanh %320 : vector<8x128xf32>
    %322 = arith.mulf %317, %321 : vector<8x128xf32>
    %cst_108 = arith.constant dense<0.000000e+00> : vector<8x512xf32>
    %323 = tpu.matmul %288, %8, %cst_108 {dimension_numbers = #tpu.dot_dimension_numbers<[1], [0], [0], [1], [0, 0, 1, 1], [], []>} : vector<8x128xf32>, vector<128x512xf32>, vector<8x512xf32> -> vector<8x512xf32>
    %cst_109 = arith.constant dense<0.000000e+00> : vector<8x512xf32>
    %324 = tpu.matmul %322, %7, %cst_109 {dimension_numbers = #tpu.dot_dimension_numbers<[1], [0], [0], [1], [0, 0, 1, 1], [], []>} : vector<8x128xf32>, vector<128x512xf32>, vector<8x512xf32> -> vector<8x512xf32>
    %325 = arith.addf %323, %324 : vector<8x512xf32>
    %326 = arith.addf %325, %11 : vector<8x512xf32>
    %327 = vector.extract_strided_slice %326 {offsets = [0, 0], sizes = [8, 128], strides = [1, 1]} : vector<8x512xf32> to vector<8x128xf32>
    %cst_110 = arith.constant 5.000000e-01 : f32
    %328 = vector.broadcast %cst_110 : f32 to vector<8x128xf32>
    %329 = arith.mulf %328, %327 : vector<8x128xf32>
    %330 = math.tanh %329 : vector<8x128xf32>
    %cst_111 = arith.constant 5.000000e-01 : f32
    %331 = vector.broadcast %cst_111 : f32 to vector<8x128xf32>
    %332 = arith.mulf %331, %330 : vector<8x128xf32>
    %cst_112 = arith.constant 5.000000e-01 : f32
    %333 = vector.broadcast %cst_112 : f32 to vector<8x128xf32>
    %334 = arith.addf %332, %333 : vector<8x128xf32>
    %335 = vector.extract_strided_slice %326 {offsets = [0, 128], sizes = [8, 128], strides = [1, 1]} : vector<8x512xf32> to vector<8x128xf32>
    %cst_113 = arith.constant 5.000000e-01 : f32
    %336 = vector.broadcast %cst_113 : f32 to vector<8x128xf32>
    %337 = arith.mulf %336, %335 : vector<8x128xf32>
    %338 = math.tanh %337 : vector<8x128xf32>
    %cst_114 = arith.constant 5.000000e-01 : f32
    %339 = vector.broadcast %cst_114 : f32 to vector<8x128xf32>
    %340 = arith.mulf %339, %338 : vector<8x128xf32>
    %cst_115 = arith.constant 5.000000e-01 : f32
    %341 = vector.broadcast %cst_115 : f32 to vector<8x128xf32>
    %342 = arith.addf %340, %341 : vector<8x128xf32>
    %343 = vector.extract_strided_slice %326 {offsets = [0, 256], sizes = [8, 128], strides = [1, 1]} : vector<8x512xf32> to vector<8x128xf32>
    %344 = math.tanh %343 : vector<8x128xf32>
    %345 = vector.extract_strided_slice %326 {offsets = [0, 384], sizes = [8, 128], strides = [1, 1]} : vector<8x512xf32> to vector<8x128xf32>
    %cst_116 = arith.constant 5.000000e-01 : f32
    %346 = vector.broadcast %cst_116 : f32 to vector<8x128xf32>
    %347 = arith.mulf %346, %345 : vector<8x128xf32>
    %348 = math.tanh %347 : vector<8x128xf32>
    %cst_117 = arith.constant 5.000000e-01 : f32
    %349 = vector.broadcast %cst_117 : f32 to vector<8x128xf32>
    %350 = arith.mulf %349, %348 : vector<8x128xf32>
    %cst_118 = arith.constant 5.000000e-01 : f32
    %351 = vector.broadcast %cst_118 : f32 to vector<8x128xf32>
    %352 = arith.addf %350, %351 : vector<8x128xf32>
    %353 = arith.mulf %342, %286 : vector<8x128xf32>
    %354 = arith.mulf %334, %344 : vector<8x128xf32>
    %355 = arith.addf %353, %354 : vector<8x128xf32>
    %356 = math.tanh %355 : vector<8x128xf32>
    %357 = arith.mulf %352, %356 : vector<8x128xf32>
    %358 = vector.extract_strided_slice %5 {offsets = [40, 0], sizes = [8, 512], strides = [1, 1]} : vector<64x512xf32> to vector<8x512xf32>
    %cst_119 = arith.constant dense<0.000000e+00> : vector<8x512xf32>
    %359 = tpu.matmul %322, %6, %cst_119 {dimension_numbers = #tpu.dot_dimension_numbers<[1], [0], [0], [1], [0, 0, 1, 1], [], []>} : vector<8x128xf32>, vector<128x512xf32>, vector<8x512xf32> -> vector<8x512xf32>
    %360 = arith.addf %358, %359 : vector<8x512xf32>
    %361 = vector.extract_strided_slice %360 {offsets = [0, 0], sizes = [8, 128], strides = [1, 1]} : vector<8x512xf32> to vector<8x128xf32>
    %cst_120 = arith.constant 5.000000e-01 : f32
    %362 = vector.broadcast %cst_120 : f32 to vector<8x128xf32>
    %363 = arith.mulf %362, %361 : vector<8x128xf32>
    %364 = math.tanh %363 : vector<8x128xf32>
    %cst_121 = arith.constant 5.000000e-01 : f32
    %365 = vector.broadcast %cst_121 : f32 to vector<8x128xf32>
    %366 = arith.mulf %365, %364 : vector<8x128xf32>
    %cst_122 = arith.constant 5.000000e-01 : f32
    %367 = vector.broadcast %cst_122 : f32 to vector<8x128xf32>
    %368 = arith.addf %366, %367 : vector<8x128xf32>
    %369 = vector.extract_strided_slice %360 {offsets = [0, 128], sizes = [8, 128], strides = [1, 1]} : vector<8x512xf32> to vector<8x128xf32>
    %cst_123 = arith.constant 5.000000e-01 : f32
    %370 = vector.broadcast %cst_123 : f32 to vector<8x128xf32>
    %371 = arith.mulf %370, %369 : vector<8x128xf32>
    %372 = math.tanh %371 : vector<8x128xf32>
    %cst_124 = arith.constant 5.000000e-01 : f32
    %373 = vector.broadcast %cst_124 : f32 to vector<8x128xf32>
    %374 = arith.mulf %373, %372 : vector<8x128xf32>
    %cst_125 = arith.constant 5.000000e-01 : f32
    %375 = vector.broadcast %cst_125 : f32 to vector<8x128xf32>
    %376 = arith.addf %374, %375 : vector<8x128xf32>
    %377 = vector.extract_strided_slice %360 {offsets = [0, 256], sizes = [8, 128], strides = [1, 1]} : vector<8x512xf32> to vector<8x128xf32>
    %378 = math.tanh %377 : vector<8x128xf32>
    %379 = vector.extract_strided_slice %360 {offsets = [0, 384], sizes = [8, 128], strides = [1, 1]} : vector<8x512xf32> to vector<8x128xf32>
    %cst_126 = arith.constant 5.000000e-01 : f32
    %380 = vector.broadcast %cst_126 : f32 to vector<8x128xf32>
    %381 = arith.mulf %380, %379 : vector<8x128xf32>
    %382 = math.tanh %381 : vector<8x128xf32>
    %cst_127 = arith.constant 5.000000e-01 : f32
    %383 = vector.broadcast %cst_127 : f32 to vector<8x128xf32>
    %384 = arith.mulf %383, %382 : vector<8x128xf32>
    %cst_128 = arith.constant 5.000000e-01 : f32
    %385 = vector.broadcast %cst_128 : f32 to vector<8x128xf32>
    %386 = arith.addf %384, %385 : vector<8x128xf32>
    %387 = arith.mulf %376, %320 : vector<8x128xf32>
    %388 = arith.mulf %368, %378 : vector<8x128xf32>
    %389 = arith.addf %387, %388 : vector<8x128xf32>
    %390 = math.tanh %389 : vector<8x128xf32>
    %391 = arith.mulf %386, %390 : vector<8x128xf32>
    %cst_129 = arith.constant dense<0.000000e+00> : vector<8x512xf32>
    %392 = tpu.matmul %357, %8, %cst_129 {dimension_numbers = #tpu.dot_dimension_numbers<[1], [0], [0], [1], [0, 0, 1, 1], [], []>} : vector<8x128xf32>, vector<128x512xf32>, vector<8x512xf32> -> vector<8x512xf32>
    %cst_130 = arith.constant dense<0.000000e+00> : vector<8x512xf32>
    %393 = tpu.matmul %391, %7, %cst_130 {dimension_numbers = #tpu.dot_dimension_numbers<[1], [0], [0], [1], [0, 0, 1, 1], [], []>} : vector<8x128xf32>, vector<128x512xf32>, vector<8x512xf32> -> vector<8x512xf32>
    %394 = arith.addf %392, %393 : vector<8x512xf32>
    %395 = arith.addf %394, %11 : vector<8x512xf32>
    %396 = vector.extract_strided_slice %395 {offsets = [0, 0], sizes = [8, 128], strides = [1, 1]} : vector<8x512xf32> to vector<8x128xf32>
    %cst_131 = arith.constant 5.000000e-01 : f32
    %397 = vector.broadcast %cst_131 : f32 to vector<8x128xf32>
    %398 = arith.mulf %397, %396 : vector<8x128xf32>
    %399 = math.tanh %398 : vector<8x128xf32>
    %cst_132 = arith.constant 5.000000e-01 : f32
    %400 = vector.broadcast %cst_132 : f32 to vector<8x128xf32>
    %401 = arith.mulf %400, %399 : vector<8x128xf32>
    %cst_133 = arith.constant 5.000000e-01 : f32
    %402 = vector.broadcast %cst_133 : f32 to vector<8x128xf32>
    %403 = arith.addf %401, %402 : vector<8x128xf32>
    %404 = vector.extract_strided_slice %395 {offsets = [0, 128], sizes = [8, 128], strides = [1, 1]} : vector<8x512xf32> to vector<8x128xf32>
    %cst_134 = arith.constant 5.000000e-01 : f32
    %405 = vector.broadcast %cst_134 : f32 to vector<8x128xf32>
    %406 = arith.mulf %405, %404 : vector<8x128xf32>
    %407 = math.tanh %406 : vector<8x128xf32>
    %cst_135 = arith.constant 5.000000e-01 : f32
    %408 = vector.broadcast %cst_135 : f32 to vector<8x128xf32>
    %409 = arith.mulf %408, %407 : vector<8x128xf32>
    %cst_136 = arith.constant 5.000000e-01 : f32
    %410 = vector.broadcast %cst_136 : f32 to vector<8x128xf32>
    %411 = arith.addf %409, %410 : vector<8x128xf32>
    %412 = vector.extract_strided_slice %395 {offsets = [0, 256], sizes = [8, 128], strides = [1, 1]} : vector<8x512xf32> to vector<8x128xf32>
    %413 = math.tanh %412 : vector<8x128xf32>
    %414 = vector.extract_strided_slice %395 {offsets = [0, 384], sizes = [8, 128], strides = [1, 1]} : vector<8x512xf32> to vector<8x128xf32>
    %cst_137 = arith.constant 5.000000e-01 : f32
    %415 = vector.broadcast %cst_137 : f32 to vector<8x128xf32>
    %416 = arith.mulf %415, %414 : vector<8x128xf32>
    %417 = math.tanh %416 : vector<8x128xf32>
    %cst_138 = arith.constant 5.000000e-01 : f32
    %418 = vector.broadcast %cst_138 : f32 to vector<8x128xf32>
    %419 = arith.mulf %418, %417 : vector<8x128xf32>
    %cst_139 = arith.constant 5.000000e-01 : f32
    %420 = vector.broadcast %cst_139 : f32 to vector<8x128xf32>
    %421 = arith.addf %419, %420 : vector<8x128xf32>
    %422 = arith.mulf %411, %355 : vector<8x128xf32>
    %423 = arith.mulf %403, %413 : vector<8x128xf32>
    %424 = arith.addf %422, %423 : vector<8x128xf32>
    %425 = math.tanh %424 : vector<8x128xf32>
    %426 = arith.mulf %421, %425 : vector<8x128xf32>
    %427 = vector.extract_strided_slice %5 {offsets = [48, 0], sizes = [8, 512], strides = [1, 1]} : vector<64x512xf32> to vector<8x512xf32>
    %cst_140 = arith.constant dense<0.000000e+00> : vector<8x512xf32>
    %428 = tpu.matmul %391, %6, %cst_140 {dimension_numbers = #tpu.dot_dimension_numbers<[1], [0], [0], [1], [0, 0, 1, 1], [], []>} : vector<8x128xf32>, vector<128x512xf32>, vector<8x512xf32> -> vector<8x512xf32>
    %429 = arith.addf %427, %428 : vector<8x512xf32>
    %430 = vector.extract_strided_slice %429 {offsets = [0, 0], sizes = [8, 128], strides = [1, 1]} : vector<8x512xf32> to vector<8x128xf32>
    %cst_141 = arith.constant 5.000000e-01 : f32
    %431 = vector.broadcast %cst_141 : f32 to vector<8x128xf32>
    %432 = arith.mulf %431, %430 : vector<8x128xf32>
    %433 = math.tanh %432 : vector<8x128xf32>
    %cst_142 = arith.constant 5.000000e-01 : f32
    %434 = vector.broadcast %cst_142 : f32 to vector<8x128xf32>
    %435 = arith.mulf %434, %433 : vector<8x128xf32>
    %cst_143 = arith.constant 5.000000e-01 : f32
    %436 = vector.broadcast %cst_143 : f32 to vector<8x128xf32>
    %437 = arith.addf %435, %436 : vector<8x128xf32>
    %438 = vector.extract_strided_slice %429 {offsets = [0, 128], sizes = [8, 128], strides = [1, 1]} : vector<8x512xf32> to vector<8x128xf32>
    %cst_144 = arith.constant 5.000000e-01 : f32
    %439 = vector.broadcast %cst_144 : f32 to vector<8x128xf32>
    %440 = arith.mulf %439, %438 : vector<8x128xf32>
    %441 = math.tanh %440 : vector<8x128xf32>
    %cst_145 = arith.constant 5.000000e-01 : f32
    %442 = vector.broadcast %cst_145 : f32 to vector<8x128xf32>
    %443 = arith.mulf %442, %441 : vector<8x128xf32>
    %cst_146 = arith.constant 5.000000e-01 : f32
    %444 = vector.broadcast %cst_146 : f32 to vector<8x128xf32>
    %445 = arith.addf %443, %444 : vector<8x128xf32>
    %446 = vector.extract_strided_slice %429 {offsets = [0, 256], sizes = [8, 128], strides = [1, 1]} : vector<8x512xf32> to vector<8x128xf32>
    %447 = math.tanh %446 : vector<8x128xf32>
    %448 = vector.extract_strided_slice %429 {offsets = [0, 384], sizes = [8, 128], strides = [1, 1]} : vector<8x512xf32> to vector<8x128xf32>
    %cst_147 = arith.constant 5.000000e-01 : f32
    %449 = vector.broadcast %cst_147 : f32 to vector<8x128xf32>
    %450 = arith.mulf %449, %448 : vector<8x128xf32>
    %451 = math.tanh %450 : vector<8x128xf32>
    %cst_148 = arith.constant 5.000000e-01 : f32
    %452 = vector.broadcast %cst_148 : f32 to vector<8x128xf32>
    %453 = arith.mulf %452, %451 : vector<8x128xf32>
    %cst_149 = arith.constant 5.000000e-01 : f32
    %454 = vector.broadcast %cst_149 : f32 to vector<8x128xf32>
    %455 = arith.addf %453, %454 : vector<8x128xf32>
    %456 = arith.mulf %445, %389 : vector<8x128xf32>
    %457 = arith.mulf %437, %447 : vector<8x128xf32>
    %458 = arith.addf %456, %457 : vector<8x128xf32>
    %459 = math.tanh %458 : vector<8x128xf32>
    %460 = arith.mulf %455, %459 : vector<8x128xf32>
    %cst_150 = arith.constant dense<0.000000e+00> : vector<8x512xf32>
    %461 = tpu.matmul %426, %8, %cst_150 {dimension_numbers = #tpu.dot_dimension_numbers<[1], [0], [0], [1], [0, 0, 1, 1], [], []>} : vector<8x128xf32>, vector<128x512xf32>, vector<8x512xf32> -> vector<8x512xf32>
    %cst_151 = arith.constant dense<0.000000e+00> : vector<8x512xf32>
    %462 = tpu.matmul %460, %7, %cst_151 {dimension_numbers = #tpu.dot_dimension_numbers<[1], [0], [0], [1], [0, 0, 1, 1], [], []>} : vector<8x128xf32>, vector<128x512xf32>, vector<8x512xf32> -> vector<8x512xf32>
    %463 = arith.addf %461, %462 : vector<8x512xf32>
    %464 = arith.addf %463, %11 : vector<8x512xf32>
    %465 = vector.extract_strided_slice %464 {offsets = [0, 0], sizes = [8, 128], strides = [1, 1]} : vector<8x512xf32> to vector<8x128xf32>
    %cst_152 = arith.constant 5.000000e-01 : f32
    %466 = vector.broadcast %cst_152 : f32 to vector<8x128xf32>
    %467 = arith.mulf %466, %465 : vector<8x128xf32>
    %468 = math.tanh %467 : vector<8x128xf32>
    %cst_153 = arith.constant 5.000000e-01 : f32
    %469 = vector.broadcast %cst_153 : f32 to vector<8x128xf32>
    %470 = arith.mulf %469, %468 : vector<8x128xf32>
    %cst_154 = arith.constant 5.000000e-01 : f32
    %471 = vector.broadcast %cst_154 : f32 to vector<8x128xf32>
    %472 = arith.addf %470, %471 : vector<8x128xf32>
    %473 = vector.extract_strided_slice %464 {offsets = [0, 128], sizes = [8, 128], strides = [1, 1]} : vector<8x512xf32> to vector<8x128xf32>
    %cst_155 = arith.constant 5.000000e-01 : f32
    %474 = vector.broadcast %cst_155 : f32 to vector<8x128xf32>
    %475 = arith.mulf %474, %473 : vector<8x128xf32>
    %476 = math.tanh %475 : vector<8x128xf32>
    %cst_156 = arith.constant 5.000000e-01 : f32
    %477 = vector.broadcast %cst_156 : f32 to vector<8x128xf32>
    %478 = arith.mulf %477, %476 : vector<8x128xf32>
    %cst_157 = arith.constant 5.000000e-01 : f32
    %479 = vector.broadcast %cst_157 : f32 to vector<8x128xf32>
    %480 = arith.addf %478, %479 : vector<8x128xf32>
    %481 = vector.extract_strided_slice %464 {offsets = [0, 256], sizes = [8, 128], strides = [1, 1]} : vector<8x512xf32> to vector<8x128xf32>
    %482 = math.tanh %481 : vector<8x128xf32>
    %483 = vector.extract_strided_slice %464 {offsets = [0, 384], sizes = [8, 128], strides = [1, 1]} : vector<8x512xf32> to vector<8x128xf32>
    %cst_158 = arith.constant 5.000000e-01 : f32
    %484 = vector.broadcast %cst_158 : f32 to vector<8x128xf32>
    %485 = arith.mulf %484, %483 : vector<8x128xf32>
    %486 = math.tanh %485 : vector<8x128xf32>
    %cst_159 = arith.constant 5.000000e-01 : f32
    %487 = vector.broadcast %cst_159 : f32 to vector<8x128xf32>
    %488 = arith.mulf %487, %486 : vector<8x128xf32>
    %cst_160 = arith.constant 5.000000e-01 : f32
    %489 = vector.broadcast %cst_160 : f32 to vector<8x128xf32>
    %490 = arith.addf %488, %489 : vector<8x128xf32>
    %491 = arith.mulf %480, %424 : vector<8x128xf32>
    %492 = arith.mulf %472, %482 : vector<8x128xf32>
    %493 = arith.addf %491, %492 : vector<8x128xf32>
    %494 = math.tanh %493 : vector<8x128xf32>
    %495 = arith.mulf %490, %494 : vector<8x128xf32>
    %496 = vector.extract_strided_slice %5 {offsets = [56, 0], sizes = [8, 512], strides = [1, 1]} : vector<64x512xf32> to vector<8x512xf32>
    %cst_161 = arith.constant dense<0.000000e+00> : vector<8x512xf32>
    %497 = tpu.matmul %460, %6, %cst_161 {dimension_numbers = #tpu.dot_dimension_numbers<[1], [0], [0], [1], [0, 0, 1, 1], [], []>} : vector<8x128xf32>, vector<128x512xf32>, vector<8x512xf32> -> vector<8x512xf32>
    %498 = arith.addf %496, %497 : vector<8x512xf32>
    %499 = vector.extract_strided_slice %498 {offsets = [0, 0], sizes = [8, 128], strides = [1, 1]} : vector<8x512xf32> to vector<8x128xf32>
    %cst_162 = arith.constant 5.000000e-01 : f32
    %500 = vector.broadcast %cst_162 : f32 to vector<8x128xf32>
    %501 = arith.mulf %500, %499 : vector<8x128xf32>
    %502 = math.tanh %501 : vector<8x128xf32>
    %cst_163 = arith.constant 5.000000e-01 : f32
    %503 = vector.broadcast %cst_163 : f32 to vector<8x128xf32>
    %504 = arith.mulf %503, %502 : vector<8x128xf32>
    %cst_164 = arith.constant 5.000000e-01 : f32
    %505 = vector.broadcast %cst_164 : f32 to vector<8x128xf32>
    %506 = arith.addf %504, %505 : vector<8x128xf32>
    %507 = vector.extract_strided_slice %498 {offsets = [0, 128], sizes = [8, 128], strides = [1, 1]} : vector<8x512xf32> to vector<8x128xf32>
    %cst_165 = arith.constant 5.000000e-01 : f32
    %508 = vector.broadcast %cst_165 : f32 to vector<8x128xf32>
    %509 = arith.mulf %508, %507 : vector<8x128xf32>
    %510 = math.tanh %509 : vector<8x128xf32>
    %cst_166 = arith.constant 5.000000e-01 : f32
    %511 = vector.broadcast %cst_166 : f32 to vector<8x128xf32>
    %512 = arith.mulf %511, %510 : vector<8x128xf32>
    %cst_167 = arith.constant 5.000000e-01 : f32
    %513 = vector.broadcast %cst_167 : f32 to vector<8x128xf32>
    %514 = arith.addf %512, %513 : vector<8x128xf32>
    %515 = vector.extract_strided_slice %498 {offsets = [0, 256], sizes = [8, 128], strides = [1, 1]} : vector<8x512xf32> to vector<8x128xf32>
    %516 = math.tanh %515 : vector<8x128xf32>
    %517 = vector.extract_strided_slice %498 {offsets = [0, 384], sizes = [8, 128], strides = [1, 1]} : vector<8x512xf32> to vector<8x128xf32>
    %cst_168 = arith.constant 5.000000e-01 : f32
    %518 = vector.broadcast %cst_168 : f32 to vector<8x128xf32>
    %519 = arith.mulf %518, %517 : vector<8x128xf32>
    %520 = math.tanh %519 : vector<8x128xf32>
    %cst_169 = arith.constant 5.000000e-01 : f32
    %521 = vector.broadcast %cst_169 : f32 to vector<8x128xf32>
    %522 = arith.mulf %521, %520 : vector<8x128xf32>
    %cst_170 = arith.constant 5.000000e-01 : f32
    %523 = vector.broadcast %cst_170 : f32 to vector<8x128xf32>
    %524 = arith.addf %522, %523 : vector<8x128xf32>
    %525 = arith.mulf %514, %458 : vector<8x128xf32>
    %526 = arith.mulf %506, %516 : vector<8x128xf32>
    %527 = arith.addf %525, %526 : vector<8x128xf32>
    %528 = math.tanh %527 : vector<8x128xf32>
    %529 = arith.mulf %524, %528 : vector<8x128xf32>
    %cst_171 = arith.constant dense<0.000000e+00> : vector<8x512xf32>
    %530 = tpu.matmul %495, %8, %cst_171 {dimension_numbers = #tpu.dot_dimension_numbers<[1], [0], [0], [1], [0, 0, 1, 1], [], []>} : vector<8x128xf32>, vector<128x512xf32>, vector<8x512xf32> -> vector<8x512xf32>
    %cst_172 = arith.constant dense<0.000000e+00> : vector<8x512xf32>
    %531 = tpu.matmul %529, %7, %cst_172 {dimension_numbers = #tpu.dot_dimension_numbers<[1], [0], [0], [1], [0, 0, 1, 1], [], []>} : vector<8x128xf32>, vector<128x512xf32>, vector<8x512xf32> -> vector<8x512xf32>
    %532 = arith.addf %530, %531 : vector<8x512xf32>
    %533 = arith.addf %532, %11 : vector<8x512xf32>
    %534 = vector.extract_strided_slice %533 {offsets = [0, 0], sizes = [8, 128], strides = [1, 1]} : vector<8x512xf32> to vector<8x128xf32>
    %cst_173 = arith.constant 5.000000e-01 : f32
    %535 = vector.broadcast %cst_173 : f32 to vector<8x128xf32>
    %536 = arith.mulf %535, %534 : vector<8x128xf32>
    %537 = math.tanh %536 : vector<8x128xf32>
    %cst_174 = arith.constant 5.000000e-01 : f32
    %538 = vector.broadcast %cst_174 : f32 to vector<8x128xf32>
    %539 = arith.mulf %538, %537 : vector<8x128xf32>
    %cst_175 = arith.constant 5.000000e-01 : f32
    %540 = vector.broadcast %cst_175 : f32 to vector<8x128xf32>
    %541 = arith.addf %539, %540 : vector<8x128xf32>
    %542 = vector.extract_strided_slice %533 {offsets = [0, 128], sizes = [8, 128], strides = [1, 1]} : vector<8x512xf32> to vector<8x128xf32>
    %cst_176 = arith.constant 5.000000e-01 : f32
    %543 = vector.broadcast %cst_176 : f32 to vector<8x128xf32>
    %544 = arith.mulf %543, %542 : vector<8x128xf32>
    %545 = math.tanh %544 : vector<8x128xf32>
    %cst_177 = arith.constant 5.000000e-01 : f32
    %546 = vector.broadcast %cst_177 : f32 to vector<8x128xf32>
    %547 = arith.mulf %546, %545 : vector<8x128xf32>
    %cst_178 = arith.constant 5.000000e-01 : f32
    %548 = vector.broadcast %cst_178 : f32 to vector<8x128xf32>
    %549 = arith.addf %547, %548 : vector<8x128xf32>
    %550 = vector.extract_strided_slice %533 {offsets = [0, 256], sizes = [8, 128], strides = [1, 1]} : vector<8x512xf32> to vector<8x128xf32>
    %551 = math.tanh %550 : vector<8x128xf32>
    %552 = vector.extract_strided_slice %533 {offsets = [0, 384], sizes = [8, 128], strides = [1, 1]} : vector<8x512xf32> to vector<8x128xf32>
    %cst_179 = arith.constant 5.000000e-01 : f32
    %553 = vector.broadcast %cst_179 : f32 to vector<8x128xf32>
    %554 = arith.mulf %553, %552 : vector<8x128xf32>
    %555 = math.tanh %554 : vector<8x128xf32>
    %cst_180 = arith.constant 5.000000e-01 : f32
    %556 = vector.broadcast %cst_180 : f32 to vector<8x128xf32>
    %557 = arith.mulf %556, %555 : vector<8x128xf32>
    %cst_181 = arith.constant 5.000000e-01 : f32
    %558 = vector.broadcast %cst_181 : f32 to vector<8x128xf32>
    %559 = arith.addf %557, %558 : vector<8x128xf32>
    %560 = arith.mulf %549, %493 : vector<8x128xf32>
    %561 = arith.mulf %541, %551 : vector<8x128xf32>
    %562 = arith.addf %560, %561 : vector<8x128xf32>
    %563 = math.tanh %562 : vector<8x128xf32>
    %564 = arith.mulf %559, %563 : vector<8x128xf32>
    %c0_182 = arith.constant 0 : index
    %c0_183 = arith.constant 0 : index
    %565 = vector.load %arg7[%c0_182, %c0_183] : memref<128x128xf32, #tpu.memory_space<vmem>>, vector<128x128xf32>
    %cst_184 = arith.constant dense<0.000000e+00> : vector<8x128xf32>
    %566 = tpu.matmul %564, %565, %cst_184 {dimension_numbers = #tpu.dot_dimension_numbers<[1], [0], [0], [1], [0, 0, 1, 1], [], []>} : vector<8x128xf32>, vector<128x128xf32>, vector<8x128xf32> -> vector<8x128xf32>
    %c0_185 = arith.constant 0 : index
    %c0_186 = arith.constant 0 : index
    %567 = vector.load %arg8[%c0_185, %c0_186] : memref<1x128xf32, #tpu.memory_space<vmem>>, vector<1x128xf32>
    %568 = vector.broadcast %567 : vector<1x128xf32> to vector<8x128xf32>
    %569 = arith.addf %566, %568 : vector<8x128xf32>
    %c0_187 = arith.constant 0 : index
    %c0_188 = arith.constant 0 : index
    %570 = vector.load %arg9[%c0_187, %c0_188] : memref<8x128xf32, #tpu.memory_space<vmem>>, vector<8x128xf32>
    tpu.vector_store %arg9[%c0_187, %c0_188], %569 {strides = array<i32>} : memref<8x128xf32, #tpu.memory_space<vmem>>, vector<8x128xf32>,
    return
  }
}

</mosaic_0001>

<bundles_post_ra>
// kernel: lstm_model_forward.1
= control target key start
LH: loop header
LB: loop body
LE: loop exit
PB: predicated region body
PF: predicated region fallthrough
CT: control target
= control target key end

     0   :  { %14 = vsyncpa [#allocation3], 0  ;;  %s8873_s0 = inlined_call_operand.vmem [shape: f32[64,16], index: 0, kind: input, shape index: {}]   ;;  %s8874_s1 = inlined_call_operand.vmem [shape: f32[16,512], index: 1, kind: input, shape index: {}]   ;;  %s8875_s2 = inlined_call_operand.hbm [shape: f32[128,512], index: 2, kind: input, shape index: {}]   ;;  %s8876_s3 = inlined_call_operand.vmem [shape: f32[1,512], index: 3, kind: input, shape index: {}]   ;;  %s8877_s4 = inlined_call_operand.hbm [shape: f32[128,512], index: 4, kind: input, shape index: {}]   ;;  %s8878_s5 = inlined_call_operand.hbm [shape: f32[128,512], index: 5, kind: input, shape index: {}]   ;;  %s8879_s6 = inlined_call_operand.vmem [shape: f32[1,512], index: 6, kind: input, shape index: {}]   ;;  %s8880_s7 = inlined_call_operand.hbm [shape: f32[128,128], index: 7, kind: input, shape index: {}]   ;;  %s8881_s8 = inlined_call_operand.vmem [shape: f32[1,128], index: 8, kind: input, shape index: {}]   ;;  %s8882_s9 = inlined_call_operand.vmem [shape: f32[8,128], index: 9, kind: output, shape index: {}]  }
   0x1   :  { %15 = vsyncpa [#allocation5], 0 }
   0x2   :  { %16 = vsyncpa [#allocation8], 0  ;;  %s5372_s30 = smov [#allocation4]   ;;  %s5373_s11 = smov [#allocation2]  }
   0x3   :  { %s40_s10 = sshll.u32 %s5372_s30, 4  ;;  %s26_s12 = sshll.u32 %s5373_s11, 4  ;;  %s41_s10 = int_to_ptr.vmem [resolvable:$true] %s40_s10  ;;  %s27_s12 = int_to_ptr.vmem [resolvable:$true] %s26_s12 }
   0x4   :  { %s5294_s13 = scalar_lea.vmem %s41_s10, 8192  ;;  %p5299_p1 = scmp.lt.s32.totalorder %s41_s10, %s41_s10 }
   0x5   :  { %p5295_p0 = scmp.ne.s32.totalorder %s41_s10, %s5294_s13  ;;  %p5300_p2 = scmp.lt.s32.totalorder %s5294_s13, %s5294_s13 }
   0x7   :  { %p5301_p3 = por %p5300_p2, %p5299_p1 }
   0x9   :  { %p5302_p4 = pnand %p5301_p3, %p5295_p0 }
   0xb   :  { %5305 = shalt.err (!%p5302_p4)
}
   0xc   :  { %s5374_s14 = smov 512   ;;  %s5375_s15 = smov 32  }
   0xd   :  { %46 = dma.hbm_to_vmem [thread:$0]  %s8877_s4, 8192, %s41_s10, [#allocation5], %s5374_s14, %s5374_s14, %s5375_s15  }
   0xe   :  { %s5314_s18 = scalar_lea.vmem %s27_s12, 8192  ;;  %p5319_p6 = scmp.lt.s32.totalorder %s27_s12, %s27_s12 }
   0xf   :  { %p5315_p5 = scmp.ne.s32.totalorder %s27_s12, %s5314_s18  ;;  %p5320_p7 = scmp.lt.s32.totalorder %s5314_s18, %s5314_s18 }
  0x11   :  { %p5321_p8 = por %p5320_p7, %p5319_p6 }
  0x13   :  { %p5322_p9 = pnand %p5321_p8, %p5315_p5 }
  0x15   :  { %5325 = shalt.err (!%p5322_p9)
}
  0x16   :  { %32 = dma.hbm_to_vmem [thread:$0]  %s8875_s2, 8192, %s27_s12, [#allocation3], %s5374_s14, %s5374_s14, %s5375_s15  }
  0x17   :  { %s5376_s21 = smov [#allocation6]   ;;  %s5377_s23 = smov [#allocation7]  }
  0x18   :  { %s52_s22 = sshll.u32 %s5376_s21, 4  ;;  %s66_s24 = sshll.u32 %s5377_s23, 4  ;;  %s53_s22 = int_to_ptr.vmem [resolvable:$true] %s52_s22  ;;  %s67_s24 = int_to_ptr.vmem [resolvable:$true] %s66_s24 }
  0x19   :  { %s5334_s25 = scalar_lea.vmem %s53_s22, 8192  ;;  %p5339_p11 = scmp.lt.s32.totalorder %s53_s22, %s53_s22 }
  0x1a   :  { %p5335_p10 = scmp.ne.s32.totalorder %s53_s22, %s5334_s25  ;;  %p5340_p12 = scmp.lt.s32.totalorder %s5334_s25, %s5334_s25 }
  0x1c   :  { %p5341_p13 = por %p5340_p12, %p5339_p11 }
  0x1e   :  { %p5342_p0 = pnand %p5341_p13, %p5335_p10 }
  0x20   :  { %5345 = shalt.err (!%p5342_p0)
}
  0x21   :  { %58 = dma.hbm_to_vmem [thread:$0]  %s8878_s5, 8192, %s53_s22, [#allocation5], %s5374_s14, %s5374_s14, %s5375_s15  }
  0x22   :  { %s5354_s27 = scalar_lea.vmem %s67_s24, 2048  ;;  %p5359_p2 = scmp.lt.s32.totalorder %s67_s24, %s67_s24 }
  0x23   :  { %p5355_p1 = scmp.ne.s32.totalorder %s67_s24, %s5354_s27  ;;  %p5360_p3 = scmp.lt.s32.totalorder %s5354_s27, %s5354_s27 }
  0x25   :  { %p5361_p4 = por %p5360_p3, %p5359_p2 }
  0x27   :  { %p5362_p5 = pnand %p5361_p4, %p5355_p1 }
  0x29   :  { %5365 = shalt.err (!%p5362_p5)
}
  0x2a   :  { %s5378_s2 = smov 128   ;;  %s5379_s28 = smov 8  }
  0x2b   :  { %72 = dma.hbm_to_vmem [thread:$0]  %s8880_s7, 2048, %s67_s24, [#allocation8], %s5378_s2, %s5378_s2, %s5379_s28  }
  0x2c   :  { %5366 = dma.done.wait [#allocation3], 8192  }
  0x2d   :  { %5367 = vsyncadd [#allocation3], 4294959104 }
  0x2e   :  { %5368 = dma.done.wait [#allocation5], 16384  }
  0x2f   :  { %5369 = vsyncadd [#allocation5], 4294950912 }
  0x30   :  { %5370 = dma.done.wait [#allocation8], 2048  }
  0x31   :  { %5371 = vsyncadd [#allocation8], 4294965248  ;;  %v8883_v0 = vmov 0.0   ;;  %v100_v1 = vld [vmem:[%s8874_s1 + $0x28] sm:$0xff]  ;;  %v102_v2 = vld [vmem:[%s8874_s1 + $0x38] sm:$0xff]  ;;  %vm125_vm0 = vcmask 130048  }
  0x32   :  { %214 = vmatprep.mubr.f32.mxu0 %v8883_v0  ;;  %327 = vmatprep.mubr.f32.mxu1 %v8883_v0  ;;  %v99_v3 = vld [vmem:[%s8874_s1 + $0x20] sm:$0xff]  ;;  %v101_v4 = vld [vmem:[%s8874_s1 + $0x30] sm:$0xff]  ;;  %v96_v5 = vld [vmem:[%s8874_s1 + $0x8] sm:$0xff]  ;;  %vm5381_vm1 = vmmov 0  }
  0x33   :  { %178 = vmatprep.subr.mxu0 %v100_v1  ;;  %291 = vmatprep.subr.mxu1 %v102_v2  ;;  %v98_v6 = vld [vmem:[%s8874_s1 + $0x18] sm:$0xff]  ;;  %v95_v7 = vld [vmem:[%s8874_s1] sm:$0xff]  ;;  %v97_v8 = vld [vmem:[%s8874_s1 + $0x10] sm:$0xff] }
  0x34   :  { %179 = vmatpush1.msra.mxu0 %v99_v3  ;;  %292 = vmatpush1.msra.mxu1 %v101_v4  ;;  %v87_v9 = vld [vmem:[%s8873_s0] sm:$0xff]  ;;  %v437_v10 = vld [vmem:[#allocation2 + $0x1e8] sm:$0xff]  ;;  %v439_v11 = vld [vmem:[#allocation2 + $0x1f8] sm:$0xff] }
  0x35   :  { %180 = vmatprep.subr.mxu0 %v96_v5  ;;  %293 = vmatprep.subr.mxu1 %v98_v6  ;;  %v436_v12 = vld [vmem:[#allocation2 + $0x1e0] sm:$0xff]  ;;  %v438_v13 = vld [vmem:[#allocation2 + $0x1f0] sm:$0xff]  ;;  %v433_v14 = vld [vmem:[#allocation2 + $0x1c8] sm:$0xff] }
  0x36   :  { %181 = vmatpush1.msra.mxu0 %v95_v7  ;;  %294 = vmatpush1.msra.mxu1 %v97_v8  ;;  %v435_v15 = vld [vmem:[#allocation2 + $0x1d8] sm:$0xff]  ;;  %v432_v16 = vld [vmem:[#allocation2 + $0x1c0] sm:$0xff]  ;;  %v434_v17 = vld [vmem:[#allocation2 + $0x1d0] sm:$0xff] }
  0x37   :  { %4451 = vmatmul.mubr.msk.f32.vlgmr.msra.gmra.mxu0 %vm125_vm0, %v87_v9  ;;  %4459 = vmatmul.mubr.msk.f32.vlgmr.msra.gmra.mxu1 %vm125_vm0, %v87_v9  ;;  %v88_v18 = vld [vmem:[%s8873_s0 + $0x8] sm:$0xff]  ;;  %v431_v20 = vld [vmem:[#allocation2 + $0x1b8] sm:$0xff]  ;;  %v428_v21 = vld [vmem:[#allocation2 + $0x1a0] sm:$0xff] }
  0x38   :  { %590 = vmatprep.subr.mxu0 %v437_v10  ;;  %661 = vmatprep.subr.mxu1 %v439_v11  ;;  %v429_v19 = vld [vmem:[#allocation2 + $0x1a8] sm:$0xff]  ;;  %v430_v22 = vld [vmem:[#allocation2 + $0x1b0] sm:$0xff]  ;;  %v427_v24 = vld [vmem:[#allocation2 + $0x198] sm:$0xff] }
  0x39   :  { %591 = vmatpush1.msra.mxu0 %v436_v12  ;;  %662 = vmatpush1.msra.mxu1 %v438_v13  ;;  %v425_v23 = vld [vmem:[#allocation2 + $0x188] sm:$0xff]  ;;  %v424_v25 = vld [vmem:[#allocation2 + $0x180] sm:$0xff]  ;;  %v426_v26 = vld [vmem:[#allocation2 + $0x190] sm:$0xff] }
  0x3a   :  { %592 = vmatprep.subr.mxu0 %v433_v14  ;;  %663 = vmatprep.subr.mxu1 %v435_v15  ;;  %v89_v27 = vld [vmem:[%s8873_s0 + $0x10] sm:$0xff]  ;;  %v421_v28 = vld [vmem:[#allocation2 + $0x168] sm:$0xff]  ;;  %v423_v29 = vld [vmem:[#allocation2 + $0x178] sm:$0xff] }
  0x3b   :  { %220 = vmatprep.mubr.f32.mxu0 %v8883_v0  ;;  %333 = vmatprep.mubr.f32.mxu1 %v8883_v0  ;;  %v420_v30 = vld [vmem:[#allocation2 + $0x160] sm:$0xff]  ;;  %v422_v31 = vld [vmem:[#allocation2 + $0x170] sm:$0xff]  ;;  %v5489_v32 = vld [vmem:[#allocation2 + $0x148] sm:$0xff] }
  0x3c   :  { %593 = vmatpush1.msra.mxu0 %v432_v16  ;;  %664 = vmatpush1.msra.mxu1 %v434_v17  ;;  %v5491_v33 = vld [vmem:[#allocation2 + $0x158] sm:$0xff]  ;;  %v5493_v34 = vld [vmem:[#allocation2 + $0x140] sm:$0xff]  ;;  %v5495_v35 = vld [vmem:[#allocation2 + $0x150] sm:$0xff] }
  0x3d   :  { %4452 = vmatmul.mubr.msk.f32.gmra.mxu0 %vm125_vm0, %v88_v18  ;;  %4460 = vmatmul.mubr.msk.f32.gmra.mxu1 %vm125_vm0, %v88_v18  ;;  %v90_v36 = vld [vmem:[%s8873_s0 + $0x18] sm:$0xff]  ;;  %v5504_v37 = vld [vmem:[#allocation2 + $0x128] sm:$0xff]  ;;  %v5510_v39 = vld [vmem:[#allocation2 + $0x120] sm:$0xff] }
  0x3e   :  { %594 = vmatprep.subr.mxu0 %v429_v19  ;;  %665 = vmatprep.subr.mxu1 %v431_v20  ;;  %v5506_v38 = vld [vmem:[#allocation2 + $0x138] sm:$0xff]  ;;  %v5512_v40 = vld [vmem:[#allocation2 + $0x130] sm:$0xff]  ;;  %v5516_v41 = vld [vmem:[#allocation2 + $0x108] sm:$0xff] }
  0x3f   :  { %595 = vmatpush1.msra.mxu0 %v428_v21  ;;  %666 = vmatpush1.msra.mxu1 %v430_v22  ;;  %v5518_v42 = vld [vmem:[#allocation2 + $0x118] sm:$0xff]  ;;  %v5524_v43 = vld [vmem:[#allocation2 + $0x100] sm:$0xff]  ;;  %v5526_v44 = vld [vmem:[#allocation2 + $0x110] sm:$0xff] }
  0x40   :  { %596 = vmatprep.subr.mxu0 %v425_v23  ;;  %667 = vmatprep.subr.mxu1 %v427_v24  ;;  %v91_v45 = vld [vmem:[%s8873_s0 + $0x20] sm:$0xff]  ;;  %v5535_v46 = vld [vmem:[#allocation2 + $0xe8] sm:$0xff]  ;;  %v5537_v47 = vld [vmem:[#allocation2 + $0xf8] sm:$0xff] }
  0x41   :  { %226 = vmatprep.mubr.f32.mxu0 %v8883_v0  ;;  %339 = vmatprep.mubr.f32.mxu1 %v8883_v0  ;;  %v5541_v48 = vld [vmem:[#allocation2 + $0xe0] sm:$0xff]  ;;  %v5543_v49 = vld [vmem:[#allocation2 + $0xf0] sm:$0xff]  ;;  %v5547_v50 = vld [vmem:[#allocation2 + $0xc8] sm:$0xff] }
  0x42   :  { %597 = vmatpush1.msra.mxu0 %v424_v25  ;;  %668 = vmatpush1.msra.mxu1 %v426_v26  ;;  %v5549_v51 = vld [vmem:[#allocation2 + $0xd8] sm:$0xff]  ;;  %v5555_v52 = vld [vmem:[#allocation2 + $0xc0] sm:$0xff]  ;;  %v5557_v53 = vld [vmem:[#allocation2 + $0xd0] sm:$0xff] }
  0x43   :  { %4453 = vmatmul.mubr.msk.f32.gmra.mxu0 %vm125_vm0, %v89_v27  ;;  %4461 = vmatmul.mubr.msk.f32.gmra.mxu1 %vm125_vm0, %v89_v27  ;;  %v92_v54 = vld [vmem:[%s8873_s0 + $0x28] sm:$0xff]  ;;  %v5568_v56 = vld [vmem:[#allocation2 + $0xb8] sm:$0xff]  ;;  %v5572_v57 = vld [vmem:[#allocation2 + $0xa0] sm:$0xff] }
  0x44   :  { %598 = vmatprep.subr.mxu0 %v421_v28  ;;  %669 = vmatprep.subr.mxu1 %v423_v29  ;;  %v5566_v55 = vld [vmem:[#allocation2 + $0xa8] sm:$0xff]  ;;  %v5574_v58 = vld [vmem:[#allocation2 + $0xb0] sm:$0xff]  ;;  %v5580_v60 = vld [vmem:[#allocation2 + $0x98] sm:$0xff] }
  0x45   :  { %599 = vmatpush1.msra.mxu0 %v420_v30  ;;  %670 = vmatpush1.msra.mxu1 %v422_v31  ;;  %v5578_v59 = vld [vmem:[#allocation2 + $0x88] sm:$0xff]  ;;  %v5586_v61 = vld [vmem:[#allocation2 + $0x80] sm:$0xff]  ;;  %v5588_v62 = vld [vmem:[#allocation2 + $0x90] sm:$0xff] }
  0x46   :  { %600 = vmatprep.subr.mxu0 %v5489_v32  ;;  %671 = vmatprep.subr.mxu1 %v5491_v33  ;;  %v93_v63 = vld [vmem:[%s8873_s0 + $0x30] sm:$0xff]  ;;  %v5597_v1 = vld [vmem:[#allocation2 + $0x68] sm:$0xff]  ;;  %v5599_v2 = vld [vmem:[#allocation2 + $0x78] sm:$0xff] }
  0x47   :  { %232 = vmatprep.mubr.f32.mxu0 %v8883_v0  ;;  %345 = vmatprep.mubr.f32.mxu1 %v8883_v0  ;;  %v5603_v3 = vld [vmem:[#allocation2 + $0x60] sm:$0xff]  ;;  %v5605_v4 = vld [vmem:[#allocation2 + $0x70] sm:$0xff]  ;;  %v5609_v5 = vld [vmem:[#allocation2 + $0x48] sm:$0xff] }
  0x48   :  { %601 = vmatpush1.msra.mxu0 %v5493_v34  ;;  %672 = vmatpush1.msra.mxu1 %v5495_v35  ;;  %v5611_v6 = vld [vmem:[#allocation2 + $0x58] sm:$0xff]  ;;  %v5617_v7 = vld [vmem:[#allocation2 + $0x40] sm:$0xff]  ;;  %v5619_v8 = vld [vmem:[#allocation2 + $0x50] sm:$0xff] }
  0x49   :  { %4454 = vmatmul.mubr.msk.f32.gmra.mxu0 %vm125_vm0, %v90_v36  ;;  %4462 = vmatmul.mubr.msk.f32.gmra.mxu1 %vm125_vm0, %v90_v36  ;;  %v94_v9 = vld [vmem:[%s8873_s0 + $0x38] sm:$0xff]  ;;  %v5628_v10 = vld [vmem:[#allocation2 + $0x28] sm:$0xff]  ;;  %v5634_v12 = vld [vmem:[#allocation2 + $0x20] sm:$0xff] }
  0x4a   :  { %602 = vmatprep.subr.mxu0 %v5504_v37  ;;  %673 = vmatprep.subr.mxu1 %v5506_v38  ;;  %v5630_v11 = vld [vmem:[#allocation2 + $0x38] sm:$0xff]  ;;  %v5636_v13 = vld [vmem:[#allocation2 + $0x30] sm:$0xff]  ;;  %v5640_v14 = vld [vmem:[#allocation2 + $0x8] sm:$0xff] }
  0x4b   :  { %603 = vmatpush1.msra.mxu0 %v5510_v39  ;;  %674 = vmatpush1.msra.mxu1 %v5512_v40  ;;  %v5642_v15 = vld [vmem:[#allocation2 + $0x18] sm:$0xff]  ;;  %v5646_v16 = vld [vmem:[#allocation2] sm:$0xff]  ;;  %v5650_v17 = vld [vmem:[#allocation2 + $0x10] sm:$0xff] }
  0x4c   :  { %604 = vmatprep.subr.mxu0 %v5516_v41  ;;  %675 = vmatprep.subr.mxu1 %v5518_v42  ;;  %9422 = vst [vmem:[#allocation12_spill] sm:$0xff] %v5642_v15  ;;  %9423 = vst [vmem:[#allocation13_spill] sm:$0xff] %v5646_v16  ;;  %v5662_v18 = vld [vmem:[#allocation4 + $0x1e8] sm:$0xff]  ;;  %v5664_v19 = vld [vmem:[#allocation4 + $0x1f8] sm:$0xff] }
  0x4d   :  { %238 = vmatprep.mubr.f32.mxu0 %v8883_v0  ;;  %351 = vmatprep.mubr.f32.mxu1 %v8883_v0  ;;  %9424 = vst [vmem:[#allocation14_spill] sm:$0xff] %v5650_v17  ;;  %9425 = vst [vmem:[#allocation15_spill] sm:$0xff] %v5662_v18  ;;  %v5668_v20 = vld [vmem:[#allocation4 + $0x1e0] sm:$0xff]  ;;  %v5670_v21 = vld [vmem:[#allocation4 + $0x1f0] sm:$0xff] }
  0x4e   :  { %605 = vmatpush1.msra.mxu0 %v5524_v43  ;;  %676 = vmatpush1.msra.mxu1 %v5526_v44  ;;  %9426 = vst [vmem:[#allocation16_spill] sm:$0xff] %v5664_v19  ;;  %9427 = vst [vmem:[#allocation17_spill] sm:$0xff] %v5668_v20  ;;  %v5674_v22 = vld [vmem:[#allocation4 + $0x1c8] sm:$0xff]  ;;  %v5676_v23 = vld [vmem:[#allocation4 + $0x1d8] sm:$0xff] }
  0x4f   :  { %4455 = vmatmul.mubr.msk.f32.gmra.mxu0 %vm125_vm0, %v91_v45  ;;  %4463 = vmatmul.mubr.msk.f32.gmra.mxu1 %vm125_vm0, %v91_v45  ;;  %9428 = vst [vmem:[#allocation18_spill] sm:$0xff] %v5670_v21  ;;  %9429 = vst [vmem:[#allocation19_spill] sm:$0xff] %v5674_v22  ;;  %v5680_v24 = vld [vmem:[#allocation4 + $0x1c0] sm:$0xff]  ;;  %v5682_v25 = vld [vmem:[#allocation4 + $0x1d0] sm:$0xff] }
  0x50   :  { %606 = vmatprep.subr.mxu0 %v5535_v46  ;;  %677 = vmatprep.subr.mxu1 %v5537_v47  ;;  %9430 = vst [vmem:[#allocation20_spill] sm:$0xff] %v5676_v23  ;;  %9431 = vst [vmem:[#allocation21_spill] sm:$0xff] %v5680_v24  ;;  %v5686_v26 = vld [vmem:[#allocation4 + $0x1a8] sm:$0xff]  ;;  %v5688_v27 = vld [vmem:[#allocation4 + $0x1b8] sm:$0xff] }
  0x51   :  { %607 = vmatpush1.msra.mxu0 %v5541_v48  ;;  %678 = vmatpush1.msra.mxu1 %v5543_v49  ;;  %9432 = vst [vmem:[#allocation22_spill] sm:$0xff] %v5682_v25  ;;  %9433 = vst [vmem:[#allocation23_spill] sm:$0xff] %v5686_v26  ;;  %v5692_v28 = vld [vmem:[#allocation4 + $0x1a0] sm:$0xff]  ;;  %v5694_v29 = vld [vmem:[#allocation4 + $0x1b0] sm:$0xff] }
  0x52   :  { %608 = vmatprep.subr.mxu0 %v5547_v50  ;;  %679 = vmatprep.subr.mxu1 %v5549_v51  ;;  %9434 = vst [vmem:[#allocation24_spill] sm:$0xff] %v5688_v27  ;;  %9435 = vst [vmem:[#allocation25_spill] sm:$0xff] %v5692_v28  ;;  %v5698_v30 = vld [vmem:[#allocation4 + $0x188] sm:$0xff]  ;;  %v5700_v31 = vld [vmem:[#allocation4 + $0x198] sm:$0xff] }
  0x53   :  { %244 = vmatprep.mubr.f32.mxu0 %v8883_v0  ;;  %357 = vmatprep.mubr.f32.mxu1 %v8883_v0  ;;  %9436 = vst [vmem:[#allocation26_spill] sm:$0xff] %v5694_v29  ;;  %9437 = vst [vmem:[#allocation27_spill] sm:$0xff] %v5698_v30  ;;  %v5704_v36 = vld [vmem:[#allocation4 + $0x180] sm:$0xff]  ;;  %v5706_v45 = vld [vmem:[#allocation4 + $0x190] sm:$0xff] }
  0x54   :  { %609 = vmatpush1.msra.mxu0 %v5555_v52  ;;  %680 = vmatpush1.msra.mxu1 %v5557_v53  ;;  %9438 = vst [vmem:[#allocation28_spill] sm:$0xff] %v5700_v31  ;;  %9439 = vst [vmem:[#allocation29_spill] sm:$0xff] %v5704_v36 }
  0x55   :  { %4456 = vmatmul.mubr.msk.f32.gmra.mxu0 %vm125_vm0, %v92_v54  ;;  %4464 = vmatmul.mubr.msk.f32.gmra.mxu1 %vm125_vm0, %v92_v54  ;;  %9440 = vst [vmem:[#allocation30_spill] sm:$0xff] %v5706_v45  ;;  %v5710_v54 = vld [vmem:[#allocation4 + $0x168] sm:$0xff] }
  0x56   :  { %610 = vmatprep.subr.mxu0 %v5566_v55  ;;  %681 = vmatprep.subr.mxu1 %v5568_v56  ;;  %9441 = vst [vmem:[#allocation31_spill] sm:$0xff] %v5710_v54 }
  0x57   :  { %611 = vmatpush1.msra.mxu0 %v5572_v57  ;;  %682 = vmatpush1.msra.mxu1 %v5574_v58 }
  0x58   :  { %612 = vmatprep.subr.mxu0 %v5578_v59  ;;  %683 = vmatprep.subr.mxu1 %v5580_v60 }
  0x59   :  { %250 = vmatprep.mubr.f32.mxu0 %v8883_v0  ;;  %363 = vmatprep.mubr.f32.mxu1 %v8883_v0 }
  0x5a   :  { %613 = vmatpush1.msra.mxu0 %v5586_v61  ;;  %684 = vmatpush1.msra.mxu1 %v5588_v62 }
  0x5b   :  { %4457 = vmatmul.mubr.msk.f32.gmra.mxu0 %vm125_vm0, %v93_v63  ;;  %4465 = vmatmul.mubr.msk.f32.gmra.mxu1 %vm125_vm0, %v93_v63  ;;  %v5712_v63 = vld [vmem:[#allocation4 + $0x178] sm:$0xff] }
  0x5c   :  { %614 = vmatprep.subr.mxu0 %v5597_v1  ;;  %685 = vmatprep.subr.mxu1 %v5599_v2  ;;  %9442 = vst [vmem:[#allocation32_spill] sm:$0xff] %v5712_v63 }
  0x5d   :  { %615 = vmatpush1.msra.mxu0 %v5603_v3  ;;  %686 = vmatpush1.msra.mxu1 %v5605_v4 }
  0x5e   :  { %616 = vmatprep.subr.mxu0 %v5609_v5  ;;  %687 = vmatprep.subr.mxu1 %v5611_v6 }
  0x5f   :  { %256 = vmatprep.mubr.f32.mxu0 %v8883_v0  ;;  %369 = vmatprep.mubr.f32.mxu1 %v8883_v0 }
  0x60   :  { %617 = vmatpush1.msra.mxu0 %v5617_v7  ;;  %688 = vmatpush1.msra.mxu1 %v5619_v8 }
  0x61   :  { %4458 = vmatmul.mubr.msk.f32.gmra.mxu0 %vm125_vm0, %v94_v9  ;;  %4466 = vmatmul.mubr.msk.f32.gmra.mxu1 %vm125_vm0, %v94_v9  ;;  %v5716_v9 = vld [vmem:[#allocation4 + $0x160] sm:$0xff] }
  0x62   :  { %618 = vmatprep.subr.mxu0 %v5628_v10  ;;  %689 = vmatprep.subr.mxu1 %v5630_v11  ;;  %9443 = vst [vmem:[#allocation33_spill] sm:$0xff] %v5716_v9 }
  0x63   :  { %619 = vmatpush1.msra.mxu0 %v5634_v12  ;;  %690 = vmatpush1.msra.mxu1 %v5636_v13 }
  0x64   :  { %620 = vmatprep.subr.mxu0 %v5640_v14  ;;  %691 = vmatprep.subr.mxu1 %v5642_v15 }
  0x65   :  { %621 = vmatpush1.msra.mxu0 %v5646_v16  ;;  %654 = vmatprep.mubr.f32.mxu0 %v8883_v0 }
  0x66   :  { %692 = vmatpush1.msra.mxu1 %v5650_v17  ;;  %725 = vmatprep.mubr.f32.mxu1 %v8883_v0 }
  0x67   :  { %655 = vmatmul.mubr.f32.vlgmr.msra.gmra.mxu0 %v8883_v0  ;;  %726 = vmatmul.mubr.f32.vlgmr.msra.gmra.mxu1 %v8883_v0 }
  0x68   :  { %818 = vmatprep.mubr.f32.mxu0 %v8883_v0  ;;  %889 = vmatprep.mubr.f32.mxu1 %v8883_v0  ;;  %v5718_v0 = vld [vmem:[#allocation4 + $0x170] sm:$0xff] }
  0x69   :  { %754 = vmatprep.subr.mxu0 %v5662_v18  ;;  %825 = vmatprep.subr.mxu1 %v5664_v19  ;;  %9444 = vst [vmem:[#allocation34_spill] sm:$0xff] %v5718_v0 }
  0x6a   :  { %755 = vmatpush1.msra.mxu0 %v5668_v20  ;;  %826 = vmatpush1.msra.mxu1 %v5670_v21 }
  0x6b   :  { %756 = vmatprep.subr.mxu0 %v5674_v22  ;;  %827 = vmatprep.subr.mxu1 %v5676_v23 }
  0x6c   :  { %757 = vmatpush1.msra.mxu0 %v5680_v24  ;;  %828 = vmatpush1.msra.mxu1 %v5682_v25 }
  0x6d   :  { %758 = vmatprep.subr.mxu0 %v5686_v26  ;;  %829 = vmatprep.subr.mxu1 %v5688_v27  ;;  %v5808_v27 = vld [vmem:[#allocation4 + $0x60] sm:$0xff] }
  0x6e   :  { %759 = vmatpush1.msra.mxu0 %v5692_v28  ;;  %830 = vmatpush1.msra.mxu1 %v5694_v29  ;;  %v5784_v29 = vld [vmem:[#allocation4 + $0xa0] sm:$0xff]  ;;  %v5792_v28 = vld [vmem:[#allocation4 + $0x98] sm:$0xff]  ;;  %9475 = vst [vmem:[#allocation65_spill] sm:$0xff] %v5808_v27 }
  0x6f   :  { %760 = vmatprep.subr.mxu0 %v5698_v30  ;;  %831 = vmatprep.subr.mxu1 %v5700_v31  ;;  %v5722_v31 = vld [vmem:[#allocation4 + $0x148] sm:$0xff]  ;;  %v5776_v30 = vld [vmem:[#allocation4 + $0xd0] sm:$0xff]  ;;  %9467 = vst [vmem:[#allocation57_spill] sm:$0xff] %v5784_v29  ;;  %9470 = vst [vmem:[#allocation60_spill] sm:$0xff] %v5792_v28 }
  0x70   :  { %761 = vmatpush1.msra.mxu0 %v5704_v36  ;;  %832 = vmatpush1.msra.mxu1 %v5706_v45  ;;  %9445 = vst [vmem:[#allocation35_spill] sm:$0xff] %v5722_v31  ;;  %v5724_v36 = vld [vmem:[#allocation4 + $0x158] sm:$0xff]  ;;  %v5728_v45 = vld [vmem:[#allocation4 + $0x140] sm:$0xff]  ;;  %9464 = vst [vmem:[#allocation54_spill] sm:$0xff] %v5776_v30 }
  0x71   :  { %762 = vmatprep.subr.mxu0 %v5710_v54  ;;  %833 = vmatprep.subr.mxu1 %v5712_v63  ;;  %9446 = vst [vmem:[#allocation36_spill] sm:$0xff] %v5724_v36  ;;  %9447 = vst [vmem:[#allocation37_spill] sm:$0xff] %v5728_v45  ;;  %v5730_v54 = vld [vmem:[#allocation4 + $0x150] sm:$0xff]  ;;  %v5734_v63 = vld [vmem:[#allocation4 + $0x128] sm:$0xff] }
  0x72   :  { %763 = vmatpush1.msra.mxu0 %v5716_v9  ;;  %834 = vmatpush1.msra.mxu1 %v5718_v0  ;;  %9448 = vst [vmem:[#allocation38_spill] sm:$0xff] %v5730_v54  ;;  %9449 = vst [vmem:[#allocation39_spill] sm:$0xff] %v5734_v63  ;;  %v5736_v9 = vld [vmem:[#allocation4 + $0x138] sm:$0xff]  ;;  %v5740_v0 = vld [vmem:[#allocation4 + $0x120] sm:$0xff] }
  0x73   :  { %764 = vmatprep.subr.mxu0 %v5722_v31  ;;  %835 = vmatprep.subr.mxu1 %v5724_v36  ;;  %9450 = vst [vmem:[#allocation40_spill] sm:$0xff] %v5736_v9  ;;  %9451 = vst [vmem:[#allocation41_spill] sm:$0xff] %v5740_v0  ;;  %v5742_v31 = vld [vmem:[#allocation4 + $0x130] sm:$0xff]  ;;  %v5746_v36 = vld [vmem:[#allocation4 + $0x108] sm:$0xff] }
  0x74   :  { %765 = vmatpush1.msra.mxu0 %v5728_v45  ;;  %836 = vmatpush1.msra.mxu1 %v5730_v54  ;;  %9452 = vst [vmem:[#allocation42_spill] sm:$0xff] %v5742_v31  ;;  %9453 = vst [vmem:[#allocation43_spill] sm:$0xff] %v5746_v36  ;;  %v5748_v45 = vld [vmem:[#allocation4 + $0x118] sm:$0xff]  ;;  %v5752_v54 = vld [vmem:[#allocation4 + $0x100] sm:$0xff] }
  0x75   :  { %766 = vmatprep.subr.mxu0 %v5734_v63  ;;  %837 = vmatprep.subr.mxu1 %v5736_v9  ;;  %9454 = vst [vmem:[#allocation44_spill] sm:$0xff] %v5748_v45  ;;  %9455 = vst [vmem:[#allocation45_spill] sm:$0xff] %v5752_v54  ;;  %v5754_v63 = vld [vmem:[#allocation4 + $0x110] sm:$0xff]  ;;  %v5758_v9 = vld [vmem:[#allocation4 + $0xe8] sm:$0xff] }
  0x76   :  { %767 = vmatpush1.msra.mxu0 %v5740_v0  ;;  %838 = vmatpush1.msra.mxu1 %v5742_v31  ;;  %9456 = vst [vmem:[#allocation46_spill] sm:$0xff] %v5754_v63  ;;  %9457 = vst [vmem:[#allocation47_spill] sm:$0xff] %v5758_v9  ;;  %v5760_v0 = vld [vmem:[#allocation4 + $0xf8] sm:$0xff]  ;;  %v5764_v31 = vld [vmem:[#allocation4 + $0xe0] sm:$0xff] }
  0x77   :  { %768 = vmatprep.subr.mxu0 %v5746_v36  ;;  %839 = vmatprep.subr.mxu1 %v5748_v45  ;;  %9458 = vst [vmem:[#allocation48_spill] sm:$0xff] %v5760_v0  ;;  %9459 = vst [vmem:[#allocation49_spill] sm:$0xff] %v5764_v31  ;;  %v5766_v36 = vld [vmem:[#allocation4 + $0xf0] sm:$0xff]  ;;  %v5768_v45 = vld [vmem:[#allocation4 + $0xc8] sm:$0xff] }
  0x78   :  { %769 = vmatpush1.msra.mxu0 %v5752_v54  ;;  %840 = vmatpush1.msra.mxu1 %v5754_v63  ;;  %9460 = vst [vmem:[#allocation50_spill] sm:$0xff] %v5766_v36  ;;  %9461 = vst [vmem:[#allocation51_spill] sm:$0xff] %v5768_v45  ;;  %v5772_v54 = vld [vmem:[#allocation4 + $0xd8] sm:$0xff]  ;;  %v5774_v63 = vld [vmem:[#allocation4 + $0xc0] sm:$0xff] }
  0x79   :  { %770 = vmatprep.subr.mxu0 %v5758_v9  ;;  %841 = vmatprep.subr.mxu1 %v5760_v0  ;;  %9462 = vst [vmem:[#allocation52_spill] sm:$0xff] %v5772_v54  ;;  %9463 = vst [vmem:[#allocation53_spill] sm:$0xff] %v5774_v63  ;;  %v5780_v0 = vld [vmem:[#allocation4 + $0xa8] sm:$0xff]  ;;  %v5782_v9 = vld [vmem:[#allocation4 + $0xb8] sm:$0xff] }
  0x7a   :  { %771 = vmatpush1.msra.mxu0 %v5764_v31  ;;  %842 = vmatpush1.msra.mxu1 %v5766_v36  ;;  %9465 = vst [vmem:[#allocation55_spill] sm:$0xff] %v5780_v0  ;;  %9466 = vst [vmem:[#allocation56_spill] sm:$0xff] %v5782_v9  ;;  %v5788_v36 = vld [vmem:[#allocation4 + $0xb0] sm:$0xff]  ;;  %v5790_v31 = vld [vmem:[#allocation4 + $0x88] sm:$0xff] }
  0x7b   :  { %772 = vmatprep.subr.mxu0 %v5768_v45  ;;  %843 = vmatprep.subr.mxu1 %v5772_v54  ;;  %9468 = vst [vmem:[#allocation58_spill] sm:$0xff] %v5788_v36  ;;  %9469 = vst [vmem:[#allocation59_spill] sm:$0xff] %v5790_v31  ;;  %v5796_v54 = vld [vmem:[#allocation4 + $0x80] sm:$0xff]  ;;  %v5798_v45 = vld [vmem:[#allocation4 + $0x90] sm:$0xff] }
  0x7c   :  { %773 = vmatpush1.msra.mxu0 %v5774_v63  ;;  %844 = vmatpush1.msra.mxu1 %v5776_v30  ;;  %9471 = vst [vmem:[#allocation61_spill] sm:$0xff] %v5796_v54  ;;  %9472 = vst [vmem:[#allocation62_spill] sm:$0xff] %v5798_v45  ;;  %v5802_v63 = vld [vmem:[#allocation4 + $0x68] sm:$0xff]  ;;  %v5804_v30 = vld [vmem:[#allocation4 + $0x78] sm:$0xff] }
  0x7d   :  { %774 = vmatprep.subr.mxu0 %v5780_v0  ;;  %845 = vmatprep.subr.mxu1 %v5782_v9  ;;  %9473 = vst [vmem:[#allocation63_spill] sm:$0xff] %v5802_v63  ;;  %9474 = vst [vmem:[#allocation64_spill] sm:$0xff] %v5804_v30  ;;  %v5810_v0 = vld [vmem:[#allocation4 + $0x70] sm:$0xff]  ;;  %v5814_v9 = vld [vmem:[#allocation4 + $0x48] sm:$0xff] }
  0x7e   :  { %775 = vmatpush1.msra.mxu0 %v5784_v29  ;;  %846 = vmatpush1.msra.mxu1 %v5788_v36  ;;  %9476 = vst [vmem:[#allocation66_spill] sm:$0xff] %v5810_v0  ;;  %9477 = vst [vmem:[#allocation67_spill] sm:$0xff] %v5814_v9  ;;  %v5816_v29 = vld [vmem:[#allocation4 + $0x58] sm:$0xff]  ;;  %v5820_v36 = vld [vmem:[#allocation4 + $0x40] sm:$0xff] }
  0x7f   :  { %776 = vmatprep.subr.mxu0 %v5790_v31  ;;  %847 = vmatprep.subr.mxu1 %v5792_v28  ;;  %9478 = vst [vmem:[#allocation68_spill] sm:$0xff] %v5816_v29  ;;  %9479 = vst [vmem:[#allocation69_spill] sm:$0xff] %v5820_v36  ;;  %v5822_v31 = vld [vmem:[#allocation4 + $0x50] sm:$0xff]  ;;  %v5826_v28 = vld [vmem:[#allocation4 + $0x28] sm:$0xff] }
  0x80   :  { %777 = vmatpush1.msra.mxu0 %v5796_v54  ;;  %848 = vmatpush1.msra.mxu1 %v5798_v45  ;;  %9480 = vst [vmem:[#allocation70_spill] sm:$0xff] %v5822_v31  ;;  %9481 = vst [vmem:[#allocation71_spill] sm:$0xff] %v5826_v28  ;;  %v5828_v54 = vld [vmem:[#allocation4 + $0x38] sm:$0xff]  ;;  %v5832_v45 = vld [vmem:[#allocation4 + $0x20] sm:$0xff] }
  0x81   :  { %778 = vmatprep.subr.mxu0 %v5802_v63  ;;  %849 = vmatprep.subr.mxu1 %v5804_v30  ;;  %9482 = vst [vmem:[#allocation72_spill] sm:$0xff] %v5828_v54  ;;  %9483 = vst [vmem:[#allocation73_spill] sm:$0xff] %v5832_v45  ;;  %v5834_v63 = vld [vmem:[#allocation4 + $0x30] sm:$0xff]  ;;  %v5838_v30 = vld [vmem:[#allocation4 + $0x8] sm:$0xff] }
  0x82   :  { %779 = vmatpush1.msra.mxu0 %v5808_v27  ;;  %850 = vmatpush1.msra.mxu1 %v5810_v0  ;;  %9484 = vst [vmem:[#allocation74_spill] sm:$0xff] %v5834_v63  ;;  %9485 = vst [vmem:[#allocation75_spill] sm:$0xff] %v5838_v30  ;;  %v5840_v27 = vld [vmem:[#allocation4 + $0x18] sm:$0xff]  ;;  %v5844_v0 = vld [vmem:[#allocation4] sm:$0xff] }
  0x83   :  { %780 = vmatprep.subr.mxu0 %v5814_v9  ;;  %851 = vmatprep.subr.mxu1 %v5816_v29  ;;  %9486 = vst [vmem:[#allocation76_spill] sm:$0xff] %v5840_v27  ;;  %9487 = vst [vmem:[#allocation77_spill] sm:$0xff] %v5844_v0  ;;  %v5846_v9 = vld [vmem:[#allocation4 + $0x10] sm:$0xff]  ;;  %v5850_v29 = vld [vmem:[#allocation6 + $0x1e8] sm:$0xff] }
  0x84   :  { %781 = vmatpush1.msra.mxu0 %v5820_v36  ;;  %852 = vmatpush1.msra.mxu1 %v5822_v31  ;;  %9488 = vst [vmem:[#allocation78_spill] sm:$0xff] %v5846_v9  ;;  %9489 = vst [vmem:[#allocation79_spill] sm:$0xff] %v5850_v29  ;;  %v5852_v36 = vld [vmem:[#allocation6 + $0x1f8] sm:$0xff] }
  0x85   :  { %782 = vmatprep.subr.mxu0 %v5826_v28  ;;  %853 = vmatprep.subr.mxu1 %v5828_v54  ;;  %9490 = vst [vmem:[#allocation80_spill] sm:$0xff] %v5852_v36  ;;  %v105_v54 = vlaneseq }
  0x86   :  { %783 = vmatpush1.msra.mxu0 %v5832_v45  ;;  %854 = vmatpush1.msra.mxu1 %v5834_v63 }
  0x87   :  { %784 = vmatprep.subr.mxu0 %v5838_v30  ;;  %855 = vmatprep.subr.mxu1 %v5840_v27  ;;  %v5860_v45 = vshrl.u32 %v105_v54, 7 }
  0x88   :  { %785 = vmatpush1.msra.mxu0 %v5844_v0  ;;  %856 = vmatpush1.msra.mxu1 %v5846_v9  ;;  %v103_v0 = vld [vmem:[%s8876_s3] sm:$0xf] }
  0x89   :  { %896 = vmatprep.subr.mxu0 %v5850_v29  ;;  %967 = vmatprep.subr.mxu1 %v5852_v36  ;;  %9491 = vst [vmem:[#allocation81_spill] sm:$0xff] %v5860_v45  ;;  %v8950_v31 = vsub.s32 0, %v5860_v45  ;;  %v8952_v30 = vsub.s32 2, %v5860_v45  ;;  %v8956_v36 = vsub.s32 1, %v5860_v45  ;;  %v8957_v54 = vsub.s32 3, %v5860_v45 }
  0x8b   :  { %v108_v27 = vrot.slane %v103_v0, %v8950_v31  ;;  %v5881_v26 = vrot.slane %v103_v0, %v8952_v30  ;;  %v112_v23 = vrot.slane %v103_v0, %v8956_v36  ;;  %v5887_v22 = vrot.slane %v103_v0, %v8957_v54 }
  0xf7   :  { %v5862_v63 = vpop.f32.mrf.mxu0  ;;  %v5864_v28 = vpop.f32.mrf.mxu1 }
  0xf9   :  { %v5871_v9 = vpop.f32.mrf.mxu0  ;;  %v5873_v29 = vpop.f32.mrf.mxu1 }
  0xfd   :  { %v222_v25 = vpop.f32.mrf.mxu0  ;;  %v335_v24 = vpop.f32.mrf.mxu1 }
  0xfe   :  { %v5889_v21 = vadd.f32 %v222_v25, %v108_v27  ;;  %v5892_v20 = vadd.f32 %v335_v24, %v5881_v26 }
  0xff   :  { %v224_v19 = vpop.f32.mrf.mxu0  ;;  %v337_v31 = vpop.f32.mrf.mxu1 }
 0x100   :  { %9492 = vst [vmem:[#allocation82_spill] sm:$0xff] %v5892_v20  ;;  %v5894_v18 = vadd.f32 %v224_v19, %v112_v23  ;;  %v5897_v30 = vadd.f32 %v337_v31, %v5887_v22 }
 0x102   :  { %9493 = vst [vmem:[#allocation83_spill] sm:$0xff] %v5894_v18  ;;  %9494 = vst [vmem:[#allocation84_spill] sm:$0xff] %v5897_v30 }
 0x103   :  { %v228_v17 = vpop.f32.mrf.mxu0  ;;  %v341_v16 = vpop.f32.mrf.mxu1 }
 0x104   :  { %v5899_v15 = vadd.f32 %v228_v17, %v108_v27  ;;  %v5902_v36 = vadd.f32 %v341_v16, %v5881_v26 }
 0x105   :  { %v230_v0 = vpop.f32.mrf.mxu0  ;;  %v343_v25 = vpop.f32.mrf.mxu1 }
 0x106   :  { %9495 = vst [vmem:[#allocation85_spill] sm:$0xff] %v5899_v15  ;;  %9496 = vst [vmem:[#allocation86_spill] sm:$0xff] %v5902_v36  ;;  %v5904_v54 = vadd.f32 %v230_v0, %v112_v23  ;;  %v5907_v24 = vadd.f32 %v343_v25, %v5887_v22 }
 0x108   :  { %9497 = vst [vmem:[#allocation87_spill] sm:$0xff] %v5904_v54  ;;  %9498 = vst [vmem:[#allocation88_spill] sm:$0xff] %v5907_v24 }
 0x109   :  { %v234_v45 = vpop.f32.mrf.mxu0  ;;  %v347_v19 = vpop.f32.mrf.mxu1 }
 0x10a   :  { %v5909_v20 = vadd.f32 %v234_v45, %v108_v27  ;;  %v5912_v31 = vadd.f32 %v347_v19, %v5881_v26 }
 0x10b   :  { %v236_v30 = vpop.f32.mrf.mxu0  ;;  %v349_v17 = vpop.f32.mrf.mxu1 }
 0x10c   :  { %9499 = vst [vmem:[#allocation89_spill] sm:$0xff] %v5909_v20  ;;  %9500 = vst [vmem:[#allocation90_spill] sm:$0xff] %v5912_v31  ;;  %v5914_v15 = vadd.f32 %v236_v30, %v112_v23  ;;  %v5917_v16 = vadd.f32 %v349_v17, %v5887_v22 }
 0x10e   :  { %9501 = vst [vmem:[#allocation91_spill] sm:$0xff] %v5914_v15  ;;  %9502 = vst [vmem:[#allocation92_spill] sm:$0xff] %v5917_v16 }
 0x10f   :  { %v240_v36 = vpop.f32.mrf.mxu0  ;;  %v353_v0 = vpop.f32.mrf.mxu1 }
 0x110   :  { %v5919_v54 = vadd.f32 %v240_v36, %v108_v27  ;;  %v5922_v25 = vadd.f32 %v353_v0, %v5881_v26 }
 0x111   :  { %v242_v24 = vpop.f32.mrf.mxu0  ;;  %v355_v45 = vpop.f32.mrf.mxu1 }
 0x112   :  { %9503 = vst [vmem:[#allocation93_spill] sm:$0xff] %v5919_v54  ;;  %9504 = vst [vmem:[#allocation94_spill] sm:$0xff] %v5922_v25  ;;  %v5924_v20 = vadd.f32 %v242_v24, %v112_v23  ;;  %v5927_v19 = vadd.f32 %v355_v45, %v5887_v22 }
 0x114   :  { %9505 = vst [vmem:[#allocation95_spill] sm:$0xff] %v5924_v20  ;;  %9506 = vst [vmem:[#allocation96_spill] sm:$0xff] %v5927_v19 }
 0x115   :  { %v246_v31 = vpop.f32.mrf.mxu0  ;;  %v359_v30 = vpop.f32.mrf.mxu1 }
 0x116   :  { %v5929_v15 = vadd.f32 %v246_v31, %v108_v27  ;;  %v5932_v17 = vadd.f32 %v359_v30, %v5881_v26 }
 0x117   :  { %v248_v16 = vpop.f32.mrf.mxu0  ;;  %v361_v36 = vpop.f32.mrf.mxu1 }
 0x118   :  { %9507 = vst [vmem:[#allocation97_spill] sm:$0xff] %v5929_v15  ;;  %9508 = vst [vmem:[#allocation98_spill] sm:$0xff] %v5932_v17  ;;  %v5934_v54 = vadd.f32 %v248_v16, %v112_v23  ;;  %v5937_v0 = vadd.f32 %v361_v36, %v5887_v22 }
 0x11a   :  { %9509 = vst [vmem:[#allocation99_spill] sm:$0xff] %v5934_v54  ;;  %9510 = vst [vmem:[#allocation100_spill] sm:$0xff] %v5937_v0 }
 0x11b   :  { %v252_v25 = vpop.f32.mrf.mxu0  ;;  %v365_v24 = vpop.f32.mrf.mxu1 }
 0x11c   :  { %v5939_v20 = vadd.f32 %v252_v25, %v108_v27  ;;  %v5942_v45 = vadd.f32 %v365_v24, %v5881_v26 }
 0x11d   :  { %v254_v19 = vpop.f32.mrf.mxu0  ;;  %v367_v31 = vpop.f32.mrf.mxu1 }
 0x11e   :  { %9511 = vst [vmem:[#allocation101_spill] sm:$0xff] %v5939_v20  ;;  %9512 = vst [vmem:[#allocation102_spill] sm:$0xff] %v5942_v45  ;;  %v5944_v15 = vadd.f32 %v254_v19, %v112_v23  ;;  %v5947_v30 = vadd.f32 %v367_v31, %v5887_v22  ;;  %v217_v19 = vadd.f32 %v5862_v63, %v108_v27 }
 0x11f   :  { %v219_v31 = vadd.f32 %v5871_v9, %v112_v23 }
 0x120   :  { %9513 = vst [vmem:[#allocation103_spill] sm:$0xff] %v5944_v15  ;;  %9514 = vst [vmem:[#allocation104_spill] sm:$0xff] %v5947_v30 }
 0x121   :  { %v258_v17 = vpop.f32.mrf.mxu0  ;;  %v371_v16 = vpop.f32.mrf.mxu1 }
 0x122   :  { %v5949_v54 = vadd.f32 %v258_v17, %v108_v27  ;;  %v5952_v36 = vadd.f32 %v371_v16, %v5881_v26  ;;  %v330_v16 = vadd.f32 %v5864_v28, %v5881_v26 }
 0x123   :  { %v260_v0 = vpop.f32.mrf.mxu0  ;;  %v373_v25 = vpop.f32.mrf.mxu1 }
 0x124   :  { %9515 = vst [vmem:[#allocation105_spill] sm:$0xff] %v5949_v54  ;;  %9516 = vst [vmem:[#allocation106_spill] sm:$0xff] %v5952_v36  ;;  %v5954_v20 = vadd.f32 %v260_v0, %v112_v23  ;;  %v5957_v24 = vadd.f32 %v373_v25, %v5887_v22  ;;  %v332_v25 = vadd.f32 %v5873_v29, %v5887_v22 }
 0x126   :  { %9517 = vst [vmem:[#allocation107_spill] sm:$0xff] %v5954_v20  ;;  %9518 = vst [vmem:[#allocation108_spill] sm:$0xff] %v5957_v24  ;;  %v6024_v24 = vld [vmem:[#allocation6 + $0x158] sm:$0xff] }
 0x127   :  { %v656_v45 = vpop.f32.mrf.mxu0  ;;  %v727_v54 = vpop.f32.mrf.mxu1  ;;  %9529 = vst [vmem:[#allocation119_spill] sm:$0xff] %v6024_v24 }
 0x128   :  { %v732_v30 = vadd.f32 %v656_v45, %v217_v19  ;;  %v734_v0 = vadd.f32 %v727_v54, %v330_v16  ;;  %v5972_v16 = vld [vmem:[#allocation6 + $0x1f0] sm:$0xff] }
 0x129   :  { %v658_v15 = vpop.f32.mrf.mxu0  ;;  %v729_v20 = vpop.f32.mrf.mxu1 }
 0x12a   :  { %v736_v18 = vmul.f32 0.5, %v732_v30  ;;  %v733_v17 = vadd.f32 %v658_v15, %v219_v31  ;;  %v735_v27 = vadd.f32 %v729_v20, %v332_v25  ;;  %v5976_v25 = vld [vmem:[#allocation6 + $0x1d8] sm:$0xff] }
 0x12c   :  { %4530 = vtanh.f32 %v736_v18  ;;  %v740_v36 = vmul.f32 0.5, %v733_v17  ;;  %v745_v63 = vmul.f32 0.5, %v735_v27  ;;  %v5970_v17 = vld [vmem:[#allocation6 + $0x1e0] sm:$0xff] }
 0x12d   :  { %v5980_v27 = vld [vmem:[#allocation6 + $0x1c0] sm:$0xff] }
 0x12e   :  { %4532 = vtanh.f32 %v740_v36 }
 0x12f   :  { %4534 = vtanh.f32 %v734_v0  ;;  %v5974_v0 = vld [vmem:[#allocation6 + $0x1c8] sm:$0xff] }
 0x130   :  { %4536 = vtanh.f32 %v745_v63  ;;  %v5982_v63 = vld [vmem:[#allocation6 + $0x1d0] sm:$0xff] }
 0x139   :  { %v4531_v23 = vpop.eup %4530 }
 0x13a   :  { %v738_v9 = vmul.f32 0.5, %v4531_v23  ;;  %v5986_v23 = vld [vmem:[#allocation6 + $0x1a8] sm:$0xff] }
 0x13b   :  { %v4533_v45 = vpop.eup %4532 }
 0x13c   :  { %v739_v30 = vadd.f32 0.5, %v738_v9  ;;  %v742_v15 = vmul.f32 0.5, %v4533_v45  ;;  %v4535_v31 = vpop.eup %4534  ;;  %v5988_v9 = vld [vmem:[#allocation6 + $0x1b8] sm:$0xff]  ;;  %v5992_v45 = vld [vmem:[#allocation6 + $0x1a0] sm:$0xff] }
 0x13d   :  { %v4537_v54 = vpop.eup %4536 }
 0x13e   :  { %v743_v19 = vadd.f32 0.5, %v742_v15  ;;  %v750_v18 = vmul.f32 %v4535_v31, %v739_v30  ;;  %v747_v36 = vmul.f32 0.5, %v4537_v54  ;;  %v5994_v30 = vld [vmem:[#allocation6 + $0x1b0] sm:$0xff]  ;;  %v5998_v15 = vld [vmem:[#allocation6 + $0x188] sm:$0xff]  ;;  %v6004_v31 = vld [vmem:[#allocation6 + $0x180] sm:$0xff] }
 0x13f   :  { %9519 = vst [vmem:[#allocation109_spill] sm:$0xff] %v5994_v30  ;;  %9520 = vst [vmem:[#allocation110_spill] sm:$0xff] %v5998_v15  ;;  %v6012_v54 = vld [vmem:[#allocation6 + $0x178] sm:$0xff] }
 0x140   :  { %v749_v26 = vmul.f32 0.0, %v743_v19  ;;  %v748_v22 = vadd.f32 0.5, %v747_v36  ;;  %v6000_v19 = vld [vmem:[#allocation6 + $0x198] sm:$0xff]  ;;  %9522 = vst [vmem:[#allocation112_spill] sm:$0xff] %v6004_v31  ;;  %9525 = vst [vmem:[#allocation115_spill] sm:$0xff] %v6012_v54  ;;  %v6016_v36 = vld [vmem:[#allocation6 + $0x160] sm:$0xff] }
 0x141   :  { %9521 = vst [vmem:[#allocation111_spill] sm:$0xff] %v6000_v19  ;;  %9526 = vst [vmem:[#allocation116_spill] sm:$0xff] %v6016_v36 }
 0x142   :  { %v5965_v28 = vadd.f32 %v750_v18, %v749_v26  ;;  %v6006_v26 = vld [vmem:[#allocation6 + $0x190] sm:$0xff]  ;;  %v6010_v18 = vld [vmem:[#allocation6 + $0x168] sm:$0xff] }
 0x143   :  { %9523 = vst [vmem:[#allocation113_spill] sm:$0xff] %v6006_v26  ;;  %9524 = vst [vmem:[#allocation114_spill] sm:$0xff] %v6010_v18 }
 0x144   :  { %4538 = vtanh.f32 %v5965_v28 }
 0x151   :  { %v4539_v29 = vpop.eup %4538 }
 0x152   :  { %v5968_v20 = vmul.f32 %v4539_v29, %v748_v22  ;;  %v6018_v22 = vld [vmem:[#allocation6 + $0x170] sm:$0xff]  ;;  %v6022_v29 = vld [vmem:[#allocation6 + $0x148] sm:$0xff] }
 0x153   :  { %9527 = vst [vmem:[#allocation117_spill] sm:$0xff] %v6018_v22  ;;  %9528 = vst [vmem:[#allocation118_spill] sm:$0xff] %v6022_v29 }
 0x154   :  { %819 = vmatmul.mubr.f32.vlgmr.msra.gmra.mxu0 %v5968_v20  ;;  %890 = vmatmul.mubr.f32.vlgmr.msra.gmra.mxu1 %v5968_v20 }
 0x155   :  { %897 = vmatpush1.msra.mxu0 %v5970_v17  ;;  %968 = vmatpush1.msra.mxu1 %v5972_v16 }
 0x156   :  { %898 = vmatprep.subr.mxu0 %v5974_v0  ;;  %969 = vmatprep.subr.mxu1 %v5976_v25 }
 0x157   :  { %899 = vmatpush1.msra.mxu0 %v5980_v27  ;;  %970 = vmatpush1.msra.mxu1 %v5982_v63 }
 0x158   :  { %900 = vmatprep.subr.mxu0 %v5986_v23  ;;  %971 = vmatprep.subr.mxu1 %v5988_v9 }
 0x159   :  { %901 = vmatpush1.msra.mxu0 %v5992_v45  ;;  %972 = vmatpush1.msra.mxu1 %v5994_v30  ;;  %v6028_v30 = vld [vmem:[#allocation6 + $0x140] sm:$0xff] }
 0x15a   :  { %902 = vmatprep.subr.mxu0 %v5998_v15  ;;  %973 = vmatprep.subr.mxu1 %v6000_v19  ;;  %9530 = vst [vmem:[#allocation120_spill] sm:$0xff] %v6028_v30  ;;  %v6030_v15 = vld [vmem:[#allocation6 + $0x150] sm:$0xff]  ;;  %v6034_v19 = vld [vmem:[#allocation6 + $0x128] sm:$0xff] }
 0x15b   :  { %903 = vmatpush1.msra.mxu0 %v6004_v31  ;;  %974 = vmatpush1.msra.mxu1 %v6006_v26  ;;  %9531 = vst [vmem:[#allocation121_spill] sm:$0xff] %v6030_v15  ;;  %9532 = vst [vmem:[#allocation122_spill] sm:$0xff] %v6034_v19  ;;  %v6036_v31 = vld [vmem:[#allocation6 + $0x138] sm:$0xff]  ;;  %v6040_v26 = vld [vmem:[#allocation6 + $0x120] sm:$0xff] }
 0x15c   :  { %904 = vmatprep.subr.mxu0 %v6010_v18  ;;  %975 = vmatprep.subr.mxu1 %v6012_v54  ;;  %9533 = vst [vmem:[#allocation123_spill] sm:$0xff] %v6036_v31  ;;  %9534 = vst [vmem:[#allocation124_spill] sm:$0xff] %v6040_v26  ;;  %v6042_v18 = vld [vmem:[#allocation6 + $0x130] sm:$0xff]  ;;  %v6046_v54 = vld [vmem:[#allocation6 + $0x108] sm:$0xff] }
 0x15d   :  { %905 = vmatpush1.msra.mxu0 %v6016_v36  ;;  %976 = vmatpush1.msra.mxu1 %v6018_v22  ;;  %9535 = vst [vmem:[#allocation125_spill] sm:$0xff] %v6042_v18  ;;  %9536 = vst [vmem:[#allocation126_spill] sm:$0xff] %v6046_v54  ;;  %v6048_v36 = vld [vmem:[#allocation6 + $0x118] sm:$0xff]  ;;  %v6052_v22 = vld [vmem:[#allocation6 + $0x100] sm:$0xff] }
 0x15e   :  { %906 = vmatprep.subr.mxu0 %v6022_v29  ;;  %977 = vmatprep.subr.mxu1 %v6024_v24  ;;  %9537 = vst [vmem:[#allocation127_spill] sm:$0xff] %v6048_v36  ;;  %9538 = vst [vmem:[#allocation128_spill] sm:$0xff] %v6052_v22  ;;  %v6054_v29 = vld [vmem:[#allocation6 + $0x110] sm:$0xff]  ;;  %v6058_v24 = vld [vmem:[#allocation6 + $0xe8] sm:$0xff] }
 0x15f   :  { %907 = vmatpush1.msra.mxu0 %v6028_v30  ;;  %978 = vmatpush1.msra.mxu1 %v6030_v15  ;;  %9539 = vst [vmem:[#allocation129_spill] sm:$0xff] %v6054_v29  ;;  %9540 = vst [vmem:[#allocation130_spill] sm:$0xff] %v6058_v24  ;;  %v6060_v30 = vld [vmem:[#allocation6 + $0xf8] sm:$0xff]  ;;  %v6064_v15 = vld [vmem:[#allocation6 + $0xe0] sm:$0xff] }
 0x160   :  { %908 = vmatprep.subr.mxu0 %v6034_v19  ;;  %979 = vmatprep.subr.mxu1 %v6036_v31  ;;  %9541 = vst [vmem:[#allocation131_spill] sm:$0xff] %v6060_v30  ;;  %9542 = vst [vmem:[#allocation132_spill] sm:$0xff] %v6064_v15  ;;  %v6066_v19 = vld [vmem:[#allocation6 + $0xf0] sm:$0xff]  ;;  %v6070_v31 = vld [vmem:[#allocation6 + $0xc8] sm:$0xff] }
 0x161   :  { %909 = vmatpush1.msra.mxu0 %v6040_v26  ;;  %980 = vmatpush1.msra.mxu1 %v6042_v18  ;;  %9543 = vst [vmem:[#allocation133_spill] sm:$0xff] %v6066_v19  ;;  %9544 = vst [vmem:[#allocation134_spill] sm:$0xff] %v6070_v31  ;;  %v6072_v26 = vld [vmem:[#allocation6 + $0xd8] sm:$0xff]  ;;  %v6076_v18 = vld [vmem:[#allocation6 + $0xc0] sm:$0xff] }
 0x162   :  { %910 = vmatprep.subr.mxu0 %v6046_v54  ;;  %981 = vmatprep.subr.mxu1 %v6048_v36  ;;  %9545 = vst [vmem:[#allocation135_spill] sm:$0xff] %v6072_v26  ;;  %9546 = vst [vmem:[#allocation136_spill] sm:$0xff] %v6076_v18  ;;  %v6078_v54 = vld [vmem:[#allocation6 + $0xd0] sm:$0xff]  ;;  %v6082_v36 = vld [vmem:[#allocation6 + $0xa8] sm:$0xff] }
 0x163   :  { %911 = vmatpush1.msra.mxu0 %v6052_v22  ;;  %982 = vmatpush1.msra.mxu1 %v6054_v29  ;;  %9547 = vst [vmem:[#allocation137_spill] sm:$0xff] %v6078_v54  ;;  %9548 = vst [vmem:[#allocation138_spill] sm:$0xff] %v6082_v36  ;;  %v6084_v22 = vld [vmem:[#allocation6 + $0xb8] sm:$0xff]  ;;  %v6088_v29 = vld [vmem:[#allocation6 + $0xa0] sm:$0xff] }
 0x164   :  { %912 = vmatprep.subr.mxu0 %v6058_v24  ;;  %983 = vmatprep.subr.mxu1 %v6060_v30  ;;  %9549 = vst [vmem:[#allocation139_spill] sm:$0xff] %v6084_v22  ;;  %9550 = vst [vmem:[#allocation140_spill] sm:$0xff] %v6088_v29  ;;  %v6090_v24 = vld [vmem:[#allocation6 + $0xb0] sm:$0xff]  ;;  %v6094_v30 = vld [vmem:[#allocation6 + $0x88] sm:$0xff] }
 0x165   :  { %913 = vmatpush1.msra.mxu0 %v6064_v15  ;;  %984 = vmatpush1.msra.mxu1 %v6066_v19  ;;  %9551 = vst [vmem:[#allocation141_spill] sm:$0xff] %v6090_v24  ;;  %9552 = vst [vmem:[#allocation142_spill] sm:$0xff] %v6094_v30  ;;  %v6096_v15 = vld [vmem:[#allocation6 + $0x98] sm:$0xff]  ;;  %v6100_v19 = vld [vmem:[#allocation6 + $0x80] sm:$0xff] }
 0x166   :  { %914 = vmatprep.subr.mxu0 %v6070_v31  ;;  %985 = vmatprep.subr.mxu1 %v6072_v26  ;;  %9553 = vst [vmem:[#allocation143_spill] sm:$0xff] %v6096_v15  ;;  %9554 = vst [vmem:[#allocation144_spill] sm:$0xff] %v6100_v19  ;;  %v6102_v31 = vld [vmem:[#allocation6 + $0x90] sm:$0xff]  ;;  %v6106_v26 = vld [vmem:[#allocation6 + $0x68] sm:$0xff] }
 0x167   :  { %915 = vmatpush1.msra.mxu0 %v6076_v18  ;;  %986 = vmatpush1.msra.mxu1 %v6078_v54  ;;  %9555 = vst [vmem:[#allocation145_spill] sm:$0xff] %v6102_v31  ;;  %9556 = vst [vmem:[#allocation146_spill] sm:$0xff] %v6106_v26  ;;  %v6108_v18 = vld [vmem:[#allocation6 + $0x78] sm:$0xff]  ;;  %v6112_v54 = vld [vmem:[#allocation6 + $0x60] sm:$0xff] }
 0x168   :  { %916 = vmatprep.subr.mxu0 %v6082_v36  ;;  %987 = vmatprep.subr.mxu1 %v6084_v22  ;;  %9557 = vst [vmem:[#allocation147_spill] sm:$0xff] %v6108_v18  ;;  %9558 = vst [vmem:[#allocation148_spill] sm:$0xff] %v6112_v54  ;;  %v6114_v36 = vld [vmem:[#allocation6 + $0x70] sm:$0xff]  ;;  %v6118_v22 = vld [vmem:[#allocation6 + $0x48] sm:$0xff] }
 0x169   :  { %917 = vmatpush1.msra.mxu0 %v6088_v29  ;;  %988 = vmatpush1.msra.mxu1 %v6090_v24  ;;  %9559 = vst [vmem:[#allocation149_spill] sm:$0xff] %v6114_v36  ;;  %v6120_v29 = vld [vmem:[#allocation6 + $0x58] sm:$0xff]  ;;  %v6124_v24 = vld [vmem:[#allocation6 + $0x40] sm:$0xff] }
 0x16a   :  { %918 = vmatprep.subr.mxu0 %v6094_v30  ;;  %989 = vmatprep.subr.mxu1 %v6096_v15  ;;  %9560 = vst [vmem:[#allocation150_spill] sm:$0xff] %v6120_v29  ;;  %v6126_v30 = vld [vmem:[#allocation6 + $0x50] sm:$0xff]  ;;  %v6130_v15 = vld [vmem:[#allocation6 + $0x28] sm:$0xff] }
 0x16b   :  { %919 = vmatpush1.msra.mxu0 %v6100_v19  ;;  %990 = vmatpush1.msra.mxu1 %v6102_v31  ;;  %9561 = vst [vmem:[#allocation151_spill] sm:$0xff] %v6126_v30  ;;  %v6132_v19 = vld [vmem:[#allocation6 + $0x38] sm:$0xff]  ;;  %v6136_v31 = vld [vmem:[#allocation6 + $0x20] sm:$0xff] }
 0x16c   :  { %920 = vmatprep.subr.mxu0 %v6106_v26  ;;  %991 = vmatprep.subr.mxu1 %v6108_v18  ;;  %9562 = vst [vmem:[#allocation152_spill] sm:$0xff] %v6136_v31  ;;  %v6138_v26 = vld [vmem:[#allocation6 + $0x30] sm:$0xff]  ;;  %v6142_v18 = vld [vmem:[#allocation6 + $0x8] sm:$0xff] }
 0x16d   :  { %921 = vmatpush1.msra.mxu0 %v6112_v54  ;;  %992 = vmatpush1.msra.mxu1 %v6114_v36  ;;  %9563 = vst [vmem:[#allocation153_spill] sm:$0xff] %v6138_v26  ;;  %9564 = vst [vmem:[#allocation154_spill] sm:$0xff] %v6142_v18  ;;  %v6144_v54 = vld [vmem:[#allocation6 + $0x18] sm:$0xff]  ;;  %v6148_v36 = vld [vmem:[#allocation6] sm:$0xff] }
 0x16e   :  { %922 = vmatprep.subr.mxu0 %v6118_v22  ;;  %993 = vmatprep.subr.mxu1 %v6120_v29  ;;  %9565 = vst [vmem:[#allocation155_spill] sm:$0xff] %v6144_v54  ;;  %9566 = vst [vmem:[#allocation156_spill] sm:$0xff] %v6148_v36  ;;  %v6152_v29 = vld [vmem:[#allocation6 + $0x10] sm:$0xff] }
 0x16f   :  { %923 = vmatpush1.msra.mxu0 %v6124_v24  ;;  %994 = vmatpush1.msra.mxu1 %v6126_v30  ;;  %9567 = vst [vmem:[#allocation157_spill] sm:$0xff] %v6152_v29  ;;  %v9568_v30 = vmov 0.0  }
 0x170   :  { %924 = vmatprep.subr.mxu0 %v6130_v15  ;;  %995 = vmatprep.subr.mxu1 %v6132_v19 }
 0x171   :  { %925 = vmatpush1.msra.mxu0 %v6136_v31  ;;  %996 = vmatpush1.msra.mxu1 %v6138_v26  ;;  %v6162_v31 = vld [vmem:[#allocation2 + $0x1e8] sm:$0xff]  ;;  %v6165_v26 = vld [vmem:[#allocation2 + $0x1f8] sm:$0xff] }
 0x172   :  { %926 = vmatprep.subr.mxu0 %v6142_v18  ;;  %997 = vmatprep.subr.mxu1 %v6144_v54  ;;  %9569 = vst [vmem:[#allocation158_spill] sm:$0xff] %v6162_v31  ;;  %9570 = vst [vmem:[#allocation159_spill] sm:$0xff] %v6165_v26  ;;  %v6168_v54 = vld [vmem:[#allocation2 + $0x1e0] sm:$0xff]  ;;  %v6177_v18 = vld [vmem:[#allocation2 + $0x1d8] sm:$0xff] }
 0x173   :  { %927 = vmatpush1.msra.mxu0 %v6148_v36  ;;  %960 = vmatprep.mubr.f32.mxu0 %v9568_v30  ;;  %9571 = vst [vmem:[#allocation160_spill] sm:$0xff] %v6168_v54  ;;  %v6171_v36 = vld [vmem:[#allocation2 + $0x1f0] sm:$0xff]  ;;  %9574 = vst [vmem:[#allocation163_spill] sm:$0xff] %v6177_v18 }
 0x174   :  { %998 = vmatpush1.msra.mxu1 %v6152_v29  ;;  %1031 = vmatprep.mubr.f32.mxu1 %v9568_v30  ;;  %9572 = vst [vmem:[#allocation161_spill] sm:$0xff] %v6171_v36  ;;  %v6174_v29 = vld [vmem:[#allocation2 + $0x1c8] sm:$0xff] }
 0x175   :  { %961 = vmatmul.mubr.f32.vlgmr.msra.gmra.mxu0 %v9568_v30  ;;  %1032 = vmatmul.mubr.f32.vlgmr.msra.gmra.mxu1 %v9568_v30  ;;  %9573 = vst [vmem:[#allocation162_spill] sm:$0xff] %v6174_v29 }
 0x176   :  { %1060 = vmatprep.subr.mxu0 %v6162_v31  ;;  %1131 = vmatprep.subr.mxu1 %v6165_v26  ;;  %v6180_v31 = vld [vmem:[#allocation2 + $0x1c0] sm:$0xff]  ;;  %v6183_v26 = vld [vmem:[#allocation2 + $0x1d0] sm:$0xff] }
 0x177   :  { %1061 = vmatpush1.msra.mxu0 %v6168_v54  ;;  %1132 = vmatpush1.msra.mxu1 %v6171_v36  ;;  %9575 = vst [vmem:[#allocation164_spill] sm:$0xff] %v6180_v31  ;;  %9576 = vst [vmem:[#allocation165_spill] sm:$0xff] %v6183_v26  ;;  %v6186_v54 = vld [vmem:[#allocation2 + $0x1a8] sm:$0xff]  ;;  %v6189_v36 = vld [vmem:[#allocation2 + $0x1b8] sm:$0xff] }
 0x178   :  { %1062 = vmatprep.subr.mxu0 %v6174_v29  ;;  %1133 = vmatprep.subr.mxu1 %v6177_v18  ;;  %9577 = vst [vmem:[#allocation166_spill] sm:$0xff] %v6186_v54  ;;  %9578 = vst [vmem:[#allocation167_spill] sm:$0xff] %v6189_v36  ;;  %v6192_v29 = vld [vmem:[#allocation2 + $0x1a0] sm:$0xff]  ;;  %v6195_v18 = vld [vmem:[#allocation2 + $0x1b0] sm:$0xff] }
 0x179   :  { %1063 = vmatpush1.msra.mxu0 %v6180_v31  ;;  %1134 = vmatpush1.msra.mxu1 %v6183_v26  ;;  %9579 = vst [vmem:[#allocation168_spill] sm:$0xff] %v6192_v29  ;;  %9580 = vst [vmem:[#allocation169_spill] sm:$0xff] %v6195_v18  ;;  %v6198_v31 = vld [vmem:[#allocation2 + $0x188] sm:$0xff]  ;;  %v6201_v26 = vld [vmem:[#allocation2 + $0x198] sm:$0xff] }
 0x17a   :  { %1064 = vmatprep.subr.mxu0 %v6186_v54  ;;  %1135 = vmatprep.subr.mxu1 %v6189_v36  ;;  %9581 = vst [vmem:[#allocation170_spill] sm:$0xff] %v6198_v31  ;;  %9582 = vst [vmem:[#allocation171_spill] sm:$0xff] %v6201_v26  ;;  %v6204_v54 = vld [vmem:[#allocation2 + $0x180] sm:$0xff]  ;;  %v6207_v36 = vld [vmem:[#allocation2 + $0x190] sm:$0xff] }
 0x17b   :  { %1065 = vmatpush1.msra.mxu0 %v6192_v29  ;;  %1136 = vmatpush1.msra.mxu1 %v6195_v18  ;;  %v6210_v29 = vld [vmem:[#allocation2 + $0x168] sm:$0xff]  ;;  %v6213_v18 = vld [vmem:[#allocation2 + $0x178] sm:$0xff] }
 0x17c   :  { %1066 = vmatprep.subr.mxu0 %v6198_v31  ;;  %1137 = vmatprep.subr.mxu1 %v6201_v26  ;;  %v6216_v31 = vld [vmem:[#allocation2 + $0x160] sm:$0xff]  ;;  %v6219_v26 = vld [vmem:[#allocation2 + $0x170] sm:$0xff] }
 0x17d   :  { %1067 = vmatpush1.msra.mxu0 %v6204_v54  ;;  %1138 = vmatpush1.msra.mxu1 %v6207_v36 }
 0x17e   :  { %1068 = vmatprep.subr.mxu0 %v6210_v29  ;;  %1139 = vmatprep.subr.mxu1 %v6213_v18 }
 0x17f   :  { %1069 = vmatpush1.msra.mxu0 %v6216_v31  ;;  %1140 = vmatpush1.msra.mxu1 %v6219_v26 }
 0x180   :  { %1070 = vmatprep.subr.mxu0 %v5489_v32  ;;  %1141 = vmatprep.subr.mxu1 %v5491_v33  ;;  %v9583_v32 = vld [vmem:[#allocation12_spill] sm:$0xff]  ;;  %v9584_v33 = vld [vmem:[#allocation13_spill] sm:$0xff] }
 0x181   :  { %1071 = vmatpush1.msra.mxu0 %v5493_v34  ;;  %1142 = vmatpush1.msra.mxu1 %v5495_v35  ;;  %v9585_v34 = vld [vmem:[#allocation14_spill] sm:$0xff]  ;;  %v9586_v35 = vld [vmem:[#allocation15_spill] sm:$0xff] }
 0x182   :  { %1072 = vmatprep.subr.mxu0 %v5504_v37  ;;  %1143 = vmatprep.subr.mxu1 %v5506_v38  ;;  %v9587_v37 = vld [vmem:[#allocation16_spill] sm:$0xff]  ;;  %v9588_v38 = vld [vmem:[#allocation17_spill] sm:$0xff] }
 0x183   :  { %1073 = vmatpush1.msra.mxu0 %v5510_v39  ;;  %1144 = vmatpush1.msra.mxu1 %v5512_v40  ;;  %v9589_v39 = vld [vmem:[#allocation18_spill] sm:$0xff]  ;;  %v9590_v40 = vld [vmem:[#allocation19_spill] sm:$0xff] }
 0x184   :  { %1074 = vmatprep.subr.mxu0 %v5516_v41  ;;  %1145 = vmatprep.subr.mxu1 %v5518_v42  ;;  %v9591_v41 = vld [vmem:[#allocation20_spill] sm:$0xff]  ;;  %v9592_v42 = vld [vmem:[#allocation21_spill] sm:$0xff] }
 0x185   :  { %1075 = vmatpush1.msra.mxu0 %v5524_v43  ;;  %1146 = vmatpush1.msra.mxu1 %v5526_v44  ;;  %v9593_v43 = vld [vmem:[#allocation22_spill] sm:$0xff]  ;;  %v9594_v44 = vld [vmem:[#allocation23_spill] sm:$0xff] }
 0x186   :  { %1076 = vmatprep.subr.mxu0 %v5535_v46  ;;  %1147 = vmatprep.subr.mxu1 %v5537_v47  ;;  %v9595_v46 = vld [vmem:[#allocation24_spill] sm:$0xff]  ;;  %v9596_v47 = vld [vmem:[#allocation25_spill] sm:$0xff] }
 0x187   :  { %1077 = vmatpush1.msra.mxu0 %v5541_v48  ;;  %1148 = vmatpush1.msra.mxu1 %v5543_v49  ;;  %v9597_v48 = vld [vmem:[#allocation26_spill] sm:$0xff]  ;;  %v9598_v49 = vld [vmem:[#allocation27_spill] sm:$0xff] }
 0x188   :  { %1078 = vmatprep.subr.mxu0 %v5547_v50  ;;  %1149 = vmatprep.subr.mxu1 %v5549_v51  ;;  %v9599_v50 = vld [vmem:[#allocation28_spill] sm:$0xff]  ;;  %v9600_v51 = vld [vmem:[#allocation29_spill] sm:$0xff] }
 0x189   :  { %1079 = vmatpush1.msra.mxu0 %v5555_v52  ;;  %1150 = vmatpush1.msra.mxu1 %v5557_v53  ;;  %v9601_v52 = vld [vmem:[#allocation30_spill] sm:$0xff]  ;;  %v9602_v53 = vld [vmem:[#allocation31_spill] sm:$0xff] }
 0x18a   :  { %1080 = vmatprep.subr.mxu0 %v5566_v55  ;;  %1151 = vmatprep.subr.mxu1 %v5568_v56  ;;  %v9603_v55 = vld [vmem:[#allocation32_spill] sm:$0xff]  ;;  %v9604_v56 = vld [vmem:[#allocation33_spill] sm:$0xff] }
 0x18b   :  { %1081 = vmatpush1.msra.mxu0 %v5572_v57  ;;  %1152 = vmatpush1.msra.mxu1 %v5574_v58  ;;  %v9605_v57 = vld [vmem:[#allocation34_spill] sm:$0xff]  ;;  %v9606_v58 = vld [vmem:[#allocation35_spill] sm:$0xff] }
 0x18c   :  { %1082 = vmatprep.subr.mxu0 %v5578_v59  ;;  %1153 = vmatprep.subr.mxu1 %v5580_v60  ;;  %v9607_v59 = vld [vmem:[#allocation36_spill] sm:$0xff]  ;;  %v9608_v60 = vld [vmem:[#allocation37_spill] sm:$0xff] }
 0x18d   :  { %1083 = vmatpush1.msra.mxu0 %v5586_v61  ;;  %1154 = vmatpush1.msra.mxu1 %v5588_v62  ;;  %v9609_v61 = vld [vmem:[#allocation38_spill] sm:$0xff]  ;;  %v9610_v62 = vld [vmem:[#allocation39_spill] sm:$0xff] }
 0x18e   :  { %1084 = vmatprep.subr.mxu0 %v5597_v1  ;;  %1155 = vmatprep.subr.mxu1 %v5599_v2  ;;  %v9611_v1 = vld [vmem:[#allocation40_spill] sm:$0xff]  ;;  %v9612_v2 = vld [vmem:[#allocation41_spill] sm:$0xff] }
 0x18f   :  { %1085 = vmatpush1.msra.mxu0 %v5603_v3  ;;  %1156 = vmatpush1.msra.mxu1 %v5605_v4  ;;  %v9613_v3 = vld [vmem:[#allocation42_spill] sm:$0xff]  ;;  %v9614_v4 = vld [vmem:[#allocation43_spill] sm:$0xff] }
 0x190   :  { %1086 = vmatprep.subr.mxu0 %v5609_v5  ;;  %1157 = vmatprep.subr.mxu1 %v5611_v6  ;;  %v9615_v5 = vld [vmem:[#allocation44_spill] sm:$0xff]  ;;  %v9616_v6 = vld [vmem:[#allocation45_spill] sm:$0xff] }
 0x191   :  { %1087 = vmatpush1.msra.mxu0 %v5617_v7  ;;  %1158 = vmatpush1.msra.mxu1 %v5619_v8  ;;  %v9617_v7 = vld [vmem:[#allocation46_spill] sm:$0xff]  ;;  %v9618_v8 = vld [vmem:[#allocation47_spill] sm:$0xff] }
 0x192   :  { %1088 = vmatprep.subr.mxu0 %v5628_v10  ;;  %1159 = vmatprep.subr.mxu1 %v5630_v11  ;;  %v9619_v10 = vld [vmem:[#allocation48_spill] sm:$0xff]  ;;  %v9620_v11 = vld [vmem:[#allocation49_spill] sm:$0xff] }
 0x193   :  { %1089 = vmatpush1.msra.mxu0 %v5634_v12  ;;  %1160 = vmatpush1.msra.mxu1 %v5636_v13  ;;  %v9621_v12 = vld [vmem:[#allocation50_spill] sm:$0xff]  ;;  %v9622_v13 = vld [vmem:[#allocation51_spill] sm:$0xff] }
 0x194   :  { %1090 = vmatprep.subr.mxu0 %v5640_v14  ;;  %1161 = vmatprep.subr.mxu1 %v9583_v32  ;;  %v9623_v14 = vld [vmem:[#allocation52_spill] sm:$0xff]  ;;  %v9625_v32 = vld [vmem:[#allocation54_spill] sm:$0xff] }
 0x195   :  { %1091 = vmatpush1.msra.mxu0 %v9584_v33  ;;  %1124 = vmatprep.mubr.f32.mxu0 %v9568_v30  ;;  %v9626_v33 = vld [vmem:[#allocation55_spill] sm:$0xff] }
 0x196   :  { %1162 = vmatpush1.msra.mxu1 %v9585_v34  ;;  %1195 = vmatprep.mubr.f32.mxu1 %v9568_v30  ;;  %v9627_v34 = vld [vmem:[#allocation56_spill] sm:$0xff] }
 0x197   :  { %1125 = vmatmul.mubr.f32.vlgmr.msra.gmra.mxu0 %v5968_v20  ;;  %1196 = vmatmul.mubr.f32.vlgmr.msra.gmra.mxu1 %v5968_v20  ;;  %v9624_v20 = vld [vmem:[#allocation53_spill] sm:$0xff] }
 0x198   :  { %1224 = vmatprep.subr.mxu0 %v9586_v35  ;;  %1295 = vmatprep.subr.mxu1 %v9587_v37  ;;  %v9628_v35 = vld [vmem:[#allocation57_spill] sm:$0xff]  ;;  %v9629_v37 = vld [vmem:[#allocation58_spill] sm:$0xff] }
 0x199   :  { %1225 = vmatpush1.msra.mxu0 %v9588_v38  ;;  %1296 = vmatpush1.msra.mxu1 %v9589_v39  ;;  %v9630_v38 = vld [vmem:[#allocation59_spill] sm:$0xff]  ;;  %v9631_v39 = vld [vmem:[#allocation60_spill] sm:$0xff] }
 0x19a   :  { %1226 = vmatprep.subr.mxu0 %v9590_v40  ;;  %1297 = vmatprep.subr.mxu1 %v9591_v41  ;;  %v9632_v40 = vld [vmem:[#allocation61_spill] sm:$0xff]  ;;  %v9633_v41 = vld [vmem:[#allocation62_spill] sm:$0xff] }
 0x19b   :  { %1227 = vmatpush1.msra.mxu0 %v9592_v42  ;;  %1298 = vmatpush1.msra.mxu1 %v9593_v43  ;;  %v9634_v42 = vld [vmem:[#allocation63_spill] sm:$0xff]  ;;  %v9635_v43 = vld [vmem:[#allocation64_spill] sm:$0xff] }
 0x19c   :  { %1228 = vmatprep.subr.mxu0 %v9594_v44  ;;  %1299 = vmatprep.subr.mxu1 %v9595_v46  ;;  %v9636_v44 = vld [vmem:[#allocation65_spill] sm:$0xff]  ;;  %v9637_v46 = vld [vmem:[#allocation66_spill] sm:$0xff] }
 0x19d   :  { %1229 = vmatpush1.msra.mxu0 %v9596_v47  ;;  %1300 = vmatpush1.msra.mxu1 %v9597_v48  ;;  %v9638_v47 = vld [vmem:[#allocation67_spill] sm:$0xff]  ;;  %v9639_v48 = vld [vmem:[#allocation68_spill] sm:$0xff] }
 0x19e   :  { %1230 = vmatprep.subr.mxu0 %v9598_v49  ;;  %1301 = vmatprep.subr.mxu1 %v9599_v50  ;;  %v9640_v49 = vld [vmem:[#allocation69_spill] sm:$0xff]  ;;  %v9641_v50 = vld [vmem:[#allocation70_spill] sm:$0xff] }
 0x19f   :  { %1231 = vmatpush1.msra.mxu0 %v9600_v51  ;;  %1302 = vmatpush1.msra.mxu1 %v9601_v52  ;;  %v9642_v51 = vld [vmem:[#allocation71_spill] sm:$0xff]  ;;  %v9643_v52 = vld [vmem:[#allocation72_spill] sm:$0xff] }
 0x1a0   :  { %1232 = vmatprep.subr.mxu0 %v9602_v53  ;;  %1303 = vmatprep.subr.mxu1 %v9603_v55  ;;  %v9644_v53 = vld [vmem:[#allocation73_spill] sm:$0xff]  ;;  %v9645_v55 = vld [vmem:[#allocation74_spill] sm:$0xff] }
 0x1a1   :  { %1233 = vmatpush1.msra.mxu0 %v9604_v56  ;;  %1304 = vmatpush1.msra.mxu1 %v9605_v57  ;;  %v9646_v56 = vld [vmem:[#allocation75_spill] sm:$0xff]  ;;  %v9647_v57 = vld [vmem:[#allocation76_spill] sm:$0xff] }
 0x1a2   :  { %1234 = vmatprep.subr.mxu0 %v9606_v58  ;;  %1305 = vmatprep.subr.mxu1 %v9607_v59  ;;  %v9648_v58 = vld [vmem:[#allocation77_spill] sm:$0xff]  ;;  %v9649_v59 = vld [vmem:[#allocation78_spill] sm:$0xff] }
 0x1a3   :  { %1235 = vmatpush1.msra.mxu0 %v9608_v60  ;;  %1306 = vmatpush1.msra.mxu1 %v9609_v61  ;;  %v9650_v60 = vld [vmem:[#allocation79_spill] sm:$0xff]  ;;  %v9651_v61 = vld [vmem:[#allocation80_spill] sm:$0xff] }
 0x1a4   :  { %1236 = vmatprep.subr.mxu0 %v9610_v62  ;;  %1307 = vmatprep.subr.mxu1 %v9611_v1 }
 0x1a5   :  { %1237 = vmatpush1.msra.mxu0 %v9612_v2  ;;  %1308 = vmatpush1.msra.mxu1 %v9613_v3 }
 0x1a6   :  { %1238 = vmatprep.subr.mxu0 %v9614_v4  ;;  %1309 = vmatprep.subr.mxu1 %v9615_v5 }
 0x1a7   :  { %1239 = vmatpush1.msra.mxu0 %v9616_v6  ;;  %1310 = vmatpush1.msra.mxu1 %v9617_v7 }
 0x1a8   :  { %1240 = vmatprep.subr.mxu0 %v9618_v8  ;;  %1311 = vmatprep.subr.mxu1 %v9619_v10 }
 0x1a9   :  { %1241 = vmatpush1.msra.mxu0 %v9620_v11  ;;  %1312 = vmatpush1.msra.mxu1 %v9621_v12 }
 0x1aa   :  { %1242 = vmatprep.subr.mxu0 %v9622_v13  ;;  %1313 = vmatprep.subr.mxu1 %v9623_v14  ;;  %v9652_v14 = vld [vmem:[#allocation83_spill] sm:$0xff] }
 0x1ab   :  { %1243 = vmatpush1.msra.mxu0 %v9624_v20  ;;  %1314 = vmatpush1.msra.mxu1 %v9625_v32  ;;  %v9653_v32 = vld [vmem:[#allocation82_spill] sm:$0xff] }
 0x1ac   :  { %1244 = vmatprep.subr.mxu0 %v9626_v33  ;;  %1315 = vmatprep.subr.mxu1 %v9627_v34 }
 0x1ad   :  { %1245 = vmatpush1.msra.mxu0 %v9628_v35  ;;  %1316 = vmatpush1.msra.mxu1 %v9629_v37  ;;  %v9654_v37 = vld [vmem:[#allocation84_spill] sm:$0xff] }
 0x1ae   :  { %1246 = vmatprep.subr.mxu0 %v9630_v38  ;;  %1317 = vmatprep.subr.mxu1 %v9631_v39  ;;  %v568_v39 = vld [vmem:[%s8879_s6] sm:$0xf] }
 0x1af   :  { %1247 = vmatpush1.msra.mxu0 %v9632_v40  ;;  %1318 = vmatpush1.msra.mxu1 %v9633_v41  ;;  %v9655_v40 = vld [vmem:[#allocation81_spill] sm:$0xff] }
 0x1b0   :  { %1248 = vmatprep.subr.mxu0 %v9634_v42  ;;  %1319 = vmatprep.subr.mxu1 %v9635_v43 }
 0x1b1   :  { %1249 = vmatpush1.msra.mxu0 %v9636_v44  ;;  %1320 = vmatpush1.msra.mxu1 %v9637_v46  ;;  %v9657_v46 = vsub.s32 0, %v9655_v40 }
 0x1b2   :  { %1250 = vmatprep.subr.mxu0 %v9638_v47  ;;  %1321 = vmatprep.subr.mxu1 %v9639_v48 }
 0x1b3   :  { %1251 = vmatpush1.msra.mxu0 %v9640_v49  ;;  %1322 = vmatpush1.msra.mxu1 %v9641_v50  ;;  %v6351_v47 = vrot.slane %v568_v39, %v9657_v46  ;;  %v9672_v46 = vld [vmem:[#allocation121_spill] sm:$0xff] }
 0x1b4   :  { %1252 = vmatprep.subr.mxu0 %v9642_v51  ;;  %1323 = vmatprep.subr.mxu1 %v9643_v52 }
 0x1b5   :  { %1253 = vmatpush1.msra.mxu0 %v9644_v53  ;;  %1324 = vmatpush1.msra.mxu1 %v9645_v55 }
 0x1b6   :  { %1254 = vmatprep.subr.mxu0 %v9646_v56  ;;  %1325 = vmatprep.subr.mxu1 %v9647_v57 }
 0x1b7   :  { %1255 = vmatpush1.msra.mxu0 %v9648_v58  ;;  %1326 = vmatpush1.msra.mxu1 %v9649_v59 }
 0x1b8   :  { %1288 = vmatprep.mubr.f32.mxu0 %v9568_v30  ;;  %1359 = vmatprep.mubr.f32.mxu1 %v9568_v30 }
 0x1b9   :  { %1366 = vmatprep.subr.mxu0 %v9650_v60  ;;  %1437 = vmatprep.subr.mxu1 %v9651_v61 }
 0x214   :  { %v820_v62 = vpop.f32.mrf.mxu0  ;;  %v891_v1 = vpop.f32.mrf.mxu1 }
 0x216   :  { %v822_v2 = vpop.f32.mrf.mxu0  ;;  %v893_v3 = vpop.f32.mrf.mxu1 }
 0x235   :  { %v962_v4 = vpop.f32.mrf.mxu0  ;;  %v1033_v5 = vpop.f32.mrf.mxu1 }
 0x236   :  { %v963_v48 = vadd.f32 %v962_v4, %v820_v62  ;;  %v9658_v62 = vsub.s32 2, %v9655_v40 }
 0x237   :  { %v964_v6 = vpop.f32.mrf.mxu0  ;;  %v1035_v7 = vpop.f32.mrf.mxu1 }
 0x238   :  { %v965_v42 = vadd.f32 %v964_v6, %v822_v2  ;;  %v1038_v56 = vadd.f32 %v963_v48, %v6351_v47  ;;  %v6361_v4 = vrot.slane %v568_v39, %v9658_v62  ;;  %v1034_v6 = vadd.f32 %v1033_v5, %v891_v1  ;;  %v9673_v48 = vld [vmem:[#allocation122_spill] sm:$0xff]  ;;  %v9686_v62 = vld [vmem:[#allocation135_spill] sm:$0xff] }
 0x23a   :  { %v1042_v61 = vmul.f32 0.5, %v1038_v56  ;;  %v9680_v56 = vld [vmem:[#allocation129_spill] sm:$0xff] }
 0x257   :  { %v1126_v8 = vpop.f32.mrf.mxu0  ;;  %v1197_v11 = vpop.f32.mrf.mxu1 }
 0x258   :  { %v1202_v10 = vadd.f32 %v1126_v8, %v5889_v21  ;;  %v1204_v33 = vadd.f32 %v1197_v11, %v9653_v32  ;;  %v9656_v21 = vsub.s32 1, %v9655_v40  ;;  %v1036_v32 = vadd.f32 %v1035_v7, %v893_v3 }
 0x259   :  { %v1128_v12 = vpop.f32.mrf.mxu0  ;;  %v1199_v35 = vpop.f32.mrf.mxu1 }
 0x25a   :  { %v1206_v13 = vmul.f32 0.5, %v1202_v10  ;;  %v1203_v20 = vadd.f32 %v1128_v12, %v9652_v14  ;;  %v1205_v38 = vadd.f32 %v1199_v35, %v9654_v37  ;;  %v6347_v41 = vrot.slane %v568_v39, %v9656_v21  ;;  %v9669_v21 = vld [vmem:[#allocation118_spill] sm:$0xff] }
 0x25b   :  { %v1040_v10 = vadd.f32 %v1034_v6, %v6361_v4  ;;  %v9659_v14 = vsub.s32 3, %v9655_v40  ;;  %v9667_v40 = vld [vmem:[#allocation116_spill] sm:$0xff] }
 0x25c   :  { %4540 = vtanh.f32 %v1206_v13  ;;  %v1210_v34 = vmul.f32 0.5, %v1203_v20  ;;  %v1215_v43 = vmul.f32 0.5, %v1205_v38  ;;  %v1039_v51 = vadd.f32 %v965_v42, %v6347_v41  ;;  %v9663_v38 = vld [vmem:[#allocation112_spill] sm:$0xff]  ;;  %v9670_v42 = vld [vmem:[#allocation119_spill] sm:$0xff] }
 0x25d   :  { %v6366_v20 = vrot.slane %v568_v39, %v9659_v14  ;;  %v9665_v39 = vld [vmem:[#allocation114_spill] sm:$0xff]  ;;  %v9687_v6 = vld [vmem:[#allocation136_spill] sm:$0xff] }
 0x25e   :  { %4542 = vtanh.f32 %v1210_v34  ;;  %v1046_v59 = vmul.f32 0.5, %v1039_v51  ;;  %v9676_v51 = vld [vmem:[#allocation125_spill] sm:$0xff]  ;;  %v9693_v14 = vld [vmem:[#allocation142_spill] sm:$0xff] }
 0x25f   :  { %4544 = vtanh.f32 %v1204_v33  ;;  %v1041_v5 = vadd.f32 %v1036_v32, %v6366_v20  ;;  %v9694_v32 = vld [vmem:[#allocation143_spill] sm:$0xff] }
 0x260   :  { %4546 = vtanh.f32 %v1215_v43 }
 0x261   :  { %4548 = vtanh.f32 %v1046_v59  ;;  %v1051_v37 = vmul.f32 0.5, %v1041_v5  ;;  %v9683_v59 = vld [vmem:[#allocation132_spill] sm:$0xff]  ;;  %v9698_v5 = vld [vmem:[#allocation147_spill] sm:$0xff] }
 0x269   :  { %v4541_v44 = vpop.eup %4540 }
 0x26a   :  { %v1208_v49 = vmul.f32 0.5, %v4541_v44  ;;  %v9671_v44 = vld [vmem:[#allocation120_spill] sm:$0xff] }
 0x26b   :  { %v4543_v50 = vpop.eup %4542 }
 0x26c   :  { %v1209_v52 = vadd.f32 0.5, %v1208_v49  ;;  %v1212_v53 = vmul.f32 0.5, %v4543_v50  ;;  %v4545_v55 = vpop.eup %4544  ;;  %v9674_v49 = vld [vmem:[#allocation123_spill] sm:$0xff]  ;;  %v9675_v50 = vld [vmem:[#allocation124_spill] sm:$0xff] }
 0x26d   :  { %v4547_v8 = vpop.eup %4546 }
 0x26e   :  { %v1213_v57 = vadd.f32 0.5, %v1212_v53  ;;  %v1220_v58 = vmul.f32 %v4545_v55, %v1209_v52  ;;  %v1217_v11 = vmul.f32 0.5, %v4547_v8  ;;  %v4549_v12 = vpop.eup %4548  ;;  %v9677_v52 = vld [vmem:[#allocation126_spill] sm:$0xff]  ;;  %v9678_v53 = vld [vmem:[#allocation127_spill] sm:$0xff]  ;;  %v9679_v55 = vld [vmem:[#allocation128_spill] sm:$0xff] }
 0x26f   :  { %v1048_v35 = vmul.f32 0.5, %v4549_v12  ;;  %v9688_v8 = vld [vmem:[#allocation137_spill] sm:$0xff]  ;;  %v9691_v12 = vld [vmem:[#allocation140_spill] sm:$0xff] }
 0x270   :  { %v1219_v60 = vmul.f32 %v1213_v57, %v5965_v28  ;;  %v1218_v13 = vadd.f32 0.5, %v1217_v11  ;;  %v9681_v57 = vld [vmem:[#allocation130_spill] sm:$0xff]  ;;  %v9690_v11 = vld [vmem:[#allocation139_spill] sm:$0xff] }
 0x271   :  { %v1049_v3 = vadd.f32 0.5, %v1048_v35  ;;  %v9696_v35 = vld [vmem:[#allocation145_spill] sm:$0xff] }
 0x272   :  { %v6356_v2 = vadd.f32 %v1220_v58, %v1219_v60  ;;  %v9682_v58 = vld [vmem:[#allocation131_spill] sm:$0xff]  ;;  %v9684_v60 = vld [vmem:[#allocation133_spill] sm:$0xff] }
 0x274   :  { %4550 = vtanh.f32 %v6356_v2 }
 0x275   :  { %4552 = vtanh.f32 %v1042_v61  ;;  %v9685_v61 = vld [vmem:[#allocation134_spill] sm:$0xff] }
 0x276   :  { %4554 = vtanh.f32 %v1040_v10  ;;  %v9689_v10 = vld [vmem:[#allocation138_spill] sm:$0xff] }
 0x277   :  { %4556 = vtanh.f32 %v1051_v37  ;;  %v9700_v37 = vld [vmem:[#allocation149_spill] sm:$0xff] }
 0x281   :  { %v4551_v28 = vpop.eup %4550 }
 0x282   :  { %v4553_v33 = vpop.eup %4552  ;;  %v6368_v34 = vmul.f32 %v4551_v28, %v1218_v13  ;;  %v9692_v13 = vld [vmem:[#allocation141_spill] sm:$0xff] }
 0x283   :  { %v1044_v1 = vmul.f32 0.5, %v4553_v33  ;;  %v9695_v33 = vld [vmem:[#allocation144_spill] sm:$0xff] }
 0x284   :  { %1289 = vmatmul.mubr.f32.vlgmr.msra.gmra.mxu0 %v6368_v34  ;;  %1360 = vmatmul.mubr.f32.vlgmr.msra.gmra.mxu1 %v6368_v34 }
 0x285   :  { %1367 = vmatpush1.msra.mxu0 %v5970_v17  ;;  %1438 = vmatpush1.msra.mxu1 %v5972_v16  ;;  %v1045_v7 = vadd.f32 0.5, %v1044_v1  ;;  %v9660_v17 = vld [vmem:[#allocation109_spill] sm:$0xff]  ;;  %v9661_v16 = vld [vmem:[#allocation110_spill] sm:$0xff] }
 0x286   :  { %1368 = vmatprep.subr.mxu0 %v5974_v0  ;;  %1439 = vmatprep.subr.mxu1 %v5976_v25  ;;  %v9662_v0 = vld [vmem:[#allocation111_spill] sm:$0xff]  ;;  %v1055_v25 = vmul.f32 0.0, %v1049_v3  ;;  %v9697_v1 = vld [vmem:[#allocation146_spill] sm:$0xff] }
 0x287   :  { %1369 = vmatpush1.msra.mxu0 %v5980_v27  ;;  %1440 = vmatpush1.msra.mxu1 %v5982_v63  ;;  %v9664_v27 = vld [vmem:[#allocation113_spill] sm:$0xff]  ;;  %v4555_v63 = vpop.eup %4554 }
 0x288   :  { %1370 = vmatprep.subr.mxu0 %v5986_v23  ;;  %1441 = vmatprep.subr.mxu1 %v5988_v9  ;;  %v9666_v23 = vld [vmem:[#allocation115_spill] sm:$0xff]  ;;  %v1056_v9 = vmul.f32 %v4555_v63, %v1045_v7  ;;  %v4557_v28 = vpop.eup %4556  ;;  %v9699_v7 = vld [vmem:[#allocation148_spill] sm:$0xff]  ;;  %v9705_v63 = vld [vmem:[#allocation154_spill] sm:$0xff] }
 0x289   :  { %1371 = vmatpush1.msra.mxu0 %v5992_v45  ;;  %1442 = vmatpush1.msra.mxu1 %v9660_v17  ;;  %v9668_v45 = vld [vmem:[#allocation117_spill] sm:$0xff]  ;;  %v1053_v3 = vmul.f32 0.5, %v4557_v28  ;;  %v9701_v17 = vld [vmem:[#allocation150_spill] sm:$0xff]  ;;  %v6523_v28 = vld [vmem:[#allocation2 + $0xb8] sm:$0xff] }
 0x28a   :  { %1372 = vmatprep.subr.mxu0 %v9661_v16  ;;  %1443 = vmatprep.subr.mxu1 %v9662_v0  ;;  %v6393_v43 = vadd.f32 %v1056_v9, %v1055_v25  ;;  %v9702_v16 = vld [vmem:[#allocation151_spill] sm:$0xff]  ;;  %v9711_v9 = vld [vmem:[#allocation160_spill] sm:$0xff] }
 0x28b   :  { %1373 = vmatpush1.msra.mxu0 %v9663_v38  ;;  %1444 = vmatpush1.msra.mxu1 %v9664_v27  ;;  %v1054_v25 = vadd.f32 0.5, %v1053_v3  ;;  %v9703_v38 = vld [vmem:[#allocation152_spill] sm:$0xff]  ;;  %v9704_v27 = vld [vmem:[#allocation153_spill] sm:$0xff] }
 0x28c   :  { %1374 = vmatprep.subr.mxu0 %v9665_v39  ;;  %1445 = vmatprep.subr.mxu1 %v9666_v23  ;;  %4558 = vtanh.f32 %v6393_v43  ;;  %v9706_v39 = vld [vmem:[#allocation155_spill] sm:$0xff]  ;;  %v9708_v23 = vld [vmem:[#allocation157_spill] sm:$0xff] }
 0x28d   :  { %1375 = vmatpush1.msra.mxu0 %v9667_v40  ;;  %1446 = vmatpush1.msra.mxu1 %v9668_v45  ;;  %v9712_v40 = vld [vmem:[#allocation161_spill] sm:$0xff]  ;;  %v9713_v45 = vld [vmem:[#allocation162_spill] sm:$0xff] }
 0x28e   :  { %1376 = vmatprep.subr.mxu0 %v9669_v21  ;;  %1447 = vmatprep.subr.mxu1 %v9670_v42  ;;  %v9714_v21 = vld [vmem:[#allocation163_spill] sm:$0xff]  ;;  %v9715_v42 = vld [vmem:[#allocation164_spill] sm:$0xff]  ;;  %v6544_v3 = vld [vmem:[#allocation2 + $0x68] sm:$0xff] }
 0x28f   :  { %1377 = vmatpush1.msra.mxu0 %v9671_v44  ;;  %1448 = vmatpush1.msra.mxu1 %v9672_v46  ;;  %v9716_v44 = vld [vmem:[#allocation165_spill] sm:$0xff]  ;;  %v9717_v46 = vld [vmem:[#allocation166_spill] sm:$0xff] }
 0x290   :  { %1378 = vmatprep.subr.mxu0 %v9673_v48  ;;  %1449 = vmatprep.subr.mxu1 %v9674_v49  ;;  %v9718_v48 = vld [vmem:[#allocation167_spill] sm:$0xff]  ;;  %v9719_v49 = vld [vmem:[#allocation168_spill] sm:$0xff] }
 0x291   :  { %1379 = vmatpush1.msra.mxu0 %v9675_v50  ;;  %1450 = vmatpush1.msra.mxu1 %v9676_v51  ;;  %v9720_v50 = vld [vmem:[#allocation169_spill] sm:$0xff]  ;;  %v9721_v51 = vld [vmem:[#allocation170_spill] sm:$0xff] }
 0x292   :  { %1380 = vmatprep.subr.mxu0 %v9677_v52  ;;  %1451 = vmatprep.subr.mxu1 %v9678_v53  ;;  %v9722_v52 = vld [vmem:[#allocation171_spill] sm:$0xff]  ;;  %v6460_v53 = vld [vmem:[#allocation2 + $0x148] sm:$0xff] }
 0x293   :  { %1381 = vmatpush1.msra.mxu0 %v9679_v55  ;;  %1452 = vmatpush1.msra.mxu1 %v9680_v56  ;;  %v6463_v55 = vld [vmem:[#allocation2 + $0x158] sm:$0xff]  ;;  %v6466_v56 = vld [vmem:[#allocation2 + $0x140] sm:$0xff] }
 0x294   :  { %1382 = vmatprep.subr.mxu0 %v9681_v57  ;;  %1453 = vmatprep.subr.mxu1 %v9682_v58  ;;  %v6487_v57 = vld [vmem:[#allocation2 + $0x118] sm:$0xff]  ;;  %v6490_v58 = vld [vmem:[#allocation2 + $0x100] sm:$0xff] }
 0x295   :  { %1383 = vmatpush1.msra.mxu0 %v9683_v59  ;;  %1454 = vmatpush1.msra.mxu1 %v9684_v60  ;;  %v6493_v59 = vld [vmem:[#allocation2 + $0x110] sm:$0xff]  ;;  %v6496_v60 = vld [vmem:[#allocation2 + $0xe8] sm:$0xff] }
 0x296   :  { %1384 = vmatprep.subr.mxu0 %v9685_v61  ;;  %1455 = vmatprep.subr.mxu1 %v9686_v62  ;;  %v6499_v61 = vld [vmem:[#allocation2 + $0xf8] sm:$0xff]  ;;  %v6502_v62 = vld [vmem:[#allocation2 + $0xe0] sm:$0xff] }
 0x297   :  { %1385 = vmatpush1.msra.mxu0 %v9687_v6  ;;  %1456 = vmatpush1.msra.mxu1 %v9688_v8  ;;  %v6505_v6 = vld [vmem:[#allocation2 + $0xf0] sm:$0xff]  ;;  %v6508_v8 = vld [vmem:[#allocation2 + $0xc8] sm:$0xff] }
 0x298   :  { %1386 = vmatprep.subr.mxu0 %v9689_v10  ;;  %1457 = vmatprep.subr.mxu1 %v9690_v11  ;;  %v6511_v10 = vld [vmem:[#allocation2 + $0xd8] sm:$0xff]  ;;  %v6514_v11 = vld [vmem:[#allocation2 + $0xc0] sm:$0xff] }
 0x299   :  { %1387 = vmatpush1.msra.mxu0 %v9691_v12  ;;  %1458 = vmatpush1.msra.mxu1 %v9692_v13  ;;  %v4559_v0 = vpop.eup %4558  ;;  %v6517_v12 = vld [vmem:[#allocation2 + $0xd0] sm:$0xff]  ;;  %v6520_v13 = vld [vmem:[#allocation2 + $0xa8] sm:$0xff] }
 0x29a   :  { %1388 = vmatprep.subr.mxu0 %v9693_v14  ;;  %1459 = vmatprep.subr.mxu1 %v9694_v32  ;;  %v6526_v14 = vld [vmem:[#allocation2 + $0xa0] sm:$0xff]  ;;  %v6529_v32 = vld [vmem:[#allocation2 + $0xb0] sm:$0xff] }
 0x29b   :  { %1389 = vmatpush1.msra.mxu0 %v9695_v33  ;;  %1460 = vmatpush1.msra.mxu1 %v9696_v35  ;;  %v6532_v33 = vld [vmem:[#allocation2 + $0x88] sm:$0xff]  ;;  %v6535_v35 = vld [vmem:[#allocation2 + $0x98] sm:$0xff] }
 0x29c   :  { %1390 = vmatprep.subr.mxu0 %v9697_v1  ;;  %1461 = vmatprep.subr.mxu1 %v9698_v5  ;;  %v6538_v1 = vld [vmem:[#allocation2 + $0x80] sm:$0xff]  ;;  %v6541_v5 = vld [vmem:[#allocation2 + $0x90] sm:$0xff] }
 0x29d   :  { %1391 = vmatpush1.msra.mxu0 %v9699_v7  ;;  %1462 = vmatpush1.msra.mxu1 %v9700_v37  ;;  %v6547_v7 = vld [vmem:[#allocation2 + $0x78] sm:$0xff]  ;;  %v6550_v37 = vld [vmem:[#allocation2 + $0x60] sm:$0xff] }
 0x29e   :  { %1392 = vmatprep.subr.mxu0 %v6118_v22  ;;  %1463 = vmatprep.subr.mxu1 %v9701_v17  ;;  %v9707_v22 = vld [vmem:[#allocation156_spill] sm:$0xff]  ;;  %9723 = vst [vmem:[#allocation12_spill] sm:$0xff] %v6547_v7  ;;  %9724 = vst [vmem:[#allocation13_spill] sm:$0xff] %v6550_v37  ;;  %v6553_v17 = vld [vmem:[#allocation2 + $0x70] sm:$0xff] }
 0x29f   :  { %1393 = vmatpush1.msra.mxu0 %v6124_v24  ;;  %1464 = vmatpush1.msra.mxu1 %v9702_v16  ;;  %v1059_v24 = vmul.f32 %v4559_v0, %v1054_v25  ;;  %9725 = vst [vmem:[#allocation14_spill] sm:$0xff] %v6553_v17  ;;  %v6556_v16 = vld [vmem:[#allocation2 + $0x48] sm:$0xff]  ;;  %v6559_v0 = vld [vmem:[#allocation2 + $0x58] sm:$0xff]  ;;  %v6562_v25 = vld [vmem:[#allocation2 + $0x40] sm:$0xff] }
 0x2a0   :  { %1394 = vmatprep.subr.mxu0 %v6130_v15  ;;  %1465 = vmatprep.subr.mxu1 %v6132_v19  ;;  %v9709_v15 = vld [vmem:[#allocation158_spill] sm:$0xff]  ;;  %v9710_v19 = vld [vmem:[#allocation159_spill] sm:$0xff]  ;;  %9726 = vst [vmem:[#allocation15_spill] sm:$0xff] %v6556_v16  ;;  %9727 = vst [vmem:[#allocation16_spill] sm:$0xff] %v6559_v0 }
 0x2a1   :  { %1395 = vmatpush1.msra.mxu0 %v9703_v38  ;;  %1466 = vmatpush1.msra.mxu1 %v9704_v27  ;;  %9728 = vst [vmem:[#allocation17_spill] sm:$0xff] %v6562_v25  ;;  %v6565_v38 = vld [vmem:[#allocation2 + $0x50] sm:$0xff]  ;;  %v6568_v27 = vld [vmem:[#allocation2 + $0x28] sm:$0xff] }
 0x2a2   :  { %1396 = vmatprep.subr.mxu0 %v9705_v63  ;;  %1467 = vmatprep.subr.mxu1 %v9706_v39  ;;  %9729 = vst [vmem:[#allocation18_spill] sm:$0xff] %v6565_v38  ;;  %9730 = vst [vmem:[#allocation19_spill] sm:$0xff] %v6568_v27  ;;  %v6571_v63 = vld [vmem:[#allocation2 + $0x38] sm:$0xff]  ;;  %v6574_v39 = vld [vmem:[#allocation2 + $0x20] sm:$0xff] }
 0x2a3   :  { %1397 = vmatpush1.msra.mxu0 %v9707_v22  ;;  %1430 = vmatprep.mubr.f32.mxu0 %v9568_v30  ;;  %9731 = vst [vmem:[#allocation20_spill] sm:$0xff] %v6571_v63  ;;  %9732 = vst [vmem:[#allocation21_spill] sm:$0xff] %v6574_v39  ;;  %v6577_v22 = vld [vmem:[#allocation2 + $0x30] sm:$0xff] }
 0x2a4   :  { %1468 = vmatpush1.msra.mxu1 %v9708_v23  ;;  %1501 = vmatprep.mubr.f32.mxu1 %v9568_v30  ;;  %9733 = vst [vmem:[#allocation22_spill] sm:$0xff] %v6577_v22  ;;  %v6583_v23 = vld [vmem:[#allocation2 + $0x18] sm:$0xff] }
 0x2a5   :  { %1431 = vmatmul.mubr.f32.vlgmr.msra.gmra.mxu0 %v1059_v24  ;;  %1502 = vmatmul.mubr.f32.vlgmr.msra.gmra.mxu1 %v1059_v24  ;;  %v6580_v24 = vld [vmem:[#allocation2 + $0x8] sm:$0xff]  ;;  %9735 = vst [vmem:[#allocation24_spill] sm:$0xff] %v6583_v23 }
 0x2a6   :  { %1530 = vmatprep.subr.mxu0 %v9709_v15  ;;  %1601 = vmatprep.subr.mxu1 %v9710_v19  ;;  %9734 = vst [vmem:[#allocation23_spill] sm:$0xff] %v6580_v24  ;;  %v6586_v15 = vld [vmem:[#allocation2] sm:$0xff]  ;;  %v6590_v19 = vld [vmem:[#allocation2 + $0x10] sm:$0xff] }
 0x2a7   :  { %1531 = vmatpush1.msra.mxu0 %v9711_v9  ;;  %1602 = vmatpush1.msra.mxu1 %v9712_v40  ;;  %9736 = vst [vmem:[#allocation25_spill] sm:$0xff] %v6586_v15  ;;  %9737 = vst [vmem:[#allocation26_spill] sm:$0xff] %v6590_v19  ;;  %v6596_v9 = vld [vmem:[#allocation4 + $0x1e8] sm:$0xff]  ;;  %v6599_v40 = vld [vmem:[#allocation4 + $0x1f8] sm:$0xff] }
 0x2a8   :  { %1532 = vmatprep.subr.mxu0 %v9713_v45  ;;  %1603 = vmatprep.subr.mxu1 %v9714_v21  ;;  %9738 = vst [vmem:[#allocation27_spill] sm:$0xff] %v6596_v9  ;;  %9739 = vst [vmem:[#allocation28_spill] sm:$0xff] %v6599_v40  ;;  %v6602_v45 = vld [vmem:[#allocation4 + $0x1e0] sm:$0xff]  ;;  %v6605_v21 = vld [vmem:[#allocation4 + $0x1f0] sm:$0xff] }
 0x2a9   :  { %1533 = vmatpush1.msra.mxu0 %v9715_v42  ;;  %1604 = vmatpush1.msra.mxu1 %v9716_v44  ;;  %9740 = vst [vmem:[#allocation29_spill] sm:$0xff] %v6602_v45  ;;  %9741 = vst [vmem:[#allocation30_spill] sm:$0xff] %v6605_v21  ;;  %v6608_v42 = vld [vmem:[#allocation4 + $0x1c8] sm:$0xff]  ;;  %v6614_v44 = vld [vmem:[#allocation4 + $0x1c0] sm:$0xff] }
 0x2aa   :  { %1534 = vmatprep.subr.mxu0 %v9717_v46  ;;  %1605 = vmatprep.subr.mxu1 %v9718_v48  ;;  %9742 = vst [vmem:[#allocation31_spill] sm:$0xff] %v6608_v42  ;;  %9744 = vst [vmem:[#allocation33_spill] sm:$0xff] %v6614_v44  ;;  %v6617_v46 = vld [vmem:[#allocation4 + $0x1d0] sm:$0xff]  ;;  %v6620_v48 = vld [vmem:[#allocation4 + $0x1a8] sm:$0xff] }
 0x2ab   :  { %1535 = vmatpush1.msra.mxu0 %v9719_v49  ;;  %1606 = vmatpush1.msra.mxu1 %v9720_v50  ;;  %9745 = vst [vmem:[#allocation34_spill] sm:$0xff] %v6617_v46  ;;  %9746 = vst [vmem:[#allocation35_spill] sm:$0xff] %v6620_v48  ;;  %v6623_v49 = vld [vmem:[#allocation4 + $0x1b8] sm:$0xff]  ;;  %v6626_v50 = vld [vmem:[#allocation4 + $0x1a0] sm:$0xff] }
 0x2ac   :  { %1536 = vmatprep.subr.mxu0 %v9721_v51  ;;  %1607 = vmatprep.subr.mxu1 %v9722_v52  ;;  %9747 = vst [vmem:[#allocation36_spill] sm:$0xff] %v6623_v49  ;;  %9748 = vst [vmem:[#allocation37_spill] sm:$0xff] %v6626_v50  ;;  %v6629_v51 = vld [vmem:[#allocation4 + $0x1b0] sm:$0xff]  ;;  %v6632_v52 = vld [vmem:[#allocation4 + $0x188] sm:$0xff] }
 0x2ad   :  { %1537 = vmatpush1.msra.mxu0 %v6204_v54  ;;  %1608 = vmatpush1.msra.mxu1 %v6207_v36  ;;  %v6469_v54 = vld [vmem:[#allocation2 + $0x150] sm:$0xff]  ;;  %9749 = vst [vmem:[#allocation38_spill] sm:$0xff] %v6629_v51  ;;  %9750 = vst [vmem:[#allocation39_spill] sm:$0xff] %v6632_v52 }
 0x2ae   :  { %1538 = vmatprep.subr.mxu0 %v6210_v29  ;;  %1609 = vmatprep.subr.mxu1 %v6213_v18  ;;  %v6472_v18 = vld [vmem:[#allocation2 + $0x128] sm:$0xff]  ;;  %v6481_v36 = vld [vmem:[#allocation2 + $0x130] sm:$0xff] }
 0x2af   :  { %1539 = vmatpush1.msra.mxu0 %v6216_v31  ;;  %1610 = vmatpush1.msra.mxu1 %v6219_v26  ;;  %v6475_v31 = vld [vmem:[#allocation2 + $0x138] sm:$0xff]  ;;  %v6478_v26 = vld [vmem:[#allocation2 + $0x120] sm:$0xff]  ;;  %v6484_v29 = vld [vmem:[#allocation2 + $0x108] sm:$0xff] }
 0x2b0   :  { %1540 = vmatprep.subr.mxu0 %v6460_v53  ;;  %1611 = vmatprep.subr.mxu1 %v6463_v55 }
 0x2b1   :  { %1541 = vmatpush1.msra.mxu0 %v6466_v56  ;;  %1612 = vmatpush1.msra.mxu1 %v6469_v54 }
 0x2b2   :  { %1542 = vmatprep.subr.mxu0 %v6472_v18  ;;  %1613 = vmatprep.subr.mxu1 %v6475_v31 }
 0x2b3   :  { %1543 = vmatpush1.msra.mxu0 %v6478_v26  ;;  %1614 = vmatpush1.msra.mxu1 %v6481_v36 }
 0x2b4   :  { %1544 = vmatprep.subr.mxu0 %v6484_v29  ;;  %1615 = vmatprep.subr.mxu1 %v6487_v57 }
 0x2b5   :  { %1545 = vmatpush1.msra.mxu0 %v6490_v58  ;;  %1616 = vmatpush1.msra.mxu1 %v6493_v59 }
 0x2b6   :  { %1546 = vmatprep.subr.mxu0 %v6496_v60  ;;  %1617 = vmatprep.subr.mxu1 %v6499_v61 }
 0x2b7   :  { %1547 = vmatpush1.msra.mxu0 %v6502_v62  ;;  %1618 = vmatpush1.msra.mxu1 %v6505_v6 }
 0x2b8   :  { %1548 = vmatprep.subr.mxu0 %v6508_v8  ;;  %1619 = vmatprep.subr.mxu1 %v6511_v10 }
 0x2b9   :  { %1549 = vmatpush1.msra.mxu0 %v6514_v11  ;;  %1620 = vmatpush1.msra.mxu1 %v6517_v12 }
 0x2ba   :  { %1550 = vmatprep.subr.mxu0 %v6520_v13  ;;  %1621 = vmatprep.subr.mxu1 %v6523_v28 }
 0x2bb   :  { %1551 = vmatpush1.msra.mxu0 %v6526_v14  ;;  %1622 = vmatpush1.msra.mxu1 %v6529_v32 }
 0x2bc   :  { %1552 = vmatprep.subr.mxu0 %v6532_v33  ;;  %1623 = vmatprep.subr.mxu1 %v6535_v35 }
 0x2bd   :  { %1553 = vmatpush1.msra.mxu0 %v6538_v1  ;;  %1624 = vmatpush1.msra.mxu1 %v6541_v5 }
 0x2be   :  { %1554 = vmatprep.subr.mxu0 %v6544_v3  ;;  %1625 = vmatprep.subr.mxu1 %v6547_v7 }
 0x2bf   :  { %1555 = vmatpush1.msra.mxu0 %v6550_v37  ;;  %1626 = vmatpush1.msra.mxu1 %v6553_v17 }
 0x2c0   :  { %1556 = vmatprep.subr.mxu0 %v6556_v16  ;;  %1627 = vmatprep.subr.mxu1 %v6559_v0 }
 0x2c1   :  { %1557 = vmatpush1.msra.mxu0 %v6562_v25  ;;  %1628 = vmatpush1.msra.mxu1 %v6565_v38 }
 0x2c2   :  { %1558 = vmatprep.subr.mxu0 %v6568_v27  ;;  %1629 = vmatprep.subr.mxu1 %v6571_v63  ;;  %v9807_v27 = vld [vmem:[#allocation88_spill] sm:$0xff] }
 0x2c3   :  { %1559 = vmatpush1.msra.mxu0 %v6574_v39  ;;  %1630 = vmatpush1.msra.mxu1 %v6577_v22  ;;  %v9806_v22 = vld [vmem:[#allocation86_spill] sm:$0xff] }
 0x2c4   :  { %1560 = vmatprep.subr.mxu0 %v6580_v24  ;;  %1631 = vmatprep.subr.mxu1 %v6583_v23  ;;  %v9805_v24 = vld [vmem:[#allocation87_spill] sm:$0xff] }
 0x2c5   :  { %1561 = vmatpush1.msra.mxu0 %v6586_v15  ;;  %1594 = vmatprep.mubr.f32.mxu0 %v9568_v30 }
 0x2c6   :  { %1632 = vmatpush1.msra.mxu1 %v6590_v19  ;;  %1665 = vmatprep.mubr.f32.mxu1 %v9568_v30 }
 0x2c7   :  { %1595 = vmatmul.mubr.f32.vlgmr.msra.gmra.mxu0 %v6368_v34  ;;  %1666 = vmatmul.mubr.f32.vlgmr.msra.gmra.mxu1 %v6368_v34  ;;  %v6611_v34 = vld [vmem:[#allocation4 + $0x1d8] sm:$0xff] }
 0x2c8   :  { %1694 = vmatprep.subr.mxu0 %v6596_v9  ;;  %1765 = vmatprep.subr.mxu1 %v6599_v40  ;;  %9743 = vst [vmem:[#allocation32_spill] sm:$0xff] %v6611_v34  ;;  %v9804_v40 = vld [vmem:[#allocation85_spill] sm:$0xff] }
 0x2c9   :  { %1695 = vmatpush1.msra.mxu0 %v6602_v45  ;;  %1766 = vmatpush1.msra.mxu1 %v6605_v21 }
 0x2ca   :  { %1696 = vmatprep.subr.mxu0 %v6608_v42  ;;  %1767 = vmatprep.subr.mxu1 %v6611_v34 }
 0x2cb   :  { %1697 = vmatpush1.msra.mxu0 %v6614_v44  ;;  %1768 = vmatpush1.msra.mxu1 %v6617_v46  ;;  %v6635_v46 = vld [vmem:[#allocation4 + $0x198] sm:$0xff] }
 0x2cc   :  { %1698 = vmatprep.subr.mxu0 %v6620_v48  ;;  %1769 = vmatprep.subr.mxu1 %v6623_v49  ;;  %9751 = vst [vmem:[#allocation40_spill] sm:$0xff] %v6635_v46  ;;  %v6638_v48 = vld [vmem:[#allocation4 + $0x180] sm:$0xff]  ;;  %v6641_v49 = vld [vmem:[#allocation4 + $0x190] sm:$0xff] }
 0x2cd   :  { %1699 = vmatpush1.msra.mxu0 %v6626_v50  ;;  %1770 = vmatpush1.msra.mxu1 %v6629_v51  ;;  %9752 = vst [vmem:[#allocation41_spill] sm:$0xff] %v6638_v48  ;;  %9753 = vst [vmem:[#allocation42_spill] sm:$0xff] %v6641_v49  ;;  %v6644_v50 = vld [vmem:[#allocation4 + $0x168] sm:$0xff]  ;;  %v6647_v51 = vld [vmem:[#allocation4 + $0x178] sm:$0xff] }
 0x2ce   :  { %1700 = vmatprep.subr.mxu0 %v6632_v52  ;;  %1771 = vmatprep.subr.mxu1 %v6635_v46  ;;  %9754 = vst [vmem:[#allocation43_spill] sm:$0xff] %v6644_v50  ;;  %9755 = vst [vmem:[#allocation44_spill] sm:$0xff] %v6647_v51  ;;  %v6650_v52 = vld [vmem:[#allocation4 + $0x160] sm:$0xff]  ;;  %v6653_v46 = vld [vmem:[#allocation4 + $0x170] sm:$0xff] }
 0x2cf   :  { %1701 = vmatpush1.msra.mxu0 %v6638_v48  ;;  %1772 = vmatpush1.msra.mxu1 %v6641_v49  ;;  %9756 = vst [vmem:[#allocation45_spill] sm:$0xff] %v6650_v52  ;;  %9757 = vst [vmem:[#allocation46_spill] sm:$0xff] %v6653_v46  ;;  %v6656_v48 = vld [vmem:[#allocation4 + $0x148] sm:$0xff]  ;;  %v6659_v49 = vld [vmem:[#allocation4 + $0x158] sm:$0xff] }
 0x2d0   :  { %1702 = vmatprep.subr.mxu0 %v6644_v50  ;;  %1773 = vmatprep.subr.mxu1 %v6647_v51  ;;  %9758 = vst [vmem:[#allocation47_spill] sm:$0xff] %v6656_v48  ;;  %9759 = vst [vmem:[#allocation48_spill] sm:$0xff] %v6659_v49  ;;  %v6662_v50 = vld [vmem:[#allocation4 + $0x140] sm:$0xff]  ;;  %v6665_v51 = vld [vmem:[#allocation4 + $0x150] sm:$0xff] }
 0x2d1   :  { %1703 = vmatpush1.msra.mxu0 %v6650_v52  ;;  %1774 = vmatpush1.msra.mxu1 %v6653_v46  ;;  %9760 = vst [vmem:[#allocation49_spill] sm:$0xff] %v6662_v50  ;;  %9761 = vst [vmem:[#allocation50_spill] sm:$0xff] %v6665_v51  ;;  %v6668_v52 = vld [vmem:[#allocation4 + $0x128] sm:$0xff]  ;;  %v6671_v46 = vld [vmem:[#allocation4 + $0x138] sm:$0xff] }
 0x2d2   :  { %1704 = vmatprep.subr.mxu0 %v6656_v48  ;;  %1775 = vmatprep.subr.mxu1 %v6659_v49  ;;  %9762 = vst [vmem:[#allocation51_spill] sm:$0xff] %v6668_v52  ;;  %9763 = vst [vmem:[#allocation52_spill] sm:$0xff] %v6671_v46  ;;  %v6674_v48 = vld [vmem:[#allocation4 + $0x120] sm:$0xff]  ;;  %v6677_v49 = vld [vmem:[#allocation4 + $0x130] sm:$0xff] }
 0x2d3   :  { %1705 = vmatpush1.msra.mxu0 %v6662_v50  ;;  %1776 = vmatpush1.msra.mxu1 %v6665_v51  ;;  %9764 = vst [vmem:[#allocation53_spill] sm:$0xff] %v6674_v48  ;;  %9765 = vst [vmem:[#allocation54_spill] sm:$0xff] %v6677_v49  ;;  %v6680_v50 = vld [vmem:[#allocation4 + $0x108] sm:$0xff]  ;;  %v6683_v51 = vld [vmem:[#allocation4 + $0x118] sm:$0xff] }
 0x2d4   :  { %1706 = vmatprep.subr.mxu0 %v6668_v52  ;;  %1777 = vmatprep.subr.mxu1 %v6671_v46  ;;  %9766 = vst [vmem:[#allocation55_spill] sm:$0xff] %v6680_v50  ;;  %9767 = vst [vmem:[#allocation56_spill] sm:$0xff] %v6683_v51  ;;  %v6686_v52 = vld [vmem:[#allocation4 + $0x100] sm:$0xff]  ;;  %v6689_v46 = vld [vmem:[#allocation4 + $0x110] sm:$0xff] }
 0x2d5   :  { %1707 = vmatpush1.msra.mxu0 %v6674_v48  ;;  %1778 = vmatpush1.msra.mxu1 %v6677_v49  ;;  %9768 = vst [vmem:[#allocation57_spill] sm:$0xff] %v6686_v52  ;;  %9769 = vst [vmem:[#allocation58_spill] sm:$0xff] %v6689_v46  ;;  %v6692_v48 = vld [vmem:[#allocation4 + $0xe8] sm:$0xff]  ;;  %v6695_v49 = vld [vmem:[#allocation4 + $0xf8] sm:$0xff] }
 0x2d6   :  { %1708 = vmatprep.subr.mxu0 %v6680_v50  ;;  %1779 = vmatprep.subr.mxu1 %v6683_v51  ;;  %9770 = vst [vmem:[#allocation59_spill] sm:$0xff] %v6692_v48  ;;  %9771 = vst [vmem:[#allocation60_spill] sm:$0xff] %v6695_v49  ;;  %v6698_v50 = vld [vmem:[#allocation4 + $0xe0] sm:$0xff]  ;;  %v6701_v51 = vld [vmem:[#allocation4 + $0xf0] sm:$0xff] }
 0x2d7   :  { %1709 = vmatpush1.msra.mxu0 %v6686_v52  ;;  %1780 = vmatpush1.msra.mxu1 %v6689_v46  ;;  %9772 = vst [vmem:[#allocation61_spill] sm:$0xff] %v6698_v50  ;;  %9773 = vst [vmem:[#allocation62_spill] sm:$0xff] %v6701_v51  ;;  %v6704_v52 = vld [vmem:[#allocation4 + $0xc8] sm:$0xff]  ;;  %v6707_v46 = vld [vmem:[#allocation4 + $0xd8] sm:$0xff] }
 0x2d8   :  { %1710 = vmatprep.subr.mxu0 %v6692_v48  ;;  %1781 = vmatprep.subr.mxu1 %v6695_v49  ;;  %9774 = vst [vmem:[#allocation63_spill] sm:$0xff] %v6704_v52  ;;  %9775 = vst [vmem:[#allocation64_spill] sm:$0xff] %v6707_v46  ;;  %v6710_v48 = vld [vmem:[#allocation4 + $0xc0] sm:$0xff]  ;;  %v6713_v49 = vld [vmem:[#allocation4 + $0xd0] sm:$0xff] }
 0x2d9   :  { %1711 = vmatpush1.msra.mxu0 %v6698_v50  ;;  %1782 = vmatpush1.msra.mxu1 %v6701_v51  ;;  %9776 = vst [vmem:[#allocation65_spill] sm:$0xff] %v6710_v48  ;;  %9777 = vst [vmem:[#allocation66_spill] sm:$0xff] %v6713_v49  ;;  %v6716_v50 = vld [vmem:[#allocation4 + $0xa8] sm:$0xff]  ;;  %v6719_v51 = vld [vmem:[#allocation4 + $0xb8] sm:$0xff] }
 0x2da   :  { %1712 = vmatprep.subr.mxu0 %v6704_v52  ;;  %1783 = vmatprep.subr.mxu1 %v6707_v46  ;;  %9778 = vst [vmem:[#allocation67_spill] sm:$0xff] %v6716_v50  ;;  %9779 = vst [vmem:[#allocation68_spill] sm:$0xff] %v6719_v51  ;;  %v6722_v52 = vld [vmem:[#allocation4 + $0xa0] sm:$0xff]  ;;  %v6725_v46 = vld [vmem:[#allocation4 + $0xb0] sm:$0xff] }
 0x2db   :  { %1713 = vmatpush1.msra.mxu0 %v6710_v48  ;;  %1784 = vmatpush1.msra.mxu1 %v6713_v49  ;;  %9780 = vst [vmem:[#allocation69_spill] sm:$0xff] %v6722_v52  ;;  %9781 = vst [vmem:[#allocation70_spill] sm:$0xff] %v6725_v46  ;;  %v6728_v48 = vld [vmem:[#allocation4 + $0x88] sm:$0xff]  ;;  %v6731_v49 = vld [vmem:[#allocation4 + $0x98] sm:$0xff] }
 0x2dc   :  { %1714 = vmatprep.subr.mxu0 %v6716_v50  ;;  %1785 = vmatprep.subr.mxu1 %v6719_v51  ;;  %9782 = vst [vmem:[#allocation71_spill] sm:$0xff] %v6728_v48  ;;  %9783 = vst [vmem:[#allocation72_spill] sm:$0xff] %v6731_v49  ;;  %v6734_v50 = vld [vmem:[#allocation4 + $0x80] sm:$0xff]  ;;  %v6737_v51 = vld [vmem:[#allocation4 + $0x90] sm:$0xff] }
 0x2dd   :  { %1715 = vmatpush1.msra.mxu0 %v6722_v52  ;;  %1786 = vmatpush1.msra.mxu1 %v6725_v46  ;;  %9784 = vst [vmem:[#allocation73_spill] sm:$0xff] %v6734_v50  ;;  %9785 = vst [vmem:[#allocation74_spill] sm:$0xff] %v6737_v51  ;;  %v6740_v52 = vld [vmem:[#allocation4 + $0x68] sm:$0xff]  ;;  %v6743_v46 = vld [vmem:[#allocation4 + $0x78] sm:$0xff] }
 0x2de   :  { %1716 = vmatprep.subr.mxu0 %v6728_v48  ;;  %1787 = vmatprep.subr.mxu1 %v6731_v49  ;;  %9786 = vst [vmem:[#allocation75_spill] sm:$0xff] %v6740_v52  ;;  %9787 = vst [vmem:[#allocation76_spill] sm:$0xff] %v6743_v46  ;;  %v6746_v48 = vld [vmem:[#allocation4 + $0x60] sm:$0xff]  ;;  %v6749_v49 = vld [vmem:[#allocation4 + $0x70] sm:$0xff] }
 0x2df   :  { %1717 = vmatpush1.msra.mxu0 %v6734_v50  ;;  %1788 = vmatpush1.msra.mxu1 %v6737_v51  ;;  %9788 = vst [vmem:[#allocation77_spill] sm:$0xff] %v6746_v48  ;;  %9789 = vst [vmem:[#allocation78_spill] sm:$0xff] %v6749_v49  ;;  %v6752_v50 = vld [vmem:[#allocation4 + $0x48] sm:$0xff]  ;;  %v6755_v51 = vld [vmem:[#allocation4 + $0x58] sm:$0xff] }
 0x2e0   :  { %1718 = vmatprep.subr.mxu0 %v6740_v52  ;;  %1789 = vmatprep.subr.mxu1 %v6743_v46  ;;  %9790 = vst [vmem:[#allocation79_spill] sm:$0xff] %v6752_v50  ;;  %9791 = vst [vmem:[#allocation80_spill] sm:$0xff] %v6755_v51  ;;  %v6758_v52 = vld [vmem:[#allocation4 + $0x40] sm:$0xff]  ;;  %v6761_v46 = vld [vmem:[#allocation4 + $0x50] sm:$0xff] }
 0x2e1   :  { %1719 = vmatpush1.msra.mxu0 %v6746_v48  ;;  %1790 = vmatpush1.msra.mxu1 %v6749_v49  ;;  %9792 = vst [vmem:[#allocation83_spill] sm:$0xff] %v6758_v52  ;;  %9793 = vst [vmem:[#allocation82_spill] sm:$0xff] %v6761_v46  ;;  %v6764_v48 = vld [vmem:[#allocation4 + $0x28] sm:$0xff]  ;;  %v6767_v49 = vld [vmem:[#allocation4 + $0x38] sm:$0xff] }
 0x2e2   :  { %1720 = vmatprep.subr.mxu0 %v6752_v50  ;;  %1791 = vmatprep.subr.mxu1 %v6755_v51  ;;  %9794 = vst [vmem:[#allocation84_spill] sm:$0xff] %v6764_v48  ;;  %9795 = vst [vmem:[#allocation81_spill] sm:$0xff] %v6767_v49  ;;  %v6770_v50 = vld [vmem:[#allocation4 + $0x20] sm:$0xff]  ;;  %v6773_v51 = vld [vmem:[#allocation4 + $0x30] sm:$0xff] }
 0x2e3   :  { %1721 = vmatpush1.msra.mxu0 %v6758_v52  ;;  %1792 = vmatpush1.msra.mxu1 %v6761_v46  ;;  %9796 = vst [vmem:[#allocation109_spill] sm:$0xff] %v6770_v50  ;;  %9797 = vst [vmem:[#allocation110_spill] sm:$0xff] %v6773_v51  ;;  %v6776_v52 = vld [vmem:[#allocation4 + $0x8] sm:$0xff]  ;;  %v6779_v46 = vld [vmem:[#allocation4 + $0x18] sm:$0xff] }
 0x2e4   :  { %1722 = vmatprep.subr.mxu0 %v6764_v48  ;;  %1793 = vmatprep.subr.mxu1 %v6767_v49  ;;  %9798 = vst [vmem:[#allocation111_spill] sm:$0xff] %v6776_v52  ;;  %9799 = vst [vmem:[#allocation112_spill] sm:$0xff] %v6779_v46  ;;  %v6782_v48 = vld [vmem:[#allocation4] sm:$0xff]  ;;  %v6785_v49 = vld [vmem:[#allocation4 + $0x10] sm:$0xff] }
 0x2e5   :  { %1723 = vmatpush1.msra.mxu0 %v6770_v50  ;;  %1794 = vmatpush1.msra.mxu1 %v6773_v51  ;;  %9800 = vst [vmem:[#allocation113_spill] sm:$0xff] %v6782_v48  ;;  %9801 = vst [vmem:[#allocation114_spill] sm:$0xff] %v6785_v49  ;;  %v6790_v51 = vld [vmem:[#allocation6 + $0x1e8] sm:$0xff] }
 0x2e6   :  { %1724 = vmatprep.subr.mxu0 %v6776_v52  ;;  %1795 = vmatprep.subr.mxu1 %v6779_v46  ;;  %9802 = vst [vmem:[#allocation115_spill] sm:$0xff] %v6790_v51  ;;  %v6793_v52 = vld [vmem:[#allocation6 + $0x1f8] sm:$0xff] }
 0x2e7   :  { %1725 = vmatpush1.msra.mxu0 %v6782_v48  ;;  %1796 = vmatpush1.msra.mxu1 %v6785_v49  ;;  %9803 = vst [vmem:[#allocation116_spill] sm:$0xff] %v6793_v52 }
 0x2e8   :  { %1758 = vmatprep.mubr.f32.mxu0 %v9568_v30  ;;  %1829 = vmatprep.mubr.f32.mxu1 %v9568_v30 }
 0x2e9   :  { %1836 = vmatprep.subr.mxu0 %v6790_v51  ;;  %1907 = vmatprep.subr.mxu1 %v6793_v52 }
 0x344   :  { %v1290_v46 = vpop.f32.mrf.mxu0  ;;  %v1361_v50 = vpop.f32.mrf.mxu1 }
 0x346   :  { %v1292_v44 = vpop.f32.mrf.mxu0  ;;  %v1363_v48 = vpop.f32.mrf.mxu1 }
 0x365   :  { %v1432_v34 = vpop.f32.mrf.mxu0  ;;  %v1503_v42 = vpop.f32.mrf.mxu1 }
 0x366   :  { %v1433_v17 = vadd.f32 %v1432_v34, %v1290_v46 }
 0x367   :  { %v1434_v21 = vpop.f32.mrf.mxu0  ;;  %v1505_v49 = vpop.f32.mrf.mxu1 }
 0x368   :  { %v1435_v25 = vadd.f32 %v1434_v21, %v1292_v44  ;;  %v1506_v21 = vadd.f32 %v1505_v49, %v1363_v48  ;;  %v6818_v48 = vld [vmem:[#allocation6 + $0x1c8] sm:$0xff]  ;;  %v6821_v49 = vld [vmem:[#allocation6 + $0x1d8] sm:$0xff] }
 0x387   :  { %v1596_v45 = vpop.f32.mrf.mxu0  ;;  %v1667_v19 = vpop.f32.mrf.mxu1 }
 0x388   :  { %v1672_v9 = vadd.f32 %v1596_v45, %v9804_v40  ;;  %v1674_v39 = vadd.f32 %v1667_v19, %v9806_v22  ;;  %v1509_v45 = vadd.f32 %v1435_v25, %v6347_v41  ;;  %v1508_v22 = vadd.f32 %v1433_v17, %v6351_v47 }
 0x389   :  { %v1598_v15 = vpop.f32.mrf.mxu0  ;;  %v1669_v63 = vpop.f32.mrf.mxu1 }
 0x38a   :  { %v1676_v23 = vmul.f32 0.5, %v1672_v9  ;;  %v1673_v51 = vadd.f32 %v1598_v15, %v9805_v24  ;;  %v1675_v38 = vadd.f32 %v1669_v63, %v9807_v27  ;;  %v1512_v27 = vmul.f32 0.5, %v1508_v22 }
 0x38c   :  { %4560 = vtanh.f32 %v1676_v23  ;;  %v1680_v52 = vmul.f32 0.5, %v1673_v51  ;;  %v1685_v0 = vmul.f32 0.5, %v1675_v38  ;;  %v6815_v51 = vld [vmem:[#allocation6 + $0x1f0] sm:$0xff] }
 0x38e   :  { %4562 = vtanh.f32 %v1680_v52 }
 0x38f   :  { %4564 = vtanh.f32 %v1674_v39  ;;  %v1516_v39 = vmul.f32 0.5, %v1509_v45  ;;  %v6827_v45 = vld [vmem:[#allocation6 + $0x1d0] sm:$0xff] }
 0x390   :  { %4566 = vtanh.f32 %v1685_v0 }
 0x391   :  { %4568 = vtanh.f32 %v1516_v39  ;;  %v6839_v39 = vld [vmem:[#allocation6 + $0x1b0] sm:$0xff] }
 0x399   :  { %v4561_v16 = vpop.eup %4560 }
 0x39a   :  { %v1678_v37 = vmul.f32 0.5, %v4561_v16  ;;  %v1504_v16 = vadd.f32 %v1503_v42, %v1361_v50  ;;  %v1511_v42 = vadd.f32 %v1506_v21, %v6366_v20  ;;  %v6812_v50 = vld [vmem:[#allocation6 + $0x1e0] sm:$0xff]  ;;  %v6864_v21 = vld [vmem:[#allocation6 + $0x170] sm:$0xff] }
 0x39b   :  { %v4563_v40 = vpop.eup %4562 }
 0x39c   :  { %v1679_v9 = vadd.f32 0.5, %v1678_v37  ;;  %v1682_v7 = vmul.f32 0.5, %v4563_v40  ;;  %v4565_v24 = vpop.eup %4564  ;;  %v1510_v37 = vadd.f32 %v1504_v16, %v6361_v4  ;;  %v6824_v40 = vld [vmem:[#allocation6 + $0x1c0] sm:$0xff] }
 0x39d   :  { %v4567_v25 = vpop.eup %4566 }
 0x39e   :  { %v1683_v23 = vadd.f32 0.5, %v1682_v7  ;;  %v1690_v15 = vmul.f32 %v4565_v24, %v1679_v9  ;;  %v1687_v0 = vmul.f32 0.5, %v4567_v25  ;;  %v4569_v38 = vpop.eup %4568  ;;  %v6830_v9 = vld [vmem:[#allocation6 + $0x1a8] sm:$0xff]  ;;  %v6833_v24 = vld [vmem:[#allocation6 + $0x1b8] sm:$0xff]  ;;  %v6849_v25 = vld [vmem:[#allocation6 + $0x180] sm:$0xff] }
 0x3a0   :  { %v1689_v19 = vmul.f32 %v1683_v23, %v6356_v2  ;;  %v1688_v17 = vadd.f32 0.5, %v1687_v0  ;;  %v1518_v2 = vmul.f32 0.5, %v4569_v38  ;;  %v1521_v23 = vmul.f32 0.5, %v1511_v42  ;;  %v6855_v38 = vld [vmem:[#allocation6 + $0x168] sm:$0xff]  ;;  %v6875_v42 = vld [vmem:[#allocation6 + $0x140] sm:$0xff] }
 0x3a1   :  { %9810 = vst [vmem:[#allocation119_spill] sm:$0xff] %v6875_v42 }
 0x3a2   :  { %v6803_v63 = vadd.f32 %v1690_v15, %v1689_v19  ;;  %v1519_v52 = vadd.f32 0.5, %v1518_v2  ;;  %v6836_v15 = vld [vmem:[#allocation6 + $0x1a0] sm:$0xff]  ;;  %v6842_v19 = vld [vmem:[#allocation6 + $0x188] sm:$0xff]  ;;  %v6870_v2 = vld [vmem:[#allocation6 + $0x158] sm:$0xff] }
 0x3a3   :  { %9809 = vst [vmem:[#allocation118_spill] sm:$0xff] %v6870_v2 }
 0x3a4   :  { %4570 = vtanh.f32 %v6803_v63  ;;  %v1525_v16 = vmul.f32 %v1519_v52, %v6393_v43  ;;  %v6861_v43 = vld [vmem:[#allocation6 + $0x160] sm:$0xff]  ;;  %v6878_v52 = vld [vmem:[#allocation6 + $0x150] sm:$0xff] }
 0x3a5   :  { %4572 = vtanh.f32 %v1512_v27  ;;  %v6845_v27 = vld [vmem:[#allocation6 + $0x198] sm:$0xff]  ;;  %9811 = vst [vmem:[#allocation120_spill] sm:$0xff] %v6878_v52 }
 0x3a6   :  { %4574 = vtanh.f32 %v1510_v37  ;;  %v6852_v37 = vld [vmem:[#allocation6 + $0x190] sm:$0xff] }
 0x3a7   :  { %4576 = vtanh.f32 %v1521_v23  ;;  %v6884_v23 = vld [vmem:[#allocation6 + $0x138] sm:$0xff] }
 0x3a8   :  { %9813 = vst [vmem:[#allocation122_spill] sm:$0xff] %v6884_v23 }
 0x3b1   :  { %v4571_v7 = vpop.eup %4570 }
 0x3b2   :  { %v4573_v34 = vpop.eup %4572  ;;  %v6807_v44 = vmul.f32 %v4571_v7, %v1688_v17  ;;  %v6858_v17 = vld [vmem:[#allocation6 + $0x178] sm:$0xff] }
 0x3b3   :  { %v1514_v46 = vmul.f32 0.5, %v4573_v34  ;;  %v4575_v0 = vpop.eup %4574  ;;  %v6867_v34 = vld [vmem:[#allocation6 + $0x148] sm:$0xff] }
 0x3b4   :  { %1759 = vmatmul.mubr.f32.vlgmr.msra.gmra.mxu0 %v6807_v44  ;;  %1830 = vmatmul.mubr.f32.vlgmr.msra.gmra.mxu1 %v6807_v44  ;;  %9808 = vst [vmem:[#allocation117_spill] sm:$0xff] %v6867_v34 }
 0x3b5   :  { %1837 = vmatpush1.msra.mxu0 %v6812_v50  ;;  %1908 = vmatpush1.msra.mxu1 %v6815_v51  ;;  %v1515_v22 = vadd.f32 0.5, %v1514_v46 }
 0x3b6   :  { %1838 = vmatprep.subr.mxu0 %v6818_v48  ;;  %1909 = vmatprep.subr.mxu1 %v6821_v49 }
 0x3b7   :  { %1839 = vmatpush1.msra.mxu0 %v6824_v40  ;;  %1910 = vmatpush1.msra.mxu1 %v6827_v45  ;;  %v1526_v7 = vmul.f32 %v4575_v0, %v1515_v22  ;;  %v6881_v22 = vld [vmem:[#allocation6 + $0x128] sm:$0xff]  ;;  %v6887_v0 = vld [vmem:[#allocation6 + $0x120] sm:$0xff] }
 0x3b8   :  { %1840 = vmatprep.subr.mxu0 %v6830_v9  ;;  %1911 = vmatprep.subr.mxu1 %v6833_v24  ;;  %9812 = vst [vmem:[#allocation121_spill] sm:$0xff] %v6881_v22  ;;  %9814 = vst [vmem:[#allocation123_spill] sm:$0xff] %v6887_v0 }
 0x3b9   :  { %1841 = vmatpush1.msra.mxu0 %v6836_v15  ;;  %1912 = vmatpush1.msra.mxu1 %v6839_v39  ;;  %v6873_v46 = vadd.f32 %v1526_v7, %v1525_v16  ;;  %v6890_v16 = vld [vmem:[#allocation6 + $0x130] sm:$0xff]  ;;  %v6893_v7 = vld [vmem:[#allocation6 + $0x108] sm:$0xff] }
 0x3ba   :  { %1842 = vmatprep.subr.mxu0 %v6842_v19  ;;  %1913 = vmatprep.subr.mxu1 %v6845_v27  ;;  %9815 = vst [vmem:[#allocation124_spill] sm:$0xff] %v6890_v16  ;;  %9816 = vst [vmem:[#allocation125_spill] sm:$0xff] %v6893_v7 }
 0x3bb   :  { %1843 = vmatpush1.msra.mxu0 %v6849_v25  ;;  %1914 = vmatpush1.msra.mxu1 %v6852_v37  ;;  %4578 = vtanh.f32 %v6873_v46 }
 0x3bc   :  { %1844 = vmatprep.subr.mxu0 %v6855_v38  ;;  %1915 = vmatprep.subr.mxu1 %v6858_v17 }
 0x3bd   :  { %1845 = vmatpush1.msra.mxu0 %v6861_v43  ;;  %1916 = vmatpush1.msra.mxu1 %v6864_v21 }
 0x3be   :  { %1846 = vmatprep.subr.mxu0 %v6867_v34  ;;  %1917 = vmatprep.subr.mxu1 %v6870_v2  ;;  %v6960_v2 = vld [vmem:[#allocation6 + $0x60] sm:$0xff] }
 0x3bf   :  { %1847 = vmatpush1.msra.mxu0 %v6875_v42  ;;  %1918 = vmatpush1.msra.mxu1 %v6878_v52  ;;  %v6896_v52 = vld [vmem:[#allocation6 + $0x118] sm:$0xff]  ;;  %v6942_v42 = vld [vmem:[#allocation6 + $0x88] sm:$0xff]  ;;  %9838 = vst [vmem:[#allocation147_spill] sm:$0xff] %v6960_v2  ;;  %v6984_v34 = vld [vmem:[#allocation6 + $0x20] sm:$0xff] }
 0x3c0   :  { %1848 = vmatprep.subr.mxu0 %v6881_v22  ;;  %1919 = vmatprep.subr.mxu1 %v6884_v23  ;;  %9817 = vst [vmem:[#allocation126_spill] sm:$0xff] %v6896_v52  ;;  %v6900_v22 = vld [vmem:[#allocation6 + $0x100] sm:$0xff]  ;;  %v6903_v23 = vld [vmem:[#allocation6 + $0x110] sm:$0xff]  ;;  %9832 = vst [vmem:[#allocation141_spill] sm:$0xff] %v6942_v42 }
 0x3c1   :  { %1849 = vmatpush1.msra.mxu0 %v6887_v0  ;;  %1920 = vmatpush1.msra.mxu1 %v6890_v16  ;;  %9818 = vst [vmem:[#allocation127_spill] sm:$0xff] %v6900_v22  ;;  %9819 = vst [vmem:[#allocation128_spill] sm:$0xff] %v6903_v23  ;;  %v6906_v0 = vld [vmem:[#allocation6 + $0xe8] sm:$0xff]  ;;  %v6909_v16 = vld [vmem:[#allocation6 + $0xf8] sm:$0xff] }
 0x3c2   :  { %1850 = vmatprep.subr.mxu0 %v6893_v7  ;;  %1921 = vmatprep.subr.mxu1 %v6896_v52  ;;  %9820 = vst [vmem:[#allocation129_spill] sm:$0xff] %v6906_v0  ;;  %9821 = vst [vmem:[#allocation130_spill] sm:$0xff] %v6909_v16  ;;  %v6912_v7 = vld [vmem:[#allocation6 + $0xe0] sm:$0xff]  ;;  %v6915_v52 = vld [vmem:[#allocation6 + $0xf0] sm:$0xff] }
 0x3c3   :  { %1851 = vmatpush1.msra.mxu0 %v6900_v22  ;;  %1922 = vmatpush1.msra.mxu1 %v6903_v23  ;;  %9822 = vst [vmem:[#allocation131_spill] sm:$0xff] %v6912_v7  ;;  %9823 = vst [vmem:[#allocation132_spill] sm:$0xff] %v6915_v52  ;;  %v6918_v22 = vld [vmem:[#allocation6 + $0xc8] sm:$0xff]  ;;  %v6921_v23 = vld [vmem:[#allocation6 + $0xd8] sm:$0xff] }
 0x3c4   :  { %1852 = vmatprep.subr.mxu0 %v6906_v0  ;;  %1923 = vmatprep.subr.mxu1 %v6909_v16  ;;  %9824 = vst [vmem:[#allocation133_spill] sm:$0xff] %v6918_v22  ;;  %9825 = vst [vmem:[#allocation134_spill] sm:$0xff] %v6921_v23  ;;  %v6924_v0 = vld [vmem:[#allocation6 + $0xc0] sm:$0xff]  ;;  %v6927_v16 = vld [vmem:[#allocation6 + $0xd0] sm:$0xff] }
 0x3c5   :  { %1853 = vmatpush1.msra.mxu0 %v6912_v7  ;;  %1924 = vmatpush1.msra.mxu1 %v6915_v52  ;;  %9826 = vst [vmem:[#allocation135_spill] sm:$0xff] %v6924_v0  ;;  %9827 = vst [vmem:[#allocation136_spill] sm:$0xff] %v6927_v16  ;;  %v6930_v7 = vld [vmem:[#allocation6 + $0xa8] sm:$0xff]  ;;  %v6933_v52 = vld [vmem:[#allocation6 + $0xb8] sm:$0xff] }
 0x3c6   :  { %1854 = vmatprep.subr.mxu0 %v6918_v22  ;;  %1925 = vmatprep.subr.mxu1 %v6921_v23  ;;  %9828 = vst [vmem:[#allocation137_spill] sm:$0xff] %v6930_v7  ;;  %9829 = vst [vmem:[#allocation138_spill] sm:$0xff] %v6933_v52  ;;  %v6936_v22 = vld [vmem:[#allocation6 + $0xa0] sm:$0xff]  ;;  %v6939_v23 = vld [vmem:[#allocation6 + $0xb0] sm:$0xff] }
 0x3c7   :  { %1855 = vmatpush1.msra.mxu0 %v6924_v0  ;;  %1926 = vmatpush1.msra.mxu1 %v6927_v16  ;;  %9830 = vst [vmem:[#allocation139_spill] sm:$0xff] %v6936_v22  ;;  %9831 = vst [vmem:[#allocation140_spill] sm:$0xff] %v6939_v23  ;;  %v4577_v0 = vpop.eup %4576  ;;  %v6945_v16 = vld [vmem:[#allocation6 + $0x98] sm:$0xff] }
 0x3c8   :  { %1856 = vmatprep.subr.mxu0 %v6930_v7  ;;  %1927 = vmatprep.subr.mxu1 %v6933_v52  ;;  %9833 = vst [vmem:[#allocation142_spill] sm:$0xff] %v6945_v16  ;;  %v6948_v7 = vld [vmem:[#allocation6 + $0x80] sm:$0xff]  ;;  %v6951_v52 = vld [vmem:[#allocation6 + $0x90] sm:$0xff]  ;;  %9845 = vst [vmem:[#allocation154_spill] sm:$0xff] %v6984_v34 }
 0x3c9   :  { %1857 = vmatpush1.msra.mxu0 %v6936_v22  ;;  %1928 = vmatpush1.msra.mxu1 %v6939_v23  ;;  %9834 = vst [vmem:[#allocation143_spill] sm:$0xff] %v6948_v7  ;;  %9835 = vst [vmem:[#allocation144_spill] sm:$0xff] %v6951_v52  ;;  %v6954_v22 = vld [vmem:[#allocation6 + $0x68] sm:$0xff]  ;;  %v6957_v23 = vld [vmem:[#allocation6 + $0x78] sm:$0xff] }
 0x3ca   :  { %1858 = vmatprep.subr.mxu0 %v6942_v42  ;;  %1929 = vmatprep.subr.mxu1 %v6945_v16  ;;  %9836 = vst [vmem:[#allocation145_spill] sm:$0xff] %v6954_v22  ;;  %9837 = vst [vmem:[#allocation146_spill] sm:$0xff] %v6957_v23  ;;  %v1523_v42 = vmul.f32 0.5, %v4577_v0  ;;  %v6963_v16 = vld [vmem:[#allocation6 + $0x70] sm:$0xff] }
 0x3cb   :  { %1859 = vmatpush1.msra.mxu0 %v6948_v7  ;;  %1930 = vmatpush1.msra.mxu1 %v6951_v52  ;;  %9839 = vst [vmem:[#allocation148_spill] sm:$0xff] %v6963_v16  ;;  %v6966_v7 = vld [vmem:[#allocation6 + $0x48] sm:$0xff]  ;;  %v6969_v52 = vld [vmem:[#allocation6 + $0x58] sm:$0xff]  ;;  %v6975_v0 = vld [vmem:[#allocation6 + $0x50] sm:$0xff] }
 0x3cc   :  { %1860 = vmatprep.subr.mxu0 %v6954_v22  ;;  %1931 = vmatprep.subr.mxu1 %v6957_v23  ;;  %9840 = vst [vmem:[#allocation149_spill] sm:$0xff] %v6966_v7  ;;  %9841 = vst [vmem:[#allocation150_spill] sm:$0xff] %v6969_v52  ;;  %v6972_v22 = vld [vmem:[#allocation6 + $0x40] sm:$0xff]  ;;  %v6978_v23 = vld [vmem:[#allocation6 + $0x28] sm:$0xff] }
 0x3cd   :  { %1861 = vmatpush1.msra.mxu0 %v6960_v2  ;;  %1932 = vmatpush1.msra.mxu1 %v6963_v16  ;;  %9842 = vst [vmem:[#allocation151_spill] sm:$0xff] %v6972_v22  ;;  %9843 = vst [vmem:[#allocation152_spill] sm:$0xff] %v6975_v0  ;;  %v4579_v2 = vpop.eup %4578  ;;  %v6981_v16 = vld [vmem:[#allocation6 + $0x38] sm:$0xff] }
 0x3ce   :  { %1862 = vmatprep.subr.mxu0 %v6966_v7  ;;  %1933 = vmatprep.subr.mxu1 %v6969_v52  ;;  %9844 = vst [vmem:[#allocation153_spill] sm:$0xff] %v6978_v23  ;;  %v1524_v7 = vadd.f32 0.5, %v1523_v42  ;;  %v6987_v52 = vld [vmem:[#allocation6 + $0x30] sm:$0xff] }
 0x3cf   :  { %1863 = vmatpush1.msra.mxu0 %v6972_v22  ;;  %1934 = vmatpush1.msra.mxu1 %v6975_v0  ;;  %v6990_v22 = vld [vmem:[#allocation6 + $0x8] sm:$0xff]  ;;  %v6993_v0 = vld [vmem:[#allocation6 + $0x18] sm:$0xff] }
 0x3d0   :  { %1864 = vmatprep.subr.mxu0 %v6978_v23  ;;  %1935 = vmatprep.subr.mxu1 %v6981_v16  ;;  %9846 = vst [vmem:[#allocation155_spill] sm:$0xff] %v6990_v22  ;;  %9847 = vst [vmem:[#allocation156_spill] sm:$0xff] %v6993_v0  ;;  %v6996_v23 = vld [vmem:[#allocation6] sm:$0xff]  ;;  %v1529_v42 = vmul.f32 %v4579_v2, %v1524_v7  ;;  %v7013_v2 = vld [vmem:[#allocation2 + $0x1f0] sm:$0xff] }
 0x3d1   :  { %1865 = vmatpush1.msra.mxu0 %v6984_v34  ;;  %1936 = vmatpush1.msra.mxu1 %v6987_v52  ;;  %9848 = vst [vmem:[#allocation157_spill] sm:$0xff] %v6996_v23  ;;  %v7000_v34 = vld [vmem:[#allocation6 + $0x10] sm:$0xff]  ;;  %9852 = vst [vmem:[#allocation161_spill] sm:$0xff] %v7013_v2  ;;  %v7016_v7 = vld [vmem:[#allocation2 + $0x1c8] sm:$0xff] }
 0x3d2   :  { %1866 = vmatprep.subr.mxu0 %v6990_v22  ;;  %1937 = vmatprep.subr.mxu1 %v6993_v0  ;;  %v7004_v22 = vld [vmem:[#allocation2 + $0x1e8] sm:$0xff]  ;;  %v7007_v0 = vld [vmem:[#allocation2 + $0x1f8] sm:$0xff]  ;;  %9853 = vst [vmem:[#allocation162_spill] sm:$0xff] %v7016_v7 }
 0x3d3   :  { %1867 = vmatpush1.msra.mxu0 %v6996_v23  ;;  %1900 = vmatprep.mubr.f32.mxu0 %v9568_v30  ;;  %9849 = vst [vmem:[#allocation158_spill] sm:$0xff] %v7004_v22  ;;  %9850 = vst [vmem:[#allocation159_spill] sm:$0xff] %v7007_v0  ;;  %v7010_v23 = vld [vmem:[#allocation2 + $0x1e0] sm:$0xff] }
 0x3d4   :  { %1938 = vmatpush1.msra.mxu1 %v7000_v34  ;;  %1971 = vmatprep.mubr.f32.mxu1 %v9568_v30  ;;  %9851 = vst [vmem:[#allocation160_spill] sm:$0xff] %v7010_v23 }
 0x3d5   :  { %1901 = vmatmul.mubr.f32.vlgmr.msra.gmra.mxu0 %v1529_v42  ;;  %1972 = vmatmul.mubr.f32.vlgmr.msra.gmra.mxu1 %v1529_v42  ;;  %v7019_v42 = vld [vmem:[#allocation2 + $0x1d8] sm:$0xff] }
 0x3d6   :  { %2000 = vmatprep.subr.mxu0 %v7004_v22  ;;  %2071 = vmatprep.subr.mxu1 %v7007_v0  ;;  %9854 = vst [vmem:[#allocation163_spill] sm:$0xff] %v7019_v42  ;;  %v7022_v22 = vld [vmem:[#allocation2 + $0x1c0] sm:$0xff]  ;;  %v7025_v0 = vld [vmem:[#allocation2 + $0x1d0] sm:$0xff] }
 0x3d7   :  { %2001 = vmatpush1.msra.mxu0 %v7010_v23  ;;  %2072 = vmatpush1.msra.mxu1 %v7013_v2  ;;  %9855 = vst [vmem:[#allocation164_spill] sm:$0xff] %v7022_v22  ;;  %9856 = vst [vmem:[#allocation165_spill] sm:$0xff] %v7025_v0  ;;  %v7028_v23 = vld [vmem:[#allocation2 + $0x1a8] sm:$0xff]  ;;  %v7031_v2 = vld [vmem:[#allocation2 + $0x1b8] sm:$0xff] }
 0x3d8   :  { %2002 = vmatprep.subr.mxu0 %v7016_v7  ;;  %2073 = vmatprep.subr.mxu1 %v7019_v42  ;;  %9857 = vst [vmem:[#allocation166_spill] sm:$0xff] %v7028_v23  ;;  %9858 = vst [vmem:[#allocation167_spill] sm:$0xff] %v7031_v2  ;;  %v7034_v7 = vld [vmem:[#allocation2 + $0x1a0] sm:$0xff]  ;;  %v7037_v42 = vld [vmem:[#allocation2 + $0x1b0] sm:$0xff] }
 0x3d9   :  { %2003 = vmatpush1.msra.mxu0 %v7022_v22  ;;  %2074 = vmatpush1.msra.mxu1 %v7025_v0  ;;  %9859 = vst [vmem:[#allocation168_spill] sm:$0xff] %v7034_v7  ;;  %9860 = vst [vmem:[#allocation169_spill] sm:$0xff] %v7037_v42  ;;  %v7040_v22 = vld [vmem:[#allocation2 + $0x188] sm:$0xff]  ;;  %v7043_v0 = vld [vmem:[#allocation2 + $0x198] sm:$0xff] }
 0x3da   :  { %2004 = vmatprep.subr.mxu0 %v7028_v23  ;;  %2075 = vmatprep.subr.mxu1 %v7031_v2  ;;  %9861 = vst [vmem:[#allocation170_spill] sm:$0xff] %v7040_v22  ;;  %9862 = vst [vmem:[#allocation171_spill] sm:$0xff] %v7043_v0  ;;  %v7046_v23 = vld [vmem:[#allocation2 + $0x180] sm:$0xff]  ;;  %v7049_v2 = vld [vmem:[#allocation2 + $0x190] sm:$0xff] }
 0x3db   :  { %2005 = vmatpush1.msra.mxu0 %v7034_v7  ;;  %2076 = vmatpush1.msra.mxu1 %v7037_v42  ;;  %v7052_v7 = vld [vmem:[#allocation2 + $0x168] sm:$0xff]  ;;  %v7055_v42 = vld [vmem:[#allocation2 + $0x178] sm:$0xff] }
 0x3dc   :  { %2006 = vmatprep.subr.mxu0 %v7040_v22  ;;  %2077 = vmatprep.subr.mxu1 %v7043_v0  ;;  %v7058_v22 = vld [vmem:[#allocation2 + $0x160] sm:$0xff]  ;;  %v7061_v0 = vld [vmem:[#allocation2 + $0x170] sm:$0xff] }
 0x3dd   :  { %2007 = vmatpush1.msra.mxu0 %v7046_v23  ;;  %2078 = vmatpush1.msra.mxu1 %v7049_v2 }
 0x3de   :  { %2008 = vmatprep.subr.mxu0 %v7052_v7  ;;  %2079 = vmatprep.subr.mxu1 %v7055_v42 }
 0x3df   :  { %2009 = vmatpush1.msra.mxu0 %v7058_v22  ;;  %2080 = vmatpush1.msra.mxu1 %v7061_v0 }
 0x3e0   :  { %2010 = vmatprep.subr.mxu0 %v6460_v53  ;;  %2081 = vmatprep.subr.mxu1 %v6463_v55  ;;  %v9863_v53 = vld [vmem:[#allocation12_spill] sm:$0xff]  ;;  %v9864_v55 = vld [vmem:[#allocation13_spill] sm:$0xff] }
 0x3e1   :  { %2011 = vmatpush1.msra.mxu0 %v6466_v56  ;;  %2082 = vmatpush1.msra.mxu1 %v6469_v54  ;;  %v9865_v56 = vld [vmem:[#allocation14_spill] sm:$0xff]  ;;  %v9866_v54 = vld [vmem:[#allocation15_spill] sm:$0xff] }
 0x3e2   :  { %2012 = vmatprep.subr.mxu0 %v6472_v18  ;;  %2083 = vmatprep.subr.mxu1 %v6475_v31  ;;  %v9867_v18 = vld [vmem:[#allocation16_spill] sm:$0xff]  ;;  %v9868_v31 = vld [vmem:[#allocation17_spill] sm:$0xff] }
 0x3e3   :  { %2013 = vmatpush1.msra.mxu0 %v6478_v26  ;;  %2084 = vmatpush1.msra.mxu1 %v6481_v36  ;;  %v9869_v26 = vld [vmem:[#allocation18_spill] sm:$0xff]  ;;  %v9870_v36 = vld [vmem:[#allocation19_spill] sm:$0xff] }
 0x3e4   :  { %2014 = vmatprep.subr.mxu0 %v6484_v29  ;;  %2085 = vmatprep.subr.mxu1 %v6487_v57  ;;  %v9871_v29 = vld [vmem:[#allocation20_spill] sm:$0xff]  ;;  %v9872_v57 = vld [vmem:[#allocation21_spill] sm:$0xff] }
 0x3e5   :  { %2015 = vmatpush1.msra.mxu0 %v6490_v58  ;;  %2086 = vmatpush1.msra.mxu1 %v6493_v59  ;;  %v9873_v58 = vld [vmem:[#allocation22_spill] sm:$0xff]  ;;  %v9874_v59 = vld [vmem:[#allocation23_spill] sm:$0xff] }
 0x3e6   :  { %2016 = vmatprep.subr.mxu0 %v6496_v60  ;;  %2087 = vmatprep.subr.mxu1 %v6499_v61  ;;  %v9875_v60 = vld [vmem:[#allocation24_spill] sm:$0xff]  ;;  %v9876_v61 = vld [vmem:[#allocation25_spill] sm:$0xff] }
 0x3e7   :  { %2017 = vmatpush1.msra.mxu0 %v6502_v62  ;;  %2088 = vmatpush1.msra.mxu1 %v6505_v6  ;;  %v9877_v62 = vld [vmem:[#allocation26_spill] sm:$0xff]  ;;  %v9878_v6 = vld [vmem:[#allocation27_spill] sm:$0xff] }
 0x3e8   :  { %2018 = vmatprep.subr.mxu0 %v6508_v8  ;;  %2089 = vmatprep.subr.mxu1 %v6511_v10  ;;  %v9879_v8 = vld [vmem:[#allocation28_spill] sm:$0xff]  ;;  %v9880_v10 = vld [vmem:[#allocation29_spill] sm:$0xff] }
 0x3e9   :  { %2019 = vmatpush1.msra.mxu0 %v6514_v11  ;;  %2090 = vmatpush1.msra.mxu1 %v6517_v12  ;;  %v9881_v11 = vld [vmem:[#allocation30_spill] sm:$0xff]  ;;  %v9882_v12 = vld [vmem:[#allocation31_spill] sm:$0xff] }
 0x3ea   :  { %2020 = vmatprep.subr.mxu0 %v6520_v13  ;;  %2091 = vmatprep.subr.mxu1 %v6523_v28  ;;  %v9883_v13 = vld [vmem:[#allocation32_spill] sm:$0xff]  ;;  %v9884_v28 = vld [vmem:[#allocation33_spill] sm:$0xff] }
 0x3eb   :  { %2021 = vmatpush1.msra.mxu0 %v6526_v14  ;;  %2092 = vmatpush1.msra.mxu1 %v6529_v32  ;;  %v9885_v14 = vld [vmem:[#allocation34_spill] sm:$0xff]  ;;  %v9886_v32 = vld [vmem:[#allocation35_spill] sm:$0xff] }
 0x3ec   :  { %2022 = vmatprep.subr.mxu0 %v6532_v33  ;;  %2093 = vmatprep.subr.mxu1 %v6535_v35  ;;  %v9887_v33 = vld [vmem:[#allocation36_spill] sm:$0xff]  ;;  %v9888_v35 = vld [vmem:[#allocation37_spill] sm:$0xff] }
 0x3ed   :  { %2023 = vmatpush1.msra.mxu0 %v6538_v1  ;;  %2094 = vmatpush1.msra.mxu1 %v6541_v5  ;;  %v9889_v1 = vld [vmem:[#allocation38_spill] sm:$0xff]  ;;  %v9890_v5 = vld [vmem:[#allocation39_spill] sm:$0xff] }
 0x3ee   :  { %2024 = vmatprep.subr.mxu0 %v6544_v3  ;;  %2095 = vmatprep.subr.mxu1 %v9863_v53  ;;  %v9891_v3 = vld [vmem:[#allocation40_spill] sm:$0xff]  ;;  %v9893_v53 = vld [vmem:[#allocation42_spill] sm:$0xff] }
 0x3ef   :  { %2025 = vmatpush1.msra.mxu0 %v9864_v55  ;;  %2096 = vmatpush1.msra.mxu1 %v9865_v56  ;;  %v9894_v55 = vld [vmem:[#allocation43_spill] sm:$0xff]  ;;  %v9895_v56 = vld [vmem:[#allocation44_spill] sm:$0xff] }
 0x3f0   :  { %2026 = vmatprep.subr.mxu0 %v9866_v54  ;;  %2097 = vmatprep.subr.mxu1 %v9867_v18  ;;  %v9896_v54 = vld [vmem:[#allocation45_spill] sm:$0xff]  ;;  %v9897_v18 = vld [vmem:[#allocation46_spill] sm:$0xff] }
 0x3f1   :  { %2027 = vmatpush1.msra.mxu0 %v9868_v31  ;;  %2098 = vmatpush1.msra.mxu1 %v9869_v26  ;;  %v9898_v31 = vld [vmem:[#allocation47_spill] sm:$0xff]  ;;  %v9899_v26 = vld [vmem:[#allocation48_spill] sm:$0xff] }
 0x3f2   :  { %2028 = vmatprep.subr.mxu0 %v9870_v36  ;;  %2099 = vmatprep.subr.mxu1 %v9871_v29  ;;  %v9900_v36 = vld [vmem:[#allocation49_spill] sm:$0xff]  ;;  %v9901_v29 = vld [vmem:[#allocation50_spill] sm:$0xff] }
 0x3f3   :  { %2029 = vmatpush1.msra.mxu0 %v9872_v57  ;;  %2100 = vmatpush1.msra.mxu1 %v9873_v58  ;;  %v9902_v57 = vld [vmem:[#allocation51_spill] sm:$0xff]  ;;  %v9903_v58 = vld [vmem:[#allocation52_spill] sm:$0xff] }
 0x3f4   :  { %2030 = vmatprep.subr.mxu0 %v9874_v59  ;;  %2101 = vmatprep.subr.mxu1 %v9875_v60  ;;  %v9904_v59 = vld [vmem:[#allocation53_spill] sm:$0xff]  ;;  %v9905_v60 = vld [vmem:[#allocation54_spill] sm:$0xff] }
 0x3f5   :  { %2031 = vmatpush1.msra.mxu0 %v9876_v61  ;;  %2064 = vmatprep.mubr.f32.mxu0 %v9568_v30  ;;  %v9906_v61 = vld [vmem:[#allocation55_spill] sm:$0xff] }
 0x3f6   :  { %2102 = vmatpush1.msra.mxu1 %v9877_v62  ;;  %2135 = vmatprep.mubr.f32.mxu1 %v9568_v30  ;;  %v9907_v62 = vld [vmem:[#allocation56_spill] sm:$0xff] }
 0x3f7   :  { %2065 = vmatmul.mubr.f32.vlgmr.msra.gmra.mxu0 %v6807_v44  ;;  %2136 = vmatmul.mubr.f32.vlgmr.msra.gmra.mxu1 %v6807_v44  ;;  %v9892_v44 = vld [vmem:[#allocation41_spill] sm:$0xff] }
 0x3f8   :  { %2164 = vmatprep.subr.mxu0 %v9878_v6  ;;  %2235 = vmatprep.subr.mxu1 %v9879_v8  ;;  %v9908_v6 = vld [vmem:[#allocation57_spill] sm:$0xff]  ;;  %v9909_v8 = vld [vmem:[#allocation58_spill] sm:$0xff] }
 0x3f9   :  { %2165 = vmatpush1.msra.mxu0 %v9880_v10  ;;  %2236 = vmatpush1.msra.mxu1 %v9881_v11  ;;  %v9910_v10 = vld [vmem:[#allocation59_spill] sm:$0xff]  ;;  %v9911_v11 = vld [vmem:[#allocation60_spill] sm:$0xff] }
 0x3fa   :  { %2166 = vmatprep.subr.mxu0 %v9882_v12  ;;  %2237 = vmatprep.subr.mxu1 %v9883_v13  ;;  %v9912_v12 = vld [vmem:[#allocation61_spill] sm:$0xff]  ;;  %v9913_v13 = vld [vmem:[#allocation62_spill] sm:$0xff] }
 0x3fb   :  { %2167 = vmatpush1.msra.mxu0 %v9884_v28  ;;  %2238 = vmatpush1.msra.mxu1 %v9885_v14  ;;  %v9914_v28 = vld [vmem:[#allocation63_spill] sm:$0xff]  ;;  %v9915_v14 = vld [vmem:[#allocation64_spill] sm:$0xff] }
 0x3fc   :  { %2168 = vmatprep.subr.mxu0 %v9886_v32  ;;  %2239 = vmatprep.subr.mxu1 %v9887_v33  ;;  %v9916_v32 = vld [vmem:[#allocation65_spill] sm:$0xff]  ;;  %v9917_v33 = vld [vmem:[#allocation66_spill] sm:$0xff] }
 0x3fd   :  { %2169 = vmatpush1.msra.mxu0 %v9888_v35  ;;  %2240 = vmatpush1.msra.mxu1 %v9889_v1  ;;  %v9918_v35 = vld [vmem:[#allocation67_spill] sm:$0xff]  ;;  %v9919_v1 = vld [vmem:[#allocation68_spill] sm:$0xff] }
 0x3fe   :  { %2170 = vmatprep.subr.mxu0 %v9890_v5  ;;  %2241 = vmatprep.subr.mxu1 %v9891_v3  ;;  %v9920_v5 = vld [vmem:[#allocation69_spill] sm:$0xff]  ;;  %v9921_v3 = vld [vmem:[#allocation70_spill] sm:$0xff] }
 0x3ff   :  { %2171 = vmatpush1.msra.mxu0 %v9892_v44  ;;  %2242 = vmatpush1.msra.mxu1 %v9893_v53  ;;  %v9922_v44 = vld [vmem:[#allocation71_spill] sm:$0xff]  ;;  %v9923_v53 = vld [vmem:[#allocation72_spill] sm:$0xff] }
 0x400   :  { %2172 = vmatprep.subr.mxu0 %v9894_v55  ;;  %2243 = vmatprep.subr.mxu1 %v9895_v56  ;;  %v9924_v55 = vld [vmem:[#allocation73_spill] sm:$0xff]  ;;  %v9925_v56 = vld [vmem:[#allocation74_spill] sm:$0xff] }
 0x401   :  { %2173 = vmatpush1.msra.mxu0 %v9896_v54  ;;  %2244 = vmatpush1.msra.mxu1 %v9897_v18  ;;  %v9926_v54 = vld [vmem:[#allocation75_spill] sm:$0xff]  ;;  %v9927_v18 = vld [vmem:[#allocation76_spill] sm:$0xff] }
 0x402   :  { %2174 = vmatprep.subr.mxu0 %v9898_v31  ;;  %2245 = vmatprep.subr.mxu1 %v9899_v26  ;;  %v9928_v31 = vld [vmem:[#allocation77_spill] sm:$0xff]  ;;  %v9929_v26 = vld [vmem:[#allocation78_spill] sm:$0xff] }
 0x403   :  { %2175 = vmatpush1.msra.mxu0 %v9900_v36  ;;  %2246 = vmatpush1.msra.mxu1 %v9901_v29  ;;  %v9930_v36 = vld [vmem:[#allocation79_spill] sm:$0xff]  ;;  %v9931_v29 = vld [vmem:[#allocation80_spill] sm:$0xff] }
 0x404   :  { %2176 = vmatprep.subr.mxu0 %v9902_v57  ;;  %2247 = vmatprep.subr.mxu1 %v9903_v58  ;;  %v9932_v57 = vld [vmem:[#allocation83_spill] sm:$0xff]  ;;  %v9933_v58 = vld [vmem:[#allocation82_spill] sm:$0xff] }
 0x405   :  { %2177 = vmatpush1.msra.mxu0 %v9904_v59  ;;  %2248 = vmatpush1.msra.mxu1 %v9905_v60  ;;  %v9934_v59 = vld [vmem:[#allocation84_spill] sm:$0xff]  ;;  %v9935_v60 = vld [vmem:[#allocation81_spill] sm:$0xff] }
 0x406   :  { %2178 = vmatprep.subr.mxu0 %v9906_v61  ;;  %2249 = vmatprep.subr.mxu1 %v9907_v62  ;;  %v9936_v61 = vld [vmem:[#allocation109_spill] sm:$0xff]  ;;  %v9937_v62 = vld [vmem:[#allocation110_spill] sm:$0xff] }
 0x407   :  { %2179 = vmatpush1.msra.mxu0 %v9908_v6  ;;  %2250 = vmatpush1.msra.mxu1 %v9909_v8  ;;  %v9938_v6 = vld [vmem:[#allocation111_spill] sm:$0xff]  ;;  %v9939_v8 = vld [vmem:[#allocation112_spill] sm:$0xff] }
 0x408   :  { %2180 = vmatprep.subr.mxu0 %v9910_v10  ;;  %2251 = vmatprep.subr.mxu1 %v9911_v11  ;;  %v9940_v10 = vld [vmem:[#allocation113_spill] sm:$0xff]  ;;  %v9941_v11 = vld [vmem:[#allocation114_spill] sm:$0xff] }
 0x409   :  { %2181 = vmatpush1.msra.mxu0 %v9912_v12  ;;  %2252 = vmatpush1.msra.mxu1 %v9913_v13  ;;  %v9942_v12 = vld [vmem:[#allocation115_spill] sm:$0xff]  ;;  %v9943_v13 = vld [vmem:[#allocation116_spill] sm:$0xff] }
 0x40a   :  { %2182 = vmatprep.subr.mxu0 %v9914_v28  ;;  %2253 = vmatprep.subr.mxu1 %v9915_v14 }
 0x40b   :  { %2183 = vmatpush1.msra.mxu0 %v9916_v32  ;;  %2254 = vmatpush1.msra.mxu1 %v9917_v33 }
 0x40c   :  { %2184 = vmatprep.subr.mxu0 %v9918_v35  ;;  %2255 = vmatprep.subr.mxu1 %v9919_v1 }
 0x40d   :  { %2185 = vmatpush1.msra.mxu0 %v9920_v5  ;;  %2256 = vmatpush1.msra.mxu1 %v9921_v3 }
 0x40e   :  { %2186 = vmatprep.subr.mxu0 %v9922_v44  ;;  %2257 = vmatprep.subr.mxu1 %v9923_v53  ;;  %v9944_v53 = vld [vmem:[#allocation89_spill] sm:$0xff] }
 0x40f   :  { %2187 = vmatpush1.msra.mxu0 %v9924_v55  ;;  %2258 = vmatpush1.msra.mxu1 %v9925_v56 }
 0x410   :  { %2188 = vmatprep.subr.mxu0 %v9926_v54  ;;  %2259 = vmatprep.subr.mxu1 %v9927_v18 }
 0x411   :  { %2189 = vmatpush1.msra.mxu0 %v9928_v31  ;;  %2260 = vmatpush1.msra.mxu1 %v9929_v26  ;;  %v9945_v31 = vld [vmem:[#allocation91_spill] sm:$0xff] }
 0x412   :  { %2190 = vmatprep.subr.mxu0 %v9930_v36  ;;  %2261 = vmatprep.subr.mxu1 %v9931_v29  ;;  %v9946_v36 = vld [vmem:[#allocation90_spill] sm:$0xff] }
 0x413   :  { %2191 = vmatpush1.msra.mxu0 %v9932_v57  ;;  %2262 = vmatpush1.msra.mxu1 %v9933_v58 }
 0x414   :  { %2192 = vmatprep.subr.mxu0 %v9934_v59  ;;  %2263 = vmatprep.subr.mxu1 %v9935_v60  ;;  %v9947_v59 = vld [vmem:[#allocation92_spill] sm:$0xff] }
 0x415   :  { %2193 = vmatpush1.msra.mxu0 %v9936_v61  ;;  %2264 = vmatpush1.msra.mxu1 %v9937_v62 }
 0x416   :  { %2194 = vmatprep.subr.mxu0 %v9938_v6  ;;  %2265 = vmatprep.subr.mxu1 %v9939_v8 }
 0x417   :  { %2195 = vmatpush1.msra.mxu0 %v9940_v10  ;;  %2266 = vmatpush1.msra.mxu1 %v9941_v11 }
 0x418   :  { %2228 = vmatprep.mubr.f32.mxu0 %v9568_v30  ;;  %2299 = vmatprep.mubr.f32.mxu1 %v9568_v30 }
 0x419   :  { %2306 = vmatprep.subr.mxu0 %v9942_v12  ;;  %2377 = vmatprep.subr.mxu1 %v9943_v13 }
 0x474   :  { %v1760_v28 = vpop.f32.mrf.mxu0  ;;  %v1831_v14 = vpop.f32.mrf.mxu1 }
 0x476   :  { %v1762_v32 = vpop.f32.mrf.mxu0  ;;  %v1833_v33 = vpop.f32.mrf.mxu1 }
 0x495   :  { %v1902_v35 = vpop.f32.mrf.mxu0  ;;  %v1973_v1 = vpop.f32.mrf.mxu1 }
 0x496   :  { %v1903_v8 = vadd.f32 %v1902_v35, %v1760_v28  ;;  %v1974_v28 = vadd.f32 %v1973_v1, %v1831_v14 }
 0x497   :  { %v1904_v5 = vpop.f32.mrf.mxu0  ;;  %v1975_v3 = vpop.f32.mrf.mxu1 }
 0x498   :  { %v1905_v61 = vadd.f32 %v1904_v5, %v1762_v32  ;;  %v1980_v5 = vadd.f32 %v1974_v28, %v6361_v4  ;;  %v9976_v28 = vld [vmem:[#allocation145_spill] sm:$0xff] }
 0x49a   :  { %v1979_v12 = vadd.f32 %v1905_v61, %v6347_v41 }
 0x4b7   :  { %v2066_v44 = vpop.f32.mrf.mxu0  ;;  %v2137_v56 = vpop.f32.mrf.mxu1 }
 0x4b8   :  { %v2142_v55 = vadd.f32 %v2066_v44, %v9944_v53  ;;  %v2144_v29 = vadd.f32 %v2137_v56, %v9946_v36 }
 0x4b9   :  { %v2068_v54 = vpop.f32.mrf.mxu0  ;;  %v2139_v58 = vpop.f32.mrf.mxu1 }
 0x4ba   :  { %v2146_v18 = vmul.f32 0.5, %v2142_v55  ;;  %v2143_v26 = vadd.f32 %v2068_v54, %v9945_v31  ;;  %v2145_v60 = vadd.f32 %v2139_v58, %v9947_v59  ;;  %v1978_v55 = vadd.f32 %v1903_v8, %v6351_v47  ;;  %v9964_v8 = vld [vmem:[#allocation133_spill] sm:$0xff] }
 0x4bb   :  { %v1976_v59 = vadd.f32 %v1975_v3, %v1833_v33 }
 0x4bc   :  { %4580 = vtanh.f32 %v2146_v18  ;;  %v2150_v57 = vmul.f32 0.5, %v2143_v26  ;;  %v2155_v62 = vmul.f32 0.5, %v2145_v60  ;;  %v1986_v18 = vmul.f32 0.5, %v1979_v12  ;;  %v9967_v12 = vld [vmem:[#allocation136_spill] sm:$0xff] }
 0x4bd   :  { %v1982_v26 = vmul.f32 0.5, %v1978_v55  ;;  %v1981_v14 = vadd.f32 %v1976_v59, %v6366_v20  ;;  %v9971_v55 = vld [vmem:[#allocation140_spill] sm:$0xff]  ;;  %v9982_v59 = vld [vmem:[#allocation151_spill] sm:$0xff] }
 0x4be   :  { %4582 = vtanh.f32 %v2150_v57 }
 0x4bf   :  { %4584 = vtanh.f32 %v2144_v29  ;;  %v1991_v3 = vmul.f32 0.5, %v1981_v14 }
 0x4c0   :  { %4586 = vtanh.f32 %v2155_v62 }
 0x4c1   :  { %4588 = vtanh.f32 %v1986_v18  ;;  %v9973_v18 = vld [vmem:[#allocation142_spill] sm:$0xff] }
 0x4c9   :  { %v4581_v6 = vpop.eup %4580 }
 0x4ca   :  { %v2148_v10 = vmul.f32 0.5, %v4581_v6  ;;  %v9963_v6 = vld [vmem:[#allocation132_spill] sm:$0xff] }
 0x4cb   :  { %v4583_v11 = vpop.eup %4582 }
 0x4cc   :  { %v2149_v13 = vadd.f32 0.5, %v2148_v10  ;;  %v2152_v44 = vmul.f32 0.5, %v4583_v11  ;;  %v4585_v53 = vpop.eup %4584  ;;  %v9965_v10 = vld [vmem:[#allocation134_spill] sm:$0xff]  ;;  %v9966_v11 = vld [vmem:[#allocation135_spill] sm:$0xff] }
 0x4cd   :  { %v4587_v35 = vpop.eup %4586 }
 0x4ce   :  { %v2153_v56 = vadd.f32 0.5, %v2152_v44  ;;  %v2160_v54 = vmul.f32 %v4585_v53, %v2149_v13  ;;  %v2157_v36 = vmul.f32 0.5, %v4587_v35  ;;  %v4589_v29 = vpop.eup %4588  ;;  %v9968_v13 = vld [vmem:[#allocation137_spill] sm:$0xff]  ;;  %v9969_v44 = vld [vmem:[#allocation138_spill] sm:$0xff]  ;;  %v9970_v53 = vld [vmem:[#allocation139_spill] sm:$0xff] }
 0x4cf   :  { %v9977_v35 = vld [vmem:[#allocation146_spill] sm:$0xff] }
 0x4d0   :  { %v2159_v31 = vmul.f32 %v2153_v56, %v6803_v63  ;;  %v2158_v57 = vadd.f32 0.5, %v2157_v36  ;;  %v1988_v63 = vmul.f32 0.5, %v4589_v29  ;;  %v9978_v36 = vld [vmem:[#allocation147_spill] sm:$0xff]  ;;  %v9979_v29 = vld [vmem:[#allocation148_spill] sm:$0xff] }
 0x4d2   :  { %v7187_v32 = vadd.f32 %v2160_v54, %v2159_v31  ;;  %v1989_v33 = vadd.f32 0.5, %v1988_v63  ;;  %v9972_v54 = vld [vmem:[#allocation141_spill] sm:$0xff]  ;;  %v9974_v31 = vld [vmem:[#allocation143_spill] sm:$0xff] }
 0x4d4   :  { %4590 = vtanh.f32 %v7187_v32 }
 0x4d5   :  { %4592 = vtanh.f32 %v1982_v26  ;;  %v9975_v26 = vld [vmem:[#allocation144_spill] sm:$0xff] }
 0x4d6   :  { %4594 = vtanh.f32 %v1980_v5 }
 0x4d7   :  { %4596 = vtanh.f32 %v1991_v3  ;;  %v9987_v3 = vld [vmem:[#allocation156_spill] sm:$0xff] }
 0x4e1   :  { %v4591_v58 = vpop.eup %4590 }
 0x4e2   :  { %v4593_v60 = vpop.eup %4592  ;;  %v7191_v61 = vmul.f32 %v4591_v58, %v2158_v57  ;;  %v9980_v57 = vld [vmem:[#allocation149_spill] sm:$0xff]  ;;  %v9981_v58 = vld [vmem:[#allocation150_spill] sm:$0xff] }
 0x4e3   :  { %v1984_v62 = vmul.f32 0.5, %v4593_v60  ;;  %v9983_v60 = vld [vmem:[#allocation152_spill] sm:$0xff] }
 0x4e4   :  { %2229 = vmatmul.mubr.f32.vlgmr.msra.gmra.mxu0 %v7191_v61  ;;  %2300 = vmatmul.mubr.f32.vlgmr.msra.gmra.mxu1 %v7191_v61 }
 0x4e5   :  { %2307 = vmatpush1.msra.mxu0 %v6812_v50  ;;  %2378 = vmatpush1.msra.mxu1 %v6815_v51  ;;  %v1985_v1 = vadd.f32 0.5, %v1984_v62  ;;  %v1995_v50 = vmul.f32 %v1989_v33, %v6873_v46  ;;  %v4595_v51 = vpop.eup %4594  ;;  %v9962_v46 = vld [vmem:[#allocation131_spill] sm:$0xff]  ;;  %v9984_v62 = vld [vmem:[#allocation153_spill] sm:$0xff]  ;;  %v9985_v33 = vld [vmem:[#allocation154_spill] sm:$0xff] }
 0x4e6   :  { %2308 = vmatprep.subr.mxu0 %v6818_v48  ;;  %2379 = vmatprep.subr.mxu1 %v6821_v49  ;;  %v9948_v49 = vld [vmem:[#allocation117_spill] sm:$0xff]  ;;  %v4597_v56 = vpop.eup %4596 }
 0x4e7   :  { %2309 = vmatpush1.msra.mxu0 %v6824_v40  ;;  %2380 = vmatpush1.msra.mxu1 %v6827_v45  ;;  %v1996_v48 = vmul.f32 %v4595_v51, %v1985_v1  ;;  %v9949_v40 = vld [vmem:[#allocation118_spill] sm:$0xff]  ;;  %v1993_v5 = vmul.f32 0.5, %v4597_v56  ;;  %v9986_v1 = vld [vmem:[#allocation155_spill] sm:$0xff]  ;;  %v7344_v56 = vld [vmem:[#allocation2 + $0xa8] sm:$0xff] }
 0x4e8   :  { %2310 = vmatprep.subr.mxu0 %v6830_v9  ;;  %2381 = vmatprep.subr.mxu1 %v6833_v24  ;;  %v9950_v9 = vld [vmem:[#allocation119_spill] sm:$0xff]  ;;  %v9951_v24 = vld [vmem:[#allocation120_spill] sm:$0xff] }
 0x4e9   :  { %2311 = vmatpush1.msra.mxu0 %v6836_v15  ;;  %2382 = vmatpush1.msra.mxu1 %v6839_v39  ;;  %v7217_v45 = vadd.f32 %v1996_v48, %v1995_v50  ;;  %v9952_v15 = vld [vmem:[#allocation121_spill] sm:$0xff]  ;;  %v9953_v39 = vld [vmem:[#allocation122_spill] sm:$0xff]  ;;  %v1994_v14 = vadd.f32 0.5, %v1993_v5  ;;  %v9990_v48 = vld [vmem:[#allocation159_spill] sm:$0xff] }
 0x4ea   :  { %2312 = vmatprep.subr.mxu0 %v6842_v19  ;;  %2383 = vmatprep.subr.mxu1 %v6845_v27  ;;  %v9954_v19 = vld [vmem:[#allocation123_spill] sm:$0xff]  ;;  %v9955_v27 = vld [vmem:[#allocation124_spill] sm:$0xff]  ;;  %v9988_v50 = vld [vmem:[#allocation157_spill] sm:$0xff] }
 0x4eb   :  { %2313 = vmatpush1.msra.mxu0 %v6849_v25  ;;  %2384 = vmatpush1.msra.mxu1 %v6852_v37  ;;  %v9956_v25 = vld [vmem:[#allocation125_spill] sm:$0xff]  ;;  %v9957_v37 = vld [vmem:[#allocation126_spill] sm:$0xff]  ;;  %4598 = vtanh.f32 %v7217_v45 }
 0x4ec   :  { %2314 = vmatprep.subr.mxu0 %v6855_v38  ;;  %2385 = vmatprep.subr.mxu1 %v6858_v17  ;;  %v9958_v38 = vld [vmem:[#allocation127_spill] sm:$0xff]  ;;  %v9959_v17 = vld [vmem:[#allocation128_spill] sm:$0xff]  ;;  %v7365_v5 = vld [vmem:[#allocation2 + $0x90] sm:$0xff] }
 0x4ed   :  { %2315 = vmatpush1.msra.mxu0 %v6861_v43  ;;  %2386 = vmatpush1.msra.mxu1 %v6864_v21  ;;  %v9960_v43 = vld [vmem:[#allocation129_spill] sm:$0xff]  ;;  %v9961_v21 = vld [vmem:[#allocation130_spill] sm:$0xff] }
 0x4ee   :  { %2316 = vmatprep.subr.mxu0 %v9948_v49  ;;  %2387 = vmatprep.subr.mxu1 %v9949_v40  ;;  %v9992_v49 = vld [vmem:[#allocation161_spill] sm:$0xff]  ;;  %v9993_v40 = vld [vmem:[#allocation162_spill] sm:$0xff] }
 0x4ef   :  { %2317 = vmatpush1.msra.mxu0 %v9950_v9  ;;  %2388 = vmatpush1.msra.mxu1 %v9951_v24  ;;  %v9994_v9 = vld [vmem:[#allocation163_spill] sm:$0xff]  ;;  %v9995_v24 = vld [vmem:[#allocation164_spill] sm:$0xff] }
 0x4f0   :  { %2318 = vmatprep.subr.mxu0 %v9952_v15  ;;  %2389 = vmatprep.subr.mxu1 %v9953_v39  ;;  %v9996_v15 = vld [vmem:[#allocation165_spill] sm:$0xff]  ;;  %v9998_v39 = vld [vmem:[#allocation167_spill] sm:$0xff] }
 0x4f1   :  { %2319 = vmatpush1.msra.mxu0 %v9954_v19  ;;  %2390 = vmatpush1.msra.mxu1 %v9955_v27  ;;  %v9999_v19 = vld [vmem:[#allocation168_spill] sm:$0xff]  ;;  %v10000_v27 = vld [vmem:[#allocation169_spill] sm:$0xff] }
 0x4f2   :  { %2320 = vmatprep.subr.mxu0 %v9956_v25  ;;  %2391 = vmatprep.subr.mxu1 %v9957_v37  ;;  %v10001_v25 = vld [vmem:[#allocation170_spill] sm:$0xff]  ;;  %v10002_v37 = vld [vmem:[#allocation171_spill] sm:$0xff] }
 0x4f3   :  { %2321 = vmatpush1.msra.mxu0 %v9958_v38  ;;  %2392 = vmatpush1.msra.mxu1 %v9959_v17  ;;  %v7284_v38 = vld [vmem:[#allocation2 + $0x148] sm:$0xff]  ;;  %v7287_v17 = vld [vmem:[#allocation2 + $0x158] sm:$0xff] }
 0x4f4   :  { %2322 = vmatprep.subr.mxu0 %v9960_v43  ;;  %2393 = vmatprep.subr.mxu1 %v9961_v21  ;;  %v7290_v43 = vld [vmem:[#allocation2 + $0x140] sm:$0xff]  ;;  %v7311_v21 = vld [vmem:[#allocation2 + $0x118] sm:$0xff] }
 0x4f5   :  { %2323 = vmatpush1.msra.mxu0 %v9962_v46  ;;  %2394 = vmatpush1.msra.mxu1 %v9963_v6  ;;  %v7314_v46 = vld [vmem:[#allocation2 + $0x100] sm:$0xff]  ;;  %v7317_v6 = vld [vmem:[#allocation2 + $0x110] sm:$0xff] }
 0x4f6   :  { %2324 = vmatprep.subr.mxu0 %v9964_v8  ;;  %2395 = vmatprep.subr.mxu1 %v9965_v10  ;;  %v7320_v8 = vld [vmem:[#allocation2 + $0xe8] sm:$0xff]  ;;  %v7323_v10 = vld [vmem:[#allocation2 + $0xf8] sm:$0xff] }
 0x4f7   :  { %2325 = vmatpush1.msra.mxu0 %v9966_v11  ;;  %2396 = vmatpush1.msra.mxu1 %v9967_v12  ;;  %v7326_v11 = vld [vmem:[#allocation2 + $0xe0] sm:$0xff]  ;;  %v7329_v12 = vld [vmem:[#allocation2 + $0xf0] sm:$0xff] }
 0x4f8   :  { %2326 = vmatprep.subr.mxu0 %v9968_v13  ;;  %2397 = vmatprep.subr.mxu1 %v9969_v44  ;;  %v4599_v63 = vpop.eup %4598  ;;  %v7332_v13 = vld [vmem:[#allocation2 + $0xc8] sm:$0xff]  ;;  %v7335_v44 = vld [vmem:[#allocation2 + $0xd8] sm:$0xff] }
 0x4f9   :  { %2327 = vmatpush1.msra.mxu0 %v9970_v53  ;;  %2398 = vmatpush1.msra.mxu1 %v9971_v55  ;;  %v1999_v51 = vmul.f32 %v4599_v63, %v1994_v14  ;;  %v7338_v53 = vld [vmem:[#allocation2 + $0xc0] sm:$0xff]  ;;  %v7341_v55 = vld [vmem:[#allocation2 + $0xd0] sm:$0xff]  ;;  %v7392_v14 = vld [vmem:[#allocation2 + $0x28] sm:$0xff] }
 0x4fa   :  { %2328 = vmatprep.subr.mxu0 %v9972_v54  ;;  %2399 = vmatprep.subr.mxu1 %v9973_v18  ;;  %v7347_v54 = vld [vmem:[#allocation2 + $0xb8] sm:$0xff]  ;;  %v7350_v18 = vld [vmem:[#allocation2 + $0xa0] sm:$0xff]  ;;  %10010 = vst [vmem:[#allocation15_spill] sm:$0xff] %v7392_v14 }
 0x4fb   :  { %2329 = vmatpush1.msra.mxu0 %v9974_v31  ;;  %2400 = vmatpush1.msra.mxu1 %v9975_v26  ;;  %v7353_v31 = vld [vmem:[#allocation2 + $0xb0] sm:$0xff]  ;;  %v7356_v26 = vld [vmem:[#allocation2 + $0x88] sm:$0xff]  ;;  %v7386_v63 = vld [vmem:[#allocation2 + $0x40] sm:$0xff] }
 0x4fc   :  { %2330 = vmatprep.subr.mxu0 %v9976_v28  ;;  %2401 = vmatprep.subr.mxu1 %v9977_v35  ;;  %v7359_v28 = vld [vmem:[#allocation2 + $0x98] sm:$0xff]  ;;  %v7362_v35 = vld [vmem:[#allocation2 + $0x80] sm:$0xff]  ;;  %10008 = vst [vmem:[#allocation13_spill] sm:$0xff] %v7386_v63 }
 0x4fd   :  { %2331 = vmatpush1.msra.mxu0 %v9978_v36  ;;  %2402 = vmatpush1.msra.mxu1 %v9979_v29  ;;  %v7368_v36 = vld [vmem:[#allocation2 + $0x68] sm:$0xff]  ;;  %v7371_v29 = vld [vmem:[#allocation2 + $0x78] sm:$0xff] }
 0x4fe   :  { %2332 = vmatprep.subr.mxu0 %v9980_v57  ;;  %2403 = vmatprep.subr.mxu1 %v9981_v58  ;;  %10003 = vst [vmem:[#allocation85_spill] sm:$0xff] %v7371_v29  ;;  %v7374_v57 = vld [vmem:[#allocation2 + $0x60] sm:$0xff]  ;;  %v7377_v58 = vld [vmem:[#allocation2 + $0x70] sm:$0xff] }
 0x4ff   :  { %2333 = vmatpush1.msra.mxu0 %v9982_v59  ;;  %2404 = vmatpush1.msra.mxu1 %v9983_v60  ;;  %10004 = vst [vmem:[#allocation87_spill] sm:$0xff] %v7374_v57  ;;  %10005 = vst [vmem:[#allocation86_spill] sm:$0xff] %v7377_v58  ;;  %v7380_v59 = vld [vmem:[#allocation2 + $0x48] sm:$0xff]  ;;  %v7383_v60 = vld [vmem:[#allocation2 + $0x58] sm:$0xff] }
 0x500   :  { %2334 = vmatprep.subr.mxu0 %v9984_v62  ;;  %2405 = vmatprep.subr.mxu1 %v6981_v16  ;;  %v9989_v16 = vld [vmem:[#allocation158_spill] sm:$0xff]  ;;  %10006 = vst [vmem:[#allocation88_spill] sm:$0xff] %v7380_v59  ;;  %10007 = vst [vmem:[#allocation12_spill] sm:$0xff] %v7383_v60 }
 0x501   :  { %2335 = vmatpush1.msra.mxu0 %v9985_v33  ;;  %2406 = vmatpush1.msra.mxu1 %v6987_v52  ;;  %v9991_v52 = vld [vmem:[#allocation160_spill] sm:$0xff]  ;;  %v7389_v62 = vld [vmem:[#allocation2 + $0x50] sm:$0xff]  ;;  %v7395_v33 = vld [vmem:[#allocation2 + $0x38] sm:$0xff] }
 0x502   :  { %2336 = vmatprep.subr.mxu0 %v9986_v1  ;;  %2407 = vmatprep.subr.mxu1 %v9987_v3  ;;  %10009 = vst [vmem:[#allocation14_spill] sm:$0xff] %v7389_v62  ;;  %10011 = vst [vmem:[#allocation16_spill] sm:$0xff] %v7395_v33  ;;  %v7398_v1 = vld [vmem:[#allocation2 + $0x20] sm:$0xff]  ;;  %v7401_v3 = vld [vmem:[#allocation2 + $0x30] sm:$0xff] }
 0x503   :  { %2337 = vmatpush1.msra.mxu0 %v9988_v50  ;;  %2370 = vmatprep.mubr.f32.mxu0 %v9568_v30  ;;  %10012 = vst [vmem:[#allocation17_spill] sm:$0xff] %v7398_v1  ;;  %10013 = vst [vmem:[#allocation18_spill] sm:$0xff] %v7401_v3  ;;  %v7404_v50 = vld [vmem:[#allocation2 + $0x8] sm:$0xff] }
 0x504   :  { %2408 = vmatpush1.msra.mxu1 %v7000_v34  ;;  %2441 = vmatprep.mubr.f32.mxu1 %v9568_v30  ;;  %v9997_v34 = vld [vmem:[#allocation166_spill] sm:$0xff]  ;;  %10014 = vst [vmem:[#allocation19_spill] sm:$0xff] %v7404_v50 }
 0x505   :  { %2371 = vmatmul.mubr.f32.vlgmr.msra.gmra.mxu0 %v1999_v51  ;;  %2442 = vmatmul.mubr.f32.vlgmr.msra.gmra.mxu1 %v1999_v51  ;;  %v7407_v51 = vld [vmem:[#allocation2 + $0x18] sm:$0xff] }
 0x506   :  { %2470 = vmatprep.subr.mxu0 %v9989_v16  ;;  %2541 = vmatprep.subr.mxu1 %v9990_v48  ;;  %10015 = vst [vmem:[#allocation20_spill] sm:$0xff] %v7407_v51  ;;  %v7410_v16 = vld [vmem:[#allocation2] sm:$0xff]  ;;  %v7414_v48 = vld [vmem:[#allocation2 + $0x10] sm:$0xff] }
 0x507   :  { %2471 = vmatpush1.msra.mxu0 %v9991_v52  ;;  %2542 = vmatpush1.msra.mxu1 %v9992_v49  ;;  %10016 = vst [vmem:[#allocation21_spill] sm:$0xff] %v7410_v16  ;;  %10017 = vst [vmem:[#allocation22_spill] sm:$0xff] %v7414_v48  ;;  %v7420_v52 = vld [vmem:[#allocation4 + $0x1e8] sm:$0xff]  ;;  %v7423_v49 = vld [vmem:[#allocation4 + $0x1f8] sm:$0xff] }
 0x508   :  { %2472 = vmatprep.subr.mxu0 %v9993_v40  ;;  %2543 = vmatprep.subr.mxu1 %v9994_v9  ;;  %10018 = vst [vmem:[#allocation23_spill] sm:$0xff] %v7420_v52  ;;  %10019 = vst [vmem:[#allocation24_spill] sm:$0xff] %v7423_v49  ;;  %v7426_v40 = vld [vmem:[#allocation4 + $0x1e0] sm:$0xff]  ;;  %v7429_v9 = vld [vmem:[#allocation4 + $0x1f0] sm:$0xff] }
 0x509   :  { %2473 = vmatpush1.msra.mxu0 %v9995_v24  ;;  %2544 = vmatpush1.msra.mxu1 %v9996_v15  ;;  %10020 = vst [vmem:[#allocation25_spill] sm:$0xff] %v7426_v40  ;;  %10021 = vst [vmem:[#allocation26_spill] sm:$0xff] %v7429_v9  ;;  %v7432_v24 = vld [vmem:[#allocation4 + $0x1c8] sm:$0xff]  ;;  %v7438_v15 = vld [vmem:[#allocation4 + $0x1c0] sm:$0xff] }
 0x50a   :  { %2474 = vmatprep.subr.mxu0 %v9997_v34  ;;  %2545 = vmatprep.subr.mxu1 %v9998_v39  ;;  %10022 = vst [vmem:[#allocation27_spill] sm:$0xff] %v7432_v24  ;;  %10024 = vst [vmem:[#allocation29_spill] sm:$0xff] %v7438_v15  ;;  %v7441_v34 = vld [vmem:[#allocation4 + $0x1d0] sm:$0xff]  ;;  %v7444_v39 = vld [vmem:[#allocation4 + $0x1a8] sm:$0xff] }
 0x50b   :  { %2475 = vmatpush1.msra.mxu0 %v9999_v19  ;;  %2546 = vmatpush1.msra.mxu1 %v10000_v27  ;;  %10025 = vst [vmem:[#allocation30_spill] sm:$0xff] %v7441_v34  ;;  %10026 = vst [vmem:[#allocation31_spill] sm:$0xff] %v7444_v39  ;;  %v7447_v19 = vld [vmem:[#allocation4 + $0x1b8] sm:$0xff]  ;;  %v7450_v27 = vld [vmem:[#allocation4 + $0x1a0] sm:$0xff] }
 0x50c   :  { %2476 = vmatprep.subr.mxu0 %v10001_v25  ;;  %2547 = vmatprep.subr.mxu1 %v10002_v37  ;;  %10027 = vst [vmem:[#allocation32_spill] sm:$0xff] %v7447_v19  ;;  %10028 = vst [vmem:[#allocation33_spill] sm:$0xff] %v7450_v27  ;;  %v7453_v25 = vld [vmem:[#allocation4 + $0x1b0] sm:$0xff]  ;;  %v7456_v37 = vld [vmem:[#allocation4 + $0x188] sm:$0xff] }
 0x50d   :  { %2477 = vmatpush1.msra.mxu0 %v7046_v23  ;;  %2548 = vmatpush1.msra.mxu1 %v7049_v2  ;;  %v7293_v23 = vld [vmem:[#allocation2 + $0x150] sm:$0xff]  ;;  %v7296_v2 = vld [vmem:[#allocation2 + $0x128] sm:$0xff]  ;;  %10029 = vst [vmem:[#allocation34_spill] sm:$0xff] %v7453_v25  ;;  %10030 = vst [vmem:[#allocation35_spill] sm:$0xff] %v7456_v37 }
 0x50e   :  { %2478 = vmatprep.subr.mxu0 %v7052_v7  ;;  %2549 = vmatprep.subr.mxu1 %v7055_v42  ;;  %v7305_v7 = vld [vmem:[#allocation2 + $0x130] sm:$0xff]  ;;  %v7308_v42 = vld [vmem:[#allocation2 + $0x108] sm:$0xff] }
 0x50f   :  { %2479 = vmatpush1.msra.mxu0 %v7058_v22  ;;  %2550 = vmatpush1.msra.mxu1 %v7061_v0  ;;  %v7299_v22 = vld [vmem:[#allocation2 + $0x138] sm:$0xff]  ;;  %v7302_v0 = vld [vmem:[#allocation2 + $0x120] sm:$0xff] }
 0x510   :  { %2480 = vmatprep.subr.mxu0 %v7284_v38  ;;  %2551 = vmatprep.subr.mxu1 %v7287_v17 }
 0x511   :  { %2481 = vmatpush1.msra.mxu0 %v7290_v43  ;;  %2552 = vmatpush1.msra.mxu1 %v7293_v23 }
 0x512   :  { %2482 = vmatprep.subr.mxu0 %v7296_v2  ;;  %2553 = vmatprep.subr.mxu1 %v7299_v22 }
 0x513   :  { %2483 = vmatpush1.msra.mxu0 %v7302_v0  ;;  %2554 = vmatpush1.msra.mxu1 %v7305_v7 }
 0x514   :  { %2484 = vmatprep.subr.mxu0 %v7308_v42  ;;  %2555 = vmatprep.subr.mxu1 %v7311_v21 }
 0x515   :  { %2485 = vmatpush1.msra.mxu0 %v7314_v46  ;;  %2556 = vmatpush1.msra.mxu1 %v7317_v6 }
 0x516   :  { %2486 = vmatprep.subr.mxu0 %v7320_v8  ;;  %2557 = vmatprep.subr.mxu1 %v7323_v10 }
 0x517   :  { %2487 = vmatpush1.msra.mxu0 %v7326_v11  ;;  %2558 = vmatpush1.msra.mxu1 %v7329_v12 }
 0x518   :  { %2488 = vmatprep.subr.mxu0 %v7332_v13  ;;  %2559 = vmatprep.subr.mxu1 %v7335_v44 }
 0x519   :  { %2489 = vmatpush1.msra.mxu0 %v7338_v53  ;;  %2560 = vmatpush1.msra.mxu1 %v7341_v55 }
 0x51a   :  { %2490 = vmatprep.subr.mxu0 %v7344_v56  ;;  %2561 = vmatprep.subr.mxu1 %v7347_v54 }
 0x51b   :  { %2491 = vmatpush1.msra.mxu0 %v7350_v18  ;;  %2562 = vmatpush1.msra.mxu1 %v7353_v31 }
 0x51c   :  { %2492 = vmatprep.subr.mxu0 %v7356_v26  ;;  %2563 = vmatprep.subr.mxu1 %v7359_v28 }
 0x51d   :  { %2493 = vmatpush1.msra.mxu0 %v7362_v35  ;;  %2564 = vmatpush1.msra.mxu1 %v7365_v5 }
 0x51e   :  { %2494 = vmatprep.subr.mxu0 %v7368_v36  ;;  %2565 = vmatprep.subr.mxu1 %v7371_v29 }
 0x51f   :  { %2495 = vmatpush1.msra.mxu0 %v7374_v57  ;;  %2566 = vmatpush1.msra.mxu1 %v7377_v58 }
 0x520   :  { %2496 = vmatprep.subr.mxu0 %v7380_v59  ;;  %2567 = vmatprep.subr.mxu1 %v7383_v60 }
 0x521   :  { %2497 = vmatpush1.msra.mxu0 %v7386_v63  ;;  %2568 = vmatpush1.msra.mxu1 %v7389_v62 }
 0x522   :  { %2498 = vmatprep.subr.mxu0 %v7392_v14  ;;  %2569 = vmatprep.subr.mxu1 %v7395_v33  ;;  %v10087_v14 = vld [vmem:[#allocation96_spill] sm:$0xff] }
 0x523   :  { %2499 = vmatpush1.msra.mxu0 %v7398_v1  ;;  %2570 = vmatpush1.msra.mxu1 %v7401_v3  ;;  %v10086_v3 = vld [vmem:[#allocation94_spill] sm:$0xff] }
 0x524   :  { %2500 = vmatprep.subr.mxu0 %v7404_v50  ;;  %2571 = vmatprep.subr.mxu1 %v7407_v51  ;;  %v10085_v50 = vld [vmem:[#allocation95_spill] sm:$0xff] }
 0x525   :  { %2501 = vmatpush1.msra.mxu0 %v7410_v16  ;;  %2534 = vmatprep.mubr.f32.mxu0 %v9568_v30 }
 0x526   :  { %2572 = vmatpush1.msra.mxu1 %v7414_v48  ;;  %2605 = vmatprep.mubr.f32.mxu1 %v9568_v30 }
 0x527   :  { %2535 = vmatmul.mubr.f32.vlgmr.msra.gmra.mxu0 %v7191_v61  ;;  %2606 = vmatmul.mubr.f32.vlgmr.msra.gmra.mxu1 %v7191_v61  ;;  %v7435_v61 = vld [vmem:[#allocation4 + $0x1d8] sm:$0xff] }
 0x528   :  { %2634 = vmatprep.subr.mxu0 %v7420_v52  ;;  %2705 = vmatprep.subr.mxu1 %v7423_v49  ;;  %10023 = vst [vmem:[#allocation28_spill] sm:$0xff] %v7435_v61  ;;  %v10084_v49 = vld [vmem:[#allocation93_spill] sm:$0xff] }
 0x529   :  { %2635 = vmatpush1.msra.mxu0 %v7426_v40  ;;  %2706 = vmatpush1.msra.mxu1 %v7429_v9 }
 0x52a   :  { %2636 = vmatprep.subr.mxu0 %v7432_v24  ;;  %2707 = vmatprep.subr.mxu1 %v7435_v61 }
 0x52b   :  { %2637 = vmatpush1.msra.mxu0 %v7438_v15  ;;  %2708 = vmatpush1.msra.mxu1 %v7441_v34  ;;  %v7459_v34 = vld [vmem:[#allocation4 + $0x198] sm:$0xff] }
 0x52c   :  { %2638 = vmatprep.subr.mxu0 %v7444_v39  ;;  %2709 = vmatprep.subr.mxu1 %v7447_v19  ;;  %10031 = vst [vmem:[#allocation36_spill] sm:$0xff] %v7459_v34  ;;  %v7462_v39 = vld [vmem:[#allocation4 + $0x180] sm:$0xff]  ;;  %v7465_v19 = vld [vmem:[#allocation4 + $0x190] sm:$0xff] }
 0x52d   :  { %2639 = vmatpush1.msra.mxu0 %v7450_v27  ;;  %2710 = vmatpush1.msra.mxu1 %v7453_v25  ;;  %10032 = vst [vmem:[#allocation37_spill] sm:$0xff] %v7462_v39  ;;  %10033 = vst [vmem:[#allocation38_spill] sm:$0xff] %v7465_v19  ;;  %v7468_v27 = vld [vmem:[#allocation4 + $0x168] sm:$0xff]  ;;  %v7471_v25 = vld [vmem:[#allocation4 + $0x178] sm:$0xff] }
 0x52e   :  { %2640 = vmatprep.subr.mxu0 %v7456_v37  ;;  %2711 = vmatprep.subr.mxu1 %v7459_v34  ;;  %10034 = vst [vmem:[#allocation39_spill] sm:$0xff] %v7468_v27  ;;  %10035 = vst [vmem:[#allocation40_spill] sm:$0xff] %v7471_v25  ;;  %v7474_v37 = vld [vmem:[#allocation4 + $0x160] sm:$0xff]  ;;  %v7477_v34 = vld [vmem:[#allocation4 + $0x170] sm:$0xff] }
 0x52f   :  { %2641 = vmatpush1.msra.mxu0 %v7462_v39  ;;  %2712 = vmatpush1.msra.mxu1 %v7465_v19  ;;  %10036 = vst [vmem:[#allocation41_spill] sm:$0xff] %v7474_v37  ;;  %10037 = vst [vmem:[#allocation42_spill] sm:$0xff] %v7477_v34  ;;  %v7480_v39 = vld [vmem:[#allocation4 + $0x148] sm:$0xff]  ;;  %v7483_v19 = vld [vmem:[#allocation4 + $0x158] sm:$0xff] }
 0x530   :  { %2642 = vmatprep.subr.mxu0 %v7468_v27  ;;  %2713 = vmatprep.subr.mxu1 %v7471_v25  ;;  %10038 = vst [vmem:[#allocation43_spill] sm:$0xff] %v7480_v39  ;;  %10039 = vst [vmem:[#allocation44_spill] sm:$0xff] %v7483_v19  ;;  %v7486_v27 = vld [vmem:[#allocation4 + $0x140] sm:$0xff]  ;;  %v7489_v25 = vld [vmem:[#allocation4 + $0x150] sm:$0xff] }
 0x531   :  { %2643 = vmatpush1.msra.mxu0 %v7474_v37  ;;  %2714 = vmatpush1.msra.mxu1 %v7477_v34  ;;  %10040 = vst [vmem:[#allocation45_spill] sm:$0xff] %v7486_v27  ;;  %10041 = vst [vmem:[#allocation46_spill] sm:$0xff] %v7489_v25  ;;  %v7492_v37 = vld [vmem:[#allocation4 + $0x128] sm:$0xff]  ;;  %v7495_v34 = vld [vmem:[#allocation4 + $0x138] sm:$0xff] }
 0x532   :  { %2644 = vmatprep.subr.mxu0 %v7480_v39  ;;  %2715 = vmatprep.subr.mxu1 %v7483_v19  ;;  %10042 = vst [vmem:[#allocation47_spill] sm:$0xff] %v7492_v37  ;;  %10043 = vst [vmem:[#allocation48_spill] sm:$0xff] %v7495_v34  ;;  %v7498_v39 = vld [vmem:[#allocation4 + $0x120] sm:$0xff]  ;;  %v7501_v19 = vld [vmem:[#allocation4 + $0x130] sm:$0xff] }
 0x533   :  { %2645 = vmatpush1.msra.mxu0 %v7486_v27  ;;  %2716 = vmatpush1.msra.mxu1 %v7489_v25  ;;  %10044 = vst [vmem:[#allocation49_spill] sm:$0xff] %v7498_v39  ;;  %10045 = vst [vmem:[#allocation50_spill] sm:$0xff] %v7501_v19  ;;  %v7504_v27 = vld [vmem:[#allocation4 + $0x108] sm:$0xff]  ;;  %v7507_v25 = vld [vmem:[#allocation4 + $0x118] sm:$0xff] }
 0x534   :  { %2646 = vmatprep.subr.mxu0 %v7492_v37  ;;  %2717 = vmatprep.subr.mxu1 %v7495_v34  ;;  %10046 = vst [vmem:[#allocation51_spill] sm:$0xff] %v7504_v27  ;;  %10047 = vst [vmem:[#allocation52_spill] sm:$0xff] %v7507_v25  ;;  %v7510_v37 = vld [vmem:[#allocation4 + $0x100] sm:$0xff]  ;;  %v7513_v34 = vld [vmem:[#allocation4 + $0x110] sm:$0xff] }
 0x535   :  { %2647 = vmatpush1.msra.mxu0 %v7498_v39  ;;  %2718 = vmatpush1.msra.mxu1 %v7501_v19  ;;  %10048 = vst [vmem:[#allocation53_spill] sm:$0xff] %v7510_v37  ;;  %10049 = vst [vmem:[#allocation54_spill] sm:$0xff] %v7513_v34  ;;  %v7516_v39 = vld [vmem:[#allocation4 + $0xe8] sm:$0xff]  ;;  %v7519_v19 = vld [vmem:[#allocation4 + $0xf8] sm:$0xff] }
 0x536   :  { %2648 = vmatprep.subr.mxu0 %v7504_v27  ;;  %2719 = vmatprep.subr.mxu1 %v7507_v25  ;;  %10050 = vst [vmem:[#allocation55_spill] sm:$0xff] %v7516_v39  ;;  %10051 = vst [vmem:[#allocation56_spill] sm:$0xff] %v7519_v19  ;;  %v7522_v27 = vld [vmem:[#allocation4 + $0xe0] sm:$0xff]  ;;  %v7525_v25 = vld [vmem:[#allocation4 + $0xf0] sm:$0xff] }
 0x537   :  { %2649 = vmatpush1.msra.mxu0 %v7510_v37  ;;  %2720 = vmatpush1.msra.mxu1 %v7513_v34  ;;  %10052 = vst [vmem:[#allocation57_spill] sm:$0xff] %v7522_v27  ;;  %10053 = vst [vmem:[#allocation58_spill] sm:$0xff] %v7525_v25  ;;  %v7528_v37 = vld [vmem:[#allocation4 + $0xc8] sm:$0xff]  ;;  %v7531_v34 = vld [vmem:[#allocation4 + $0xd8] sm:$0xff] }
 0x538   :  { %2650 = vmatprep.subr.mxu0 %v7516_v39  ;;  %2721 = vmatprep.subr.mxu1 %v7519_v19  ;;  %10054 = vst [vmem:[#allocation59_spill] sm:$0xff] %v7528_v37  ;;  %10055 = vst [vmem:[#allocation60_spill] sm:$0xff] %v7531_v34  ;;  %v7534_v39 = vld [vmem:[#allocation4 + $0xc0] sm:$0xff]  ;;  %v7537_v19 = vld [vmem:[#allocation4 + $0xd0] sm:$0xff] }
 0x539   :  { %2651 = vmatpush1.msra.mxu0 %v7522_v27  ;;  %2722 = vmatpush1.msra.mxu1 %v7525_v25  ;;  %10056 = vst [vmem:[#allocation61_spill] sm:$0xff] %v7534_v39  ;;  %10057 = vst [vmem:[#allocation62_spill] sm:$0xff] %v7537_v19  ;;  %v7540_v27 = vld [vmem:[#allocation4 + $0xa8] sm:$0xff]  ;;  %v7543_v25 = vld [vmem:[#allocation4 + $0xb8] sm:$0xff] }
 0x53a   :  { %2652 = vmatprep.subr.mxu0 %v7528_v37  ;;  %2723 = vmatprep.subr.mxu1 %v7531_v34  ;;  %10058 = vst [vmem:[#allocation63_spill] sm:$0xff] %v7540_v27  ;;  %10059 = vst [vmem:[#allocation64_spill] sm:$0xff] %v7543_v25  ;;  %v7546_v37 = vld [vmem:[#allocation4 + $0xa0] sm:$0xff]  ;;  %v7549_v34 = vld [vmem:[#allocation4 + $0xb0] sm:$0xff] }
 0x53b   :  { %2653 = vmatpush1.msra.mxu0 %v7534_v39  ;;  %2724 = vmatpush1.msra.mxu1 %v7537_v19  ;;  %10060 = vst [vmem:[#allocation65_spill] sm:$0xff] %v7546_v37  ;;  %10061 = vst [vmem:[#allocation66_spill] sm:$0xff] %v7549_v34  ;;  %v7552_v39 = vld [vmem:[#allocation4 + $0x88] sm:$0xff]  ;;  %v7555_v19 = vld [vmem:[#allocation4 + $0x98] sm:$0xff] }
 0x53c   :  { %2654 = vmatprep.subr.mxu0 %v7540_v27  ;;  %2725 = vmatprep.subr.mxu1 %v7543_v25  ;;  %10062 = vst [vmem:[#allocation67_spill] sm:$0xff] %v7552_v39  ;;  %10063 = vst [vmem:[#allocation68_spill] sm:$0xff] %v7555_v19  ;;  %v7558_v27 = vld [vmem:[#allocation4 + $0x80] sm:$0xff]  ;;  %v7561_v25 = vld [vmem:[#allocation4 + $0x90] sm:$0xff] }
 0x53d   :  { %2655 = vmatpush1.msra.mxu0 %v7546_v37  ;;  %2726 = vmatpush1.msra.mxu1 %v7549_v34  ;;  %10064 = vst [vmem:[#allocation69_spill] sm:$0xff] %v7558_v27  ;;  %10065 = vst [vmem:[#allocation70_spill] sm:$0xff] %v7561_v25  ;;  %v7564_v37 = vld [vmem:[#allocation4 + $0x68] sm:$0xff]  ;;  %v7567_v34 = vld [vmem:[#allocation4 + $0x78] sm:$0xff] }
 0x53e   :  { %2656 = vmatprep.subr.mxu0 %v7552_v39  ;;  %2727 = vmatprep.subr.mxu1 %v7555_v19  ;;  %10066 = vst [vmem:[#allocation71_spill] sm:$0xff] %v7564_v37  ;;  %10067 = vst [vmem:[#allocation72_spill] sm:$0xff] %v7567_v34  ;;  %v7570_v39 = vld [vmem:[#allocation4 + $0x60] sm:$0xff]  ;;  %v7573_v19 = vld [vmem:[#allocation4 + $0x70] sm:$0xff] }
 0x53f   :  { %2657 = vmatpush1.msra.mxu0 %v7558_v27  ;;  %2728 = vmatpush1.msra.mxu1 %v7561_v25  ;;  %10068 = vst [vmem:[#allocation73_spill] sm:$0xff] %v7570_v39  ;;  %10069 = vst [vmem:[#allocation74_spill] sm:$0xff] %v7573_v19  ;;  %v7576_v27 = vld [vmem:[#allocation4 + $0x48] sm:$0xff]  ;;  %v7579_v25 = vld [vmem:[#allocation4 + $0x58] sm:$0xff] }
 0x540   :  { %2658 = vmatprep.subr.mxu0 %v7564_v37  ;;  %2729 = vmatprep.subr.mxu1 %v7567_v34  ;;  %10070 = vst [vmem:[#allocation75_spill] sm:$0xff] %v7576_v27  ;;  %10071 = vst [vmem:[#allocation76_spill] sm:$0xff] %v7579_v25  ;;  %v7582_v37 = vld [vmem:[#allocation4 + $0x40] sm:$0xff]  ;;  %v7585_v34 = vld [vmem:[#allocation4 + $0x50] sm:$0xff] }
 0x541   :  { %2659 = vmatpush1.msra.mxu0 %v7570_v39  ;;  %2730 = vmatpush1.msra.mxu1 %v7573_v19  ;;  %10072 = vst [vmem:[#allocation77_spill] sm:$0xff] %v7582_v37  ;;  %10073 = vst [vmem:[#allocation78_spill] sm:$0xff] %v7585_v34  ;;  %v7588_v39 = vld [vmem:[#allocation4 + $0x28] sm:$0xff]  ;;  %v7591_v19 = vld [vmem:[#allocation4 + $0x38] sm:$0xff] }
 0x542   :  { %2660 = vmatprep.subr.mxu0 %v7576_v27  ;;  %2731 = vmatprep.subr.mxu1 %v7579_v25  ;;  %10074 = vst [vmem:[#allocation79_spill] sm:$0xff] %v7588_v39  ;;  %10075 = vst [vmem:[#allocation80_spill] sm:$0xff] %v7591_v19  ;;  %v7594_v27 = vld [vmem:[#allocation4 + $0x20] sm:$0xff]  ;;  %v7597_v25 = vld [vmem:[#allocation4 + $0x30] sm:$0xff] }
 0x543   :  { %2661 = vmatpush1.msra.mxu0 %v7582_v37  ;;  %2732 = vmatpush1.msra.mxu1 %v7585_v34  ;;  %10076 = vst [vmem:[#allocation83_spill] sm:$0xff] %v7594_v27  ;;  %10077 = vst [vmem:[#allocation82_spill] sm:$0xff] %v7597_v25  ;;  %v7600_v37 = vld [vmem:[#allocation4 + $0x8] sm:$0xff]  ;;  %v7603_v34 = vld [vmem:[#allocation4 + $0x18] sm:$0xff] }
 0x544   :  { %2662 = vmatprep.subr.mxu0 %v7588_v39  ;;  %2733 = vmatprep.subr.mxu1 %v7591_v19  ;;  %10078 = vst [vmem:[#allocation84_spill] sm:$0xff] %v7600_v37  ;;  %10079 = vst [vmem:[#allocation81_spill] sm:$0xff] %v7603_v34  ;;  %v7606_v39 = vld [vmem:[#allocation4] sm:$0xff]  ;;  %v7609_v19 = vld [vmem:[#allocation4 + $0x10] sm:$0xff] }
 0x545   :  { %2663 = vmatpush1.msra.mxu0 %v7594_v27  ;;  %2734 = vmatpush1.msra.mxu1 %v7597_v25  ;;  %10080 = vst [vmem:[#allocation109_spill] sm:$0xff] %v7606_v39  ;;  %10081 = vst [vmem:[#allocation110_spill] sm:$0xff] %v7609_v19  ;;  %v7614_v25 = vld [vmem:[#allocation6 + $0x1e8] sm:$0xff] }
 0x546   :  { %2664 = vmatprep.subr.mxu0 %v7600_v37  ;;  %2735 = vmatprep.subr.mxu1 %v7603_v34  ;;  %10082 = vst [vmem:[#allocation111_spill] sm:$0xff] %v7614_v25  ;;  %v7617_v37 = vld [vmem:[#allocation6 + $0x1f8] sm:$0xff] }
 0x547   :  { %2665 = vmatpush1.msra.mxu0 %v7606_v39  ;;  %2736 = vmatpush1.msra.mxu1 %v7609_v19  ;;  %10083 = vst [vmem:[#allocation112_spill] sm:$0xff] %v7617_v37 }
 0x548   :  { %2698 = vmatprep.mubr.f32.mxu0 %v9568_v30  ;;  %2769 = vmatprep.mubr.f32.mxu1 %v9568_v30 }
 0x549   :  { %2776 = vmatprep.subr.mxu0 %v7614_v25  ;;  %2847 = vmatprep.subr.mxu1 %v7617_v37 }
 0x5a4   :  { %v2230_v34 = vpop.f32.mrf.mxu0  ;;  %v2301_v27 = vpop.f32.mrf.mxu1 }
 0x5a6   :  { %v2232_v15 = vpop.f32.mrf.mxu0  ;;  %v2303_v39 = vpop.f32.mrf.mxu1 }
 0x5c5   :  { %v2372_v61 = vpop.f32.mrf.mxu0  ;;  %v2443_v24 = vpop.f32.mrf.mxu1 }
 0x5c6   :  { %v2373_v58 = vadd.f32 %v2372_v61, %v2230_v34 }
 0x5c7   :  { %v2374_v9 = vpop.f32.mrf.mxu0  ;;  %v2445_v19 = vpop.f32.mrf.mxu1 }
 0x5c8   :  { %v2375_v63 = vadd.f32 %v2374_v9, %v2232_v15  ;;  %v2446_v9 = vadd.f32 %v2445_v19, %v2303_v39  ;;  %v7642_v39 = vld [vmem:[#allocation6 + $0x1c8] sm:$0xff]  ;;  %v7645_v19 = vld [vmem:[#allocation6 + $0x1d8] sm:$0xff] }
 0x5e7   :  { %v2536_v40 = vpop.f32.mrf.mxu0  ;;  %v2607_v48 = vpop.f32.mrf.mxu1 }
 0x5e8   :  { %v2612_v52 = vadd.f32 %v2536_v40, %v10084_v49  ;;  %v2614_v1 = vadd.f32 %v2607_v48, %v10086_v3  ;;  %v2449_v40 = vadd.f32 %v2375_v63, %v6347_v41  ;;  %v2448_v3 = vadd.f32 %v2373_v58, %v6351_v47 }
 0x5e9   :  { %v2538_v16 = vpop.f32.mrf.mxu0  ;;  %v2609_v33 = vpop.f32.mrf.mxu1 }
 0x5ea   :  { %v2616_v51 = vmul.f32 0.5, %v2612_v52  ;;  %v2613_v25 = vadd.f32 %v2538_v16, %v10085_v50  ;;  %v2615_v62 = vadd.f32 %v2609_v33, %v10087_v14  ;;  %v2452_v14 = vmul.f32 0.5, %v2448_v3 }
 0x5ec   :  { %4600 = vtanh.f32 %v2616_v51  ;;  %v2620_v37 = vmul.f32 0.5, %v2613_v25  ;;  %v2625_v60 = vmul.f32 0.5, %v2615_v62  ;;  %v7639_v25 = vld [vmem:[#allocation6 + $0x1f0] sm:$0xff] }
 0x5ee   :  { %4602 = vtanh.f32 %v2620_v37 }
 0x5ef   :  { %4604 = vtanh.f32 %v2614_v1  ;;  %v2456_v1 = vmul.f32 0.5, %v2449_v40  ;;  %v7651_v40 = vld [vmem:[#allocation6 + $0x1d0] sm:$0xff] }
 0x5f0   :  { %4606 = vtanh.f32 %v2625_v60 }
 0x5f1   :  { %4608 = vtanh.f32 %v2456_v1  ;;  %v7663_v1 = vld [vmem:[#allocation6 + $0x1b0] sm:$0xff] }
 0x5f9   :  { %v4601_v59 = vpop.eup %4600 }
 0x5fa   :  { %v2618_v57 = vmul.f32 0.5, %v4601_v59  ;;  %v2444_v59 = vadd.f32 %v2443_v24, %v2301_v27  ;;  %v2451_v24 = vadd.f32 %v2446_v9, %v6366_v20  ;;  %v7636_v27 = vld [vmem:[#allocation6 + $0x1e0] sm:$0xff]  ;;  %v7688_v9 = vld [vmem:[#allocation6 + $0x170] sm:$0xff] }
 0x5fb   :  { %v4603_v49 = vpop.eup %4602 }
 0x5fc   :  { %v2619_v52 = vadd.f32 0.5, %v2618_v57  ;;  %v2622_v29 = vmul.f32 0.5, %v4603_v49  ;;  %v4605_v50 = vpop.eup %4604  ;;  %v2450_v57 = vadd.f32 %v2444_v59, %v6361_v4  ;;  %v7648_v49 = vld [vmem:[#allocation6 + $0x1c0] sm:$0xff] }
 0x5fd   :  { %v4607_v63 = vpop.eup %4606 }
 0x5fe   :  { %v2623_v51 = vadd.f32 0.5, %v2622_v29  ;;  %v2630_v16 = vmul.f32 %v4605_v50, %v2619_v52  ;;  %v2627_v60 = vmul.f32 0.5, %v4607_v63  ;;  %v4609_v62 = vpop.eup %4608  ;;  %v7654_v52 = vld [vmem:[#allocation6 + $0x1a8] sm:$0xff]  ;;  %v7657_v50 = vld [vmem:[#allocation6 + $0x1b8] sm:$0xff]  ;;  %v7673_v63 = vld [vmem:[#allocation6 + $0x180] sm:$0xff] }
 0x600   :  { %v2629_v48 = vmul.f32 %v2623_v51, %v7187_v32  ;;  %v2628_v58 = vadd.f32 0.5, %v2627_v60  ;;  %v2458_v32 = vmul.f32 0.5, %v4609_v62  ;;  %v2461_v51 = vmul.f32 0.5, %v2451_v24  ;;  %v7679_v62 = vld [vmem:[#allocation6 + $0x168] sm:$0xff]  ;;  %v7699_v24 = vld [vmem:[#allocation6 + $0x140] sm:$0xff] }
 0x601   :  { %10090 = vst [vmem:[#allocation115_spill] sm:$0xff] %v7699_v24 }
 0x602   :  { %v7627_v33 = vadd.f32 %v2630_v16, %v2629_v48  ;;  %v2459_v37 = vadd.f32 0.5, %v2458_v32  ;;  %v7660_v16 = vld [vmem:[#allocation6 + $0x1a0] sm:$0xff]  ;;  %v7666_v48 = vld [vmem:[#allocation6 + $0x188] sm:$0xff]  ;;  %v7694_v32 = vld [vmem:[#allocation6 + $0x158] sm:$0xff] }
 0x603   :  { %10089 = vst [vmem:[#allocation114_spill] sm:$0xff] %v7694_v32 }
 0x604   :  { %4610 = vtanh.f32 %v7627_v33  ;;  %v2465_v59 = vmul.f32 %v2459_v37, %v7217_v45  ;;  %v7685_v45 = vld [vmem:[#allocation6 + $0x160] sm:$0xff]  ;;  %v7702_v37 = vld [vmem:[#allocation6 + $0x150] sm:$0xff] }
 0x605   :  { %4612 = vtanh.f32 %v2452_v14  ;;  %v7669_v14 = vld [vmem:[#allocation6 + $0x198] sm:$0xff]  ;;  %10091 = vst [vmem:[#allocation116_spill] sm:$0xff] %v7702_v37 }
 0x606   :  { %4614 = vtanh.f32 %v2450_v57  ;;  %v7676_v57 = vld [vmem:[#allocation6 + $0x190] sm:$0xff] }
 0x607   :  { %4616 = vtanh.f32 %v2461_v51  ;;  %v7708_v51 = vld [vmem:[#allocation6 + $0x138] sm:$0xff] }
 0x608   :  { %10093 = vst [vmem:[#allocation91_spill] sm:$0xff] %v7708_v51 }
 0x611   :  { %v4611_v29 = vpop.eup %4610 }
 0x612   :  { %v4613_v61 = vpop.eup %4612  ;;  %v7631_v15 = vmul.f32 %v4611_v29, %v2628_v58  ;;  %v7682_v58 = vld [vmem:[#allocation6 + $0x178] sm:$0xff] }
 0x613   :  { %v2454_v34 = vmul.f32 0.5, %v4613_v61  ;;  %v4615_v60 = vpop.eup %4614  ;;  %v7691_v61 = vld [vmem:[#allocation6 + $0x148] sm:$0xff] }
 0x614   :  { %2699 = vmatmul.mubr.f32.vlgmr.msra.gmra.mxu0 %v7631_v15  ;;  %2770 = vmatmul.mubr.f32.vlgmr.msra.gmra.mxu1 %v7631_v15  ;;  %10088 = vst [vmem:[#allocation113_spill] sm:$0xff] %v7691_v61 }
 0x615   :  { %2777 = vmatpush1.msra.mxu0 %v7636_v27  ;;  %2848 = vmatpush1.msra.mxu1 %v7639_v25  ;;  %v2455_v3 = vadd.f32 0.5, %v2454_v34 }
 0x616   :  { %2778 = vmatprep.subr.mxu0 %v7642_v39  ;;  %2849 = vmatprep.subr.mxu1 %v7645_v19 }
 0x617   :  { %2779 = vmatpush1.msra.mxu0 %v7648_v49  ;;  %2850 = vmatpush1.msra.mxu1 %v7651_v40  ;;  %v2466_v29 = vmul.f32 %v4615_v60, %v2455_v3  ;;  %v7705_v3 = vld [vmem:[#allocation6 + $0x128] sm:$0xff]  ;;  %v7711_v60 = vld [vmem:[#allocation6 + $0x120] sm:$0xff] }
 0x618   :  { %2780 = vmatprep.subr.mxu0 %v7654_v52  ;;  %2851 = vmatprep.subr.mxu1 %v7657_v50  ;;  %10092 = vst [vmem:[#allocation89_spill] sm:$0xff] %v7705_v3  ;;  %10094 = vst [vmem:[#allocation90_spill] sm:$0xff] %v7711_v60 }
 0x619   :  { %2781 = vmatpush1.msra.mxu0 %v7660_v16  ;;  %2852 = vmatpush1.msra.mxu1 %v7663_v1  ;;  %v7697_v34 = vadd.f32 %v2466_v29, %v2465_v59  ;;  %v7714_v59 = vld [vmem:[#allocation6 + $0x130] sm:$0xff]  ;;  %v7717_v29 = vld [vmem:[#allocation6 + $0x108] sm:$0xff] }
 0x61a   :  { %2782 = vmatprep.subr.mxu0 %v7666_v48  ;;  %2853 = vmatprep.subr.mxu1 %v7669_v14  ;;  %10095 = vst [vmem:[#allocation92_spill] sm:$0xff] %v7714_v59  ;;  %10096 = vst [vmem:[#allocation117_spill] sm:$0xff] %v7717_v29 }
 0x61b   :  { %2783 = vmatpush1.msra.mxu0 %v7673_v63  ;;  %2854 = vmatpush1.msra.mxu1 %v7676_v57  ;;  %4618 = vtanh.f32 %v7697_v34 }
 0x61c   :  { %2784 = vmatprep.subr.mxu0 %v7679_v62  ;;  %2855 = vmatprep.subr.mxu1 %v7682_v58 }
 0x61d   :  { %2785 = vmatpush1.msra.mxu0 %v7685_v45  ;;  %2856 = vmatpush1.msra.mxu1 %v7688_v9 }
 0x61e   :  { %2786 = vmatprep.subr.mxu0 %v7691_v61  ;;  %2857 = vmatprep.subr.mxu1 %v7694_v32  ;;  %v7784_v32 = vld [vmem:[#allocation6 + $0x60] sm:$0xff] }
 0x61f   :  { %2787 = vmatpush1.msra.mxu0 %v7699_v24  ;;  %2858 = vmatpush1.msra.mxu1 %v7702_v37  ;;  %v7720_v37 = vld [vmem:[#allocation6 + $0x118] sm:$0xff]  ;;  %v7766_v24 = vld [vmem:[#allocation6 + $0x88] sm:$0xff]  ;;  %10118 = vst [vmem:[#allocation139_spill] sm:$0xff] %v7784_v32  ;;  %v7808_v61 = vld [vmem:[#allocation6 + $0x20] sm:$0xff] }
 0x620   :  { %2788 = vmatprep.subr.mxu0 %v7705_v3  ;;  %2859 = vmatprep.subr.mxu1 %v7708_v51  ;;  %10097 = vst [vmem:[#allocation118_spill] sm:$0xff] %v7720_v37  ;;  %v7724_v3 = vld [vmem:[#allocation6 + $0x100] sm:$0xff]  ;;  %v7727_v51 = vld [vmem:[#allocation6 + $0x110] sm:$0xff]  ;;  %10112 = vst [vmem:[#allocation133_spill] sm:$0xff] %v7766_v24 }
 0x621   :  { %2789 = vmatpush1.msra.mxu0 %v7711_v60  ;;  %2860 = vmatpush1.msra.mxu1 %v7714_v59  ;;  %10098 = vst [vmem:[#allocation119_spill] sm:$0xff] %v7724_v3  ;;  %10099 = vst [vmem:[#allocation120_spill] sm:$0xff] %v7727_v51  ;;  %v7730_v60 = vld [vmem:[#allocation6 + $0xe8] sm:$0xff]  ;;  %v7733_v59 = vld [vmem:[#allocation6 + $0xf8] sm:$0xff] }
 0x622   :  { %2790 = vmatprep.subr.mxu0 %v7717_v29  ;;  %2861 = vmatprep.subr.mxu1 %v7720_v37  ;;  %10100 = vst [vmem:[#allocation121_spill] sm:$0xff] %v7730_v60  ;;  %10101 = vst [vmem:[#allocation122_spill] sm:$0xff] %v7733_v59  ;;  %v7736_v29 = vld [vmem:[#allocation6 + $0xe0] sm:$0xff]  ;;  %v7739_v37 = vld [vmem:[#allocation6 + $0xf0] sm:$0xff] }
 0x623   :  { %2791 = vmatpush1.msra.mxu0 %v7724_v3  ;;  %2862 = vmatpush1.msra.mxu1 %v7727_v51  ;;  %10102 = vst [vmem:[#allocation123_spill] sm:$0xff] %v7736_v29  ;;  %10103 = vst [vmem:[#allocation124_spill] sm:$0xff] %v7739_v37  ;;  %v7742_v3 = vld [vmem:[#allocation6 + $0xc8] sm:$0xff]  ;;  %v7745_v51 = vld [vmem:[#allocation6 + $0xd8] sm:$0xff] }
 0x624   :  { %2792 = vmatprep.subr.mxu0 %v7730_v60  ;;  %2863 = vmatprep.subr.mxu1 %v7733_v59  ;;  %10104 = vst [vmem:[#allocation125_spill] sm:$0xff] %v7742_v3  ;;  %10105 = vst [vmem:[#allocation126_spill] sm:$0xff] %v7745_v51  ;;  %v7748_v60 = vld [vmem:[#allocation6 + $0xc0] sm:$0xff]  ;;  %v7751_v59 = vld [vmem:[#allocation6 + $0xd0] sm:$0xff] }
 0x625   :  { %2793 = vmatpush1.msra.mxu0 %v7736_v29  ;;  %2864 = vmatpush1.msra.mxu1 %v7739_v37  ;;  %10106 = vst [vmem:[#allocation127_spill] sm:$0xff] %v7748_v60  ;;  %10107 = vst [vmem:[#allocation128_spill] sm:$0xff] %v7751_v59  ;;  %v7754_v29 = vld [vmem:[#allocation6 + $0xa8] sm:$0xff]  ;;  %v7757_v37 = vld [vmem:[#allocation6 + $0xb8] sm:$0xff] }
 0x626   :  { %2794 = vmatprep.subr.mxu0 %v7742_v3  ;;  %2865 = vmatprep.subr.mxu1 %v7745_v51  ;;  %10108 = vst [vmem:[#allocation129_spill] sm:$0xff] %v7754_v29  ;;  %10109 = vst [vmem:[#allocation130_spill] sm:$0xff] %v7757_v37  ;;  %v7760_v3 = vld [vmem:[#allocation6 + $0xa0] sm:$0xff]  ;;  %v7763_v51 = vld [vmem:[#allocation6 + $0xb0] sm:$0xff] }
 0x627   :  { %2795 = vmatpush1.msra.mxu0 %v7748_v60  ;;  %2866 = vmatpush1.msra.mxu1 %v7751_v59  ;;  %10110 = vst [vmem:[#allocation131_spill] sm:$0xff] %v7760_v3  ;;  %10111 = vst [vmem:[#allocation132_spill] sm:$0xff] %v7763_v51  ;;  %v4617_v60 = vpop.eup %4616  ;;  %v7769_v59 = vld [vmem:[#allocation6 + $0x98] sm:$0xff] }
 0x628   :  { %2796 = vmatprep.subr.mxu0 %v7754_v29  ;;  %2867 = vmatprep.subr.mxu1 %v7757_v37  ;;  %10113 = vst [vmem:[#allocation134_spill] sm:$0xff] %v7769_v59  ;;  %v7772_v29 = vld [vmem:[#allocation6 + $0x80] sm:$0xff]  ;;  %v7775_v37 = vld [vmem:[#allocation6 + $0x90] sm:$0xff]  ;;  %10125 = vst [vmem:[#allocation146_spill] sm:$0xff] %v7808_v61 }
 0x629   :  { %2797 = vmatpush1.msra.mxu0 %v7760_v3  ;;  %2868 = vmatpush1.msra.mxu1 %v7763_v51  ;;  %10114 = vst [vmem:[#allocation135_spill] sm:$0xff] %v7772_v29  ;;  %10115 = vst [vmem:[#allocation136_spill] sm:$0xff] %v7775_v37  ;;  %v7778_v3 = vld [vmem:[#allocation6 + $0x68] sm:$0xff]  ;;  %v7781_v51 = vld [vmem:[#allocation6 + $0x78] sm:$0xff] }
 0x62a   :  { %2798 = vmatprep.subr.mxu0 %v7766_v24  ;;  %2869 = vmatprep.subr.mxu1 %v7769_v59  ;;  %10116 = vst [vmem:[#allocation137_spill] sm:$0xff] %v7778_v3  ;;  %10117 = vst [vmem:[#allocation138_spill] sm:$0xff] %v7781_v51  ;;  %v2463_v24 = vmul.f32 0.5, %v4617_v60  ;;  %v7787_v59 = vld [vmem:[#allocation6 + $0x70] sm:$0xff] }
 0x62b   :  { %2799 = vmatpush1.msra.mxu0 %v7772_v29  ;;  %2870 = vmatpush1.msra.mxu1 %v7775_v37  ;;  %10119 = vst [vmem:[#allocation140_spill] sm:$0xff] %v7787_v59  ;;  %v7790_v29 = vld [vmem:[#allocation6 + $0x48] sm:$0xff]  ;;  %v7793_v37 = vld [vmem:[#allocation6 + $0x58] sm:$0xff]  ;;  %v7799_v60 = vld [vmem:[#allocation6 + $0x50] sm:$0xff] }
 0x62c   :  { %2800 = vmatprep.subr.mxu0 %v7778_v3  ;;  %2871 = vmatprep.subr.mxu1 %v7781_v51  ;;  %10120 = vst [vmem:[#allocation141_spill] sm:$0xff] %v7790_v29  ;;  %10121 = vst [vmem:[#allocation142_spill] sm:$0xff] %v7793_v37  ;;  %v7796_v3 = vld [vmem:[#allocation6 + $0x40] sm:$0xff]  ;;  %v7802_v51 = vld [vmem:[#allocation6 + $0x28] sm:$0xff] }
 0x62d   :  { %2801 = vmatpush1.msra.mxu0 %v7784_v32  ;;  %2872 = vmatpush1.msra.mxu1 %v7787_v59  ;;  %10122 = vst [vmem:[#allocation143_spill] sm:$0xff] %v7796_v3  ;;  %10123 = vst [vmem:[#allocation144_spill] sm:$0xff] %v7799_v60  ;;  %v4619_v32 = vpop.eup %4618  ;;  %v7805_v59 = vld [vmem:[#allocation6 + $0x38] sm:$0xff] }
 0x62e   :  { %2802 = vmatprep.subr.mxu0 %v7790_v29  ;;  %2873 = vmatprep.subr.mxu1 %v7793_v37  ;;  %10124 = vst [vmem:[#allocation145_spill] sm:$0xff] %v7802_v51  ;;  %v2464_v29 = vadd.f32 0.5, %v2463_v24  ;;  %v7811_v37 = vld [vmem:[#allocation6 + $0x30] sm:$0xff] }
 0x62f   :  { %2803 = vmatpush1.msra.mxu0 %v7796_v3  ;;  %2874 = vmatpush1.msra.mxu1 %v7799_v60  ;;  %v7814_v3 = vld [vmem:[#allocation6 + $0x8] sm:$0xff]  ;;  %v7817_v60 = vld [vmem:[#allocation6 + $0x18] sm:$0xff] }
 0x630   :  { %2804 = vmatprep.subr.mxu0 %v7802_v51  ;;  %2875 = vmatprep.subr.mxu1 %v7805_v59  ;;  %10126 = vst [vmem:[#allocation147_spill] sm:$0xff] %v7814_v3  ;;  %10127 = vst [vmem:[#allocation148_spill] sm:$0xff] %v7817_v60  ;;  %v7820_v51 = vld [vmem:[#allocation6] sm:$0xff]  ;;  %v2469_v24 = vmul.f32 %v4619_v32, %v2464_v29  ;;  %v7837_v32 = vld [vmem:[#allocation2 + $0x1f0] sm:$0xff] }
 0x631   :  { %2805 = vmatpush1.msra.mxu0 %v7808_v61  ;;  %2876 = vmatpush1.msra.mxu1 %v7811_v37  ;;  %10128 = vst [vmem:[#allocation149_spill] sm:$0xff] %v7820_v51  ;;  %v7824_v61 = vld [vmem:[#allocation6 + $0x10] sm:$0xff]  ;;  %10132 = vst [vmem:[#allocation153_spill] sm:$0xff] %v7837_v32  ;;  %v7840_v29 = vld [vmem:[#allocation2 + $0x1c8] sm:$0xff] }
 0x632   :  { %2806 = vmatprep.subr.mxu0 %v7814_v3  ;;  %2877 = vmatprep.subr.mxu1 %v7817_v60  ;;  %v7828_v3 = vld [vmem:[#allocation2 + $0x1e8] sm:$0xff]  ;;  %v7831_v60 = vld [vmem:[#allocation2 + $0x1f8] sm:$0xff]  ;;  %10133 = vst [vmem:[#allocation154_spill] sm:$0xff] %v7840_v29 }
 0x633   :  { %2807 = vmatpush1.msra.mxu0 %v7820_v51  ;;  %2840 = vmatprep.mubr.f32.mxu0 %v9568_v30  ;;  %10129 = vst [vmem:[#allocation150_spill] sm:$0xff] %v7828_v3  ;;  %10130 = vst [vmem:[#allocation151_spill] sm:$0xff] %v7831_v60  ;;  %v7834_v51 = vld [vmem:[#allocation2 + $0x1e0] sm:$0xff] }
 0x634   :  { %2878 = vmatpush1.msra.mxu1 %v7824_v61  ;;  %2911 = vmatprep.mubr.f32.mxu1 %v9568_v30  ;;  %10131 = vst [vmem:[#allocation152_spill] sm:$0xff] %v7834_v51 }
 0x635   :  { %2841 = vmatmul.mubr.f32.vlgmr.msra.gmra.mxu0 %v2469_v24  ;;  %2912 = vmatmul.mubr.f32.vlgmr.msra.gmra.mxu1 %v2469_v24  ;;  %v7843_v24 = vld [vmem:[#allocation2 + $0x1d8] sm:$0xff] }
 0x636   :  { %2940 = vmatprep.subr.mxu0 %v7828_v3  ;;  %3011 = vmatprep.subr.mxu1 %v7831_v60  ;;  %10134 = vst [vmem:[#allocation155_spill] sm:$0xff] %v7843_v24  ;;  %v7846_v3 = vld [vmem:[#allocation2 + $0x1c0] sm:$0xff]  ;;  %v7849_v60 = vld [vmem:[#allocation2 + $0x1d0] sm:$0xff] }
 0x637   :  { %2941 = vmatpush1.msra.mxu0 %v7834_v51  ;;  %3012 = vmatpush1.msra.mxu1 %v7837_v32  ;;  %10135 = vst [vmem:[#allocation156_spill] sm:$0xff] %v7846_v3  ;;  %10136 = vst [vmem:[#allocation157_spill] sm:$0xff] %v7849_v60  ;;  %v7852_v51 = vld [vmem:[#allocation2 + $0x1a8] sm:$0xff]  ;;  %v7855_v32 = vld [vmem:[#allocation2 + $0x1b8] sm:$0xff] }
 0x638   :  { %2942 = vmatprep.subr.mxu0 %v7840_v29  ;;  %3013 = vmatprep.subr.mxu1 %v7843_v24  ;;  %10137 = vst [vmem:[#allocation158_spill] sm:$0xff] %v7852_v51  ;;  %10138 = vst [vmem:[#allocation159_spill] sm:$0xff] %v7855_v32  ;;  %v7858_v29 = vld [vmem:[#allocation2 + $0x1a0] sm:$0xff]  ;;  %v7861_v24 = vld [vmem:[#allocation2 + $0x1b0] sm:$0xff] }
 0x639   :  { %2943 = vmatpush1.msra.mxu0 %v7846_v3  ;;  %3014 = vmatpush1.msra.mxu1 %v7849_v60  ;;  %10139 = vst [vmem:[#allocation160_spill] sm:$0xff] %v7858_v29  ;;  %10140 = vst [vmem:[#allocation161_spill] sm:$0xff] %v7861_v24  ;;  %v7864_v3 = vld [vmem:[#allocation2 + $0x188] sm:$0xff]  ;;  %v7867_v60 = vld [vmem:[#allocation2 + $0x198] sm:$0xff] }
 0x63a   :  { %2944 = vmatprep.subr.mxu0 %v7852_v51  ;;  %3015 = vmatprep.subr.mxu1 %v7855_v32  ;;  %10141 = vst [vmem:[#allocation162_spill] sm:$0xff] %v7864_v3  ;;  %10142 = vst [vmem:[#allocation163_spill] sm:$0xff] %v7867_v60  ;;  %v7870_v51 = vld [vmem:[#allocation2 + $0x180] sm:$0xff]  ;;  %v7873_v32 = vld [vmem:[#allocation2 + $0x190] sm:$0xff] }
 0x63b   :  { %2945 = vmatpush1.msra.mxu0 %v7858_v29  ;;  %3016 = vmatpush1.msra.mxu1 %v7861_v24  ;;  %v7876_v29 = vld [vmem:[#allocation2 + $0x168] sm:$0xff]  ;;  %v7879_v24 = vld [vmem:[#allocation2 + $0x178] sm:$0xff] }
 0x63c   :  { %2946 = vmatprep.subr.mxu0 %v7864_v3  ;;  %3017 = vmatprep.subr.mxu1 %v7867_v60  ;;  %v7882_v3 = vld [vmem:[#allocation2 + $0x160] sm:$0xff]  ;;  %v7885_v60 = vld [vmem:[#allocation2 + $0x170] sm:$0xff] }
 0x63d   :  { %2947 = vmatpush1.msra.mxu0 %v7870_v51  ;;  %3018 = vmatpush1.msra.mxu1 %v7873_v32 }
 0x63e   :  { %2948 = vmatprep.subr.mxu0 %v7876_v29  ;;  %3019 = vmatprep.subr.mxu1 %v7879_v24 }
 0x63f   :  { %2949 = vmatpush1.msra.mxu0 %v7882_v3  ;;  %3020 = vmatpush1.msra.mxu1 %v7885_v60 }
 0x640   :  { %2950 = vmatprep.subr.mxu0 %v7284_v38  ;;  %3021 = vmatprep.subr.mxu1 %v7287_v17  ;;  %v10143_v38 = vld [vmem:[#allocation85_spill] sm:$0xff]  ;;  %v10144_v17 = vld [vmem:[#allocation87_spill] sm:$0xff] }
 0x641   :  { %2951 = vmatpush1.msra.mxu0 %v7290_v43  ;;  %3022 = vmatpush1.msra.mxu1 %v7293_v23  ;;  %v10145_v43 = vld [vmem:[#allocation86_spill] sm:$0xff]  ;;  %v10146_v23 = vld [vmem:[#allocation88_spill] sm:$0xff] }
 0x642   :  { %2952 = vmatprep.subr.mxu0 %v7296_v2  ;;  %3023 = vmatprep.subr.mxu1 %v7299_v22  ;;  %v10147_v2 = vld [vmem:[#allocation12_spill] sm:$0xff]  ;;  %v10148_v22 = vld [vmem:[#allocation13_spill] sm:$0xff] }
 0x643   :  { %2953 = vmatpush1.msra.mxu0 %v7302_v0  ;;  %3024 = vmatpush1.msra.mxu1 %v7305_v7  ;;  %v10149_v0 = vld [vmem:[#allocation14_spill] sm:$0xff]  ;;  %v10150_v7 = vld [vmem:[#allocation15_spill] sm:$0xff] }
 0x644   :  { %2954 = vmatprep.subr.mxu0 %v7308_v42  ;;  %3025 = vmatprep.subr.mxu1 %v7311_v21  ;;  %v10151_v42 = vld [vmem:[#allocation16_spill] sm:$0xff]  ;;  %v10152_v21 = vld [vmem:[#allocation17_spill] sm:$0xff] }
 0x645   :  { %2955 = vmatpush1.msra.mxu0 %v7314_v46  ;;  %3026 = vmatpush1.msra.mxu1 %v7317_v6  ;;  %v10153_v46 = vld [vmem:[#allocation18_spill] sm:$0xff]  ;;  %v10154_v6 = vld [vmem:[#allocation19_spill] sm:$0xff] }
 0x646   :  { %2956 = vmatprep.subr.mxu0 %v7320_v8  ;;  %3027 = vmatprep.subr.mxu1 %v7323_v10  ;;  %v10155_v8 = vld [vmem:[#allocation20_spill] sm:$0xff]  ;;  %v10156_v10 = vld [vmem:[#allocation21_spill] sm:$0xff] }
 0x647   :  { %2957 = vmatpush1.msra.mxu0 %v7326_v11  ;;  %3028 = vmatpush1.msra.mxu1 %v7329_v12  ;;  %v10157_v11 = vld [vmem:[#allocation22_spill] sm:$0xff]  ;;  %v10158_v12 = vld [vmem:[#allocation23_spill] sm:$0xff] }
 0x648   :  { %2958 = vmatprep.subr.mxu0 %v7332_v13  ;;  %3029 = vmatprep.subr.mxu1 %v7335_v44  ;;  %v10159_v13 = vld [vmem:[#allocation24_spill] sm:$0xff]  ;;  %v10160_v44 = vld [vmem:[#allocation25_spill] sm:$0xff] }
 0x649   :  { %2959 = vmatpush1.msra.mxu0 %v7338_v53  ;;  %3030 = vmatpush1.msra.mxu1 %v7341_v55  ;;  %v10161_v53 = vld [vmem:[#allocation26_spill] sm:$0xff]  ;;  %v10162_v55 = vld [vmem:[#allocation27_spill] sm:$0xff] }
 0x64a   :  { %2960 = vmatprep.subr.mxu0 %v7344_v56  ;;  %3031 = vmatprep.subr.mxu1 %v7347_v54  ;;  %v10163_v56 = vld [vmem:[#allocation28_spill] sm:$0xff]  ;;  %v10164_v54 = vld [vmem:[#allocation29_spill] sm:$0xff] }
 0x64b   :  { %2961 = vmatpush1.msra.mxu0 %v7350_v18  ;;  %3032 = vmatpush1.msra.mxu1 %v7353_v31  ;;  %v10165_v18 = vld [vmem:[#allocation30_spill] sm:$0xff]  ;;  %v10166_v31 = vld [vmem:[#allocation31_spill] sm:$0xff] }
 0x64c   :  { %2962 = vmatprep.subr.mxu0 %v7356_v26  ;;  %3033 = vmatprep.subr.mxu1 %v7359_v28  ;;  %v10167_v26 = vld [vmem:[#allocation32_spill] sm:$0xff]  ;;  %v10168_v28 = vld [vmem:[#allocation33_spill] sm:$0xff] }
 0x64d   :  { %2963 = vmatpush1.msra.mxu0 %v7362_v35  ;;  %3034 = vmatpush1.msra.mxu1 %v7365_v5  ;;  %v10169_v35 = vld [vmem:[#allocation34_spill] sm:$0xff]  ;;  %v10170_v5 = vld [vmem:[#allocation35_spill] sm:$0xff] }
 0x64e   :  { %2964 = vmatprep.subr.mxu0 %v7368_v36  ;;  %3035 = vmatprep.subr.mxu1 %v10143_v38  ;;  %v10171_v36 = vld [vmem:[#allocation36_spill] sm:$0xff]  ;;  %v10173_v38 = vld [vmem:[#allocation38_spill] sm:$0xff] }
 0x64f   :  { %2965 = vmatpush1.msra.mxu0 %v10144_v17  ;;  %3036 = vmatpush1.msra.mxu1 %v10145_v43  ;;  %v10174_v17 = vld [vmem:[#allocation39_spill] sm:$0xff]  ;;  %v10175_v43 = vld [vmem:[#allocation40_spill] sm:$0xff] }
 0x650   :  { %2966 = vmatprep.subr.mxu0 %v10146_v23  ;;  %3037 = vmatprep.subr.mxu1 %v10147_v2  ;;  %v10176_v23 = vld [vmem:[#allocation41_spill] sm:$0xff]  ;;  %v10177_v2 = vld [vmem:[#allocation42_spill] sm:$0xff] }
 0x651   :  { %2967 = vmatpush1.msra.mxu0 %v10148_v22  ;;  %3038 = vmatpush1.msra.mxu1 %v10149_v0  ;;  %v10178_v22 = vld [vmem:[#allocation43_spill] sm:$0xff]  ;;  %v10179_v0 = vld [vmem:[#allocation44_spill] sm:$0xff] }
 0x652   :  { %2968 = vmatprep.subr.mxu0 %v10150_v7  ;;  %3039 = vmatprep.subr.mxu1 %v10151_v42  ;;  %v10180_v7 = vld [vmem:[#allocation45_spill] sm:$0xff]  ;;  %v10181_v42 = vld [vmem:[#allocation46_spill] sm:$0xff] }
 0x653   :  { %2969 = vmatpush1.msra.mxu0 %v10152_v21  ;;  %3040 = vmatpush1.msra.mxu1 %v10153_v46  ;;  %v10182_v21 = vld [vmem:[#allocation47_spill] sm:$0xff]  ;;  %v10183_v46 = vld [vmem:[#allocation48_spill] sm:$0xff] }
 0x654   :  { %2970 = vmatprep.subr.mxu0 %v10154_v6  ;;  %3041 = vmatprep.subr.mxu1 %v10155_v8  ;;  %v10184_v6 = vld [vmem:[#allocation49_spill] sm:$0xff]  ;;  %v10185_v8 = vld [vmem:[#allocation50_spill] sm:$0xff] }
 0x655   :  { %2971 = vmatpush1.msra.mxu0 %v10156_v10  ;;  %3004 = vmatprep.mubr.f32.mxu0 %v9568_v30  ;;  %v10186_v10 = vld [vmem:[#allocation51_spill] sm:$0xff] }
 0x656   :  { %3042 = vmatpush1.msra.mxu1 %v10157_v11  ;;  %3075 = vmatprep.mubr.f32.mxu1 %v9568_v30  ;;  %v10187_v11 = vld [vmem:[#allocation52_spill] sm:$0xff] }
 0x657   :  { %3005 = vmatmul.mubr.f32.vlgmr.msra.gmra.mxu0 %v7631_v15  ;;  %3076 = vmatmul.mubr.f32.vlgmr.msra.gmra.mxu1 %v7631_v15  ;;  %v10172_v15 = vld [vmem:[#allocation37_spill] sm:$0xff] }
 0x658   :  { %3104 = vmatprep.subr.mxu0 %v10158_v12  ;;  %3175 = vmatprep.subr.mxu1 %v10159_v13  ;;  %v10188_v12 = vld [vmem:[#allocation53_spill] sm:$0xff]  ;;  %v10189_v13 = vld [vmem:[#allocation54_spill] sm:$0xff] }
 0x659   :  { %3105 = vmatpush1.msra.mxu0 %v10160_v44  ;;  %3176 = vmatpush1.msra.mxu1 %v10161_v53  ;;  %v10190_v44 = vld [vmem:[#allocation55_spill] sm:$0xff]  ;;  %v10191_v53 = vld [vmem:[#allocation56_spill] sm:$0xff] }
 0x65a   :  { %3106 = vmatprep.subr.mxu0 %v10162_v55  ;;  %3177 = vmatprep.subr.mxu1 %v10163_v56  ;;  %v10192_v55 = vld [vmem:[#allocation57_spill] sm:$0xff]  ;;  %v10193_v56 = vld [vmem:[#allocation58_spill] sm:$0xff] }
 0x65b   :  { %3107 = vmatpush1.msra.mxu0 %v10164_v54  ;;  %3178 = vmatpush1.msra.mxu1 %v10165_v18  ;;  %v10194_v54 = vld [vmem:[#allocation59_spill] sm:$0xff]  ;;  %v10195_v18 = vld [vmem:[#allocation60_spill] sm:$0xff] }
 0x65c   :  { %3108 = vmatprep.subr.mxu0 %v10166_v31  ;;  %3179 = vmatprep.subr.mxu1 %v10167_v26  ;;  %v10196_v31 = vld [vmem:[#allocation61_spill] sm:$0xff]  ;;  %v10197_v26 = vld [vmem:[#allocation62_spill] sm:$0xff] }
 0x65d   :  { %3109 = vmatpush1.msra.mxu0 %v10168_v28  ;;  %3180 = vmatpush1.msra.mxu1 %v10169_v35  ;;  %v10198_v28 = vld [vmem:[#allocation63_spill] sm:$0xff]  ;;  %v10199_v35 = vld [vmem:[#allocation64_spill] sm:$0xff] }
 0x65e   :  { %3110 = vmatprep.subr.mxu0 %v10170_v5  ;;  %3181 = vmatprep.subr.mxu1 %v10171_v36  ;;  %v10200_v5 = vld [vmem:[#allocation65_spill] sm:$0xff]  ;;  %v10201_v36 = vld [vmem:[#allocation66_spill] sm:$0xff] }
 0x65f   :  { %3111 = vmatpush1.msra.mxu0 %v10172_v15  ;;  %3182 = vmatpush1.msra.mxu1 %v10173_v38  ;;  %v10202_v15 = vld [vmem:[#allocation67_spill] sm:$0xff]  ;;  %v10203_v38 = vld [vmem:[#allocation68_spill] sm:$0xff] }
 0x660   :  { %3112 = vmatprep.subr.mxu0 %v10174_v17  ;;  %3183 = vmatprep.subr.mxu1 %v10175_v43  ;;  %v10204_v17 = vld [vmem:[#allocation69_spill] sm:$0xff]  ;;  %v10205_v43 = vld [vmem:[#allocation70_spill] sm:$0xff] }
 0x661   :  { %3113 = vmatpush1.msra.mxu0 %v10176_v23  ;;  %3184 = vmatpush1.msra.mxu1 %v10177_v2  ;;  %v10206_v23 = vld [vmem:[#allocation71_spill] sm:$0xff]  ;;  %v10207_v2 = vld [vmem:[#allocation72_spill] sm:$0xff] }
 0x662   :  { %3114 = vmatprep.subr.mxu0 %v10178_v22  ;;  %3185 = vmatprep.subr.mxu1 %v10179_v0  ;;  %v10208_v22 = vld [vmem:[#allocation73_spill] sm:$0xff]  ;;  %v10209_v0 = vld [vmem:[#allocation74_spill] sm:$0xff] }
 0x663   :  { %3115 = vmatpush1.msra.mxu0 %v10180_v7  ;;  %3186 = vmatpush1.msra.mxu1 %v10181_v42  ;;  %v10210_v7 = vld [vmem:[#allocation75_spill] sm:$0xff]  ;;  %v10211_v42 = vld [vmem:[#allocation76_spill] sm:$0xff] }
 0x664   :  { %3116 = vmatprep.subr.mxu0 %v10182_v21  ;;  %3187 = vmatprep.subr.mxu1 %v10183_v46  ;;  %v10212_v21 = vld [vmem:[#allocation77_spill] sm:$0xff]  ;;  %v10213_v46 = vld [vmem:[#allocation78_spill] sm:$0xff] }
 0x665   :  { %3117 = vmatpush1.msra.mxu0 %v10184_v6  ;;  %3188 = vmatpush1.msra.mxu1 %v10185_v8  ;;  %v10214_v6 = vld [vmem:[#allocation79_spill] sm:$0xff]  ;;  %v10215_v8 = vld [vmem:[#allocation80_spill] sm:$0xff] }
 0x666   :  { %3118 = vmatprep.subr.mxu0 %v10186_v10  ;;  %3189 = vmatprep.subr.mxu1 %v10187_v11  ;;  %v10216_v10 = vld [vmem:[#allocation83_spill] sm:$0xff]  ;;  %v10217_v11 = vld [vmem:[#allocation82_spill] sm:$0xff] }
 0x667   :  { %3119 = vmatpush1.msra.mxu0 %v10188_v12  ;;  %3190 = vmatpush1.msra.mxu1 %v10189_v13  ;;  %v10218_v12 = vld [vmem:[#allocation84_spill] sm:$0xff]  ;;  %v10219_v13 = vld [vmem:[#allocation81_spill] sm:$0xff] }
 0x668   :  { %3120 = vmatprep.subr.mxu0 %v10190_v44  ;;  %3191 = vmatprep.subr.mxu1 %v10191_v53  ;;  %v10220_v44 = vld [vmem:[#allocation109_spill] sm:$0xff]  ;;  %v10221_v53 = vld [vmem:[#allocation110_spill] sm:$0xff] }
 0x669   :  { %3121 = vmatpush1.msra.mxu0 %v10192_v55  ;;  %3192 = vmatpush1.msra.mxu1 %v10193_v56  ;;  %v10222_v55 = vld [vmem:[#allocation111_spill] sm:$0xff]  ;;  %v10223_v56 = vld [vmem:[#allocation112_spill] sm:$0xff] }
 0x66a   :  { %3122 = vmatprep.subr.mxu0 %v10194_v54  ;;  %3193 = vmatprep.subr.mxu1 %v10195_v18 }
 0x66b   :  { %3123 = vmatpush1.msra.mxu0 %v10196_v31  ;;  %3194 = vmatpush1.msra.mxu1 %v10197_v26 }
 0x66c   :  { %3124 = vmatprep.subr.mxu0 %v10198_v28  ;;  %3195 = vmatprep.subr.mxu1 %v10199_v35 }
 0x66d   :  { %3125 = vmatpush1.msra.mxu0 %v10200_v5  ;;  %3196 = vmatpush1.msra.mxu1 %v10201_v36 }
 0x66e   :  { %3126 = vmatprep.subr.mxu0 %v10202_v15  ;;  %3197 = vmatprep.subr.mxu1 %v10203_v38  ;;  %v10224_v38 = vld [vmem:[#allocation97_spill] sm:$0xff] }
 0x66f   :  { %3127 = vmatpush1.msra.mxu0 %v10204_v17  ;;  %3198 = vmatpush1.msra.mxu1 %v10205_v43 }
 0x670   :  { %3128 = vmatprep.subr.mxu0 %v10206_v23  ;;  %3199 = vmatprep.subr.mxu1 %v10207_v2 }
 0x671   :  { %3129 = vmatpush1.msra.mxu0 %v10208_v22  ;;  %3200 = vmatpush1.msra.mxu1 %v10209_v0  ;;  %v10225_v22 = vld [vmem:[#allocation99_spill] sm:$0xff] }
 0x672   :  { %3130 = vmatprep.subr.mxu0 %v10210_v7  ;;  %3201 = vmatprep.subr.mxu1 %v10211_v42  ;;  %v10226_v7 = vld [vmem:[#allocation98_spill] sm:$0xff] }
 0x673   :  { %3131 = vmatpush1.msra.mxu0 %v10212_v21  ;;  %3202 = vmatpush1.msra.mxu1 %v10213_v46 }
 0x674   :  { %3132 = vmatprep.subr.mxu0 %v10214_v6  ;;  %3203 = vmatprep.subr.mxu1 %v10215_v8  ;;  %v10227_v6 = vld [vmem:[#allocation100_spill] sm:$0xff] }
 0x675   :  { %3133 = vmatpush1.msra.mxu0 %v10216_v10  ;;  %3204 = vmatpush1.msra.mxu1 %v10217_v11 }
 0x676   :  { %3134 = vmatprep.subr.mxu0 %v10218_v12  ;;  %3205 = vmatprep.subr.mxu1 %v10219_v13 }
 0x677   :  { %3135 = vmatpush1.msra.mxu0 %v10220_v44  ;;  %3206 = vmatpush1.msra.mxu1 %v10221_v53 }
 0x678   :  { %3168 = vmatprep.mubr.f32.mxu0 %v9568_v30  ;;  %3239 = vmatprep.mubr.f32.mxu1 %v9568_v30 }
 0x679   :  { %3246 = vmatprep.subr.mxu0 %v10222_v55  ;;  %3317 = vmatprep.subr.mxu1 %v10223_v56 }
 0x6d4   :  { %v2700_v54 = vpop.f32.mrf.mxu0  ;;  %v2771_v18 = vpop.f32.mrf.mxu1 }
 0x6d6   :  { %v2702_v31 = vpop.f32.mrf.mxu0  ;;  %v2773_v26 = vpop.f32.mrf.mxu1 }
 0x6f5   :  { %v2842_v28 = vpop.f32.mrf.mxu0  ;;  %v2913_v35 = vpop.f32.mrf.mxu1 }
 0x6f6   :  { %v2843_v13 = vadd.f32 %v2842_v28, %v2700_v54  ;;  %v2914_v54 = vadd.f32 %v2913_v35, %v2771_v18 }
 0x6f7   :  { %v2844_v5 = vpop.f32.mrf.mxu0  ;;  %v2915_v36 = vpop.f32.mrf.mxu1 }
 0x6f8   :  { %v2845_v10 = vadd.f32 %v2844_v5, %v2702_v31  ;;  %v2920_v5 = vadd.f32 %v2914_v54, %v6361_v4  ;;  %v10256_v54 = vld [vmem:[#allocation137_spill] sm:$0xff] }
 0x6fa   :  { %v2919_v55 = vadd.f32 %v2845_v10, %v6347_v41 }
 0x717   :  { %v3006_v15 = vpop.f32.mrf.mxu0  ;;  %v3077_v43 = vpop.f32.mrf.mxu1 }
 0x718   :  { %v3082_v17 = vadd.f32 %v3006_v15, %v10224_v38  ;;  %v3084_v42 = vadd.f32 %v3077_v43, %v10226_v7 }
 0x719   :  { %v3008_v23 = vpop.f32.mrf.mxu0  ;;  %v3079_v46 = vpop.f32.mrf.mxu1 }
 0x71a   :  { %v3086_v2 = vmul.f32 0.5, %v3082_v17  ;;  %v3083_v0 = vadd.f32 %v3008_v23, %v10225_v22  ;;  %v3085_v8 = vadd.f32 %v3079_v46, %v10227_v6  ;;  %v2918_v17 = vadd.f32 %v2843_v13, %v6351_v47  ;;  %v10244_v13 = vld [vmem:[#allocation125_spill] sm:$0xff] }
 0x71b   :  { %v2916_v6 = vadd.f32 %v2915_v36, %v2773_v26 }
 0x71c   :  { %4620 = vtanh.f32 %v3086_v2  ;;  %v3090_v21 = vmul.f32 0.5, %v3083_v0  ;;  %v3095_v11 = vmul.f32 0.5, %v3085_v8  ;;  %v2926_v2 = vmul.f32 0.5, %v2919_v55  ;;  %v10247_v55 = vld [vmem:[#allocation128_spill] sm:$0xff] }
 0x71d   :  { %v2922_v0 = vmul.f32 0.5, %v2918_v17  ;;  %v2921_v18 = vadd.f32 %v2916_v6, %v6366_v20  ;;  %v10251_v17 = vld [vmem:[#allocation132_spill] sm:$0xff]  ;;  %v10262_v6 = vld [vmem:[#allocation143_spill] sm:$0xff] }
 0x71e   :  { %4622 = vtanh.f32 %v3090_v21 }
 0x71f   :  { %4624 = vtanh.f32 %v3084_v42  ;;  %v2931_v36 = vmul.f32 0.5, %v2921_v18 }
 0x720   :  { %4626 = vtanh.f32 %v3095_v11 }
 0x721   :  { %4628 = vtanh.f32 %v2926_v2  ;;  %v10253_v2 = vld [vmem:[#allocation134_spill] sm:$0xff] }
 0x729   :  { %v4621_v12 = vpop.eup %4620 }
 0x72a   :  { %v3088_v44 = vmul.f32 0.5, %v4621_v12  ;;  %v10243_v12 = vld [vmem:[#allocation124_spill] sm:$0xff] }
 0x72b   :  { %v4623_v53 = vpop.eup %4622 }
 0x72c   :  { %v3089_v56 = vadd.f32 0.5, %v3088_v44  ;;  %v3092_v15 = vmul.f32 0.5, %v4623_v53  ;;  %v4625_v38 = vpop.eup %4624  ;;  %v10245_v44 = vld [vmem:[#allocation126_spill] sm:$0xff]  ;;  %v10246_v53 = vld [vmem:[#allocation127_spill] sm:$0xff] }
 0x72d   :  { %v4627_v28 = vpop.eup %4626 }
 0x72e   :  { %v3093_v43 = vadd.f32 0.5, %v3092_v15  ;;  %v3100_v23 = vmul.f32 %v4625_v38, %v3089_v56  ;;  %v3097_v7 = vmul.f32 0.5, %v4627_v28  ;;  %v4629_v42 = vpop.eup %4628  ;;  %v10248_v56 = vld [vmem:[#allocation129_spill] sm:$0xff]  ;;  %v10249_v15 = vld [vmem:[#allocation130_spill] sm:$0xff]  ;;  %v10250_v38 = vld [vmem:[#allocation131_spill] sm:$0xff] }
 0x72f   :  { %v10257_v28 = vld [vmem:[#allocation138_spill] sm:$0xff] }
 0x730   :  { %v3099_v22 = vmul.f32 %v3093_v43, %v7627_v33  ;;  %v3098_v21 = vadd.f32 0.5, %v3097_v7  ;;  %v2928_v33 = vmul.f32 0.5, %v4629_v42  ;;  %v10258_v7 = vld [vmem:[#allocation139_spill] sm:$0xff]  ;;  %v10259_v42 = vld [vmem:[#allocation140_spill] sm:$0xff] }
 0x732   :  { %v8011_v31 = vadd.f32 %v3100_v23, %v3099_v22  ;;  %v2929_v26 = vadd.f32 0.5, %v2928_v33  ;;  %v10252_v23 = vld [vmem:[#allocation133_spill] sm:$0xff]  ;;  %v10254_v22 = vld [vmem:[#allocation135_spill] sm:$0xff] }
 0x734   :  { %4630 = vtanh.f32 %v8011_v31 }
 0x735   :  { %4632 = vtanh.f32 %v2922_v0  ;;  %v10255_v0 = vld [vmem:[#allocation136_spill] sm:$0xff] }
 0x736   :  { %4634 = vtanh.f32 %v2920_v5 }
 0x737   :  { %4636 = vtanh.f32 %v2931_v36  ;;  %v10267_v36 = vld [vmem:[#allocation148_spill] sm:$0xff] }
 0x741   :  { %v4631_v46 = vpop.eup %4630 }
 0x742   :  { %v4633_v8 = vpop.eup %4632  ;;  %v8015_v10 = vmul.f32 %v4631_v46, %v3098_v21  ;;  %v10260_v21 = vld [vmem:[#allocation141_spill] sm:$0xff]  ;;  %v10261_v46 = vld [vmem:[#allocation142_spill] sm:$0xff] }
 0x743   :  { %v2924_v11 = vmul.f32 0.5, %v4633_v8  ;;  %v10263_v8 = vld [vmem:[#allocation144_spill] sm:$0xff] }
 0x744   :  { %3169 = vmatmul.mubr.f32.vlgmr.msra.gmra.mxu0 %v8015_v10  ;;  %3240 = vmatmul.mubr.f32.vlgmr.msra.gmra.mxu1 %v8015_v10 }
 0x745   :  { %3247 = vmatpush1.msra.mxu0 %v7636_v27  ;;  %3318 = vmatpush1.msra.mxu1 %v7639_v25  ;;  %v2925_v35 = vadd.f32 0.5, %v2924_v11  ;;  %v2935_v27 = vmul.f32 %v2929_v26, %v7697_v34  ;;  %v4635_v25 = vpop.eup %4634  ;;  %v10242_v34 = vld [vmem:[#allocation123_spill] sm:$0xff]  ;;  %v10264_v11 = vld [vmem:[#allocation145_spill] sm:$0xff]  ;;  %v10265_v26 = vld [vmem:[#allocation146_spill] sm:$0xff] }
 0x746   :  { %3248 = vmatprep.subr.mxu0 %v7642_v39  ;;  %3319 = vmatprep.subr.mxu1 %v7645_v19  ;;  %v10228_v19 = vld [vmem:[#allocation113_spill] sm:$0xff]  ;;  %v4637_v43 = vpop.eup %4636 }
 0x747   :  { %3249 = vmatpush1.msra.mxu0 %v7648_v49  ;;  %3320 = vmatpush1.msra.mxu1 %v7651_v40  ;;  %v2936_v39 = vmul.f32 %v4635_v25, %v2925_v35  ;;  %v10229_v49 = vld [vmem:[#allocation114_spill] sm:$0xff]  ;;  %v2933_v5 = vmul.f32 0.5, %v4637_v43  ;;  %v10266_v35 = vld [vmem:[#allocation147_spill] sm:$0xff]  ;;  %v8168_v43 = vld [vmem:[#allocation2 + $0xa8] sm:$0xff] }
 0x748   :  { %3250 = vmatprep.subr.mxu0 %v7654_v52  ;;  %3321 = vmatprep.subr.mxu1 %v7657_v50  ;;  %v10230_v52 = vld [vmem:[#allocation115_spill] sm:$0xff]  ;;  %v10231_v50 = vld [vmem:[#allocation116_spill] sm:$0xff] }
 0x749   :  { %3251 = vmatpush1.msra.mxu0 %v7660_v16  ;;  %3322 = vmatpush1.msra.mxu1 %v7663_v1  ;;  %v8041_v40 = vadd.f32 %v2936_v39, %v2935_v27  ;;  %v10232_v16 = vld [vmem:[#allocation89_spill] sm:$0xff]  ;;  %v10233_v1 = vld [vmem:[#allocation91_spill] sm:$0xff]  ;;  %v2934_v18 = vadd.f32 0.5, %v2933_v5  ;;  %v8189_v5 = vld [vmem:[#allocation2 + $0x90] sm:$0xff] }
 0x74a   :  { %3252 = vmatprep.subr.mxu0 %v7666_v48  ;;  %3323 = vmatprep.subr.mxu1 %v7669_v14  ;;  %v10234_v48 = vld [vmem:[#allocation90_spill] sm:$0xff]  ;;  %v10235_v14 = vld [vmem:[#allocation92_spill] sm:$0xff]  ;;  %v10268_v27 = vld [vmem:[#allocation149_spill] sm:$0xff] }
 0x74b   :  { %3253 = vmatpush1.msra.mxu0 %v7673_v63  ;;  %3324 = vmatpush1.msra.mxu1 %v7676_v57  ;;  %v10236_v63 = vld [vmem:[#allocation117_spill] sm:$0xff]  ;;  %v10237_v57 = vld [vmem:[#allocation118_spill] sm:$0xff]  ;;  %4638 = vtanh.f32 %v8041_v40  ;;  %v10270_v39 = vld [vmem:[#allocation151_spill] sm:$0xff] }
 0x74c   :  { %3254 = vmatprep.subr.mxu0 %v7679_v62  ;;  %3325 = vmatprep.subr.mxu1 %v7682_v58  ;;  %v10238_v62 = vld [vmem:[#allocation119_spill] sm:$0xff]  ;;  %v10239_v58 = vld [vmem:[#allocation120_spill] sm:$0xff] }
 0x74d   :  { %3255 = vmatpush1.msra.mxu0 %v7685_v45  ;;  %3326 = vmatpush1.msra.mxu1 %v7688_v9  ;;  %v10240_v45 = vld [vmem:[#allocation121_spill] sm:$0xff]  ;;  %v10241_v9 = vld [vmem:[#allocation122_spill] sm:$0xff] }
 0x74e   :  { %3256 = vmatprep.subr.mxu0 %v10228_v19  ;;  %3327 = vmatprep.subr.mxu1 %v10229_v49  ;;  %v10272_v19 = vld [vmem:[#allocation153_spill] sm:$0xff]  ;;  %v10273_v49 = vld [vmem:[#allocation154_spill] sm:$0xff] }
 0x74f   :  { %3257 = vmatpush1.msra.mxu0 %v10230_v52  ;;  %3328 = vmatpush1.msra.mxu1 %v10231_v50  ;;  %v10274_v52 = vld [vmem:[#allocation155_spill] sm:$0xff]  ;;  %v10275_v50 = vld [vmem:[#allocation156_spill] sm:$0xff] }
 0x750   :  { %3258 = vmatprep.subr.mxu0 %v10232_v16  ;;  %3329 = vmatprep.subr.mxu1 %v10233_v1  ;;  %v10276_v16 = vld [vmem:[#allocation157_spill] sm:$0xff]  ;;  %v10278_v1 = vld [vmem:[#allocation159_spill] sm:$0xff] }
 0x751   :  { %3259 = vmatpush1.msra.mxu0 %v10234_v48  ;;  %3330 = vmatpush1.msra.mxu1 %v10235_v14  ;;  %v10279_v48 = vld [vmem:[#allocation160_spill] sm:$0xff]  ;;  %v10280_v14 = vld [vmem:[#allocation161_spill] sm:$0xff] }
 0x752   :  { %3260 = vmatprep.subr.mxu0 %v10236_v63  ;;  %3331 = vmatprep.subr.mxu1 %v10237_v57  ;;  %v10281_v63 = vld [vmem:[#allocation162_spill] sm:$0xff]  ;;  %v10282_v57 = vld [vmem:[#allocation163_spill] sm:$0xff] }
 0x753   :  { %3261 = vmatpush1.msra.mxu0 %v10238_v62  ;;  %3332 = vmatpush1.msra.mxu1 %v10239_v58  ;;  %v8108_v62 = vld [vmem:[#allocation2 + $0x148] sm:$0xff]  ;;  %v8111_v58 = vld [vmem:[#allocation2 + $0x158] sm:$0xff] }
 0x754   :  { %3262 = vmatprep.subr.mxu0 %v10240_v45  ;;  %3333 = vmatprep.subr.mxu1 %v10241_v9  ;;  %v8114_v45 = vld [vmem:[#allocation2 + $0x140] sm:$0xff]  ;;  %v8135_v9 = vld [vmem:[#allocation2 + $0x118] sm:$0xff] }
 0x755   :  { %3263 = vmatpush1.msra.mxu0 %v10242_v34  ;;  %3334 = vmatpush1.msra.mxu1 %v10243_v12  ;;  %v8138_v34 = vld [vmem:[#allocation2 + $0x100] sm:$0xff]  ;;  %v8141_v12 = vld [vmem:[#allocation2 + $0x110] sm:$0xff] }
 0x756   :  { %3264 = vmatprep.subr.mxu0 %v10244_v13  ;;  %3335 = vmatprep.subr.mxu1 %v10245_v44  ;;  %v8144_v13 = vld [vmem:[#allocation2 + $0xe8] sm:$0xff]  ;;  %v8147_v44 = vld [vmem:[#allocation2 + $0xf8] sm:$0xff] }
 0x757   :  { %3265 = vmatpush1.msra.mxu0 %v10246_v53  ;;  %3336 = vmatpush1.msra.mxu1 %v10247_v55  ;;  %v8150_v53 = vld [vmem:[#allocation2 + $0xe0] sm:$0xff]  ;;  %v8153_v55 = vld [vmem:[#allocation2 + $0xf0] sm:$0xff] }
 0x758   :  { %3266 = vmatprep.subr.mxu0 %v10248_v56  ;;  %3337 = vmatprep.subr.mxu1 %v10249_v15  ;;  %v4639_v33 = vpop.eup %4638  ;;  %v8156_v56 = vld [vmem:[#allocation2 + $0xc8] sm:$0xff]  ;;  %v8159_v15 = vld [vmem:[#allocation2 + $0xd8] sm:$0xff] }
 0x759   :  { %3267 = vmatpush1.msra.mxu0 %v10250_v38  ;;  %3338 = vmatpush1.msra.mxu1 %v10251_v17  ;;  %v2939_v25 = vmul.f32 %v4639_v33, %v2934_v18  ;;  %v8162_v38 = vld [vmem:[#allocation2 + $0xc0] sm:$0xff]  ;;  %v8165_v17 = vld [vmem:[#allocation2 + $0xd0] sm:$0xff]  ;;  %v8216_v18 = vld [vmem:[#allocation2 + $0x28] sm:$0xff] }
 0x75a   :  { %3268 = vmatprep.subr.mxu0 %v10252_v23  ;;  %3339 = vmatprep.subr.mxu1 %v10253_v2  ;;  %v8171_v23 = vld [vmem:[#allocation2 + $0xb8] sm:$0xff]  ;;  %v8174_v2 = vld [vmem:[#allocation2 + $0xa0] sm:$0xff]  ;;  %10290 = vst [vmem:[#allocation171_spill] sm:$0xff] %v8216_v18 }
 0x75b   :  { %3269 = vmatpush1.msra.mxu0 %v10254_v22  ;;  %3340 = vmatpush1.msra.mxu1 %v10255_v0  ;;  %v8177_v22 = vld [vmem:[#allocation2 + $0xb0] sm:$0xff]  ;;  %v8180_v0 = vld [vmem:[#allocation2 + $0x88] sm:$0xff]  ;;  %v8210_v33 = vld [vmem:[#allocation2 + $0x40] sm:$0xff] }
 0x75c   :  { %3270 = vmatprep.subr.mxu0 %v10256_v54  ;;  %3341 = vmatprep.subr.mxu1 %v10257_v28  ;;  %v8183_v54 = vld [vmem:[#allocation2 + $0x98] sm:$0xff]  ;;  %v8186_v28 = vld [vmem:[#allocation2 + $0x80] sm:$0xff]  ;;  %10288 = vst [vmem:[#allocation169_spill] sm:$0xff] %v8210_v33 }
 0x75d   :  { %3271 = vmatpush1.msra.mxu0 %v10258_v7  ;;  %3342 = vmatpush1.msra.mxu1 %v10259_v42  ;;  %v8192_v7 = vld [vmem:[#allocation2 + $0x68] sm:$0xff]  ;;  %v8195_v42 = vld [vmem:[#allocation2 + $0x78] sm:$0xff] }
 0x75e   :  { %3272 = vmatprep.subr.mxu0 %v10260_v21  ;;  %3343 = vmatprep.subr.mxu1 %v10261_v46  ;;  %10283 = vst [vmem:[#allocation164_spill] sm:$0xff] %v8195_v42  ;;  %v8198_v21 = vld [vmem:[#allocation2 + $0x60] sm:$0xff]  ;;  %v8201_v46 = vld [vmem:[#allocation2 + $0x70] sm:$0xff] }
 0x75f   :  { %3273 = vmatpush1.msra.mxu0 %v10262_v6  ;;  %3344 = vmatpush1.msra.mxu1 %v10263_v8  ;;  %10284 = vst [vmem:[#allocation165_spill] sm:$0xff] %v8198_v21  ;;  %10285 = vst [vmem:[#allocation166_spill] sm:$0xff] %v8201_v46  ;;  %v8204_v6 = vld [vmem:[#allocation2 + $0x48] sm:$0xff]  ;;  %v8207_v8 = vld [vmem:[#allocation2 + $0x58] sm:$0xff] }
 0x760   :  { %3274 = vmatprep.subr.mxu0 %v10264_v11  ;;  %3345 = vmatprep.subr.mxu1 %v7805_v59  ;;  %v10269_v59 = vld [vmem:[#allocation150_spill] sm:$0xff]  ;;  %10286 = vst [vmem:[#allocation167_spill] sm:$0xff] %v8204_v6  ;;  %10287 = vst [vmem:[#allocation168_spill] sm:$0xff] %v8207_v8 }
 0x761   :  { %3275 = vmatpush1.msra.mxu0 %v10265_v26  ;;  %3346 = vmatpush1.msra.mxu1 %v7811_v37  ;;  %v10271_v37 = vld [vmem:[#allocation152_spill] sm:$0xff]  ;;  %v8213_v11 = vld [vmem:[#allocation2 + $0x50] sm:$0xff]  ;;  %v8219_v26 = vld [vmem:[#allocation2 + $0x38] sm:$0xff] }
 0x762   :  { %3276 = vmatprep.subr.mxu0 %v10266_v35  ;;  %3347 = vmatprep.subr.mxu1 %v10267_v36  ;;  %10289 = vst [vmem:[#allocation170_spill] sm:$0xff] %v8213_v11  ;;  %10291 = vst [vmem:[#allocation93_spill] sm:$0xff] %v8219_v26  ;;  %v8222_v35 = vld [vmem:[#allocation2 + $0x20] sm:$0xff]  ;;  %v8225_v36 = vld [vmem:[#allocation2 + $0x30] sm:$0xff] }
 0x763   :  { %3277 = vmatpush1.msra.mxu0 %v10268_v27  ;;  %3310 = vmatprep.mubr.f32.mxu0 %v9568_v30  ;;  %10292 = vst [vmem:[#allocation95_spill] sm:$0xff] %v8222_v35  ;;  %10293 = vst [vmem:[#allocation94_spill] sm:$0xff] %v8225_v36  ;;  %v8228_v27 = vld [vmem:[#allocation2 + $0x8] sm:$0xff] }
 0x764   :  { %3348 = vmatpush1.msra.mxu1 %v7824_v61  ;;  %3381 = vmatprep.mubr.f32.mxu1 %v9568_v30  ;;  %v10277_v61 = vld [vmem:[#allocation158_spill] sm:$0xff]  ;;  %10294 = vst [vmem:[#allocation96_spill] sm:$0xff] %v8228_v27 }
 0x765   :  { %3311 = vmatmul.mubr.f32.vlgmr.msra.gmra.mxu0 %v2939_v25  ;;  %3382 = vmatmul.mubr.f32.vlgmr.msra.gmra.mxu1 %v2939_v25  ;;  %v8231_v25 = vld [vmem:[#allocation2 + $0x18] sm:$0xff] }
 0x766   :  { %3410 = vmatprep.subr.mxu0 %v10269_v59  ;;  %3481 = vmatprep.subr.mxu1 %v10270_v39  ;;  %10295 = vst [vmem:[#allocation85_spill] sm:$0xff] %v8231_v25  ;;  %v8234_v59 = vld [vmem:[#allocation2] sm:$0xff]  ;;  %v8238_v39 = vld [vmem:[#allocation2 + $0x10] sm:$0xff] }
 0x767   :  { %3411 = vmatpush1.msra.mxu0 %v10271_v37  ;;  %3482 = vmatpush1.msra.mxu1 %v10272_v19  ;;  %10296 = vst [vmem:[#allocation87_spill] sm:$0xff] %v8234_v59  ;;  %10297 = vst [vmem:[#allocation86_spill] sm:$0xff] %v8238_v39  ;;  %v8244_v37 = vld [vmem:[#allocation4 + $0x1e8] sm:$0xff]  ;;  %v8247_v19 = vld [vmem:[#allocation4 + $0x1f8] sm:$0xff] }
 0x768   :  { %3412 = vmatprep.subr.mxu0 %v10273_v49  ;;  %3483 = vmatprep.subr.mxu1 %v10274_v52  ;;  %10298 = vst [vmem:[#allocation88_spill] sm:$0xff] %v8244_v37  ;;  %10299 = vst [vmem:[#allocation12_spill] sm:$0xff] %v8247_v19  ;;  %v8250_v49 = vld [vmem:[#allocation4 + $0x1e0] sm:$0xff]  ;;  %v8253_v52 = vld [vmem:[#allocation4 + $0x1f0] sm:$0xff] }
 0x769   :  { %3413 = vmatpush1.msra.mxu0 %v10275_v50  ;;  %3484 = vmatpush1.msra.mxu1 %v10276_v16  ;;  %10300 = vst [vmem:[#allocation13_spill] sm:$0xff] %v8250_v49  ;;  %10301 = vst [vmem:[#allocation14_spill] sm:$0xff] %v8253_v52  ;;  %v8256_v50 = vld [vmem:[#allocation4 + $0x1c8] sm:$0xff]  ;;  %v8262_v16 = vld [vmem:[#allocation4 + $0x1c0] sm:$0xff] }
 0x76a   :  { %3414 = vmatprep.subr.mxu0 %v10277_v61  ;;  %3485 = vmatprep.subr.mxu1 %v10278_v1  ;;  %10302 = vst [vmem:[#allocation15_spill] sm:$0xff] %v8256_v50  ;;  %10304 = vst [vmem:[#allocation17_spill] sm:$0xff] %v8262_v16  ;;  %v8265_v61 = vld [vmem:[#allocation4 + $0x1d0] sm:$0xff]  ;;  %v8268_v1 = vld [vmem:[#allocation4 + $0x1a8] sm:$0xff] }
 0x76b   :  { %3415 = vmatpush1.msra.mxu0 %v10279_v48  ;;  %3486 = vmatpush1.msra.mxu1 %v10280_v14  ;;  %10305 = vst [vmem:[#allocation18_spill] sm:$0xff] %v8265_v61  ;;  %10306 = vst [vmem:[#allocation19_spill] sm:$0xff] %v8268_v1  ;;  %v8271_v48 = vld [vmem:[#allocation4 + $0x1b8] sm:$0xff]  ;;  %v8274_v14 = vld [vmem:[#allocation4 + $0x1a0] sm:$0xff] }
 0x76c   :  { %3416 = vmatprep.subr.mxu0 %v10281_v63  ;;  %3487 = vmatprep.subr.mxu1 %v10282_v57  ;;  %10307 = vst [vmem:[#allocation20_spill] sm:$0xff] %v8271_v48  ;;  %10308 = vst [vmem:[#allocation21_spill] sm:$0xff] %v8274_v14  ;;  %v8277_v63 = vld [vmem:[#allocation4 + $0x1b0] sm:$0xff]  ;;  %v8280_v57 = vld [vmem:[#allocation4 + $0x188] sm:$0xff] }
 0x76d   :  { %3417 = vmatpush1.msra.mxu0 %v7870_v51  ;;  %3488 = vmatpush1.msra.mxu1 %v7873_v32  ;;  %v8117_v51 = vld [vmem:[#allocation2 + $0x150] sm:$0xff]  ;;  %v8120_v32 = vld [vmem:[#allocation2 + $0x128] sm:$0xff]  ;;  %10309 = vst [vmem:[#allocation22_spill] sm:$0xff] %v8277_v63  ;;  %10310 = vst [vmem:[#allocation23_spill] sm:$0xff] %v8280_v57 }
 0x76e   :  { %3418 = vmatprep.subr.mxu0 %v7876_v29  ;;  %3489 = vmatprep.subr.mxu1 %v7879_v24  ;;  %v8129_v29 = vld [vmem:[#allocation2 + $0x130] sm:$0xff]  ;;  %v8132_v24 = vld [vmem:[#allocation2 + $0x108] sm:$0xff] }
 0x76f   :  { %3419 = vmatpush1.msra.mxu0 %v7882_v3  ;;  %3490 = vmatpush1.msra.mxu1 %v7885_v60  ;;  %v8123_v3 = vld [vmem:[#allocation2 + $0x138] sm:$0xff]  ;;  %v8126_v60 = vld [vmem:[#allocation2 + $0x120] sm:$0xff] }
 0x770   :  { %3420 = vmatprep.subr.mxu0 %v8108_v62  ;;  %3491 = vmatprep.subr.mxu1 %v8111_v58 }
 0x771   :  { %3421 = vmatpush1.msra.mxu0 %v8114_v45  ;;  %3492 = vmatpush1.msra.mxu1 %v8117_v51 }
 0x772   :  { %3422 = vmatprep.subr.mxu0 %v8120_v32  ;;  %3493 = vmatprep.subr.mxu1 %v8123_v3 }
 0x773   :  { %3423 = vmatpush1.msra.mxu0 %v8126_v60  ;;  %3494 = vmatpush1.msra.mxu1 %v8129_v29 }
 0x774   :  { %3424 = vmatprep.subr.mxu0 %v8132_v24  ;;  %3495 = vmatprep.subr.mxu1 %v8135_v9 }
 0x775   :  { %3425 = vmatpush1.msra.mxu0 %v8138_v34  ;;  %3496 = vmatpush1.msra.mxu1 %v8141_v12 }
 0x776   :  { %3426 = vmatprep.subr.mxu0 %v8144_v13  ;;  %3497 = vmatprep.subr.mxu1 %v8147_v44 }
 0x777   :  { %3427 = vmatpush1.msra.mxu0 %v8150_v53  ;;  %3498 = vmatpush1.msra.mxu1 %v8153_v55 }
 0x778   :  { %3428 = vmatprep.subr.mxu0 %v8156_v56  ;;  %3499 = vmatprep.subr.mxu1 %v8159_v15 }
 0x779   :  { %3429 = vmatpush1.msra.mxu0 %v8162_v38  ;;  %3500 = vmatpush1.msra.mxu1 %v8165_v17 }
 0x77a   :  { %3430 = vmatprep.subr.mxu0 %v8168_v43  ;;  %3501 = vmatprep.subr.mxu1 %v8171_v23 }
 0x77b   :  { %3431 = vmatpush1.msra.mxu0 %v8174_v2  ;;  %3502 = vmatpush1.msra.mxu1 %v8177_v22 }
 0x77c   :  { %3432 = vmatprep.subr.mxu0 %v8180_v0  ;;  %3503 = vmatprep.subr.mxu1 %v8183_v54 }
 0x77d   :  { %3433 = vmatpush1.msra.mxu0 %v8186_v28  ;;  %3504 = vmatpush1.msra.mxu1 %v8189_v5 }
 0x77e   :  { %3434 = vmatprep.subr.mxu0 %v8192_v7  ;;  %3505 = vmatprep.subr.mxu1 %v8195_v42 }
 0x77f   :  { %3435 = vmatpush1.msra.mxu0 %v8198_v21  ;;  %3506 = vmatpush1.msra.mxu1 %v8201_v46 }
 0x780   :  { %3436 = vmatprep.subr.mxu0 %v8204_v6  ;;  %3507 = vmatprep.subr.mxu1 %v8207_v8 }
 0x781   :  { %3437 = vmatpush1.msra.mxu0 %v8210_v33  ;;  %3508 = vmatpush1.msra.mxu1 %v8213_v11 }
 0x782   :  { %3438 = vmatprep.subr.mxu0 %v8216_v18  ;;  %3509 = vmatprep.subr.mxu1 %v8219_v26  ;;  %v10367_v18 = vld [vmem:[#allocation104_spill] sm:$0xff] }
 0x783   :  { %3439 = vmatpush1.msra.mxu0 %v8222_v35  ;;  %3510 = vmatpush1.msra.mxu1 %v8225_v36  ;;  %v10366_v36 = vld [vmem:[#allocation102_spill] sm:$0xff] }
 0x784   :  { %3440 = vmatprep.subr.mxu0 %v8228_v27  ;;  %3511 = vmatprep.subr.mxu1 %v8231_v25  ;;  %v10365_v27 = vld [vmem:[#allocation103_spill] sm:$0xff] }
 0x785   :  { %3441 = vmatpush1.msra.mxu0 %v8234_v59  ;;  %3474 = vmatprep.mubr.f32.mxu0 %v9568_v30 }
 0x786   :  { %3512 = vmatpush1.msra.mxu1 %v8238_v39  ;;  %3545 = vmatprep.mubr.f32.mxu1 %v9568_v30 }
 0x787   :  { %3475 = vmatmul.mubr.f32.vlgmr.msra.gmra.mxu0 %v8015_v10  ;;  %3546 = vmatmul.mubr.f32.vlgmr.msra.gmra.mxu1 %v8015_v10  ;;  %v8259_v10 = vld [vmem:[#allocation4 + $0x1d8] sm:$0xff] }
 0x788   :  { %3574 = vmatprep.subr.mxu0 %v8244_v37  ;;  %3645 = vmatprep.subr.mxu1 %v8247_v19  ;;  %10303 = vst [vmem:[#allocation16_spill] sm:$0xff] %v8259_v10  ;;  %v10364_v19 = vld [vmem:[#allocation101_spill] sm:$0xff] }
 0x789   :  { %3575 = vmatpush1.msra.mxu0 %v8250_v49  ;;  %3646 = vmatpush1.msra.mxu1 %v8253_v52 }
 0x78a   :  { %3576 = vmatprep.subr.mxu0 %v8256_v50  ;;  %3647 = vmatprep.subr.mxu1 %v8259_v10 }
 0x78b   :  { %3577 = vmatpush1.msra.mxu0 %v8262_v16  ;;  %3648 = vmatpush1.msra.mxu1 %v8265_v61  ;;  %v8283_v61 = vld [vmem:[#allocation4 + $0x198] sm:$0xff] }
 0x78c   :  { %3578 = vmatprep.subr.mxu0 %v8268_v1  ;;  %3649 = vmatprep.subr.mxu1 %v8271_v48  ;;  %10311 = vst [vmem:[#allocation24_spill] sm:$0xff] %v8283_v61  ;;  %v8286_v1 = vld [vmem:[#allocation4 + $0x180] sm:$0xff]  ;;  %v8289_v48 = vld [vmem:[#allocation4 + $0x190] sm:$0xff] }
 0x78d   :  { %3579 = vmatpush1.msra.mxu0 %v8274_v14  ;;  %3650 = vmatpush1.msra.mxu1 %v8277_v63  ;;  %10312 = vst [vmem:[#allocation25_spill] sm:$0xff] %v8286_v1  ;;  %10313 = vst [vmem:[#allocation26_spill] sm:$0xff] %v8289_v48  ;;  %v8292_v14 = vld [vmem:[#allocation4 + $0x168] sm:$0xff]  ;;  %v8295_v63 = vld [vmem:[#allocation4 + $0x178] sm:$0xff] }
 0x78e   :  { %3580 = vmatprep.subr.mxu0 %v8280_v57  ;;  %3651 = vmatprep.subr.mxu1 %v8283_v61  ;;  %10314 = vst [vmem:[#allocation27_spill] sm:$0xff] %v8292_v14  ;;  %10315 = vst [vmem:[#allocation28_spill] sm:$0xff] %v8295_v63  ;;  %v8298_v57 = vld [vmem:[#allocation4 + $0x160] sm:$0xff]  ;;  %v8301_v61 = vld [vmem:[#allocation4 + $0x170] sm:$0xff] }
 0x78f   :  { %3581 = vmatpush1.msra.mxu0 %v8286_v1  ;;  %3652 = vmatpush1.msra.mxu1 %v8289_v48  ;;  %10316 = vst [vmem:[#allocation29_spill] sm:$0xff] %v8298_v57  ;;  %10317 = vst [vmem:[#allocation30_spill] sm:$0xff] %v8301_v61  ;;  %v8304_v1 = vld [vmem:[#allocation4 + $0x148] sm:$0xff]  ;;  %v8307_v48 = vld [vmem:[#allocation4 + $0x158] sm:$0xff] }
 0x790   :  { %3582 = vmatprep.subr.mxu0 %v8292_v14  ;;  %3653 = vmatprep.subr.mxu1 %v8295_v63  ;;  %10318 = vst [vmem:[#allocation31_spill] sm:$0xff] %v8304_v1  ;;  %10319 = vst [vmem:[#allocation32_spill] sm:$0xff] %v8307_v48  ;;  %v8310_v14 = vld [vmem:[#allocation4 + $0x140] sm:$0xff]  ;;  %v8313_v63 = vld [vmem:[#allocation4 + $0x150] sm:$0xff] }
 0x791   :  { %3583 = vmatpush1.msra.mxu0 %v8298_v57  ;;  %3654 = vmatpush1.msra.mxu1 %v8301_v61  ;;  %10320 = vst [vmem:[#allocation33_spill] sm:$0xff] %v8310_v14  ;;  %10321 = vst [vmem:[#allocation34_spill] sm:$0xff] %v8313_v63  ;;  %v8316_v57 = vld [vmem:[#allocation4 + $0x128] sm:$0xff]  ;;  %v8319_v61 = vld [vmem:[#allocation4 + $0x138] sm:$0xff] }
 0x792   :  { %3584 = vmatprep.subr.mxu0 %v8304_v1  ;;  %3655 = vmatprep.subr.mxu1 %v8307_v48  ;;  %10322 = vst [vmem:[#allocation35_spill] sm:$0xff] %v8316_v57  ;;  %10323 = vst [vmem:[#allocation36_spill] sm:$0xff] %v8319_v61  ;;  %v8322_v1 = vld [vmem:[#allocation4 + $0x120] sm:$0xff]  ;;  %v8325_v48 = vld [vmem:[#allocation4 + $0x130] sm:$0xff] }
 0x793   :  { %3585 = vmatpush1.msra.mxu0 %v8310_v14  ;;  %3656 = vmatpush1.msra.mxu1 %v8313_v63  ;;  %10324 = vst [vmem:[#allocation37_spill] sm:$0xff] %v8322_v1  ;;  %10325 = vst [vmem:[#allocation38_spill] sm:$0xff] %v8325_v48  ;;  %v8328_v14 = vld [vmem:[#allocation4 + $0x108] sm:$0xff]  ;;  %v8331_v63 = vld [vmem:[#allocation4 + $0x118] sm:$0xff] }
 0x794   :  { %3586 = vmatprep.subr.mxu0 %v8316_v57  ;;  %3657 = vmatprep.subr.mxu1 %v8319_v61  ;;  %10326 = vst [vmem:[#allocation39_spill] sm:$0xff] %v8328_v14  ;;  %10327 = vst [vmem:[#allocation40_spill] sm:$0xff] %v8331_v63  ;;  %v8334_v57 = vld [vmem:[#allocation4 + $0x100] sm:$0xff]  ;;  %v8337_v61 = vld [vmem:[#allocation4 + $0x110] sm:$0xff] }
 0x795   :  { %3587 = vmatpush1.msra.mxu0 %v8322_v1  ;;  %3658 = vmatpush1.msra.mxu1 %v8325_v48  ;;  %10328 = vst [vmem:[#allocation41_spill] sm:$0xff] %v8334_v57  ;;  %10329 = vst [vmem:[#allocation42_spill] sm:$0xff] %v8337_v61  ;;  %v8340_v1 = vld [vmem:[#allocation4 + $0xe8] sm:$0xff]  ;;  %v8343_v48 = vld [vmem:[#allocation4 + $0xf8] sm:$0xff] }
 0x796   :  { %3588 = vmatprep.subr.mxu0 %v8328_v14  ;;  %3659 = vmatprep.subr.mxu1 %v8331_v63  ;;  %10330 = vst [vmem:[#allocation43_spill] sm:$0xff] %v8340_v1  ;;  %10331 = vst [vmem:[#allocation44_spill] sm:$0xff] %v8343_v48  ;;  %v8346_v14 = vld [vmem:[#allocation4 + $0xe0] sm:$0xff]  ;;  %v8349_v63 = vld [vmem:[#allocation4 + $0xf0] sm:$0xff] }
 0x797   :  { %3589 = vmatpush1.msra.mxu0 %v8334_v57  ;;  %3660 = vmatpush1.msra.mxu1 %v8337_v61  ;;  %10332 = vst [vmem:[#allocation45_spill] sm:$0xff] %v8346_v14  ;;  %10333 = vst [vmem:[#allocation46_spill] sm:$0xff] %v8349_v63  ;;  %v8352_v57 = vld [vmem:[#allocation4 + $0xc8] sm:$0xff]  ;;  %v8355_v61 = vld [vmem:[#allocation4 + $0xd8] sm:$0xff] }
 0x798   :  { %3590 = vmatprep.subr.mxu0 %v8340_v1  ;;  %3661 = vmatprep.subr.mxu1 %v8343_v48  ;;  %10334 = vst [vmem:[#allocation47_spill] sm:$0xff] %v8352_v57  ;;  %10335 = vst [vmem:[#allocation48_spill] sm:$0xff] %v8355_v61  ;;  %v8358_v1 = vld [vmem:[#allocation4 + $0xc0] sm:$0xff]  ;;  %v8361_v48 = vld [vmem:[#allocation4 + $0xd0] sm:$0xff] }
 0x799   :  { %3591 = vmatpush1.msra.mxu0 %v8346_v14  ;;  %3662 = vmatpush1.msra.mxu1 %v8349_v63  ;;  %10336 = vst [vmem:[#allocation49_spill] sm:$0xff] %v8358_v1  ;;  %10337 = vst [vmem:[#allocation50_spill] sm:$0xff] %v8361_v48  ;;  %v8364_v14 = vld [vmem:[#allocation4 + $0xa8] sm:$0xff]  ;;  %v8367_v63 = vld [vmem:[#allocation4 + $0xb8] sm:$0xff] }
 0x79a   :  { %3592 = vmatprep.subr.mxu0 %v8352_v57  ;;  %3663 = vmatprep.subr.mxu1 %v8355_v61  ;;  %10338 = vst [vmem:[#allocation51_spill] sm:$0xff] %v8364_v14  ;;  %10339 = vst [vmem:[#allocation52_spill] sm:$0xff] %v8367_v63  ;;  %v8370_v57 = vld [vmem:[#allocation4 + $0xa0] sm:$0xff]  ;;  %v8373_v61 = vld [vmem:[#allocation4 + $0xb0] sm:$0xff] }
 0x79b   :  { %3593 = vmatpush1.msra.mxu0 %v8358_v1  ;;  %3664 = vmatpush1.msra.mxu1 %v8361_v48  ;;  %10340 = vst [vmem:[#allocation53_spill] sm:$0xff] %v8370_v57  ;;  %10341 = vst [vmem:[#allocation54_spill] sm:$0xff] %v8373_v61  ;;  %v8376_v1 = vld [vmem:[#allocation4 + $0x88] sm:$0xff]  ;;  %v8379_v48 = vld [vmem:[#allocation4 + $0x98] sm:$0xff] }
 0x79c   :  { %3594 = vmatprep.subr.mxu0 %v8364_v14  ;;  %3665 = vmatprep.subr.mxu1 %v8367_v63  ;;  %10342 = vst [vmem:[#allocation55_spill] sm:$0xff] %v8376_v1  ;;  %10343 = vst [vmem:[#allocation56_spill] sm:$0xff] %v8379_v48  ;;  %v8382_v14 = vld [vmem:[#allocation4 + $0x80] sm:$0xff]  ;;  %v8385_v63 = vld [vmem:[#allocation4 + $0x90] sm:$0xff] }
 0x79d   :  { %3595 = vmatpush1.msra.mxu0 %v8370_v57  ;;  %3666 = vmatpush1.msra.mxu1 %v8373_v61  ;;  %10344 = vst [vmem:[#allocation57_spill] sm:$0xff] %v8382_v14  ;;  %10345 = vst [vmem:[#allocation58_spill] sm:$0xff] %v8385_v63  ;;  %v8388_v57 = vld [vmem:[#allocation4 + $0x68] sm:$0xff]  ;;  %v8391_v61 = vld [vmem:[#allocation4 + $0x78] sm:$0xff] }
 0x79e   :  { %3596 = vmatprep.subr.mxu0 %v8376_v1  ;;  %3667 = vmatprep.subr.mxu1 %v8379_v48  ;;  %10346 = vst [vmem:[#allocation59_spill] sm:$0xff] %v8388_v57  ;;  %10347 = vst [vmem:[#allocation60_spill] sm:$0xff] %v8391_v61  ;;  %v8394_v1 = vld [vmem:[#allocation4 + $0x60] sm:$0xff]  ;;  %v8397_v48 = vld [vmem:[#allocation4 + $0x70] sm:$0xff] }
 0x79f   :  { %3597 = vmatpush1.msra.mxu0 %v8382_v14  ;;  %3668 = vmatpush1.msra.mxu1 %v8385_v63  ;;  %10348 = vst [vmem:[#allocation61_spill] sm:$0xff] %v8394_v1  ;;  %10349 = vst [vmem:[#allocation62_spill] sm:$0xff] %v8397_v48  ;;  %v8400_v14 = vld [vmem:[#allocation4 + $0x48] sm:$0xff]  ;;  %v8403_v63 = vld [vmem:[#allocation4 + $0x58] sm:$0xff] }
 0x7a0   :  { %3598 = vmatprep.subr.mxu0 %v8388_v57  ;;  %3669 = vmatprep.subr.mxu1 %v8391_v61  ;;  %10350 = vst [vmem:[#allocation63_spill] sm:$0xff] %v8400_v14  ;;  %10351 = vst [vmem:[#allocation64_spill] sm:$0xff] %v8403_v63  ;;  %v8406_v57 = vld [vmem:[#allocation4 + $0x40] sm:$0xff]  ;;  %v8409_v61 = vld [vmem:[#allocation4 + $0x50] sm:$0xff] }
 0x7a1   :  { %3599 = vmatpush1.msra.mxu0 %v8394_v1  ;;  %3670 = vmatpush1.msra.mxu1 %v8397_v48  ;;  %10352 = vst [vmem:[#allocation65_spill] sm:$0xff] %v8406_v57  ;;  %10353 = vst [vmem:[#allocation66_spill] sm:$0xff] %v8409_v61  ;;  %v8412_v1 = vld [vmem:[#allocation4 + $0x28] sm:$0xff]  ;;  %v8415_v48 = vld [vmem:[#allocation4 + $0x38] sm:$0xff] }
 0x7a2   :  { %3600 = vmatprep.subr.mxu0 %v8400_v14  ;;  %3671 = vmatprep.subr.mxu1 %v8403_v63  ;;  %10354 = vst [vmem:[#allocation67_spill] sm:$0xff] %v8412_v1  ;;  %10355 = vst [vmem:[#allocation68_spill] sm:$0xff] %v8415_v48  ;;  %v8418_v14 = vld [vmem:[#allocation4 + $0x20] sm:$0xff]  ;;  %v8421_v63 = vld [vmem:[#allocation4 + $0x30] sm:$0xff] }
 0x7a3   :  { %3601 = vmatpush1.msra.mxu0 %v8406_v57  ;;  %3672 = vmatpush1.msra.mxu1 %v8409_v61  ;;  %10356 = vst [vmem:[#allocation69_spill] sm:$0xff] %v8418_v14  ;;  %10357 = vst [vmem:[#allocation70_spill] sm:$0xff] %v8421_v63  ;;  %v8424_v57 = vld [vmem:[#allocation4 + $0x8] sm:$0xff]  ;;  %v8427_v61 = vld [vmem:[#allocation4 + $0x18] sm:$0xff] }
 0x7a4   :  { %3602 = vmatprep.subr.mxu0 %v8412_v1  ;;  %3673 = vmatprep.subr.mxu1 %v8415_v48  ;;  %10358 = vst [vmem:[#allocation71_spill] sm:$0xff] %v8424_v57  ;;  %10359 = vst [vmem:[#allocation72_spill] sm:$0xff] %v8427_v61  ;;  %v8430_v1 = vld [vmem:[#allocation4] sm:$0xff]  ;;  %v8433_v48 = vld [vmem:[#allocation4 + $0x10] sm:$0xff] }
 0x7a5   :  { %3603 = vmatpush1.msra.mxu0 %v8418_v14  ;;  %3674 = vmatpush1.msra.mxu1 %v8421_v63  ;;  %10360 = vst [vmem:[#allocation73_spill] sm:$0xff] %v8430_v1  ;;  %10361 = vst [vmem:[#allocation74_spill] sm:$0xff] %v8433_v48  ;;  %v8438_v63 = vld [vmem:[#allocation6 + $0x1e8] sm:$0xff] }
 0x7a6   :  { %3604 = vmatprep.subr.mxu0 %v8424_v57  ;;  %3675 = vmatprep.subr.mxu1 %v8427_v61  ;;  %10362 = vst [vmem:[#allocation75_spill] sm:$0xff] %v8438_v63  ;;  %v8441_v57 = vld [vmem:[#allocation6 + $0x1f8] sm:$0xff] }
 0x7a7   :  { %3605 = vmatpush1.msra.mxu0 %v8430_v1  ;;  %3676 = vmatpush1.msra.mxu1 %v8433_v48  ;;  %10363 = vst [vmem:[#allocation76_spill] sm:$0xff] %v8441_v57 }
 0x7a8   :  { %3638 = vmatprep.mubr.f32.mxu0 %v9568_v30  ;;  %3709 = vmatprep.mubr.f32.mxu1 %v9568_v30 }
 0x7a9   :  { %3716 = vmatprep.subr.mxu0 %v8438_v63  ;;  %3787 = vmatprep.subr.mxu1 %v8441_v57 }
 0x804   :  { %v3170_v61 = vpop.f32.mrf.mxu0  ;;  %v3241_v14 = vpop.f32.mrf.mxu1 }
 0x806   :  { %v3172_v16 = vpop.f32.mrf.mxu0  ;;  %v3243_v1 = vpop.f32.mrf.mxu1 }
 0x825   :  { %v3312_v10 = vpop.f32.mrf.mxu0  ;;  %v3383_v50 = vpop.f32.mrf.mxu1 }
 0x826   :  { %v3313_v46 = vadd.f32 %v3312_v10, %v3170_v61 }
 0x827   :  { %v3314_v52 = vpop.f32.mrf.mxu0  ;;  %v3385_v48 = vpop.f32.mrf.mxu1 }
 0x828   :  { %v3315_v33 = vadd.f32 %v3314_v52, %v3172_v16  ;;  %v3386_v52 = vadd.f32 %v3385_v48, %v3243_v1  ;;  %v8466_v1 = vld [vmem:[#allocation6 + $0x1c8] sm:$0xff]  ;;  %v8469_v48 = vld [vmem:[#allocation6 + $0x1d8] sm:$0xff] }
 0x847   :  { %v3476_v49 = vpop.f32.mrf.mxu0  ;;  %v3547_v39 = vpop.f32.mrf.mxu1 }
 0x848   :  { %v3552_v37 = vadd.f32 %v3476_v49, %v10364_v19  ;;  %v3554_v35 = vadd.f32 %v3547_v39, %v10366_v36  ;;  %v3389_v49 = vadd.f32 %v3315_v33, %v6347_v41  ;;  %v3388_v36 = vadd.f32 %v3313_v46, %v6351_v47 }
 0x849   :  { %v3478_v59 = vpop.f32.mrf.mxu0  ;;  %v3549_v26 = vpop.f32.mrf.mxu1 }
 0x84a   :  { %v3556_v25 = vmul.f32 0.5, %v3552_v37  ;;  %v3553_v63 = vadd.f32 %v3478_v59, %v10365_v27  ;;  %v3555_v11 = vadd.f32 %v3549_v26, %v10367_v18  ;;  %v3392_v18 = vmul.f32 0.5, %v3388_v36 }
 0x84c   :  { %4640 = vtanh.f32 %v3556_v25  ;;  %v3560_v57 = vmul.f32 0.5, %v3553_v63  ;;  %v3565_v8 = vmul.f32 0.5, %v3555_v11  ;;  %v8463_v63 = vld [vmem:[#allocation6 + $0x1f0] sm:$0xff] }
 0x84e   :  { %4642 = vtanh.f32 %v3560_v57 }
 0x84f   :  { %4644 = vtanh.f32 %v3554_v35  ;;  %v3396_v35 = vmul.f32 0.5, %v3389_v49  ;;  %v8475_v49 = vld [vmem:[#allocation6 + $0x1d0] sm:$0xff] }
 0x850   :  { %4646 = vtanh.f32 %v3565_v8 }
 0x851   :  { %4648 = vtanh.f32 %v3396_v35  ;;  %v8487_v35 = vld [vmem:[#allocation6 + $0x1b0] sm:$0xff] }
 0x859   :  { %v4641_v6 = vpop.eup %4640 }
 0x85a   :  { %v3558_v21 = vmul.f32 0.5, %v4641_v6  ;;  %v3384_v6 = vadd.f32 %v3383_v50, %v3241_v14  ;;  %v3391_v50 = vadd.f32 %v3386_v52, %v6366_v20  ;;  %v8460_v14 = vld [vmem:[#allocation6 + $0x1e0] sm:$0xff]  ;;  %v8512_v52 = vld [vmem:[#allocation6 + $0x170] sm:$0xff] }
 0x85b   :  { %v4643_v19 = vpop.eup %4642  ;;  %10369 = vst [vmem:[#allocation78_spill] sm:$0xff] %v8512_v52 }
 0x85c   :  { %v3559_v37 = vadd.f32 0.5, %v3558_v21  ;;  %v3562_v42 = vmul.f32 0.5, %v4643_v19  ;;  %v4645_v27 = vpop.eup %4644  ;;  %v3390_v21 = vadd.f32 %v3384_v6, %v6361_v4  ;;  %v8472_v19 = vld [vmem:[#allocation6 + $0x1c0] sm:$0xff] }
 0x85d   :  { %v4647_v33 = vpop.eup %4646 }
 0x85e   :  { %v3563_v25 = vadd.f32 0.5, %v3562_v42  ;;  %v3570_v59 = vmul.f32 %v4645_v27, %v3559_v37  ;;  %v3567_v8 = vmul.f32 0.5, %v4647_v33  ;;  %v4649_v11 = vpop.eup %4648  ;;  %v8478_v37 = vld [vmem:[#allocation6 + $0x1a8] sm:$0xff]  ;;  %v8481_v27 = vld [vmem:[#allocation6 + $0x1b8] sm:$0xff]  ;;  %v8497_v33 = vld [vmem:[#allocation6 + $0x180] sm:$0xff] }
 0x860   :  { %v3569_v39 = vmul.f32 %v3563_v25, %v8011_v31  ;;  %v3568_v46 = vadd.f32 0.5, %v3567_v8  ;;  %v3398_v31 = vmul.f32 0.5, %v4649_v11  ;;  %v3401_v25 = vmul.f32 0.5, %v3391_v50  ;;  %v8503_v11 = vld [vmem:[#allocation6 + $0x168] sm:$0xff]  ;;  %v8523_v50 = vld [vmem:[#allocation6 + $0x140] sm:$0xff] }
 0x861   :  { %10372 = vst [vmem:[#allocation83_spill] sm:$0xff] %v8523_v50 }
 0x862   :  { %v8451_v26 = vadd.f32 %v3570_v59, %v3569_v39  ;;  %v3399_v57 = vadd.f32 0.5, %v3398_v31  ;;  %v8484_v59 = vld [vmem:[#allocation6 + $0x1a0] sm:$0xff]  ;;  %v8490_v39 = vld [vmem:[#allocation6 + $0x188] sm:$0xff]  ;;  %v8518_v31 = vld [vmem:[#allocation6 + $0x158] sm:$0xff] }
 0x863   :  { %10371 = vst [vmem:[#allocation80_spill] sm:$0xff] %v8518_v31 }
 0x864   :  { %4650 = vtanh.f32 %v8451_v26  ;;  %v3405_v6 = vmul.f32 %v3399_v57, %v8041_v40  ;;  %v8509_v40 = vld [vmem:[#allocation6 + $0x160] sm:$0xff]  ;;  %v8526_v57 = vld [vmem:[#allocation6 + $0x150] sm:$0xff] }
 0x865   :  { %4652 = vtanh.f32 %v3392_v18  ;;  %v8493_v18 = vld [vmem:[#allocation6 + $0x198] sm:$0xff]  ;;  %10368 = vst [vmem:[#allocation77_spill] sm:$0xff] %v8509_v40  ;;  %10373 = vst [vmem:[#allocation82_spill] sm:$0xff] %v8526_v57 }
 0x866   :  { %4654 = vtanh.f32 %v3390_v21  ;;  %v8500_v21 = vld [vmem:[#allocation6 + $0x190] sm:$0xff] }
 0x867   :  { %4656 = vtanh.f32 %v3401_v25  ;;  %v8532_v25 = vld [vmem:[#allocation6 + $0x138] sm:$0xff] }
 0x868   :  { %10375 = vst [vmem:[#allocation81_spill] sm:$0xff] %v8532_v25 }
 0x871   :  { %v4651_v42 = vpop.eup %4650 }
 0x872   :  { %v4653_v10 = vpop.eup %4652  ;;  %v8455_v16 = vmul.f32 %v4651_v42, %v3568_v46  ;;  %v8506_v46 = vld [vmem:[#allocation6 + $0x178] sm:$0xff] }
 0x873   :  { %v3394_v61 = vmul.f32 0.5, %v4653_v10  ;;  %v4655_v8 = vpop.eup %4654  ;;  %v8515_v10 = vld [vmem:[#allocation6 + $0x148] sm:$0xff] }
 0x874   :  { %3639 = vmatmul.mubr.f32.vlgmr.msra.gmra.mxu0 %v8455_v16  ;;  %3710 = vmatmul.mubr.f32.vlgmr.msra.gmra.mxu1 %v8455_v16  ;;  %10370 = vst [vmem:[#allocation79_spill] sm:$0xff] %v8515_v10 }
 0x875   :  { %3717 = vmatpush1.msra.mxu0 %v8460_v14  ;;  %3788 = vmatpush1.msra.mxu1 %v8463_v63  ;;  %v3395_v36 = vadd.f32 0.5, %v3394_v61 }
 0x876   :  { %3718 = vmatprep.subr.mxu0 %v8466_v1  ;;  %3789 = vmatprep.subr.mxu1 %v8469_v48 }
 0x877   :  { %3719 = vmatpush1.msra.mxu0 %v8472_v19  ;;  %3790 = vmatpush1.msra.mxu1 %v8475_v49  ;;  %v3406_v42 = vmul.f32 %v4655_v8, %v3395_v36  ;;  %v8529_v36 = vld [vmem:[#allocation6 + $0x128] sm:$0xff]  ;;  %v8535_v8 = vld [vmem:[#allocation6 + $0x120] sm:$0xff] }
 0x878   :  { %3720 = vmatprep.subr.mxu0 %v8478_v37  ;;  %3791 = vmatprep.subr.mxu1 %v8481_v27  ;;  %10374 = vst [vmem:[#allocation84_spill] sm:$0xff] %v8529_v36  ;;  %10376 = vst [vmem:[#allocation109_spill] sm:$0xff] %v8535_v8 }
 0x879   :  { %3721 = vmatpush1.msra.mxu0 %v8484_v59  ;;  %3792 = vmatpush1.msra.mxu1 %v8487_v35  ;;  %v8521_v61 = vadd.f32 %v3406_v42, %v3405_v6  ;;  %v8538_v6 = vld [vmem:[#allocation6 + $0x130] sm:$0xff]  ;;  %v8541_v42 = vld [vmem:[#allocation6 + $0x108] sm:$0xff] }
 0x87a   :  { %3722 = vmatprep.subr.mxu0 %v8490_v39  ;;  %3793 = vmatprep.subr.mxu1 %v8493_v18  ;;  %10377 = vst [vmem:[#allocation110_spill] sm:$0xff] %v8538_v6  ;;  %10378 = vst [vmem:[#allocation111_spill] sm:$0xff] %v8541_v42 }
 0x87b   :  { %3723 = vmatpush1.msra.mxu0 %v8497_v33  ;;  %3794 = vmatpush1.msra.mxu1 %v8500_v21  ;;  %4658 = vtanh.f32 %v8521_v61 }
 0x87c   :  { %3724 = vmatprep.subr.mxu0 %v8503_v11  ;;  %3795 = vmatprep.subr.mxu1 %v8506_v46 }
 0x87d   :  { %3725 = vmatpush1.msra.mxu0 %v8509_v40  ;;  %3796 = vmatpush1.msra.mxu1 %v8512_v52  ;;  %v5271_v52 = vld [vmem:[#allocation2 + $0x1d8] sm:$0xff] }
 0x87e   :  { %3726 = vmatprep.subr.mxu0 %v8515_v10  ;;  %3797 = vmatprep.subr.mxu1 %v8518_v31  ;;  %v8608_v31 = vld [vmem:[#allocation6 + $0x60] sm:$0xff]  ;;  %v5275_v40 = vld [vmem:[#allocation2 + $0x1b8] sm:$0xff] }
 0x87f   :  { %3727 = vmatpush1.msra.mxu0 %v8523_v50  ;;  %3798 = vmatpush1.msra.mxu1 %v8526_v57  ;;  %v8544_v57 = vld [vmem:[#allocation6 + $0x118] sm:$0xff]  ;;  %v8590_v50 = vld [vmem:[#allocation6 + $0x88] sm:$0xff]  ;;  %10400 = vst [vmem:[#allocation125_spill] sm:$0xff] %v8608_v31  ;;  %v8632_v10 = vld [vmem:[#allocation6 + $0x20] sm:$0xff] }
 0x880   :  { %3728 = vmatprep.subr.mxu0 %v8529_v36  ;;  %3799 = vmatprep.subr.mxu1 %v8532_v25  ;;  %10379 = vst [vmem:[#allocation112_spill] sm:$0xff] %v8544_v57  ;;  %v8548_v36 = vld [vmem:[#allocation6 + $0x100] sm:$0xff]  ;;  %v8551_v25 = vld [vmem:[#allocation6 + $0x110] sm:$0xff]  ;;  %10394 = vst [vmem:[#allocation119_spill] sm:$0xff] %v8590_v50 }
 0x881   :  { %3729 = vmatpush1.msra.mxu0 %v8535_v8  ;;  %3800 = vmatpush1.msra.mxu1 %v8538_v6  ;;  %10380 = vst [vmem:[#allocation97_spill] sm:$0xff] %v8548_v36  ;;  %10381 = vst [vmem:[#allocation99_spill] sm:$0xff] %v8551_v25  ;;  %v8554_v8 = vld [vmem:[#allocation6 + $0xe8] sm:$0xff]  ;;  %v8557_v6 = vld [vmem:[#allocation6 + $0xf8] sm:$0xff] }
 0x882   :  { %3730 = vmatprep.subr.mxu0 %v8541_v42  ;;  %3801 = vmatprep.subr.mxu1 %v8544_v57  ;;  %10382 = vst [vmem:[#allocation98_spill] sm:$0xff] %v8554_v8  ;;  %10383 = vst [vmem:[#allocation100_spill] sm:$0xff] %v8557_v6  ;;  %v8560_v42 = vld [vmem:[#allocation6 + $0xe0] sm:$0xff]  ;;  %v8563_v57 = vld [vmem:[#allocation6 + $0xf0] sm:$0xff] }
 0x883   :  { %3731 = vmatpush1.msra.mxu0 %v8548_v36  ;;  %3802 = vmatpush1.msra.mxu1 %v8551_v25  ;;  %10384 = vst [vmem:[#allocation113_spill] sm:$0xff] %v8560_v42  ;;  %10385 = vst [vmem:[#allocation114_spill] sm:$0xff] %v8563_v57  ;;  %v8566_v36 = vld [vmem:[#allocation6 + $0xc8] sm:$0xff]  ;;  %v8569_v25 = vld [vmem:[#allocation6 + $0xd8] sm:$0xff] }
 0x884   :  { %3732 = vmatprep.subr.mxu0 %v8554_v8  ;;  %3803 = vmatprep.subr.mxu1 %v8557_v6  ;;  %10386 = vst [vmem:[#allocation115_spill] sm:$0xff] %v8566_v36  ;;  %10387 = vst [vmem:[#allocation116_spill] sm:$0xff] %v8569_v25  ;;  %v8572_v8 = vld [vmem:[#allocation6 + $0xc0] sm:$0xff]  ;;  %v8575_v6 = vld [vmem:[#allocation6 + $0xd0] sm:$0xff] }
 0x885   :  { %3733 = vmatpush1.msra.mxu0 %v8560_v42  ;;  %3804 = vmatpush1.msra.mxu1 %v8563_v57  ;;  %10388 = vst [vmem:[#allocation89_spill] sm:$0xff] %v8572_v8  ;;  %10389 = vst [vmem:[#allocation91_spill] sm:$0xff] %v8575_v6  ;;  %v8578_v42 = vld [vmem:[#allocation6 + $0xa8] sm:$0xff]  ;;  %v8581_v57 = vld [vmem:[#allocation6 + $0xb8] sm:$0xff] }
 0x886   :  { %3734 = vmatprep.subr.mxu0 %v8566_v36  ;;  %3805 = vmatprep.subr.mxu1 %v8569_v25  ;;  %10390 = vst [vmem:[#allocation90_spill] sm:$0xff] %v8578_v42  ;;  %10391 = vst [vmem:[#allocation92_spill] sm:$0xff] %v8581_v57  ;;  %v8584_v36 = vld [vmem:[#allocation6 + $0xa0] sm:$0xff]  ;;  %v8587_v25 = vld [vmem:[#allocation6 + $0xb0] sm:$0xff] }
 0x887   :  { %3735 = vmatpush1.msra.mxu0 %v8572_v8  ;;  %3806 = vmatpush1.msra.mxu1 %v8575_v6  ;;  %10392 = vst [vmem:[#allocation117_spill] sm:$0xff] %v8584_v36  ;;  %10393 = vst [vmem:[#allocation118_spill] sm:$0xff] %v8587_v25  ;;  %v4657_v8 = vpop.eup %4656  ;;  %v8593_v6 = vld [vmem:[#allocation6 + $0x98] sm:$0xff] }
 0x888   :  { %3736 = vmatprep.subr.mxu0 %v8578_v42  ;;  %3807 = vmatprep.subr.mxu1 %v8581_v57  ;;  %10395 = vst [vmem:[#allocation120_spill] sm:$0xff] %v8593_v6  ;;  %v8596_v42 = vld [vmem:[#allocation6 + $0x80] sm:$0xff]  ;;  %v8599_v57 = vld [vmem:[#allocation6 + $0x90] sm:$0xff]  ;;  %10408 = vst [vmem:[#allocation133_spill] sm:$0xff] %v8632_v10 }
 0x889   :  { %3737 = vmatpush1.msra.mxu0 %v8584_v36  ;;  %3808 = vmatpush1.msra.mxu1 %v8587_v25  ;;  %10396 = vst [vmem:[#allocation121_spill] sm:$0xff] %v8596_v42  ;;  %10397 = vst [vmem:[#allocation122_spill] sm:$0xff] %v8599_v57  ;;  %v8602_v36 = vld [vmem:[#allocation6 + $0x68] sm:$0xff]  ;;  %v8605_v25 = vld [vmem:[#allocation6 + $0x78] sm:$0xff] }
 0x88a   :  { %3738 = vmatprep.subr.mxu0 %v8590_v50  ;;  %3809 = vmatprep.subr.mxu1 %v8593_v6  ;;  %10398 = vst [vmem:[#allocation123_spill] sm:$0xff] %v8602_v36  ;;  %10399 = vst [vmem:[#allocation124_spill] sm:$0xff] %v8605_v25  ;;  %v3403_v50 = vmul.f32 0.5, %v4657_v8  ;;  %v8611_v6 = vld [vmem:[#allocation6 + $0x70] sm:$0xff] }
 0x88b   :  { %3739 = vmatpush1.msra.mxu0 %v8596_v42  ;;  %3810 = vmatpush1.msra.mxu1 %v8599_v57  ;;  %10401 = vst [vmem:[#allocation126_spill] sm:$0xff] %v8611_v6  ;;  %v8614_v42 = vld [vmem:[#allocation6 + $0x48] sm:$0xff]  ;;  %v8617_v57 = vld [vmem:[#allocation6 + $0x58] sm:$0xff]  ;;  %v8623_v8 = vld [vmem:[#allocation6 + $0x50] sm:$0xff] }
 0x88c   :  { %3740 = vmatprep.subr.mxu0 %v8602_v36  ;;  %3811 = vmatprep.subr.mxu1 %v8605_v25  ;;  %10402 = vst [vmem:[#allocation127_spill] sm:$0xff] %v8614_v42  ;;  %10403 = vst [vmem:[#allocation128_spill] sm:$0xff] %v8617_v57  ;;  %v8620_v36 = vld [vmem:[#allocation6 + $0x40] sm:$0xff]  ;;  %v8626_v25 = vld [vmem:[#allocation6 + $0x28] sm:$0xff] }
 0x88d   :  { %3741 = vmatpush1.msra.mxu0 %v8608_v31  ;;  %3812 = vmatpush1.msra.mxu1 %v8611_v6  ;;  %10404 = vst [vmem:[#allocation129_spill] sm:$0xff] %v8620_v36  ;;  %10405 = vst [vmem:[#allocation130_spill] sm:$0xff] %v8623_v8  ;;  %v4659_v31 = vpop.eup %4658  ;;  %v8629_v6 = vld [vmem:[#allocation6 + $0x38] sm:$0xff] }
 0x88e   :  { %3742 = vmatprep.subr.mxu0 %v8614_v42  ;;  %3813 = vmatprep.subr.mxu1 %v8617_v57  ;;  %10406 = vst [vmem:[#allocation131_spill] sm:$0xff] %v8626_v25  ;;  %10407 = vst [vmem:[#allocation132_spill] sm:$0xff] %v8629_v6  ;;  %v3404_v42 = vadd.f32 0.5, %v3403_v50  ;;  %v8635_v57 = vld [vmem:[#allocation6 + $0x30] sm:$0xff] }
 0x88f   :  { %3743 = vmatpush1.msra.mxu0 %v8620_v36  ;;  %3814 = vmatpush1.msra.mxu1 %v8623_v8  ;;  %10409 = vst [vmem:[#allocation134_spill] sm:$0xff] %v8635_v57  ;;  %v8638_v36 = vld [vmem:[#allocation6 + $0x8] sm:$0xff]  ;;  %v8641_v8 = vld [vmem:[#allocation6 + $0x18] sm:$0xff] }
 0x890   :  { %3744 = vmatprep.subr.mxu0 %v8626_v25  ;;  %3815 = vmatprep.subr.mxu1 %v8629_v6  ;;  %10410 = vst [vmem:[#allocation135_spill] sm:$0xff] %v8638_v36  ;;  %10411 = vst [vmem:[#allocation136_spill] sm:$0xff] %v8641_v8  ;;  %v8644_v25 = vld [vmem:[#allocation6] sm:$0xff]  ;;  %v3409_v50 = vmul.f32 %v4659_v31, %v3404_v42  ;;  %v5269_v6 = vld [vmem:[#allocation2 + $0x1f0] sm:$0xff] }
 0x891   :  { %3745 = vmatpush1.msra.mxu0 %v8632_v10  ;;  %3816 = vmatpush1.msra.mxu1 %v8635_v57  ;;  %10412 = vst [vmem:[#allocation137_spill] sm:$0xff] %v8644_v25  ;;  %v8648_v10 = vld [vmem:[#allocation6 + $0x10] sm:$0xff]  ;;  %v5267_v57 = vld [vmem:[#allocation2 + $0x1f8] sm:$0xff]  ;;  %v5272_v31 = vld [vmem:[#allocation2 + $0x1c0] sm:$0xff] }
 0x892   :  { %3746 = vmatprep.subr.mxu0 %v8638_v36  ;;  %3817 = vmatprep.subr.mxu1 %v8641_v8  ;;  %10413 = vst [vmem:[#allocation138_spill] sm:$0xff] %v8648_v10  ;;  %v5266_v36 = vld [vmem:[#allocation2 + $0x1e8] sm:$0xff]  ;;  %v5268_v8 = vld [vmem:[#allocation2 + $0x1e0] sm:$0xff]  ;;  %v5273_v42 = vld [vmem:[#allocation2 + $0x1d0] sm:$0xff] }
 0x893   :  { %3747 = vmatpush1.msra.mxu0 %v8644_v25  ;;  %3780 = vmatprep.mubr.f32.mxu0 %v9568_v30  ;;  %v5270_v25 = vld [vmem:[#allocation2 + $0x1c8] sm:$0xff] }
 0x894   :  { %3818 = vmatpush1.msra.mxu1 %v8648_v10  ;;  %3851 = vmatprep.mubr.f32.mxu1 %v9568_v30  ;;  %v5274_v10 = vld [vmem:[#allocation2 + $0x1a8] sm:$0xff] }
 0x895   :  { %3781 = vmatmul.mubr.f32.vlgmr.msra.gmra.mxu0 %v3409_v50  ;;  %3852 = vmatmul.mubr.f32.vlgmr.msra.gmra.mxu1 %v3409_v50  ;;  %v5276_v50 = vld [vmem:[#allocation2 + $0x1a0] sm:$0xff] }
 0x896   :  { %3880 = vmatprep.subr.mxu0 %v5266_v36  ;;  %3951 = vmatprep.subr.mxu1 %v5267_v57  ;;  %v5277_v36 = vld [vmem:[#allocation2 + $0x1b0] sm:$0xff]  ;;  %v5278_v57 = vld [vmem:[#allocation2 + $0x188] sm:$0xff] }
 0x897   :  { %3881 = vmatpush1.msra.mxu0 %v5268_v8  ;;  %3952 = vmatpush1.msra.mxu1 %v5269_v6  ;;  %v5279_v8 = vld [vmem:[#allocation2 + $0x198] sm:$0xff]  ;;  %v5280_v6 = vld [vmem:[#allocation2 + $0x180] sm:$0xff] }
 0x898   :  { %3882 = vmatprep.subr.mxu0 %v5270_v25  ;;  %3953 = vmatprep.subr.mxu1 %v5271_v52  ;;  %v5281_v25 = vld [vmem:[#allocation2 + $0x190] sm:$0xff]  ;;  %v5282_v52 = vld [vmem:[#allocation2 + $0x168] sm:$0xff] }
 0x899   :  { %3883 = vmatpush1.msra.mxu0 %v5272_v31  ;;  %3954 = vmatpush1.msra.mxu1 %v5273_v42  ;;  %v5283_v31 = vld [vmem:[#allocation2 + $0x178] sm:$0xff]  ;;  %v5284_v42 = vld [vmem:[#allocation2 + $0x160] sm:$0xff] }
 0x89a   :  { %3884 = vmatprep.subr.mxu0 %v5274_v10  ;;  %3955 = vmatprep.subr.mxu1 %v5275_v40  ;;  %v5285_v10 = vld [vmem:[#allocation2 + $0x170] sm:$0xff] }
 0x89b   :  { %3885 = vmatpush1.msra.mxu0 %v5276_v50  ;;  %3956 = vmatpush1.msra.mxu1 %v5277_v36  ;;  %v10444_v40 = vld [vmem:[#allocation26_spill] sm:$0xff]  ;;  %v10445_v50 = vld [vmem:[#allocation27_spill] sm:$0xff]  ;;  %v10446_v36 = vld [vmem:[#allocation28_spill] sm:$0xff] }
 0x89c   :  { %3886 = vmatprep.subr.mxu0 %v5278_v57  ;;  %3957 = vmatprep.subr.mxu1 %v5279_v8  ;;  %v10447_v57 = vld [vmem:[#allocation29_spill] sm:$0xff]  ;;  %v10448_v8 = vld [vmem:[#allocation30_spill] sm:$0xff] }
 0x89d   :  { %3887 = vmatpush1.msra.mxu0 %v5280_v6  ;;  %3958 = vmatpush1.msra.mxu1 %v5281_v25  ;;  %v10449_v6 = vld [vmem:[#allocation31_spill] sm:$0xff]  ;;  %v10450_v25 = vld [vmem:[#allocation32_spill] sm:$0xff] }
 0x89e   :  { %3888 = vmatprep.subr.mxu0 %v5282_v52  ;;  %3959 = vmatprep.subr.mxu1 %v5283_v31  ;;  %v10451_v52 = vld [vmem:[#allocation33_spill] sm:$0xff]  ;;  %v10452_v31 = vld [vmem:[#allocation34_spill] sm:$0xff] }
 0x89f   :  { %3889 = vmatpush1.msra.mxu0 %v5284_v42  ;;  %3960 = vmatpush1.msra.mxu1 %v5285_v10  ;;  %v10453_v42 = vld [vmem:[#allocation35_spill] sm:$0xff]  ;;  %v10454_v10 = vld [vmem:[#allocation36_spill] sm:$0xff] }
 0x8a0   :  { %3890 = vmatprep.subr.mxu0 %v8108_v62  ;;  %3961 = vmatprep.subr.mxu1 %v8111_v58  ;;  %v10414_v62 = vld [vmem:[#allocation164_spill] sm:$0xff]  ;;  %v10415_v58 = vld [vmem:[#allocation165_spill] sm:$0xff] }
 0x8a1   :  { %3891 = vmatpush1.msra.mxu0 %v8114_v45  ;;  %3962 = vmatpush1.msra.mxu1 %v8117_v51  ;;  %v10416_v45 = vld [vmem:[#allocation166_spill] sm:$0xff]  ;;  %v10417_v51 = vld [vmem:[#allocation167_spill] sm:$0xff] }
 0x8a2   :  { %3892 = vmatprep.subr.mxu0 %v8120_v32  ;;  %3963 = vmatprep.subr.mxu1 %v8123_v3  ;;  %v10418_v32 = vld [vmem:[#allocation168_spill] sm:$0xff]  ;;  %v10419_v3 = vld [vmem:[#allocation169_spill] sm:$0xff] }
 0x8a3   :  { %3893 = vmatpush1.msra.mxu0 %v8126_v60  ;;  %3964 = vmatpush1.msra.mxu1 %v8129_v29  ;;  %v10420_v60 = vld [vmem:[#allocation170_spill] sm:$0xff]  ;;  %v10421_v29 = vld [vmem:[#allocation171_spill] sm:$0xff] }
 0x8a4   :  { %3894 = vmatprep.subr.mxu0 %v8132_v24  ;;  %3965 = vmatprep.subr.mxu1 %v8135_v9  ;;  %v10422_v24 = vld [vmem:[#allocation93_spill] sm:$0xff]  ;;  %v10423_v9 = vld [vmem:[#allocation95_spill] sm:$0xff] }
 0x8a5   :  { %3895 = vmatpush1.msra.mxu0 %v8138_v34  ;;  %3966 = vmatpush1.msra.mxu1 %v8141_v12  ;;  %v10424_v34 = vld [vmem:[#allocation94_spill] sm:$0xff]  ;;  %v10425_v12 = vld [vmem:[#allocation96_spill] sm:$0xff] }
 0x8a6   :  { %3896 = vmatprep.subr.mxu0 %v8144_v13  ;;  %3967 = vmatprep.subr.mxu1 %v8147_v44  ;;  %v10426_v13 = vld [vmem:[#allocation85_spill] sm:$0xff]  ;;  %v10427_v44 = vld [vmem:[#allocation87_spill] sm:$0xff] }
 0x8a7   :  { %3897 = vmatpush1.msra.mxu0 %v8150_v53  ;;  %3968 = vmatpush1.msra.mxu1 %v8153_v55  ;;  %v10428_v53 = vld [vmem:[#allocation86_spill] sm:$0xff]  ;;  %v10429_v55 = vld [vmem:[#allocation88_spill] sm:$0xff] }
 0x8a8   :  { %3898 = vmatprep.subr.mxu0 %v8156_v56  ;;  %3969 = vmatprep.subr.mxu1 %v8159_v15  ;;  %v10430_v56 = vld [vmem:[#allocation12_spill] sm:$0xff]  ;;  %v10431_v15 = vld [vmem:[#allocation13_spill] sm:$0xff] }
 0x8a9   :  { %3899 = vmatpush1.msra.mxu0 %v8162_v38  ;;  %3970 = vmatpush1.msra.mxu1 %v8165_v17  ;;  %v10432_v38 = vld [vmem:[#allocation14_spill] sm:$0xff]  ;;  %v10433_v17 = vld [vmem:[#allocation15_spill] sm:$0xff] }
 0x8aa   :  { %3900 = vmatprep.subr.mxu0 %v8168_v43  ;;  %3971 = vmatprep.subr.mxu1 %v8171_v23  ;;  %v10434_v43 = vld [vmem:[#allocation16_spill] sm:$0xff]  ;;  %v10435_v23 = vld [vmem:[#allocation17_spill] sm:$0xff] }
 0x8ab   :  { %3901 = vmatpush1.msra.mxu0 %v8174_v2  ;;  %3972 = vmatpush1.msra.mxu1 %v8177_v22  ;;  %v10436_v2 = vld [vmem:[#allocation18_spill] sm:$0xff]  ;;  %v10437_v22 = vld [vmem:[#allocation19_spill] sm:$0xff] }
 0x8ac   :  { %3902 = vmatprep.subr.mxu0 %v8180_v0  ;;  %3973 = vmatprep.subr.mxu1 %v8183_v54  ;;  %v10438_v0 = vld [vmem:[#allocation20_spill] sm:$0xff]  ;;  %v10439_v54 = vld [vmem:[#allocation21_spill] sm:$0xff] }
 0x8ad   :  { %3903 = vmatpush1.msra.mxu0 %v8186_v28  ;;  %3974 = vmatpush1.msra.mxu1 %v8189_v5  ;;  %v10440_v28 = vld [vmem:[#allocation22_spill] sm:$0xff]  ;;  %v10441_v5 = vld [vmem:[#allocation23_spill] sm:$0xff] }
 0x8ae   :  { %3904 = vmatprep.subr.mxu0 %v8192_v7  ;;  %3975 = vmatprep.subr.mxu1 %v10414_v62  ;;  %v10442_v7 = vld [vmem:[#allocation24_spill] sm:$0xff]  ;;  %v10455_v62 = vld [vmem:[#allocation37_spill] sm:$0xff] }
 0x8af   :  { %3905 = vmatpush1.msra.mxu0 %v10415_v58  ;;  %3976 = vmatpush1.msra.mxu1 %v10416_v45  ;;  %v10456_v58 = vld [vmem:[#allocation38_spill] sm:$0xff]  ;;  %v10457_v45 = vld [vmem:[#allocation39_spill] sm:$0xff] }
 0x8b0   :  { %3906 = vmatprep.subr.mxu0 %v10417_v51  ;;  %3977 = vmatprep.subr.mxu1 %v10418_v32  ;;  %v10458_v51 = vld [vmem:[#allocation40_spill] sm:$0xff]  ;;  %v10459_v32 = vld [vmem:[#allocation41_spill] sm:$0xff] }
 0x8b1   :  { %3907 = vmatpush1.msra.mxu0 %v10419_v3  ;;  %3978 = vmatpush1.msra.mxu1 %v10420_v60  ;;  %v10460_v3 = vld [vmem:[#allocation42_spill] sm:$0xff]  ;;  %v10461_v60 = vld [vmem:[#allocation43_spill] sm:$0xff] }
 0x8b2   :  { %3908 = vmatprep.subr.mxu0 %v10421_v29  ;;  %3979 = vmatprep.subr.mxu1 %v10422_v24  ;;  %v10462_v29 = vld [vmem:[#allocation44_spill] sm:$0xff]  ;;  %v10463_v24 = vld [vmem:[#allocation45_spill] sm:$0xff] }
 0x8b3   :  { %3909 = vmatpush1.msra.mxu0 %v10423_v9  ;;  %3980 = vmatpush1.msra.mxu1 %v10424_v34  ;;  %v10464_v9 = vld [vmem:[#allocation46_spill] sm:$0xff]  ;;  %v10465_v34 = vld [vmem:[#allocation47_spill] sm:$0xff] }
 0x8b4   :  { %3910 = vmatprep.subr.mxu0 %v10425_v12  ;;  %3981 = vmatprep.subr.mxu1 %v10426_v13  ;;  %v10466_v12 = vld [vmem:[#allocation48_spill] sm:$0xff]  ;;  %v10467_v13 = vld [vmem:[#allocation49_spill] sm:$0xff] }
 0x8b5   :  { %3911 = vmatpush1.msra.mxu0 %v10427_v44  ;;  %3944 = vmatprep.mubr.f32.mxu0 %v9568_v30  ;;  %v10468_v44 = vld [vmem:[#allocation50_spill] sm:$0xff] }
 0x8b6   :  { %3982 = vmatpush1.msra.mxu1 %v10428_v53  ;;  %4015 = vmatprep.mubr.f32.mxu1 %v9568_v30  ;;  %v10469_v53 = vld [vmem:[#allocation51_spill] sm:$0xff] }
 0x8b7   :  { %3945 = vmatmul.mubr.f32.vlgmr.msra.gmra.mxu0 %v8455_v16  ;;  %4016 = vmatmul.mubr.f32.vlgmr.msra.gmra.mxu1 %v8455_v16  ;;  %v10443_v16 = vld [vmem:[#allocation25_spill] sm:$0xff] }
 0x8b8   :  { %4044 = vmatprep.subr.mxu0 %v10429_v55  ;;  %4115 = vmatprep.subr.mxu1 %v10430_v56  ;;  %v10470_v55 = vld [vmem:[#allocation52_spill] sm:$0xff]  ;;  %v10471_v56 = vld [vmem:[#allocation53_spill] sm:$0xff] }
 0x8b9   :  { %4045 = vmatpush1.msra.mxu0 %v10431_v15  ;;  %4116 = vmatpush1.msra.mxu1 %v10432_v38  ;;  %v10472_v15 = vld [vmem:[#allocation54_spill] sm:$0xff]  ;;  %v10473_v38 = vld [vmem:[#allocation55_spill] sm:$0xff] }
 0x8ba   :  { %4046 = vmatprep.subr.mxu0 %v10433_v17  ;;  %4117 = vmatprep.subr.mxu1 %v10434_v43  ;;  %v10474_v17 = vld [vmem:[#allocation56_spill] sm:$0xff]  ;;  %v10475_v43 = vld [vmem:[#allocation57_spill] sm:$0xff] }
 0x8bb   :  { %4047 = vmatpush1.msra.mxu0 %v10435_v23  ;;  %4118 = vmatpush1.msra.mxu1 %v10436_v2  ;;  %v10476_v23 = vld [vmem:[#allocation58_spill] sm:$0xff]  ;;  %v10477_v2 = vld [vmem:[#allocation59_spill] sm:$0xff] }
 0x8bc   :  { %4048 = vmatprep.subr.mxu0 %v10437_v22  ;;  %4119 = vmatprep.subr.mxu1 %v10438_v0  ;;  %v10478_v22 = vld [vmem:[#allocation60_spill] sm:$0xff]  ;;  %v10479_v0 = vld [vmem:[#allocation61_spill] sm:$0xff] }
 0x8bd   :  { %4049 = vmatpush1.msra.mxu0 %v10439_v54  ;;  %4120 = vmatpush1.msra.mxu1 %v10440_v28  ;;  %v10480_v54 = vld [vmem:[#allocation62_spill] sm:$0xff]  ;;  %v10481_v28 = vld [vmem:[#allocation63_spill] sm:$0xff] }
 0x8be   :  { %4050 = vmatprep.subr.mxu0 %v10441_v5  ;;  %4121 = vmatprep.subr.mxu1 %v10442_v7  ;;  %v10482_v5 = vld [vmem:[#allocation64_spill] sm:$0xff]  ;;  %v10483_v7 = vld [vmem:[#allocation65_spill] sm:$0xff] }
 0x8bf   :  { %4051 = vmatpush1.msra.mxu0 %v10443_v16  ;;  %4122 = vmatpush1.msra.mxu1 %v10444_v40  ;;  %v10484_v16 = vld [vmem:[#allocation66_spill] sm:$0xff]  ;;  %v10485_v40 = vld [vmem:[#allocation67_spill] sm:$0xff] }
 0x8c0   :  { %4052 = vmatprep.subr.mxu0 %v10445_v50  ;;  %4123 = vmatprep.subr.mxu1 %v10446_v36  ;;  %v10486_v50 = vld [vmem:[#allocation68_spill] sm:$0xff]  ;;  %v10487_v36 = vld [vmem:[#allocation69_spill] sm:$0xff] }
 0x8c1   :  { %4053 = vmatpush1.msra.mxu0 %v10447_v57  ;;  %4124 = vmatpush1.msra.mxu1 %v10448_v8  ;;  %v10488_v57 = vld [vmem:[#allocation70_spill] sm:$0xff]  ;;  %v10489_v8 = vld [vmem:[#allocation71_spill] sm:$0xff] }
 0x8c2   :  { %4054 = vmatprep.subr.mxu0 %v10449_v6  ;;  %4125 = vmatprep.subr.mxu1 %v10450_v25  ;;  %v10490_v6 = vld [vmem:[#allocation72_spill] sm:$0xff]  ;;  %v10491_v25 = vld [vmem:[#allocation73_spill] sm:$0xff] }
 0x8c3   :  { %4055 = vmatpush1.msra.mxu0 %v10451_v52  ;;  %4126 = vmatpush1.msra.mxu1 %v10452_v31  ;;  %v10492_v52 = vld [vmem:[#allocation74_spill] sm:$0xff]  ;;  %v10493_v31 = vld [vmem:[#allocation75_spill] sm:$0xff] }
 0x8c4   :  { %4056 = vmatprep.subr.mxu0 %v10453_v42  ;;  %4127 = vmatprep.subr.mxu1 %v10454_v10  ;;  %v10494_v42 = vld [vmem:[#allocation76_spill] sm:$0xff] }
 0x8c5   :  { %4057 = vmatpush1.msra.mxu0 %v10455_v62  ;;  %4128 = vmatpush1.msra.mxu1 %v10456_v58 }
 0x8c6   :  { %4058 = vmatprep.subr.mxu0 %v10457_v45  ;;  %4129 = vmatprep.subr.mxu1 %v10458_v51 }
 0x8c7   :  { %4059 = vmatpush1.msra.mxu0 %v10459_v32  ;;  %4130 = vmatpush1.msra.mxu1 %v10460_v3 }
 0x8c8   :  { %4060 = vmatprep.subr.mxu0 %v10461_v60  ;;  %4131 = vmatprep.subr.mxu1 %v10462_v29 }
 0x8c9   :  { %4061 = vmatpush1.msra.mxu0 %v10463_v24  ;;  %4132 = vmatpush1.msra.mxu1 %v10464_v9  ;;  %v10495_v24 = vld [vmem:[#allocation105_spill] sm:$0xff] }
 0x8ca   :  { %4062 = vmatprep.subr.mxu0 %v10465_v34  ;;  %4133 = vmatprep.subr.mxu1 %v10466_v12 }
 0x8cb   :  { %4063 = vmatpush1.msra.mxu0 %v10467_v13  ;;  %4134 = vmatpush1.msra.mxu1 %v10468_v44  ;;  %v10496_v44 = vld [vmem:[#allocation107_spill] sm:$0xff] }
 0x8cc   :  { %4064 = vmatprep.subr.mxu0 %v10469_v53  ;;  %4135 = vmatprep.subr.mxu1 %v10470_v55  ;;  %v10497_v55 = vld [vmem:[#allocation106_spill] sm:$0xff] }
 0x8cd   :  { %4065 = vmatpush1.msra.mxu0 %v10471_v56  ;;  %4136 = vmatpush1.msra.mxu1 %v10472_v15 }
 0x8ce   :  { %4066 = vmatprep.subr.mxu0 %v10473_v38  ;;  %4137 = vmatprep.subr.mxu1 %v10474_v17  ;;  %v10498_v17 = vld [vmem:[#allocation108_spill] sm:$0xff] }
 0x8cf   :  { %4067 = vmatpush1.msra.mxu0 %v10475_v43  ;;  %4138 = vmatpush1.msra.mxu1 %v10476_v23 }
 0x8d0   :  { %4068 = vmatprep.subr.mxu0 %v10477_v2  ;;  %4139 = vmatprep.subr.mxu1 %v10478_v22 }
 0x8d1   :  { %4069 = vmatpush1.msra.mxu0 %v10479_v0  ;;  %4140 = vmatpush1.msra.mxu1 %v10480_v54 }
 0x8d2   :  { %4070 = vmatprep.subr.mxu0 %v10481_v28  ;;  %4141 = vmatprep.subr.mxu1 %v10482_v5 }
 0x8d3   :  { %4071 = vmatpush1.msra.mxu0 %v10483_v7  ;;  %4142 = vmatpush1.msra.mxu1 %v10484_v16 }
 0x8d4   :  { %4072 = vmatprep.subr.mxu0 %v10485_v40  ;;  %4143 = vmatprep.subr.mxu1 %v10486_v50 }
 0x8d5   :  { %4073 = vmatpush1.msra.mxu0 %v10487_v36  ;;  %4144 = vmatpush1.msra.mxu1 %v10488_v57 }
 0x8d6   :  { %4074 = vmatprep.subr.mxu0 %v10489_v8  ;;  %4145 = vmatprep.subr.mxu1 %v10490_v6 }
 0x8d7   :  { %4075 = vmatpush1.msra.mxu0 %v10491_v25  ;;  %4146 = vmatpush1.msra.mxu1 %v10492_v52 }
 0x8d8   :  { %4108 = vmatprep.mubr.f32.mxu0 %v9568_v30  ;;  %4179 = vmatprep.mubr.f32.mxu1 %v9568_v30 }
 0x8d9   :  { %4186 = vmatprep.subr.mxu0 %v10493_v31  ;;  %4257 = vmatprep.subr.mxu1 %v10494_v42 }
 0x934   :  { %v3640_v10 = vpop.f32.mrf.mxu0  ;;  %v3711_v62 = vpop.f32.mrf.mxu1 }
 0x936   :  { %v3642_v58 = vpop.f32.mrf.mxu0  ;;  %v3713_v45 = vpop.f32.mrf.mxu1 }
 0x955   :  { %v3782_v51 = vpop.f32.mrf.mxu0  ;;  %v3853_v32 = vpop.f32.mrf.mxu1 }
 0x956   :  { %v3783_v0 = vadd.f32 %v3782_v51, %v3640_v10  ;;  %v3854_v31 = vadd.f32 %v3853_v32, %v3711_v62 }
 0x957   :  { %v3784_v3 = vpop.f32.mrf.mxu0  ;;  %v3855_v60 = vpop.f32.mrf.mxu1 }
 0x958   :  { %v3785_v23 = vadd.f32 %v3784_v3, %v3642_v58  ;;  %v3858_v50 = vadd.f32 %v3783_v0, %v6351_v47  ;;  %v3860_v10 = vadd.f32 %v3854_v31, %v6361_v4  ;;  %v10524_v0 = vld [vmem:[#allocation118_spill] sm:$0xff] }
 0x959   :  { %v10536_v31 = vld [vmem:[#allocation130_spill] sm:$0xff] }
 0x95a   :  { %v3859_v5 = vadd.f32 %v3785_v23, %v6347_v41  ;;  %v3862_v25 = vmul.f32 0.5, %v3858_v50  ;;  %v10521_v23 = vld [vmem:[#allocation90_spill] sm:$0xff]  ;;  %v10530_v50 = vld [vmem:[#allocation124_spill] sm:$0xff] }
 0x95c   :  { %v3866_v8 = vmul.f32 0.5, %v3859_v5  ;;  %v10526_v5 = vld [vmem:[#allocation120_spill] sm:$0xff] }
 0x977   :  { %v3946_v29 = vpop.f32.mrf.mxu0  ;;  %v4017_v34 = vpop.f32.mrf.mxu1 }
 0x978   :  { %v4022_v9 = vadd.f32 %v3946_v29, %v10495_v24  ;;  %v4024_v56 = vadd.f32 %v4017_v34, %v10497_v55  ;;  %v3856_v24 = vadd.f32 %v3855_v60, %v3713_v45  ;;  %v10512_v60 = vld [vmem:[#allocation99_spill] sm:$0xff]  ;;  %v10515_v55 = vld [vmem:[#allocation113_spill] sm:$0xff] }
 0x979   :  { %v3948_v12 = vpop.f32.mrf.mxu0  ;;  %v4019_v38 = vpop.f32.mrf.mxu1 }
 0x97a   :  { %v4026_v13 = vmul.f32 0.5, %v4022_v9  ;;  %v4023_v53 = vadd.f32 %v3948_v12, %v10496_v44  ;;  %v4025_v43 = vadd.f32 %v4019_v38, %v10498_v17  ;;  %v10513_v44 = vld [vmem:[#allocation98_spill] sm:$0xff]  ;;  %v10518_v38 = vld [vmem:[#allocation116_spill] sm:$0xff]  ;;  %v10519_v17 = vld [vmem:[#allocation89_spill] sm:$0xff] }
 0x97c   :  { %4660 = vtanh.f32 %v4026_v13  ;;  %v4030_v15 = vmul.f32 0.5, %v4023_v53  ;;  %v4035_v2 = vmul.f32 0.5, %v4025_v43  ;;  %v3861_v13 = vadd.f32 %v3856_v24, %v6366_v20  ;;  %v10514_v53 = vld [vmem:[#allocation100_spill] sm:$0xff]  ;;  %v10520_v43 = vld [vmem:[#allocation91_spill] sm:$0xff] }
 0x97d   :  { %v10541_v24 = vld [vmem:[#allocation135_spill] sm:$0xff] }
 0x97e   :  { %4662 = vtanh.f32 %v4030_v15  ;;  %v3871_v32 = vmul.f32 0.5, %v3861_v13  ;;  %v10517_v15 = vld [vmem:[#allocation115_spill] sm:$0xff] }
 0x97f   :  { %4664 = vtanh.f32 %v4024_v56  ;;  %v10516_v56 = vld [vmem:[#allocation114_spill] sm:$0xff]  ;;  %v4365_v13 = vld [vmem:[#allocation7 + $0x78] sm:$0xff] }
 0x980   :  { %4666 = vtanh.f32 %v4035_v2  ;;  %v10522_v2 = vld [vmem:[#allocation92_spill] sm:$0xff] }
 0x981   :  { %4668 = vtanh.f32 %v3866_v8  ;;  %v10532_v8 = vld [vmem:[#allocation126_spill] sm:$0xff] }
 0x989   :  { %v4661_v22 = vpop.eup %4660 }
 0x98a   :  { %v4028_v54 = vmul.f32 0.5, %v4661_v22  ;;  %v10523_v22 = vld [vmem:[#allocation117_spill] sm:$0xff] }
 0x98b   :  { %v4663_v28 = vpop.eup %4662 }
 0x98c   :  { %v4029_v7 = vadd.f32 0.5, %v4028_v54  ;;  %v4032_v16 = vmul.f32 0.5, %v4663_v28  ;;  %v4665_v40 = vpop.eup %4664  ;;  %v10525_v28 = vld [vmem:[#allocation119_spill] sm:$0xff] }
 0x98d   :  { %v4667_v42 = vpop.eup %4666 }
 0x98e   :  { %v4033_v36 = vadd.f32 0.5, %v4032_v16  ;;  %v4040_v57 = vmul.f32 %v4665_v40, %v4029_v7  ;;  %v4037_v58 = vmul.f32 0.5, %v4667_v42  ;;  %v4669_v51 = vpop.eup %4668  ;;  %v10527_v7 = vld [vmem:[#allocation121_spill] sm:$0xff]  ;;  %v10528_v16 = vld [vmem:[#allocation122_spill] sm:$0xff]  ;;  %v10529_v40 = vld [vmem:[#allocation123_spill] sm:$0xff] }
 0x98f   :  { %v3868_v12 = vmul.f32 0.5, %v4669_v51 }
 0x990   :  { %v4039_v6 = vmul.f32 %v4033_v36, %v8451_v26  ;;  %v4038_v3 = vadd.f32 0.5, %v4037_v58  ;;  %v10538_v58 = vld [vmem:[#allocation132_spill] sm:$0xff] }
 0x991   :  { %v3869_v62 = vadd.f32 0.5, %v3868_v12 }
 0x992   :  { %v4041_v52 = vadd.f32 %v4040_v57, %v4039_v6  ;;  %v10531_v57 = vld [vmem:[#allocation125_spill] sm:$0xff]  ;;  %v10533_v6 = vld [vmem:[#allocation127_spill] sm:$0xff] }
 0x994   :  { %4670 = vtanh.f32 %v4041_v52  ;;  %v10535_v52 = vld [vmem:[#allocation129_spill] sm:$0xff] }
 0x995   :  { %4672 = vtanh.f32 %v3862_v25  ;;  %v10534_v25 = vld [vmem:[#allocation128_spill] sm:$0xff] }
 0x996   :  { %4674 = vtanh.f32 %v3860_v10  ;;  %v10537_v10 = vld [vmem:[#allocation131_spill] sm:$0xff] }
 0x997   :  { %4676 = vtanh.f32 %v3871_v32  ;;  %v4362_v32 = vld [vmem:[#allocation7 + $0x60] sm:$0xff] }
 0x9a1   :  { %v4671_v29 = vpop.eup %4670 }
 0x9a2   :  { %v4673_v9 = vpop.eup %4672  ;;  %v4043_v34 = vmul.f32 %v4671_v29, %v4038_v3  ;;  %v10539_v3 = vld [vmem:[#allocation133_spill] sm:$0xff]  ;;  %v10540_v29 = vld [vmem:[#allocation134_spill] sm:$0xff] }
 0x9a3   :  { %v3864_v26 = vmul.f32 0.5, %v4673_v9  ;;  %v10542_v9 = vld [vmem:[#allocation136_spill] sm:$0xff] }
 0x9a4   :  { %4109 = vmatmul.mubr.f32.vlgmr.msra.gmra.mxu0 %v4043_v34  ;;  %4180 = vmatmul.mubr.f32.vlgmr.msra.gmra.mxu1 %v4043_v34  ;;  %v10543_v34 = vld [vmem:[#allocation137_spill] sm:$0xff] }
 0x9a5   :  { %4187 = vmatpush1.msra.mxu0 %v8460_v14  ;;  %4258 = vmatpush1.msra.mxu1 %v8463_v63  ;;  %v3865_v45 = vadd.f32 0.5, %v3864_v26  ;;  %v3875_v14 = vmul.f32 %v3869_v62, %v8521_v61  ;;  %v4675_v63 = vpop.eup %4674  ;;  %v10511_v61 = vld [vmem:[#allocation97_spill] sm:$0xff]  ;;  %v10544_v26 = vld [vmem:[#allocation138_spill] sm:$0xff] }
 0x9a6   :  { %4188 = vmatprep.subr.mxu0 %v8466_v1  ;;  %4259 = vmatprep.subr.mxu1 %v8469_v48  ;;  %v10499_v48 = vld [vmem:[#allocation77_spill] sm:$0xff]  ;;  %v4677_v54 = vpop.eup %4676  ;;  %v4364_v62 = vld [vmem:[#allocation7 + $0x70] sm:$0xff] }
 0x9a7   :  { %4189 = vmatpush1.msra.mxu0 %v8472_v19  ;;  %4260 = vmatpush1.msra.mxu1 %v8475_v49  ;;  %v3876_v1 = vmul.f32 %v4675_v63, %v3865_v45  ;;  %v10500_v19 = vld [vmem:[#allocation78_spill] sm:$0xff]  ;;  %v10501_v49 = vld [vmem:[#allocation79_spill] sm:$0xff]  ;;  %v3873_v36 = vmul.f32 0.5, %v4677_v54  ;;  %v4363_v45 = vld [vmem:[#allocation7 + $0x68] sm:$0xff] }
 0x9a8   :  { %4190 = vmatprep.subr.mxu0 %v8478_v37  ;;  %4261 = vmatprep.subr.mxu1 %v8481_v27  ;;  %v10502_v37 = vld [vmem:[#allocation80_spill] sm:$0xff]  ;;  %v4360_v63 = vld [vmem:[#allocation7 + $0x50] sm:$0xff] }
 0x9a9   :  { %4191 = vmatpush1.msra.mxu0 %v8484_v59  ;;  %4262 = vmatpush1.msra.mxu1 %v8487_v35  ;;  %v8798_v27 = vadd.f32 %v3876_v1, %v3875_v14  ;;  %v10503_v59 = vld [vmem:[#allocation83_spill] sm:$0xff]  ;;  %v10504_v35 = vld [vmem:[#allocation82_spill] sm:$0xff]  ;;  %v3874_v51 = vadd.f32 0.5, %v3873_v36  ;;  %v4359_v1 = vld [vmem:[#allocation7 + $0x48] sm:$0xff] }
 0x9aa   :  { %4192 = vmatprep.subr.mxu0 %v8490_v39  ;;  %4263 = vmatprep.subr.mxu1 %v8493_v18  ;;  %v10505_v39 = vld [vmem:[#allocation84_spill] sm:$0xff]  ;;  %v10506_v18 = vld [vmem:[#allocation81_spill] sm:$0xff]  ;;  %v4361_v14 = vld [vmem:[#allocation7 + $0x58] sm:$0xff] }
 0x9ab   :  { %4193 = vmatpush1.msra.mxu0 %v8497_v33  ;;  %4264 = vmatpush1.msra.mxu1 %v8500_v21  ;;  %v10507_v33 = vld [vmem:[#allocation109_spill] sm:$0xff]  ;;  %v10508_v21 = vld [vmem:[#allocation110_spill] sm:$0xff]  ;;  %4678 = vtanh.f32 %v8798_v27 }
 0x9ac   :  { %4194 = vmatprep.subr.mxu0 %v8503_v11  ;;  %4265 = vmatprep.subr.mxu1 %v8506_v46  ;;  %v10509_v11 = vld [vmem:[#allocation111_spill] sm:$0xff]  ;;  %v10510_v46 = vld [vmem:[#allocation112_spill] sm:$0xff] }
 0x9ad   :  { %4195 = vmatpush1.msra.mxu0 %v10499_v48  ;;  %4266 = vmatpush1.msra.mxu1 %v10500_v19  ;;  %v4358_v48 = vld [vmem:[#allocation7 + $0x40] sm:$0xff]  ;;  %v4357_v19 = vld [vmem:[#allocation7 + $0x38] sm:$0xff] }
 0x9ae   :  { %4196 = vmatprep.subr.mxu0 %v10501_v49  ;;  %4267 = vmatprep.subr.mxu1 %v10502_v37  ;;  %v4356_v49 = vld [vmem:[#allocation7 + $0x30] sm:$0xff]  ;;  %v4355_v37 = vld [vmem:[#allocation7 + $0x28] sm:$0xff] }
 0x9af   :  { %4197 = vmatpush1.msra.mxu0 %v10503_v59  ;;  %4268 = vmatpush1.msra.mxu1 %v10504_v35  ;;  %v4354_v59 = vld [vmem:[#allocation7 + $0x20] sm:$0xff]  ;;  %v4353_v35 = vld [vmem:[#allocation7 + $0x18] sm:$0xff] }
 0x9b0   :  { %4198 = vmatprep.subr.mxu0 %v10505_v39  ;;  %4269 = vmatprep.subr.mxu1 %v10506_v18  ;;  %v4352_v39 = vld [vmem:[#allocation7 + $0x10] sm:$0xff]  ;;  %v4351_v18 = vld [vmem:[#allocation7 + $0x8] sm:$0xff] }
 0x9b1   :  { %4199 = vmatpush1.msra.mxu0 %v10507_v33  ;;  %4270 = vmatpush1.msra.mxu1 %v10508_v21  ;;  %v4350_v33 = vld [vmem:[#allocation7] sm:$0xff] }
 0x9b2   :  { %4200 = vmatprep.subr.mxu0 %v10509_v11  ;;  %4271 = vmatprep.subr.mxu1 %v10510_v46 }
 0x9b3   :  { %4201 = vmatpush1.msra.mxu0 %v10511_v61  ;;  %4272 = vmatpush1.msra.mxu1 %v10512_v60 }
 0x9b4   :  { %4202 = vmatprep.subr.mxu0 %v10513_v44  ;;  %4273 = vmatprep.subr.mxu1 %v10514_v53 }
 0x9b5   :  { %4203 = vmatpush1.msra.mxu0 %v10515_v55  ;;  %4274 = vmatpush1.msra.mxu1 %v10516_v56 }
 0x9b6   :  { %4204 = vmatprep.subr.mxu0 %v10517_v15  ;;  %4275 = vmatprep.subr.mxu1 %v10518_v38 }
 0x9b7   :  { %4205 = vmatpush1.msra.mxu0 %v10519_v17  ;;  %4276 = vmatpush1.msra.mxu1 %v10520_v43 }
 0x9b8   :  { %4206 = vmatprep.subr.mxu0 %v10521_v23  ;;  %4277 = vmatprep.subr.mxu1 %v10522_v2  ;;  %v4679_v42 = vpop.eup %4678 }
 0x9b9   :  { %4207 = vmatpush1.msra.mxu0 %v10523_v22  ;;  %4278 = vmatpush1.msra.mxu1 %v10524_v0  ;;  %v3879_v12 = vmul.f32 %v4679_v42, %v3874_v51 }
 0x9ba   :  { %4208 = vmatprep.subr.mxu0 %v10525_v28  ;;  %4279 = vmatprep.subr.mxu1 %v10526_v5 }
 0x9bb   :  { %4209 = vmatpush1.msra.mxu0 %v10527_v7  ;;  %4280 = vmatpush1.msra.mxu1 %v10528_v16 }
 0x9bc   :  { %4210 = vmatprep.subr.mxu0 %v10529_v40  ;;  %4281 = vmatprep.subr.mxu1 %v10530_v50 }
 0x9bd   :  { %4211 = vmatpush1.msra.mxu0 %v10531_v57  ;;  %4282 = vmatpush1.msra.mxu1 %v10532_v8 }
 0x9be   :  { %4212 = vmatprep.subr.mxu0 %v10533_v6  ;;  %4283 = vmatprep.subr.mxu1 %v10534_v25 }
 0x9bf   :  { %4213 = vmatpush1.msra.mxu0 %v10535_v52  ;;  %4284 = vmatpush1.msra.mxu1 %v10536_v31 }
 0x9c0   :  { %4214 = vmatprep.subr.mxu0 %v10537_v10  ;;  %4285 = vmatprep.subr.mxu1 %v10538_v58 }
 0x9c1   :  { %4215 = vmatpush1.msra.mxu0 %v10539_v3  ;;  %4286 = vmatpush1.msra.mxu1 %v10540_v29 }
 0x9c2   :  { %4216 = vmatprep.subr.mxu0 %v10541_v24  ;;  %4287 = vmatprep.subr.mxu1 %v10542_v9 }
 0x9c3   :  { %4217 = vmatpush1.msra.mxu0 %v10543_v34  ;;  %4250 = vmatprep.mubr.f32.mxu0 %v9568_v30 }
 0x9c4   :  { %4288 = vmatpush1.msra.mxu1 %v10544_v26  ;;  %4321 = vmatprep.mubr.f32.mxu1 %v9568_v30 }
 0x9c5   :  { %4251 = vmatmul.mubr.f32.vlgmr.msra.gmra.mxu0 %v3879_v12  ;;  %4322 = vmatmul.mubr.f32.vlgmr.msra.gmra.mxu1 %v3879_v12 }
 0x9c6   :  { %4485 = vmatprep.subr.mxu0 %v9568_v30  ;;  %4517 = vmatprep.mubr.msk.f32.mxu0 %vm5381_vm1, %v9568_v30 }
 0x9c7   :  { %4486 = vmatpush3.msra.mxu0 %v4365_v13 }
 0x9c8   :  { %4487 = vmatprep.subr.mxu0 %v9568_v30 }
 0x9c9   :  { %4488 = vmatpush3.msra.mxu0 %v4364_v62 }
 0x9ca   :  { %4489 = vmatprep.subr.mxu0 %v9568_v30 }
 0x9cb   :  { %4490 = vmatpush3.msra.mxu0 %v4363_v45 }
 0x9cc   :  { %4491 = vmatprep.subr.mxu0 %v9568_v30 }
 0x9cd   :  { %4492 = vmatpush3.msra.mxu0 %v4362_v32 }
 0x9ce   :  { %4493 = vmatprep.subr.mxu0 %v9568_v30 }
 0x9cf   :  { %4494 = vmatpush3.msra.mxu0 %v4361_v14 }
 0x9d0   :  { %4495 = vmatprep.subr.mxu0 %v9568_v30 }
 0x9d1   :  { %4496 = vmatpush3.msra.mxu0 %v4360_v63 }
 0x9d2   :  { %4497 = vmatprep.subr.mxu0 %v9568_v30 }
 0x9d3   :  { %4498 = vmatpush3.msra.mxu0 %v4359_v1 }
 0x9d4   :  { %4499 = vmatprep.subr.mxu0 %v9568_v30 }
 0x9d5   :  { %4500 = vmatpush3.msra.mxu0 %v4358_v48 }
 0x9d6   :  { %4501 = vmatprep.subr.mxu0 %v9568_v30 }
 0x9d7   :  { %4502 = vmatpush3.msra.mxu0 %v4357_v19 }
 0x9d8   :  { %4503 = vmatprep.subr.mxu0 %v9568_v30 }
 0x9d9   :  { %4504 = vmatpush3.msra.mxu0 %v4356_v49 }
 0x9da   :  { %4505 = vmatprep.subr.mxu0 %v9568_v30 }
 0x9db   :  { %4506 = vmatpush3.msra.mxu0 %v4355_v37 }
 0x9dc   :  { %4507 = vmatprep.subr.mxu0 %v9568_v30 }
 0x9dd   :  { %4508 = vmatpush3.msra.mxu0 %v4354_v59 }
 0x9de   :  { %4509 = vmatprep.subr.mxu0 %v9568_v30 }
 0x9df   :  { %4510 = vmatpush3.msra.mxu0 %v4353_v35 }
 0x9e0   :  { %4511 = vmatprep.subr.mxu0 %v9568_v30 }
 0x9e1   :  { %4512 = vmatpush3.msra.mxu0 %v4352_v39 }
 0x9e2   :  { %4513 = vmatprep.subr.mxu0 %v9568_v30 }
 0x9e3   :  { %4514 = vmatpush3.msra.mxu0 %v4351_v18 }
 0x9e4   :  { %4515 = vmatprep.subr.mxu0 %v9568_v30 }
 0x9e5   :  { %4516 = vmatpush3.msra.mxu0 %v4350_v33 }
 0xa64   :  { %v4110_v21 = vpop.f32.mrf.mxu0  ;;  %v4181_v11 = vpop.f32.mrf.mxu1 }
 0xa66   :  { %v4112_v46 = vpop.f32.mrf.mxu0  ;;  %v4183_v61 = vpop.f32.mrf.mxu1 }
 0xa85   :  { %v4252_v60 = vpop.f32.mrf.mxu0  ;;  %v4323_v53 = vpop.f32.mrf.mxu1 }
 0xa86   :  { %v4253_v44 = vadd.f32 %v4252_v60, %v4110_v21  ;;  %v4324_v17 = vadd.f32 %v4323_v53, %v4181_v11 }
 0xa87   :  { %v4254_v55 = vpop.f32.mrf.mxu0  ;;  %v4325_v2 = vpop.f32.mrf.mxu1 }
 0xa88   :  { %v4328_v56 = vadd.f32 %v4253_v44, %v6351_v47  ;;  %v4255_v15 = vadd.f32 %v4254_v55, %v4112_v46  ;;  %v4330_v30 = vadd.f32 %v4324_v17, %v6361_v4  ;;  %v4326_v22 = vadd.f32 %v4325_v2, %v4183_v61 }
 0xa8a   :  { %v4332_v38 = vmul.f32 0.5, %v4328_v56  ;;  %v4329_v43 = vadd.f32 %v4255_v15, %v6347_v41  ;;  %v4331_v0 = vadd.f32 %v4326_v22, %v6366_v20  ;;  %v4467_v20 = vld [vmem:[%s8881_s8] ss:$0 sm:$0xff] }
 0xa8c   :  { %4680 = vtanh.f32 %v4332_v38  ;;  %v4336_v23 = vmul.f32 0.5, %v4329_v43  ;;  %v4341_v54 = vmul.f32 0.5, %v4331_v0 }
 0xa8e   :  { %4682 = vtanh.f32 %v4336_v23 }
 0xa8f   :  { %4684 = vtanh.f32 %v4330_v30 }
 0xa90   :  { %4686 = vtanh.f32 %v4341_v54 }
 0xa99   :  { %v4681_v28 = vpop.eup %4680 }
 0xa9a   :  { %v4334_v5 = vmul.f32 0.5, %v4681_v28 }
 0xa9b   :  { %v4683_v7 = vpop.eup %4682 }
 0xa9c   :  { %v4335_v47 = vadd.f32 0.5, %v4334_v5  ;;  %v4338_v16 = vmul.f32 0.5, %v4683_v7  ;;  %v4685_v50 = vpop.eup %4684 }
 0xa9d   :  { %v4687_v4 = vpop.eup %4686 }
 0xa9e   :  { %v4339_v40 = vadd.f32 0.5, %v4338_v16  ;;  %v4346_v36 = vmul.f32 %v4685_v50, %v4335_v47  ;;  %v4343_v8 = vmul.f32 0.5, %v4687_v4 }
 0xaa0   :  { %v4345_v41 = vmul.f32 %v4339_v40, %v8798_v27  ;;  %v4344_v6 = vadd.f32 0.5, %v4343_v8 }
 0xaa2   :  { %v4347_v57 = vadd.f32 %v4346_v36, %v4345_v41 }
 0xaa4   :  { %4688 = vtanh.f32 %v4347_v57 }
 0xab1   :  { %v4689_v25 = vpop.eup %4688 }
 0xab2   :  { %v4349_v52 = vmul.f32 %v4689_v25, %v4344_v6 }
 0xab4   :  { %4518 = vmatmul.mubr.f32.vlgmr.msra.gmra.mxu0 %v4349_v52 }
 0xb74   :  { %v4439_v31 = vpop.f32.mrf.mxu0 }
 0xb75   :  { %v4440_v42 = vadd.f32 %v4467_v20, %v4439_v31 }
 0xb76   :  { %v4519_v10 = vpop.f32.mrf.mxu0 }
 0xb77   :  { %4443 = vst [vmem:[%s8882_s9] sm:$0xff] %v4440_v42 }
 0xb78   :  { %4448 = vsyncpa [#allocation3], 1 }
 0xb79   :  { %4449 = vsyncpa [#allocation5], 1 }
 0xb7a   :  { %4450 = vsyncpa [#allocation8], 1 }

</bundles_post_ra>
